<compile_context>
chip_gen: v7x
topology: tpu7x:2x2x1
jax: 0.10.0
libtpu: 0.0.40
codegen_flags: <defaults>
</compile_context>

<pallas_src>
import jax
import jax.numpy as jnp
from jax.experimental import pallas as pl
from jax.experimental.pallas import tpu as pltpu


def basic_block_kernel(x_ref, w1_ref, w2_ref, b1_ref, b2_ref, out_ref,
                       xpad_ref, mid_ref):
    # x_ref   : (1, H, W, C)          unpadded input (one batch element), f32
    # w1_ref  : (9*Cpad, C)           conv1 weight (BN1 scale folded), bf16,
    #                                 row index = (ky*3 + kx)*Cpad + c
    # w2_ref  : (9*Cpad, C)           conv2 weight (BN2 scale folded), bf16
    # b1/b2   : (1, C)                folded BN bias, f32
    # out_ref : (1, H, W, C)          f32
    # xpad_ref: (H+2, W+2, Cpad)      VMEM scratch: zero-padded input, bf16
    # mid_ref : (H+2, W+2, Cpad)      VMEM scratch: zero-padded intermediate, bf16
    H = out_ref.shape[1]
    W = out_ref.shape[2]
    C = out_ref.shape[3]          # inplanes == planes for this BasicBlock variant
    Cpad = xpad_ref.shape[2]

    # One-time init: zero both padded scratch buffers (1-pixel halo + channel-pad band).
    # The interior [1:H+1, 1:W+1, :C] is overwritten every grid step; everything else
    # stays zero. Correct because the grid axis is sequential ("arbitrary").
    @pl.when(pl.program_id(0) == 0)
    def _():
        xpad_ref[...] = jnp.zeros(xpad_ref.shape, xpad_ref.dtype)
        mid_ref[...] = jnp.zeros(mid_ref.shape, mid_ref.dtype)

    def conv3x3(pad_ref, w_ref):
        # 3x3, stride 1, pad 1 as ONE im2col matmul with a 2-D LHS:
        #   (H*W, 9*Cpad) bf16 x (9*Cpad, C) bf16 -> (H*W, C) f32.
        # Tap slots are Cpad wide, so the lane-axis concat is lane-aligned; the weight
        # rows for padded channels are zero.
        taps = [pad_ref[ky:ky + H, kx:kx + W, :]
                for ky in range(3) for kx in range(3)]
        patch = jnp.concatenate(taps, axis=-1).reshape(H * W, 9 * Cpad)
        return jax.lax.dot_general(
            patch, w_ref[...],
            (((1,), (0,)), ((), ())),
            preferred_element_type=jnp.float32)

    # ---- conv1 (BN1 scale pre-folded into w1) -> bias -> ReLU ----
    xpad_ref[1:H + 1, 1:W + 1, :C] = x_ref[0].astype(jnp.bfloat16)
    y1 = jnp.maximum(conv3x3(xpad_ref, w1_ref) + b1_ref[...], 0.0)     # (H*W, C) f32

    # ---- conv2 (BN2 scale pre-folded into w2) -> bias -> +identity -> ReLU ----
    mid_ref[1:H + 1, 1:W + 1, :C] = y1.reshape(H, W, C).astype(jnp.bfloat16)
    y2 = conv3x3(mid_ref, w2_ref).reshape(H, W, C) + b2_ref[...] + x_ref[0]
    out_ref[0] = jnp.maximum(y2, 0.0).astype(out_ref.dtype)


def fold_bn(gamma, beta, mean, var, eps=1e-5):
    gamma = gamma.astype(jnp.float32)
    beta = beta.astype(jnp.float32)
    mean = mean.astype(jnp.float32)
    var = var.astype(jnp.float32)
    scale = gamma / jnp.sqrt(var + eps)
    bias = beta - mean * scale
    return scale.reshape(1, -1), bias.reshape(1, -1)


def _round_up(x, m):
    return ((x + m - 1) // m) * m


def _prep_weight(w_oihw, scale_1c, cpad):
    # PyTorch conv weight (Cout, Cin, 3, 3) -> (3, 3, Cin, Cout); fold the BN scale into
    # the output channels (in f32, before the bf16 cast); zero-pad the per-tap channel
    # slot to cpad; flatten to (9*cpad, Cout) with row index (ky*3 + kx)*cpad + c.
    cout, cin = w_oihw.shape[0], w_oihw.shape[1]
    w = jnp.transpose(w_oihw.astype(jnp.float32), (2, 3, 1, 0))
    w = w * scale_1c.reshape(1, 1, 1, -1)
    w = jnp.pad(w, ((0, 0), (0, 0), (0, cpad - cin), (0, 0)))
    return w.reshape(9 * cpad, cout).astype(jnp.bfloat16)


@jax.jit
def basic_block_forward(x_nchw, w1_oihw, w2_oihw,
                        g1, be1, m1, v1, g2, be2, m2, v2):
    # NCHW -> NHWC (no host-side spatial padding; padding happens in VMEM inside kernel)
    x = jnp.transpose(x_nchw, (0, 2, 3, 1)).astype(jnp.float32)
    N, H, W, Cin = x.shape
    Cout = w1_oihw.shape[0]
    assert Cin == Cout, "residual add requires inplanes == planes"

    s1, b1 = fold_bn(g1, be1, m1, v1)
    s2, b2 = fold_bn(g2, be2, m2, v2)

    Cpad = _round_up(Cin, 128)   # lane-aligned per-tap channel slot (no-op for C >= 128)
    w1p = _prep_weight(w1_oihw, s1, Cpad)   # (9*Cpad, Cout) bf16, BN1 scale folded
    w2p = _prep_weight(w2_oihw, s2, Cpad)   # (9*Cpad, Cout) bf16, BN2 scale folded

    flops = 4 * N * H * W * 9 * Cin * Cout           # 2 convs, 2 flops/MAC (ignores pad)
    bytes_accessed = ((x.size + N * H * W * Cout) * 4
                      + (w1p.size + w2p.size) * 2 + (b1.size + b2.size) * 4)

    out = pl.pallas_call(
        basic_block_kernel,
        out_shape=jax.ShapeDtypeStruct((N, H, W, Cout), jnp.float32),
        grid_spec=pltpu.PrefetchScalarGridSpec(
            num_scalar_prefetch=0,
            grid=(N,),
            in_specs=[
                pl.BlockSpec((1, H, W, Cin), lambda n: (n, 0, 0, 0)),
                pl.BlockSpec((9 * Cpad, Cout), lambda n: (0, 0)),
                pl.BlockSpec((9 * Cpad, Cout), lambda n: (0, 0)),
                pl.BlockSpec((1, Cout), lambda n: (0, 0)),
                pl.BlockSpec((1, Cout), lambda n: (0, 0)),
            ],
            out_specs=pl.BlockSpec((1, H, W, Cout), lambda n: (n, 0, 0, 0)),
            scratch_shapes=[
                pltpu.VMEM((H + 2, W + 2, Cpad), jnp.bfloat16),
                pltpu.VMEM((H + 2, W + 2, Cpad), jnp.bfloat16),
            ],
        ),
        compiler_params=pltpu.CompilerParams(
            # "arbitrary": sequential grid so the first-step scratch init is seen by
            # every subsequent step (see header comment re v7x megacore + H-tiling).
            dimension_semantics=("arbitrary",),
            vmem_limit_bytes=32 * 1024 * 1024,
        ),
        cost_estimate=pl.CostEstimate(flops=flops, transcendentals=0,
                                      bytes_accessed=bytes_accessed),
    )(x, w1p, w2p, b1, b2)

    # NHWC -> NCHW
    return jnp.transpose(out, (0, 3, 1, 2))


def reference_forward(x_nchw, w1_oihw, w2_oihw, g1, be1, m1, v1, g2, be2, m2, v2,
                      eps=1e-5):
    """Pure-JAX reference (inference-mode BN), NCHW conv."""
    dn = ("NCHW", "OIHW", "NCHW")

    def bn(y, g, b, m, v):
        g = g.reshape(1, -1, 1, 1)
        b = b.reshape(1, -1, 1, 1)
        m = m.reshape(1, -1, 1, 1)
        v = v.reshape(1, -1, 1, 1)
        return (y - m) / jnp.sqrt(v + eps) * g + b

    out = jax.lax.conv_general_dilated(x_nchw, w1_oihw, (1, 1), ((1, 1), (1, 1)),
                                       dimension_numbers=dn)
    out = jnp.maximum(bn(out, g1, be1, m1, v1), 0.0)
    out = jax.lax.conv_general_dilated(out, w2_oihw, (1, 1), ((1, 1), (1, 1)),
                                       dimension_numbers=dn)
    out = bn(out, g2, be2, m2, v2) + x_nchw
    return jnp.maximum(out, 0.0)


if __name__ == "__main__":
    key = jax.random.PRNGKey(0)
    # Smallest channel width actually used by XNet_2_3_m's BasicBlocks is 64 (l1c);
    # inplanes == planes (stride=1, downsample=None), small spatial extent for the demo.
    N, C, H, W = 2, 64, 16, 16

    ks = jax.random.split(key, 12)
    x = jax.random.normal(ks[0], (N, C, H, W), jnp.float32)

    # ~ kaiming fan_out std = sqrt(2 / (9*C)) ≈ 0.059
    w1 = 0.06 * jax.random.normal(ks[1], (C, C, 3, 3), jnp.float32)   # conv1 weight (OIHW)
    w2 = 0.06 * jax.random.normal(ks[2], (C, C, 3, 3), jnp.float32)   # conv2 weight (OIHW)

    g1 = 1.0 + 0.1 * jax.random.normal(ks[3], (C,), jnp.float32)      # bn1 gamma
    be1 = 0.05 * jax.random.normal(ks[4], (C,), jnp.float32)          # bn1 beta
    m1 = 0.1 * jax.random.normal(ks[5], (C,), jnp.float32)            # bn1 running mean
    v1 = 0.5 + jnp.abs(jax.random.normal(ks[6], (C,), jnp.float32))   # bn1 running var

    g2 = 1.0 + 0.1 * jax.random.normal(ks[7], (C,), jnp.float32)
    be2 = 0.05 * jax.random.normal(ks[8], (C,), jnp.float32)
    m2 = 0.1 * jax.random.normal(ks[9], (C,), jnp.float32)
    v2 = 0.5 + jnp.abs(jax.random.normal(ks[10], (C,), jnp.float32))

    out = basic_block_forward(x, w1, w2, g1, be1, m1, v1, g2, be2, m2, v2)
    out = jax.block_until_ready(out)

    ref = reference_forward(x, w1, w2, g1, be1, m1, v1, g2, be2, m2, v2)
    ref = jax.block_until_ready(ref)

    assert out.shape == (N, C, H, W)
    # bf16 MXU operands across two chained convs -> looser tolerance than pure f32.
    assert jnp.allclose(out, ref, atol=5e-2, rtol=5e-2), (
        f"max abs err {jnp.max(jnp.abs(out - ref))}")

    print("KERNEL_OK")
</pallas_src>

<mosaic_0001>
module attributes {stable_mosaic.version = 11 : i64} {
  func.func @basic_block_kernel(%arg0: i32, %arg1: memref<1x16x16x64xf32, #tpu.memory_space<vmem>>, %arg2: memref<1152x64xbf16, #tpu.memory_space<vmem>>, %arg3: memref<1152x64xbf16, #tpu.memory_space<vmem>>, %arg4: memref<1x64xf32, #tpu.memory_space<vmem>>, %arg5: memref<1x64xf32, #tpu.memory_space<vmem>>, %arg6: memref<1x16x16x64xf32, #tpu.memory_space<vmem>>, %arg7: memref<18x18x128xbf16, #tpu.memory_space<vmem>>, %arg8: memref<18x18x128xbf16, #tpu.memory_space<vmem>>) attributes {dimension_semantics = [#tpu.dimension_semantics<arbitrary>], iteration_bounds = array<i64: 2>, scalar_prefetch = 0 : i64, scratch_operands = 2 : i64, tpu.core_type = #tpu.core_type<tc>, window_params = [{transform_indices = @transform_0, window_bounds = array<i64: 1, 16, 16, 64>}, {pipeline_mode = #tpu.pipeline_mode<synchronous>, transform_indices = @transform_1, window_bounds = array<i64: 1152, 64>}, {pipeline_mode = #tpu.pipeline_mode<synchronous>, transform_indices = @transform_2, window_bounds = array<i64: 1152, 64>}, {pipeline_mode = #tpu.pipeline_mode<synchronous>, transform_indices = @transform_3, window_bounds = array<i64: 1, 64>}, {pipeline_mode = #tpu.pipeline_mode<synchronous>, transform_indices = @transform_4, window_bounds = array<i64: 1, 64>}, {transform_indices = @transform_5, window_bounds = array<i64: 1, 16, 16, 64>}]} {
    %c0_i32 = arith.constant 0 : i32
    %0 = arith.cmpi eq, %arg0, %c0_i32 : i32
    %1 = arith.extui %0 : i1 to i32
    %c0_i32_0 = arith.constant 0 : i32
    %2 = arith.cmpi ne, %1, %c0_i32_0 : i32
    scf.if %2 {
      %cst_81 = arith.constant 0.000000e+00 : bf16
      %54 = vector.broadcast %cst_81 : bf16 to vector<18x18x128xbf16>
      %c0_82 = arith.constant 0 : index
      %c0_83 = arith.constant 0 : index
      %c0_84 = arith.constant 0 : index
      %55 = vector.load %arg7[%c0_82, %c0_83, %c0_84] : memref<18x18x128xbf16, #tpu.memory_space<vmem>>, vector<18x18x128xbf16>
      tpu.vector_store %arg7[%c0_82, %c0_83, %c0_84], %54 {strides = array<i32>} : memref<18x18x128xbf16, #tpu.memory_space<vmem>>, vector<18x18x128xbf16>,
      %cst_85 = arith.constant 0.000000e+00 : bf16
      %56 = vector.broadcast %cst_85 : bf16 to vector<18x18x128xbf16>
      %c0_86 = arith.constant 0 : index
      %c0_87 = arith.constant 0 : index
      %c0_88 = arith.constant 0 : index
      %57 = vector.load %arg8[%c0_86, %c0_87, %c0_88] : memref<18x18x128xbf16, #tpu.memory_space<vmem>>, vector<18x18x128xbf16>
      tpu.vector_store %arg8[%c0_86, %c0_87, %c0_88], %56 {strides = array<i32>} : memref<18x18x128xbf16, #tpu.memory_space<vmem>>, vector<18x18x128xbf16>,
    } else {
    }
    %c0 = arith.constant 0 : index
    %c0_1 = arith.constant 0 : index
    %c0_2 = arith.constant 0 : index
    %c0_3 = arith.constant 0 : index
    %3 = vector.load %arg1[%c0, %c0_1, %c0_2, %c0_3] : memref<1x16x16x64xf32, #tpu.memory_space<vmem>>, vector<1x16x16x64xf32>
    %4 = vector.shape_cast %3 : vector<1x16x16x64xf32> to vector<16x16x64xf32>
    %5 = arith.truncf %4 : vector<16x16x64xf32> to vector<16x16x64xbf16>
    %c1 = arith.constant 1 : index
    %c1_4 = arith.constant 1 : index
    %c0_5 = arith.constant 0 : index
    %6 = vector.load %arg7[%c1, %c1_4, %c0_5] : memref<18x18x128xbf16, #tpu.memory_space<vmem>>, vector<16x16x64xbf16>
    tpu.vector_store %arg7[%c1, %c1_4, %c0_5], %5 {strides = array<i32>} : memref<18x18x128xbf16, #tpu.memory_space<vmem>>, vector<16x16x64xbf16>,
    %c0_6 = arith.constant 0 : index
    %c0_7 = arith.constant 0 : index
    %c0_8 = arith.constant 0 : index
    %7 = vector.load %arg7[%c0_6, %c0_7, %c0_8] : memref<18x18x128xbf16, #tpu.memory_space<vmem>>, vector<16x16x128xbf16>
    %c0_9 = arith.constant 0 : index
    %c1_10 = arith.constant 1 : index
    %c0_11 = arith.constant 0 : index
    %8 = vector.load %arg7[%c0_9, %c1_10, %c0_11] : memref<18x18x128xbf16, #tpu.memory_space<vmem>>, vector<16x16x128xbf16>
    %c0_12 = arith.constant 0 : index
    %c2 = arith.constant 2 : index
    %c0_13 = arith.constant 0 : index
    %9 = vector.load %arg7[%c0_12, %c2, %c0_13] : memref<18x18x128xbf16, #tpu.memory_space<vmem>>, vector<16x16x128xbf16>
    %c1_14 = arith.constant 1 : index
    %c0_15 = arith.constant 0 : index
    %c0_16 = arith.constant 0 : index
    %10 = vector.load %arg7[%c1_14, %c0_15, %c0_16] : memref<18x18x128xbf16, #tpu.memory_space<vmem>>, vector<16x16x128xbf16>
    %c1_17 = arith.constant 1 : index
    %c1_18 = arith.constant 1 : index
    %c0_19 = arith.constant 0 : index
    %11 = vector.load %arg7[%c1_17, %c1_18, %c0_19] : memref<18x18x128xbf16, #tpu.memory_space<vmem>>, vector<16x16x128xbf16>
    %c1_20 = arith.constant 1 : index
    %c2_21 = arith.constant 2 : index
    %c0_22 = arith.constant 0 : index
    %12 = vector.load %arg7[%c1_20, %c2_21, %c0_22] : memref<18x18x128xbf16, #tpu.memory_space<vmem>>, vector<16x16x128xbf16>
    %c2_23 = arith.constant 2 : index
    %c0_24 = arith.constant 0 : index
    %c0_25 = arith.constant 0 : index
    %13 = vector.load %arg7[%c2_23, %c0_24, %c0_25] : memref<18x18x128xbf16, #tpu.memory_space<vmem>>, vector<16x16x128xbf16>
    %c2_26 = arith.constant 2 : index
    %c1_27 = arith.constant 1 : index
    %c0_28 = arith.constant 0 : index
    %14 = vector.load %arg7[%c2_26, %c1_27, %c0_28] : memref<18x18x128xbf16, #tpu.memory_space<vmem>>, vector<16x16x128xbf16>
    %c2_29 = arith.constant 2 : index
    %c2_30 = arith.constant 2 : index
    %c0_31 = arith.constant 0 : index
    %15 = vector.load %arg7[%c2_29, %c2_30, %c0_31] : memref<18x18x128xbf16, #tpu.memory_space<vmem>>, vector<16x16x128xbf16>
    %16 = tpu.concatenate %7, %8, %9, %10, %11, %12, %13, %14, %15 in 2 : vector<16x16x128xbf16>, vector<16x16x128xbf16>, vector<16x16x128xbf16>, vector<16x16x128xbf16>, vector<16x16x128xbf16>, vector<16x16x128xbf16>, vector<16x16x128xbf16>, vector<16x16x128xbf16>, vector<16x16x128xbf16> -> vector<16x16x1152xbf16>
    %17 = vector.shape_cast %16 : vector<16x16x1152xbf16> to vector<256x1152xbf16>
    %c0_32 = arith.constant 0 : index
    %c0_33 = arith.constant 0 : index
    %18 = vector.load %arg2[%c0_32, %c0_33] : memref<1152x64xbf16, #tpu.memory_space<vmem>>, vector<1152x64xbf16>
    %cst = arith.constant dense<0.000000e+00> : vector<256x64xf32>
    %19 = tpu.matmul %17, %18, %cst {dimension_numbers = #tpu.dot_dimension_numbers<[1], [0], [0], [1], [0, 0, 1, 1], [], []>} : vector<256x1152xbf16>, vector<1152x64xbf16>, vector<256x64xf32> -> vector<256x64xf32>
    %c0_34 = arith.constant 0 : index
    %c0_35 = arith.constant 0 : index
    %20 = vector.load %arg4[%c0_34, %c0_35] : memref<1x64xf32, #tpu.memory_space<vmem>>, vector<1x64xf32>
    %21 = vector.broadcast %20 : vector<1x64xf32> to vector<256x64xf32>
    %22 = arith.addf %19, %21 : vector<256x64xf32>
    %cst_36 = arith.constant 0.000000e+00 : f32
    %23 = vector.broadcast %cst_36 : f32 to vector<256x64xf32>
    %24 = arith.maximumf %22, %23 : vector<256x64xf32>
    %25 = vector.shape_cast %24 : vector<256x64xf32> to vector<16x16x64xf32>
    %26 = arith.truncf %25 : vector<16x16x64xf32> to vector<16x16x64xbf16>
    %c1_37 = arith.constant 1 : index
    %c1_38 = arith.constant 1 : index
    %c0_39 = arith.constant 0 : index
    %27 = vector.load %arg8[%c1_37, %c1_38, %c0_39] : memref<18x18x128xbf16, #tpu.memory_space<vmem>>, vector<16x16x64xbf16>
    tpu.vector_store %arg8[%c1_37, %c1_38, %c0_39], %26 {strides = array<i32>} : memref<18x18x128xbf16, #tpu.memory_space<vmem>>, vector<16x16x64xbf16>,
    %c0_40 = arith.constant 0 : index
    %c0_41 = arith.constant 0 : index
    %c0_42 = arith.constant 0 : index
    %28 = vector.load %arg8[%c0_40, %c0_41, %c0_42] : memref<18x18x128xbf16, #tpu.memory_space<vmem>>, vector<16x16x128xbf16>
    %c0_43 = arith.constant 0 : index
    %c1_44 = arith.constant 1 : index
    %c0_45 = arith.constant 0 : index
    %29 = vector.load %arg8[%c0_43, %c1_44, %c0_45] : memref<18x18x128xbf16, #tpu.memory_space<vmem>>, vector<16x16x128xbf16>
    %c0_46 = arith.constant 0 : index
    %c2_47 = arith.constant 2 : index
    %c0_48 = arith.constant 0 : index
    %30 = vector.load %arg8[%c0_46, %c2_47, %c0_48] : memref<18x18x128xbf16, #tpu.memory_space<vmem>>, vector<16x16x128xbf16>
    %c1_49 = arith.constant 1 : index
    %c0_50 = arith.constant 0 : index
    %c0_51 = arith.constant 0 : index
    %31 = vector.load %arg8[%c1_49, %c0_50, %c0_51] : memref<18x18x128xbf16, #tpu.memory_space<vmem>>, vector<16x16x128xbf16>
    %c1_52 = arith.constant 1 : index
    %c1_53 = arith.constant 1 : index
    %c0_54 = arith.constant 0 : index
    %32 = vector.load %arg8[%c1_52, %c1_53, %c0_54] : memref<18x18x128xbf16, #tpu.memory_space<vmem>>, vector<16x16x128xbf16>
    %c1_55 = arith.constant 1 : index
    %c2_56 = arith.constant 2 : index
    %c0_57 = arith.constant 0 : index
    %33 = vector.load %arg8[%c1_55, %c2_56, %c0_57] : memref<18x18x128xbf16, #tpu.memory_space<vmem>>, vector<16x16x128xbf16>
    %c2_58 = arith.constant 2 : index
    %c0_59 = arith.constant 0 : index
    %c0_60 = arith.constant 0 : index
    %34 = vector.load %arg8[%c2_58, %c0_59, %c0_60] : memref<18x18x128xbf16, #tpu.memory_space<vmem>>, vector<16x16x128xbf16>
    %c2_61 = arith.constant 2 : index
    %c1_62 = arith.constant 1 : index
    %c0_63 = arith.constant 0 : index
    %35 = vector.load %arg8[%c2_61, %c1_62, %c0_63] : memref<18x18x128xbf16, #tpu.memory_space<vmem>>, vector<16x16x128xbf16>
    %c2_64 = arith.constant 2 : index
    %c2_65 = arith.constant 2 : index
    %c0_66 = arith.constant 0 : index
    %36 = vector.load %arg8[%c2_64, %c2_65, %c0_66] : memref<18x18x128xbf16, #tpu.memory_space<vmem>>, vector<16x16x128xbf16>
    %37 = tpu.concatenate %28, %29, %30, %31, %32, %33, %34, %35, %36 in 2 : vector<16x16x128xbf16>, vector<16x16x128xbf16>, vector<16x16x128xbf16>, vector<16x16x128xbf16>, vector<16x16x128xbf16>, vector<16x16x128xbf16>, vector<16x16x128xbf16>, vector<16x16x128xbf16>, vector<16x16x128xbf16> -> vector<16x16x1152xbf16>
    %38 = vector.shape_cast %37 : vector<16x16x1152xbf16> to vector<256x1152xbf16>
    %c0_67 = arith.constant 0 : index
    %c0_68 = arith.constant 0 : index
    %39 = vector.load %arg3[%c0_67, %c0_68] : memref<1152x64xbf16, #tpu.memory_space<vmem>>, vector<1152x64xbf16>
    %cst_69 = arith.constant dense<0.000000e+00> : vector<256x64xf32>
    %40 = tpu.matmul %38, %39, %cst_69 {dimension_numbers = #tpu.dot_dimension_numbers<[1], [0], [0], [1], [0, 0, 1, 1], [], []>} : vector<256x1152xbf16>, vector<1152x64xbf16>, vector<256x64xf32> -> vector<256x64xf32>
    %41 = vector.shape_cast %40 : vector<256x64xf32> to vector<16x16x64xf32>
    %c0_70 = arith.constant 0 : index
    %c0_71 = arith.constant 0 : index
    %42 = vector.load %arg5[%c0_70, %c0_71] : memref<1x64xf32, #tpu.memory_space<vmem>>, vector<1x64xf32>
    %43 = vector.shape_cast %42 : vector<1x64xf32> to vector<1x1x64xf32>
    %44 = vector.broadcast %43 : vector<1x1x64xf32> to vector<16x16x64xf32>
    %45 = arith.addf %41, %44 : vector<16x16x64xf32>
    %c0_72 = arith.constant 0 : index
    %c0_73 = arith.constant 0 : index
    %c0_74 = arith.constant 0 : index
    %c0_75 = arith.constant 0 : index
    %46 = vector.load %arg1[%c0_72, %c0_73, %c0_74, %c0_75] : memref<1x16x16x64xf32, #tpu.memory_space<vmem>>, vector<1x16x16x64xf32>
    %47 = vector.shape_cast %46 : vector<1x16x16x64xf32> to vector<16x16x64xf32>
    %48 = arith.addf %45, %47 : vector<16x16x64xf32>
    %cst_76 = arith.constant 0.000000e+00 : f32
    %49 = vector.broadcast %cst_76 : f32 to vector<16x16x64xf32>
    %50 = arith.maximumf %48, %49 : vector<16x16x64xf32>
    %c0_77 = arith.constant 0 : index
    %c0_78 = arith.constant 0 : index
    %c0_79 = arith.constant 0 : index
    %c0_80 = arith.constant 0 : index
    %51 = vector.load %arg6[%c0_77, %c0_78, %c0_79, %c0_80] : memref<1x16x16x64xf32, #tpu.memory_space<vmem>>, vector<1x16x16x64xf32>
    %52 = vector.shape_cast %51 : vector<1x16x16x64xf32> to vector<16x16x64xf32>
    %53 = vector.shape_cast %50 : vector<16x16x64xf32> to vector<1x16x16x64xf32>
    tpu.vector_store %arg6[%c0_77, %c0_78, %c0_79, %c0_80], %53 {strides = array<i32>} : memref<1x16x16x64xf32, #tpu.memory_space<vmem>>, vector<1x16x16x64xf32>,
    return
  }
  func.func @transform_0(%arg0: i32) -> (i32, i32, i32, i32) {
    %c0_i32 = arith.constant 0 : i32
    %c0_i32_0 = arith.constant 0 : i32
    %c0_i32_1 = arith.constant 0 : i32
    %c0_i32_2 = arith.constant 0 : i32
    return %arg0, %c0_i32, %c0_i32_0, %c0_i32_1 : i32, i32, i32, i32
  }
  func.func @transform_1(%arg0: i32) -> (i32, i32) {
    %c0_i32 = arith.constant 0 : i32
    %c0_i32_0 = arith.constant 0 : i32
    %c0_i32_1 = arith.constant 0 : i32
    return %c0_i32, %c0_i32_0 : i32, i32
  }
  func.func @transform_2(%arg0: i32) -> (i32, i32) {
    %c0_i32 = arith.constant 0 : i32
    %c0_i32_0 = arith.constant 0 : i32
    %c0_i32_1 = arith.constant 0 : i32
    return %c0_i32, %c0_i32_0 : i32, i32
  }
  func.func @transform_3(%arg0: i32) -> (i32, i32) {
    %c0_i32 = arith.constant 0 : i32
    %c0_i32_0 = arith.constant 0 : i32
    %c0_i32_1 = arith.constant 0 : i32
    return %c0_i32, %c0_i32_0 : i32, i32
  }
  func.func @transform_4(%arg0: i32) -> (i32, i32) {
    %c0_i32 = arith.constant 0 : i32
    %c0_i32_0 = arith.constant 0 : i32
    %c0_i32_1 = arith.constant 0 : i32
    return %c0_i32, %c0_i32_0 : i32, i32
  }
  func.func @transform_5(%arg0: i32) -> (i32, i32, i32, i32) {
    %c0_i32 = arith.constant 0 : i32
    %c0_i32_0 = arith.constant 0 : i32
    %c0_i32_1 = arith.constant 0 : i32
    %c0_i32_2 = arith.constant 0 : i32
    return %arg0, %c0_i32, %c0_i32_0, %c0_i32_1 : i32, i32, i32, i32
  }
}

</mosaic_0001>

<bundles_post_ra>
// kernel: basic_block_forward.1
= control target key start
LH: loop header
LB: loop body
LE: loop exit
PB: predicated region body
PF: predicated region fallthrough
CT: control target
= control target key end

     0   :  { %10 = vsyncpa [#allocation5], 0  ;;  %s13066_s0 = inlined_call_operand.vmem [shape: f32[2,16,16,64], index: 0, kind: input, shape index: {}]   ;;  %s13067_s1 = inlined_call_operand.vmem [shape: bf16[1152,64], index: 1, kind: input, shape index: {}]   ;;  %s13068_s2 = inlined_call_operand.vmem [shape: bf16[1152,64], index: 2, kind: input, shape index: {}]   ;;  %s13069_s3 = inlined_call_operand.vmem [shape: f32[1,64], index: 3, kind: input, shape index: {}]   ;;  %s13070_s4 = inlined_call_operand.vmem [shape: f32[1,64], index: 4, kind: input, shape index: {}]   ;;  %s13071_s5 = inlined_call_operand.hbm [shape: f32[2,16,16,64], index: 5, kind: output, shape index: {}]  }
   0x1   :  { %12 = vsyncpa [#allocation5 + $0x1], 0  ;;  %s9849_s18 = smov 0   ;;  %s9851_s19 = smov 0  }
   0x2   :  { %s9853_s20 = smov 0   ;;  %s9855_s21 = smov 0  }
   0x3 LB: > { %s9870_s22 = sadd.s32 4294967295, %s9813_s21   ;;  %s7652_s23 = sadd.s32 4294967294, %s9813_s21   ;;  %s9813_s21 = sphi %s9855_s21, %s13283_s21   ;;  %s9809_s20 = sphi %s9853_s20, %s13282_s20   ;;  %s9805_s19 = sphi %s9851_s19, %s13281_s19   ;;  %s9801_s18 = sphi %s9849_s18, %s13280_s18  }
   0x4   : > { %s9874_s24 = sadd.s32 1, %s9813_s21   ;;  %s135_s25 = sadd.s32 1, %s9809_s20 }
   0x5   : > { %s132_s26 = ssub.s32 %s9813_s21, %s9874_s24  ;;  %p145_p0 = scmp.ne.s32.totalorder %s9809_s20, %s9805_s19 }
   0x6   : > { %p133_p1 = scmp.eq.s32.totalorder %s132_s26, 0  ;;  %p146_p2 = scmp.eq.s32.totalorder %s9870_s22, 1 }
   0x7   : > { %p151_p3 = scmp.ne.s32.totalorder %s9805_s19, %s9801_s18  ;;  %p152_p4 = scmp.eq.s32.totalorder %s7652_s23, 1 }
   0x8   : > { %s9885_s27 = scalar_select %p133_p1, %s9809_s20, %s135_s25  }
   0x9   : > { %p9887_p5 = por %p146_p2, %p145_p0  ;;  %p9891_p6 = por %p152_p4, %p151_p3 }
   0xa   : > { %p7655_p7 = scmp.ge.s32.totalorder %s9813_s21, 1  ;;  %p190_p8 = scmp.lt.s32.totalorder %s9813_s21, 3 }
   0xc   : > { %p191_p9 = pnand %p7655_p7, %p190_p8 }
   0xe   : > { %194 = sbr.rel (%p191_p9) target bundleno = 1193 (0x4a9), region = 40 }
  0x15   : > { %s215_s30 = sand.u32 1, %s9805_s19   ;;  %p218_p10 = scmp.lt.s32.totalorder %s9870_s22, 1 }
  0x16   : > { %s7656_s6 = sshll.u32 %s215_s30, 8  ;;  %p7659_p11 = scmp.ne.s32.totalorder %s9870_s22, 0 }
  0x17   : > { %s219_s7 = scalar_select %p218_p10, %s9870_s22, 1 }
  0x18   : > { %s9907_s12 = scalar_lea.vmem [#allocation4], %s7656_s6  ;;  %227 = sbr.rel (%p7659_p11) target bundleno = 79 (0x4f), region = 44  ;;  %v9815_v0 = vmov (!%p7659_p11), 0  }
  0x19   : > { %s8163_s8 = sshll.u32 %s219_s7, 8  ;;  %228 = vst [vmem:[#allocation2] sm:$0xf] (!%p7659_p11), %v9815_v0  ;;  %229 = vst [vmem:[#allocation2 + $0x4] sm:$0xf] (!%p7659_p11), %v9815_v0 }
  0x1a   : > { %s9905_s11 = scalar_lea.vmem %s13066_s0, %s8163_s8  ;;  %230 = vst [vmem:[#allocation2 + $0x8] sm:$0x1] (!%p7659_p11), %v9815_v0  ;;  %231 = vst [vmem:[#allocation2 + $0xc] sm:$0xf] (!%p7659_p11), %v9815_v0 }
  0x1b   : > { %232 = vst [vmem:[#allocation2 + $0x10] sm:$0xf] (!%p7659_p11), %v9815_v0  ;;  %233 = vst [vmem:[#allocation2 + $0x14] sm:$0x1] (!%p7659_p11), %v9815_v0 }
  0x1c   : > { %234 = vst [vmem:[#allocation2 + $0x18] sm:$0xf] (!%p7659_p11), %v9815_v0  ;;  %235 = vst [vmem:[#allocation2 + $0x1c] sm:$0xf] (!%p7659_p11), %v9815_v0 }
  0x1d   : > { %236 = vst [vmem:[#allocation2 + $0x20] sm:$0x1] (!%p7659_p11), %v9815_v0  ;;  %237 = vst [vmem:[#allocation2 + $0x24] sm:$0xf] (!%p7659_p11), %v9815_v0 }
  0x1e   : > { %238 = vst [vmem:[#allocation2 + $0x28] sm:$0xf] (!%p7659_p11), %v9815_v0  ;;  %239 = vst [vmem:[#allocation2 + $0x2c] sm:$0x1] (!%p7659_p11), %v9815_v0 }
  0x1f   : > { %240 = vst [vmem:[#allocation2 + $0x30] sm:$0xf] %v9815_v0  ;;  %241 = vst [vmem:[#allocation2 + $0x34] sm:$0xf] %v9815_v0 }
  0x20   : > { %242 = vst [vmem:[#allocation2 + $0x38] sm:$0x1] %v9815_v0  ;;  %243 = vst [vmem:[#allocation2 + $0x3c] sm:$0xf] %v9815_v0 }
  0x21   : > { %244 = vst [vmem:[#allocation2 + $0x40] sm:$0xf] %v9815_v0  ;;  %245 = vst [vmem:[#allocation2 + $0x44] sm:$0x1] %v9815_v0 }
  0x22   : > { %246 = vst [vmem:[#allocation2 + $0x48] sm:$0xf] %v9815_v0  ;;  %247 = vst [vmem:[#allocation2 + $0x4c] sm:$0xf] %v9815_v0 }
  0x23   : > { %248 = vst [vmem:[#allocation2 + $0x50] sm:$0x1] %v9815_v0  ;;  %249 = vst [vmem:[#allocation2 + $0x54] sm:$0xf] %v9815_v0 }
  0x24   : > { %250 = vst [vmem:[#allocation2 + $0x58] sm:$0xf] %v9815_v0  ;;  %251 = vst [vmem:[#allocation2 + $0x5c] sm:$0x1] %v9815_v0 }
  0x25   : > { %252 = vst [vmem:[#allocation2 + $0x60] sm:$0xf] %v9815_v0  ;;  %253 = vst [vmem:[#allocation2 + $0x64] sm:$0xf] %v9815_v0 }
  0x26   : > { %254 = vst [vmem:[#allocation2 + $0x68] sm:$0x1] %v9815_v0  ;;  %255 = vst [vmem:[#allocation2 + $0x6c] sm:$0xf] %v9815_v0 }
  0x27   : > { %256 = vst [vmem:[#allocation2 + $0x70] sm:$0xf] %v9815_v0  ;;  %257 = vst [vmem:[#allocation2 + $0x74] sm:$0x1] %v9815_v0 }
  0x28   : > { %258 = vst [vmem:[#allocation2 + $0x78] sm:$0xf] %v9815_v0  ;;  %259 = vst [vmem:[#allocation2 + $0x7c] sm:$0xf] %v9815_v0 }
  0x29   : > { %260 = vst [vmem:[#allocation2 + $0x80] sm:$0x1] %v9815_v0  ;;  %261 = vst [vmem:[#allocation2 + $0x84] sm:$0xf] %v9815_v0 }
  0x2a   : > { %262 = vst [vmem:[#allocation2 + $0x88] sm:$0xf] %v9815_v0  ;;  %263 = vst [vmem:[#allocation2 + $0x8c] sm:$0x1] %v9815_v0 }
  0x2b   : > { %264 = vst [vmem:[#allocation2 + $0x90] sm:$0xf] %v9815_v0  ;;  %265 = vst [vmem:[#allocation2 + $0x94] sm:$0xf] %v9815_v0 }
  0x2c   : > { %266 = vst [vmem:[#allocation2 + $0x98] sm:$0x1] %v9815_v0  ;;  %267 = vst [vmem:[#allocation2 + $0x9c] sm:$0xf] %v9815_v0 }
  0x2d   : > { %268 = vst [vmem:[#allocation2 + $0xa0] sm:$0xf] %v9815_v0  ;;  %269 = vst [vmem:[#allocation2 + $0xa4] sm:$0x1] %v9815_v0 }
  0x2e   : > { %270 = vst [vmem:[#allocation2 + $0xa8] sm:$0xf] %v9815_v0  ;;  %271 = vst [vmem:[#allocation2 + $0xac] sm:$0xf] %v9815_v0 }
  0x2f   : > { %272 = vst [vmem:[#allocation2 + $0xb0] sm:$0x1] %v9815_v0  ;;  %273 = vst [vmem:[#allocation2 + $0xb4] sm:$0xf] %v9815_v0 }
  0x30   : > { %274 = vst [vmem:[#allocation2 + $0xb8] sm:$0xf] %v9815_v0  ;;  %275 = vst [vmem:[#allocation2 + $0xbc] sm:$0x1] %v9815_v0 }
  0x31   : > { %276 = vst [vmem:[#allocation2 + $0xc0] sm:$0xf] %v9815_v0  ;;  %277 = vst [vmem:[#allocation2 + $0xc4] sm:$0xf] %v9815_v0 }
  0x32   : > { %278 = vst [vmem:[#allocation2 + $0xc8] sm:$0x1] %v9815_v0  ;;  %279 = vst [vmem:[#allocation2 + $0xcc] sm:$0xf] %v9815_v0 }
  0x33   : > { %280 = vst [vmem:[#allocation2 + $0xd0] sm:$0xf] %v9815_v0  ;;  %281 = vst [vmem:[#allocation2 + $0xd4] sm:$0x1] %v9815_v0 }
  0x34   : > { %282 = vst [vmem:[#allocation3] sm:$0xf] %v9815_v0  ;;  %283 = vst [vmem:[#allocation3 + $0x4] sm:$0xf] %v9815_v0 }
  0x35   : > { %284 = vst [vmem:[#allocation3 + $0x8] sm:$0x1] %v9815_v0  ;;  %285 = vst [vmem:[#allocation3 + $0xc] sm:$0xf] %v9815_v0 }
  0x36   : > { %286 = vst [vmem:[#allocation3 + $0x10] sm:$0xf] %v9815_v0  ;;  %287 = vst [vmem:[#allocation3 + $0x14] sm:$0x1] %v9815_v0 }
  0x37   : > { %288 = vst [vmem:[#allocation3 + $0x18] sm:$0xf] %v9815_v0  ;;  %289 = vst [vmem:[#allocation3 + $0x1c] sm:$0xf] %v9815_v0 }
  0x38   : > { %290 = vst [vmem:[#allocation3 + $0x20] sm:$0x1] %v9815_v0  ;;  %291 = vst [vmem:[#allocation3 + $0x24] sm:$0xf] %v9815_v0 }
  0x39   : > { %292 = vst [vmem:[#allocation3 + $0x28] sm:$0xf] %v9815_v0  ;;  %293 = vst [vmem:[#allocation3 + $0x2c] sm:$0x1] %v9815_v0 }
  0x3a   : > { %294 = vst [vmem:[#allocation3 + $0x30] sm:$0xf] %v9815_v0  ;;  %295 = vst [vmem:[#allocation3 + $0x34] sm:$0xf] %v9815_v0 }
  0x3b   : > { %296 = vst [vmem:[#allocation3 + $0x38] sm:$0x1] %v9815_v0  ;;  %297 = vst [vmem:[#allocation3 + $0x3c] sm:$0xf] %v9815_v0 }
  0x3c   : > { %298 = vst [vmem:[#allocation3 + $0x40] sm:$0xf] %v9815_v0  ;;  %299 = vst [vmem:[#allocation3 + $0x44] sm:$0x1] %v9815_v0 }
  0x3d   : > { %300 = vst [vmem:[#allocation3 + $0x48] sm:$0xf] %v9815_v0  ;;  %301 = vst [vmem:[#allocation3 + $0x4c] sm:$0xf] %v9815_v0 }
  0x3e   : > { %302 = vst [vmem:[#allocation3 + $0x50] sm:$0x1] %v9815_v0  ;;  %303 = vst [vmem:[#allocation3 + $0x54] sm:$0xf] %v9815_v0 }
  0x3f   : > { %304 = vst [vmem:[#allocation3 + $0x58] sm:$0xf] %v9815_v0  ;;  %305 = vst [vmem:[#allocation3 + $0x5c] sm:$0x1] %v9815_v0 }
  0x40   : > { %306 = vst [vmem:[#allocation3 + $0x60] sm:$0xf] %v9815_v0  ;;  %307 = vst [vmem:[#allocation3 + $0x64] sm:$0xf] %v9815_v0 }
  0x41   : > { %308 = vst [vmem:[#allocation3 + $0x68] sm:$0x1] %v9815_v0  ;;  %309 = vst [vmem:[#allocation3 + $0x6c] sm:$0xf] %v9815_v0 }
  0x42   : > { %310 = vst [vmem:[#allocation3 + $0x70] sm:$0xf] %v9815_v0  ;;  %311 = vst [vmem:[#allocation3 + $0x74] sm:$0x1] %v9815_v0 }
  0x43   : > { %312 = vst [vmem:[#allocation3 + $0x78] sm:$0xf] %v9815_v0  ;;  %313 = vst [vmem:[#allocation3 + $0x7c] sm:$0xf] %v9815_v0 }
  0x44   : > { %314 = vst [vmem:[#allocation3 + $0x80] sm:$0x1] %v9815_v0  ;;  %315 = vst [vmem:[#allocation3 + $0x84] sm:$0xf] %v9815_v0 }
  0x45   : > { %316 = vst [vmem:[#allocation3 + $0x88] sm:$0xf] %v9815_v0  ;;  %317 = vst [vmem:[#allocation3 + $0x8c] sm:$0x1] %v9815_v0 }
  0x46   : > { %318 = vst [vmem:[#allocation3 + $0x90] sm:$0xf] %v9815_v0  ;;  %319 = vst [vmem:[#allocation3 + $0x94] sm:$0xf] %v9815_v0 }
  0x47   : > { %320 = vst [vmem:[#allocation3 + $0x98] sm:$0x1] %v9815_v0  ;;  %321 = vst [vmem:[#allocation3 + $0x9c] sm:$0xf] %v9815_v0 }
  0x48   : > { %322 = vst [vmem:[#allocation3 + $0xa0] sm:$0xf] %v9815_v0  ;;  %323 = vst [vmem:[#allocation3 + $0xa4] sm:$0x1] %v9815_v0 }
  0x49   : > { %324 = vst [vmem:[#allocation3 + $0xa8] sm:$0xf] %v9815_v0  ;;  %325 = vst [vmem:[#allocation3 + $0xac] sm:$0xf] %v9815_v0 }
  0x4a   : > { %326 = vst [vmem:[#allocation3 + $0xb0] sm:$0x1] %v9815_v0  ;;  %327 = vst [vmem:[#allocation3 + $0xb4] sm:$0xf] %v9815_v0 }
  0x4b   : > { %328 = vst [vmem:[#allocation3 + $0xb8] sm:$0xf] %v9815_v0  ;;  %329 = vst [vmem:[#allocation3 + $0xbc] sm:$0x1] %v9815_v0 }
  0x4c   : > { %330 = vst [vmem:[#allocation3 + $0xc0] sm:$0xf] %v9815_v0  ;;  %331 = vst [vmem:[#allocation3 + $0xc4] sm:$0xf] %v9815_v0 }
  0x4d   : > { %332 = vst [vmem:[#allocation3 + $0xc8] sm:$0x1] %v9815_v0  ;;  %333 = vst [vmem:[#allocation3 + $0xcc] sm:$0xf] %v9815_v0 }
  0x4e   : > { %334 = vst [vmem:[#allocation3 + $0xd0] sm:$0xf] %v9815_v0  ;;  %335 = vst [vmem:[#allocation3 + $0xd4] sm:$0x1] %v9815_v0 }
  0x4f PF: > { %v9311_v1 = vld [vmem:[%s13067_s1 + $0x40] sm:$0xff]   ;;  %v9315_v5 = vld [vmem:[%s13067_s1 + $0x48] sm:$0xff]   ;;  %v9319_v9 = vld [vmem:[%s13067_s1 + $0x50] sm:$0xff]   ;;  %vm788_vm0 = vcmask 519168   ;;  %vm796_vm1 = vcmask 516096   ;;  %v13117_v48 = vmov 0 }
  0x50   : > { %v9312_v2 = vld [vmem:[%s13067_s1] sm:$0xff]   ;;  %8229 = vmatprep.subr.bf16.mxu0 %v9311_v1  ;;  %v9316_v6 = vld [vmem:[%s13067_s1 + $0x8] sm:$0xff]   ;;  %v9320_v10 = vld [vmem:[%s13067_s1 + $0x10] sm:$0xff]   ;;  %vm464_vm2 = vsmask.f32 256  ;;  %v13120_v0 = vmov 0 }
  0x51   : > { %v9313_v3 = vld [vmem:[%s13067_s1 + $0xc0] sm:$0xff]   ;;  %8230 = vmatpush3.bf16.msra.mxu0 %v9312_v2  ;;  %v9317_v7 = vld [vmem:[%s13067_s1 + $0xc8] sm:$0xff]   ;;  %v9321_v11 = vld [vmem:[%s13067_s1 + $0xd0] sm:$0xff]   ;;  %vm465_vm3 = vsmask.f32 4368  ;;  %vm1500_vm9 = vcmask 1046528  }
  0x52   : > { %v9314_v4 = vld [vmem:[%s13067_s1 + $0x80] sm:$0xff]   ;;  %8341 = vmatprep.subr.bf16.mxu1 %v9313_v3  ;;  %8231 = vmatprep.subr.bf16.mxu0 %v9315_v5  ;;  %v9318_v8 = vld [vmem:[%s13067_s1 + $0x88] sm:$0xff]   ;;  %v9322_v12 = vld [vmem:[%s13067_s1 + $0x90] sm:$0xff]   ;;  %vm1243_vm4 = vsmask.f32 7424  ;;  %v13123_v3 = vmov 0 }
  0x53   : > { %8342 = vmatpush3.bf16.msra.mxu1 %v9314_v4  ;;  %v9323_v13 = vld [vmem:[%s13067_s1 + $0x58] sm:$0xff]   ;;  %v9327_v17 = vld [vmem:[%s13067_s1 + $0x60] sm:$0xff]   ;;  %v9331_v21 = vld [vmem:[%s13067_s1 + $0x68] sm:$0xff]   ;;  %vm789_vm5 = vsmask.f32 7938  ;;  %vm7543_vm10 = vcmask 523264  }
  0x54   : > { %8343 = vmatprep.subr.bf16.mxu1 %v9317_v7  ;;  %v9324_v14 = vld [vmem:[%s13067_s1 + $0x18] sm:$0xff]   ;;  %v9328_v18 = vld [vmem:[%s13067_s1 + $0x20] sm:$0xff]   ;;  %v9332_v22 = vld [vmem:[%s13067_s1 + $0x28] sm:$0xff]   ;;  %s8228_s25 = sshll.u32 %s9870_s22, 12  ;;  %s7590_s26 = sshll.u32 %s9907_s12, 4  ;;  %s13015_s26 = int_to_ptr.vmem [resolvable:$true] %s7590_s26 }
  0x55   : > { %8232 = vmatpush3.bf16.msra.mxu0 %v9316_v6  ;;  %v9325_v15 = vld [vmem:[%s13067_s1 + $0xd8] sm:$0xff]   ;;  %v9329_v19 = vld [vmem:[%s13067_s1 + $0xe0] sm:$0xff]   ;;  %v9333_v23 = vld [vmem:[%s13067_s1 + $0xe8] sm:$0xff]   ;;  %s13013_s8 = scalar_lea.hbm %s13071_s5, %s8228_s25  ;;  %s13025_s22 = scalar_lea.sflag [#allocation5], %s215_s30 }
  0x56   : > { %8233 = vmatprep.subr.bf16.mxu0 %v9319_v9  ;;  %v9326_v16 = vld [vmem:[%s13067_s1 + $0x98] sm:$0xff]   ;;  %v9330_v20 = vld [vmem:[%s13067_s1 + $0xa0] sm:$0xff]   ;;  %v9334_v24 = vld [vmem:[%s13067_s1 + $0xa8] sm:$0xff]   ;;  %s9816_s9 = smov [#allocation4]  }
  0x57   : > { %8344 = vmatpush3.bf16.msra.mxu1 %v9318_v8  ;;  %v9335_v25 = vld [vmem:[%s13067_s1 + $0x70] sm:$0xff]   ;;  %v9339_v29 = vld [vmem:[%s13067_s1 + $0x78] sm:$0xff]   ;;  %v906_v32 = vld [vmem:[#allocation2] sm:$0xf]  ;;  %s9755_s10 = sshll.u32 %s9816_s9, 4  ;;  %s9756_s10 = int_to_ptr.vmem [resolvable:$false] %s9755_s10 }
  0x58   : > { %8345 = vmatprep.subr.bf16.mxu1 %v9321_v11  ;;  %v9336_v26 = vld [vmem:[%s13067_s1 + $0x30] sm:$0xff]   ;;  %v9340_v30 = vld [vmem:[%s13067_s1 + $0x38] sm:$0xff]   ;;  %v907_v33 = vld [vmem:[#allocation2 + $0x4] sm:$0xf]  ;;  %s9757_s13 = scalar_lea.vmem %s9756_s10, 8192  ;;  %p9758_p1 = scmp.lt.s32.totalorder %s13015_s26, %s9756_s10 }
  0x59   : > { %8234 = vmatpush3.bf16.msra.mxu0 %v9320_v10  ;;  %v9337_v27 = vld [vmem:[%s13067_s1 + $0xf0] sm:$0xff]   ;;  %v9341_v31 = vld [vmem:[%s13067_s1 + $0xf8] sm:$0xff]   ;;  %v7692_v34 = vcombine.low %v906_v32, %v907_v33  ;;  %v10111_v35 = vld [vmem:[#allocation2 + $0x8] ss:$0 sps:$4 sm:$0x11]  }
  0x5a   : > { %8235 = vmatprep.subr.bf16.mxu0 %v9323_v13  ;;  %v9338_v28 = vld [vmem:[%s13067_s1 + $0xb0] sm:$0xff]   ;;  %v9344_v36 = vld [vmem:[%s13067_s1 + $0xb8] sm:$0xff]   ;;  %v1252_v39 = vshll.u32 %v10111_v35, 16  ;;  %v9345_v40 = vld [vmem:[%s13067_s1 + $0x140] sm:$0xff]   ;;  %v1502_v58 = vrot.slane %v10111_v35, 1 }
  0x5b   : > { %8346 = vmatpush3.bf16.msra.mxu1 %v9322_v12  ;;  %v1245_v37 = vshrl.u32 %v7692_v34, 16  ;;  %v1247_v38 = vshll.u32 %v7692_v34, 16  ;;  %v336_v41 = vld [vmem:[%s9905_s11] sm:$0xff]  ;;  %v337_v42 = vld [vmem:[%s9905_s11 + $0x8] sm:$0xff]  ;;  %vm10123_vm6 = vmor %vm464_vm2, %vm465_vm3 }
  0x5c   : > { %8347 = vmatprep.subr.bf16.mxu1 %v9325_v15  ;;  %v1254_v44 = vrot.slane %v1252_v39, 1  ;;  %v8164_v45 = vpack.c.bf16 %v336_v41, %v336_v41  ;;  %v8165_v46 = vpack.c.bf16 %v337_v42, %v337_v42  ;;  %v13118_v48 = vsel %vm10123_vm6, 4294967295, %v13117_v48  ;;  %v954_v52 = vld [vmem:[#allocation2] sm:$0xe]  ;;  %v338_v53 = vld [vmem:[%s9905_s11 + $0x10] sm:$0xff]  ;;  %v339_v59 = vld [vmem:[%s9905_s11 + $0x18] sm:$0xff] }
  0x5d   : > { %8236 = vmatpush3.bf16.msra.mxu0 %v9324_v14  ;;  %v1249_v43 = vrot.slane %v1247_v38, 1  ;;  %13119 = vst [vmem:[#allocation7_spill] sm:$0xff] %v13118_v48  ;;  %v791_v55 = vld [vmem:[#allocation2 + $0xc] sm:$0xf]  ;;  %v9348_v56 = vld [vmem:[%s13067_s1 + $0x100] sm:$0xff]   ;;  %v7724_v57 = vcombine.low %v954_v52, %v907_v33  ;;  %v8166_v60 = vpack.c.bf16 %v338_v53, %v338_v53  ;;  %vm10136_vm7 = vmand %vm796_vm1, %vm464_vm2  ;;  %v8167_v2 = vpack.c.bf16 %v339_v59, %v339_v59 }
  0x5e   : > { %8237 = vmatprep.subr.bf16.mxu0 %v9327_v17  ;;  %v468_v49 = vshrl.u32 %v8164_v45, 16  ;;  %v471_v50 = vshll.u32 %v8164_v45, 16  ;;  %v476_v51 = vshrl.u32 %v8165_v46, 16  ;;  %v479_v54 = vshll.u32 %v8165_v46, 16  ;;  %v798_v1 = vld [vmem:[#allocation2 + $0x14] sm:$0x1]  ;;  %vm10142_vm8 = vmand %vm788_vm0, %vm789_vm5 }
  0x5f   : > { %8348 = vmatpush3.bf16.msra.mxu1 %v9326_v16  ;;  %v1250_v47 = vor.u32 %v1249_v43, %v1245_v37  ;;  %v13121_v0 = vsel %vm10136_vm7, 4294967295, %v13120_v0  ;;  %v13124_v3 = vsel %vm10142_vm8, 4294967295, %v13123_v3  ;;  %v10146_v4 = vrot.slane %v7724_v57, 1  ;;  %v9355_v7 = vld [vmem:[%s13067_s1 + $0x148] sm:$0xff]   ;;  %v340_v12 = vld [vmem:[%s9905_s11 + $0x20] sm:$0xff] }
  0x60   : > { %8349 = vmatprep.subr.bf16.mxu1 %v9329_v19  ;;  %v470_v62 = vrot.slane %v468_v49, 7  ;;  %v478_v63 = vrot.slane %v476_v51, 7  ;;  %13122 = vst [vmem:[#allocation8_spill] sm:$0xff] %v13121_v0  ;;  %13125 = vst [vmem:[#allocation9_spill] sm:$0xff] %v13124_v3  ;;  %v485_v5 = vshrl.u32 %v8166_v60, 16  ;;  %v488_v6 = vshll.u32 %v8166_v60, 16 }
  0x61   : > { %8238 = vmatpush3.bf16.msra.mxu0 %v9328_v18  ;;  %v1255_v61 = vsel %vm1243_vm4, %v1250_v47, %v1254_v44  ;;  %v341_v13 = vld [vmem:[%s9905_s11 + $0x28] sm:$0xff]  ;;  %v493_v15 = vshrl.u32 %v8167_v2, 16  ;;  %v496_v16 = vshll.u32 %v8167_v2, 16  ;;  %v808_v42 = vld [vmem:[#allocation2 + $0x24] sm:$0xf] }
  0x62   : > { %8239 = vmatprep.subr.bf16.mxu0 %v9331_v21  ;;  %3108 = vmatprep.mubr.bf16.mxu0 %v1255_v61  ;;  %v473_v8 = vor.u32 %v471_v50, %v470_v62  ;;  %v474_v9 = vrot.slane %v470_v62, 4  ;;  %v481_v10 = vor.u32 %v479_v54, %v478_v63  ;;  %v483_v11 = vrot.slane %v478_v63, 4  ;;  %v9358_v17 = vld [vmem:[%s13067_s1 + $0x108] sm:$0xff]   ;;  %v801_v21 = vld [vmem:[#allocation2 + $0x18] sm:$0xf] }
  0x63   : > { %8350 = vmatpush3.bf16.msra.mxu1 %v9330_v20  ;;  %v487_v14 = vrot.slane %v485_v5, 7  ;;  %v812_v52 = vld [vmem:[#allocation2 + $0x2c] sm:$0x1]  ;;  %v815_v60 = vld [vmem:[#allocation2 + $0x30] sm:$0xf]  ;;  %v1503_v5 = vsel %vm1500_vm9, %v10146_v4, %v1502_v58 }
  0x64   : > { %8351 = vmatprep.subr.bf16.mxu1 %v9333_v23  ;;  %v482_v18 = vsel %vm10123_vm6, %v474_v9, %v481_v10  ;;  %v792_v19 = vsel %vm10142_vm8, %v473_v8, %v791_v55  ;;  %v799_v20 = vsel %vm10136_vm7, %v483_v11, %v798_v1  ;;  %v342_v23 = vld [vmem:[%s9905_s11 + $0x30] sm:$0xff] }
  0x65   : > { %8240 = vmatpush3.bf16.msra.mxu0 %v9332_v22  ;;  %v8168_v22 = vpack.c.bf16 %v340_v12, %v340_v12  ;;  %793 = vst [vmem:[#allocation2 + $0xc] sm:$0xf] %v792_v19  ;;  %795 = vst.msk [vmem:[#allocation2 + $0x10] sm:$0xf] %vm788_vm0, %v482_v18  ;;  %v8170_v33 = vpack.c.bf16 %v342_v23, %v342_v23  ;;  %v9368_v55 = vld [vmem:[%s13067_s1 + $0x110] sm:$0xff]  }
  0x66   : > { %8241 = vmatprep.subr.bf16.mxu0 %v9335_v25  ;;  %800 = vst [vmem:[#allocation2 + $0x14] sm:$0x1] %v799_v20  ;;  %v491_v25 = vrot.slane %v487_v14, 4 }
  0x67   : > { %8352 = vmatpush3.bf16.msra.mxu1 %v9334_v24  ;;  %v490_v24 = vor.u32 %v488_v6, %v487_v14  ;;  %v505_v32 = vshll.u32 %v8168_v22, 16  ;;  %v519_v43 = vshrl.u32 %v8170_v33, 16  ;;  %v522_v44 = vshll.u32 %v8170_v33, 16  ;;  %v819_v33 = vld [vmem:[#allocation2 + $0x38] sm:$0x1] }
  0x68   : > { %8353 = vmatprep.subr.bf16.mxu1 %v9337_v27  ;;  %v8169_v27 = vpack.c.bf16 %v341_v13, %v341_v13 }
  0x69   : > { %8242 = vmatpush3.bf16.msra.mxu0 %v9336_v26  ;;  %v495_v26 = vrot.slane %v493_v15, 7  ;;  %v802_v37 = vsel %vm10142_vm8, %v490_v24, %v801_v21  ;;  %v521_v53 = vrot.slane %v519_v43, 7  ;;  %v344_v24 = vld [vmem:[%s9905_s11 + $0x40] sm:$0xff] }
  0x6a   : > { %8243 = vmatprep.subr.bf16.mxu0 %v9339_v29  ;;  %v9365_v29 = vld [vmem:[%s13067_s1 + $0x150] sm:$0xff]   ;;  %v510_v39 = vshrl.u32 %v8169_v27, 16  ;;  %803 = vst [vmem:[#allocation2 + $0x18] sm:$0xf] %v802_v37  ;;  %v513_v41 = vshll.u32 %v8169_v27, 16 }
  0x6b   : > { %8354 = vmatpush3.bf16.msra.mxu1 %v9338_v28  ;;  %v343_v28 = vld [vmem:[%s9905_s11 + $0x38] sm:$0xff]  ;;  %v500_v38 = vrot.slane %v495_v26, 4  ;;  %v524_v1 = vor.u32 %v522_v44, %v521_v53  ;;  %v525_v13 = vrot.slane %v521_v53, 4 }
  0x6c   : > { %8355 = vmatprep.subr.bf16.mxu1 %v9341_v31  ;;  %v502_v31 = vshrl.u32 %v8168_v22, 16  ;;  %v512_v47 = vrot.slane %v510_v39, 7  ;;  %v970_v61 = vld [vmem:[#allocation2 + $0xc] sm:$0xf]  ;;  %v971_v62 = vld [vmem:[#allocation2 + $0x10] sm:$0xf]  ;;  %v10209_v39 = vpack.c.bf16 %v344_v24, %v344_v24 }
  0x6d   : > { %8244 = vmatpush3.bf16.msra.mxu0 %v9340_v30  ;;  %v805_v30 = vld [vmem:[#allocation2 + $0x20] sm:$0x1]  ;;  %v10182_v2 = vcombine.low %v970_v61, %v971_v62  ;;  %v908_v6 = vld [vmem:[#allocation2 + $0xc] sm:$0xf]  ;;  %v816_v58 = vsel %vm10142_vm8, %v524_v1, %v815_v60 }
  0x6e   : > { %8453 = vmatprep.subr.bf16.mxu0 %v9345_v40  ;;  %v504_v40 = vrot.slane %v502_v31, 7  ;;  %v806_v46 = vsel %vm10136_vm7, %v500_v38, %v805_v30  ;;  %v517_v57 = vrot.slane %v512_v47, 4  ;;  %v9350_v11 = vld [vmem:[#allocation2 + $0x14] ss:$0 sps:$4 sm:$0x11]   ;;  %v345_v38 = vld [vmem:[%s9905_s11 + $0x48] sm:$0xff] }
  0x6f   : > { %8356 = vmatpush3.bf16.msra.mxu1 %v9344_v36  ;;  %v498_v36 = vor.u32 %v496_v16, %v495_v26  ;;  %807 = vst [vmem:[#allocation2 + $0x20] sm:$0x1] %v806_v46  ;;  %v955_v12 = vld [vmem:[#allocation2 + $0xc] sm:$0xe]  ;;  %3269 = vmatprep.mubr.bf16.mxu1 %v10182_v2  ;;  %817 = vst [vmem:[#allocation2 + $0x30] sm:$0xf] %v816_v58  ;;  %v8173_v61 = vpack.c.bf16 %v345_v38, %v345_v38 }
  0x70   : > { %3109 = vmatmul.mubr.bf16.vlgmr.msra.gmra.mrb[0].mxu0 %v7692_v34  ;;  %v8171_v34 = vpack.c.bf16 %v343_v28, %v343_v28  ;;  %v507_v50 = vor.u32 %v505_v32, %v504_v40  ;;  %v508_v51 = vrot.slane %v504_v40, 4  ;;  %v813_v9 = vsel %vm10136_vm7, %v517_v57, %v812_v52  ;;  %v346_v40 = vld [vmem:[%s9905_s11 + $0x50] sm:$0xff]  ;;  %v9375_v52 = vld [vmem:[%s13067_s1 + $0x158] sm:$0xff]  }
  0x71   : > { %8454 = vmatpush3.bf16.msra.mxu0 %v9348_v56  ;;  %v499_v45 = vsel %vm10123_vm6, %v491_v25, %v498_v36  ;;  %v515_v56 = vor.u32 %v513_v41, %v512_v47  ;;  %814 = vst [vmem:[#allocation2 + $0x2c] sm:$0x1] %v813_v9  ;;  %v972_v4 = vld [vmem:[#allocation2 + $0x18] sm:$0xf]  ;;  %v1505_v18 = vrot.slane %v9350_v11, 1  ;;  %v536_v62 = vshrl.u32 %v10209_v39, 16 }
  0x72   : > { %8455 = vmatprep.subr.bf16.mxu0 %v9355_v7  ;;  %v527_v49 = vshrl.u32 %v8171_v34, 16  ;;  %804 = vst.msk [vmem:[#allocation2 + $0x1c] sm:$0xf] %vm788_vm0, %v499_v45  ;;  %v530_v54 = vshll.u32 %v8171_v34, 16  ;;  %v809_v63 = vsel %vm10142_vm8, %v507_v50, %v808_v42  ;;  %v909_v7 = vld [vmem:[#allocation2 + $0x10] sm:$0xf]  ;;  %3270 = vmatmul.mubr.bf16.vlgmr.msra.gmra.mrb[0].mxu1 %v1503_v5 }
  0x73   : > { %v516_v8 = vsel %vm10123_vm6, %v508_v51, %v515_v56  ;;  %810 = vst [vmem:[#allocation2 + $0x24] sm:$0xf] %v809_v63  ;;  %v7693_v10 = vcombine.low %v908_v6, %v909_v7  ;;  %v7725_v14 = vcombine.low %v955_v12, %v909_v7  ;;  %v910_v19 = vld [vmem:[#allocation2 + $0x18] sm:$0xf]  ;;  %v539_v24 = vshll.u32 %v10209_v39, 16 }
  0x74   : > { %v10178_v59 = vrot.slane %v527_v49, 7  ;;  %811 = vst.msk [vmem:[#allocation2 + $0x28] sm:$0xf] %vm788_vm0, %v516_v8  ;;  %v956_v28 = vld [vmem:[#allocation2 + $0x18] sm:$0xe]  ;;  %v8174_v8 = vpack.c.bf16 %v346_v40, %v346_v40 }
  0x75   : > { %8456 = vmatpush3.bf16.msra.mxu0 %v9358_v17  ;;  %v1257_v15 = vshrl.u32 %v7693_v10, 16  ;;  %v1259_v16 = vshll.u32 %v7693_v10, 16  ;;  %v1264_v17 = vshll.u32 %v9350_v11, 16  ;;  %v1504_v21 = vrot.slane %v7725_v14, 1  ;;  %v347_v57 = vld [vmem:[%s9905_s11 + $0x58] sm:$0xff] }
  0x76   : > { %8457 = vmatprep.subr.bf16.mxu0 %v9365_v29  ;;  %v532_v35 = vor.u32 %v530_v54, %v10178_v59  ;;  %v9354_v30 = vld [vmem:[#allocation2 + $0x20] ss:$0 sps:$4 sm:$0x11]   ;;  %v534_v32 = vrot.slane %v10178_v59, 4  ;;  %v976_v60 = vld [vmem:[#allocation2 + $0x30] sm:$0xf] }
  0x77   : > { %v1261_v25 = vrot.slane %v1259_v16, 1  ;;  %v1266_v26 = vrot.slane %v1264_v17, 1  ;;  %v1506_v36 = vsel %vm1500_vm9, %v1504_v21, %v1505_v18  ;;  %v1276_v43 = vshll.u32 %v9354_v30, 16  ;;  %v914_v12 = vld [vmem:[#allocation2 + $0x30] sm:$0xf] }
  0x78   : > { %v533_v23 = vsel %vm10123_vm6, %v525_v13, %v532_v35  ;;  %v1508_v49 = vrot.slane %v9354_v30, 1  ;;  %v820_v56 = vsel %vm10136_vm7, %v534_v32, %v819_v33  ;;  %v10225_v59 = vld [vmem:[#allocation2 + $0x2c] ss:$0 sps:$4 sm:$0x11]   ;;  %v8175_v35 = vpack.c.bf16 %v347_v57, %v347_v57  ;;  %v9378_v32 = vld [vmem:[%s13067_s1 + $0x118] sm:$0xff]  }
  0x79   : > { %8458 = vmatpush3.bf16.msra.mxu0 %v9368_v55  ;;  %v973_v20 = vld [vmem:[#allocation2 + $0x1c] sm:$0xf]  ;;  %818 = vst.msk [vmem:[#allocation2 + $0x34] sm:$0xf] %vm788_vm0, %v533_v23  ;;  %v1262_v34 = vor.u32 %v1261_v25, %v1257_v15  ;;  %v1278_v54 = vrot.slane %v1276_v43, 1  ;;  %v1511_v18 = vrot.slane %v10225_v59, 1 }
  0x7a   : > { %v911_v22 = vld [vmem:[#allocation2 + $0x1c] sm:$0xf]  ;;  %v10200_v27 = vcombine.low %v972_v4, %v973_v20  ;;  %v974_v37 = vld [vmem:[#allocation2 + $0x24] sm:$0xf]  ;;  %821 = vst [vmem:[#allocation2 + $0x38] sm:$0x1] %v820_v56  ;;  %8459 = vmatprep.subr.bf16.mxu0 %v9375_v52 }
  0x7b   : > { %v10203_v29 = vcombine.low %v910_v19, %v911_v22  ;;  %v7726_v31 = vcombine.low %v956_v28, %v911_v22  ;;  %v975_v44 = vld [vmem:[#allocation2 + $0x28] sm:$0xf]  ;;  %v1267_v46 = vsel %vm1243_vm4, %v1262_v34, %v1266_v26  ;;  %v912_v50 = vld [vmem:[#allocation2 + $0x24] sm:$0xf]  ;;  %v538_v19 = vrot.slane %v536_v62, 7 }
  0x7c   : > { %3277 = vmatprep.mubr.bf16.mxu1 %v10200_v27  ;;  %v10215_v47 = vcombine.low %v974_v37, %v975_v44  ;;  %v913_v51 = vld [vmem:[#allocation2 + $0x28] sm:$0xf]  ;;  %3116 = vmatprep.mubr.bf16.mxu0 %v1267_v46  ;;  %v957_v7 = vld [vmem:[#allocation2 + $0x24] sm:$0xe]  ;;  %v822_v20 = vld [vmem:[#allocation2 + $0x3c] sm:$0xf] }
  0x7d   : > { %v1269_v41 = vshrl.u32 %v10203_v29, 16  ;;  %v1271_v42 = vshll.u32 %v10203_v29, 16  ;;  %v1507_v45 = vrot.slane %v7726_v31, 1  ;;  %v10220_v55 = vcombine.low %v912_v50, %v913_v51  ;;  %3117 = vmatmul.mubr.bf16.gmra.mrb[4].mxu0 %v7693_v10  ;;  %3278 = vmatmul.mubr.bf16.gmra.mrb[4].mxu1 %v1506_v36  ;;  %v958_v25 = vld [vmem:[#allocation2 + $0x30] sm:$0xe]  ;;  %v348_v31 = vld [vmem:[%s9905_s11 + $0x60] sm:$0xff] }
  0x7e   : > { %3285 = vmatprep.mubr.bf16.mxu1 %v10215_v47  ;;  %v1288_v10 = vshll.u32 %v10225_v59, 16  ;;  %v7727_v11 = vcombine.low %v957_v7, %v913_v51  ;;  %v542_v26 = vrot.slane %v538_v19, 4  ;;  %v544_v28 = vshrl.u32 %v8173_v61, 16  ;;  %8460 = vmatpush3.bf16.msra.mxu0 %v9378_v32  ;;  %v9385_v51 = vld [vmem:[%s13067_s1 + $0x160] sm:$0xff]   ;;  %v829_v56 = vld [vmem:[#allocation2 + $0x48] sm:$0xf] }
  0x7f   : > { %v1273_v53 = vrot.slane %v1271_v42, 1  ;;  %v1281_v1 = vshrl.u32 %v10220_v55, 16  ;;  %v1283_v5 = vshll.u32 %v10220_v55, 16  ;;  %v1509_v9 = vsel %vm1500_vm9, %v1507_v45, %v1508_v49  ;;  %v826_v45 = vld [vmem:[#allocation2 + $0x44] sm:$0x1]  ;;  %v349_v57 = vld [vmem:[%s9905_s11 + $0x68] sm:$0xff]  ;;  %8461 = vmatprep.subr.bf16.mxu0 %v9385_v51 }
  0x80   : > { %v977_v6 = vld [vmem:[#allocation2 + $0x34] sm:$0xf]  ;;  %v1290_v16 = vrot.slane %v1288_v10, 1  ;;  %v1510_v17 = vrot.slane %v7727_v11, 1  ;;  %v547_v30 = vshll.u32 %v8173_v61, 16  ;;  %v541_v37 = vor.u32 %v539_v24, %v538_v19 }
  0x81   : > { %v1274_v63 = vor.u32 %v1273_v53, %v1269_v41  ;;  %v10233_v13 = vld [vmem:[#allocation2 + $0x34] sm:$0xf]  ;;  %v1285_v4 = vrot.slane %v1283_v5, 1  ;;  %v10236_v14 = vcombine.low %v976_v60, %v977_v6  ;;  %v10250_v34 = vld [vmem:[#allocation2 + $0x38] ss:$0 sps:$4 sm:$0x11]   ;;  %v8176_v59 = vpack.c.bf16 %v348_v31, %v348_v31 }
  0x82   : > { %v10239_v15 = vcombine.low %v914_v12, %v10233_v13  ;;  %v546_v38 = vrot.slane %v544_v28, 7  ;;  %v553_v39 = vshrl.u32 %v8174_v8, 16  ;;  %v556_v40 = vshll.u32 %v8174_v8, 16  ;;  %v836_v24 = vld [vmem:[#allocation2 + $0x54] sm:$0xf] }
  0x83   : > { %v1279_v58 = vsel %vm1243_vm4, %v1274_v63, %v1278_v54  ;;  %v1286_v21 = vor.u32 %v1285_v4, %v1281_v1  ;;  %v561_v41 = vshrl.u32 %v8175_v35, 16  ;;  %v1300_v43 = vshll.u32 %v10250_v34, 16  ;;  %v833_v1 = vld [vmem:[#allocation2 + $0x50] sm:$0x1] }
  0x84   : > { %3124 = vmatprep.mubr.bf16.mxu0 %v1279_v58  ;;  %v1293_v22 = vshrl.u32 %v10239_v15, 16  ;;  %v1295_v23 = vshll.u32 %v10239_v15, 16  ;;  %v823_v44 = vsel %vm10142_vm8, %v541_v37, %v822_v20  ;;  %v549_v46 = vor.u32 %v547_v30, %v546_v38 }
  0x85   : > { %v1291_v33 = vsel %vm1243_vm4, %v1286_v21, %v1290_v16  ;;  %3125 = vmatmul.mubr.bf16.gmra.mrb[8].mxu0 %v10203_v29  ;;  %3286 = vmatmul.mubr.bf16.gmra.mrb[8].mxu1 %v1509_v9  ;;  %824 = vst [vmem:[#allocation2 + $0x3c] sm:$0xf] %v823_v44  ;;  %v7728_v29 = vcombine.low %v958_v25, %v10233_v13  ;;  %v551_v49 = vrot.slane %v546_v38, 4  ;;  %v555_v50 = vrot.slane %v553_v39, 7  ;;  %v350_v13 = vld [vmem:[%s9905_s11 + $0x70] sm:$0xff] }
  0x86   : > { %v1297_v36 = vrot.slane %v1295_v23, 1  ;;  %3132 = vmatprep.mubr.bf16.mxu0 %v1291_v33  ;;  %3293 = vmatprep.mubr.bf16.mxu1 %v10236_v14  ;;  %v1302_v52 = vrot.slane %v1300_v43, 1  ;;  %v563_v53 = vrot.slane %v561_v41, 7  ;;  %v564_v54 = vshll.u32 %v8175_v35, 16  ;;  %v9388_v35 = vld [vmem:[%s13067_s1 + $0x120] sm:$0xff]  }
  0x87   : > { %v1512_v60 = vsel %vm1500_vm9, %v1510_v17, %v1511_v18  ;;  %v550_v61 = vsel %vm10123_vm6, %v542_v26, %v549_v46  ;;  %v827_v62 = vsel %vm10136_vm7, %v551_v49, %v826_v45  ;;  %v558_v63 = vor.u32 %v556_v40, %v555_v50  ;;  %v351_v17 = vld [vmem:[%s9905_s11 + $0x78] sm:$0xff]  ;;  %8462 = vmatpush3.bf16.msra.mxu0 %v9388_v35  ;;  %v352_v33 = vld [vmem:[%s9905_s11 + $0x80] sm:$0xff]  ;;  %v353_v45 = vld [vmem:[%s9905_s11 + $0x88] sm:$0xff] }
  0x88   : > { %v1298_v42 = vor.u32 %v1297_v36, %v1293_v22  ;;  %825 = vst.msk [vmem:[#allocation2 + $0x40] sm:$0xf] %vm788_vm0, %v550_v61  ;;  %828 = vst [vmem:[#allocation2 + $0x44] sm:$0x1] %v827_v62  ;;  %v559_v6 = vrot.slane %v555_v50, 4  ;;  %v566_v7 = vor.u32 %v564_v54, %v563_v53  ;;  %v568_v8 = vrot.slane %v563_v53, 4 }
  0x89   : > { %v830_v9 = vsel %vm10142_vm8, %v558_v63, %v829_v56  ;;  %v8177_v10 = vpack.c.bf16 %v349_v57, %v349_v57  ;;  %v570_v11 = vshrl.u32 %v8176_v59, 16  ;;  %v573_v12 = vshll.u32 %v8176_v59, 16  ;;  %v9395_v22 = vld [vmem:[%s13067_s1 + $0x168] sm:$0xff]   ;;  %v840_v59 = vld [vmem:[#allocation2 + $0x5c] sm:$0x1] }
  0x8a   : > { %v1303_v5 = vsel %vm1243_vm4, %v1298_v42, %v1302_v52  ;;  %v1513_v58 = vrot.slane %v7728_v29, 1  ;;  %v567_v4 = vsel %vm10123_vm6, %v559_v6, %v566_v7  ;;  %831 = vst [vmem:[#allocation2 + $0x48] sm:$0xf] %v830_v9  ;;  %v834_v16 = vsel %vm10136_vm7, %v568_v8, %v833_v1  ;;  %8463 = vmatprep.subr.bf16.mxu0 %v9395_v22  ;;  %v9398_v35 = vld [vmem:[%s13067_s1 + $0x128] sm:$0xff]  }
  0x8b   : > { %v1514_v18 = vrot.slane %v10250_v34, 1  ;;  %832 = vst.msk [vmem:[#allocation2 + $0x4c] sm:$0xf] %vm788_vm0, %v567_v4  ;;  %835 = vst [vmem:[#allocation2 + $0x50] sm:$0x1] %v834_v16  ;;  %v572_v19 = vrot.slane %v570_v11, 7  ;;  %v10286_v25 = vpack.c.bf16 %v350_v13, %v350_v13  ;;  %v10288_v32 = vpack.c.bf16 %v351_v17, %v351_v17  ;;  %8464 = vmatpush3.bf16.msra.mxu0 %v9398_v35 }
  0x8c   : > { %v578_v20 = vshrl.u32 %v8177_v10, 16  ;;  %v581_v21 = vshll.u32 %v8177_v10, 16  ;;  %v978_v23 = vld [vmem:[#allocation2 + $0x3c] sm:$0xf]  ;;  %v10304_v52 = vpack.c.bf16 %v352_v33, %v352_v33  ;;  %v9405_v33 = vld [vmem:[%s13067_s1 + $0x170] sm:$0xff]  }
  0x8d   : > { %3133 = vmatmul.mubr.bf16.gmra.mrb[12].mxu0 %v10220_v55  ;;  %3294 = vmatmul.mubr.bf16.gmra.mrb[12].mxu1 %v1512_v60  ;;  %v916_v55 = vld [vmem:[#allocation2 + $0x3c] sm:$0xf]  ;;  %v575_v28 = vor.u32 %v573_v12, %v572_v19  ;;  %v576_v30 = vrot.slane %v572_v19, 4  ;;  %v1515_v36 = vsel %vm1500_vm9, %v1513_v58, %v1514_v18  ;;  %v587_v44 = vshrl.u32 %v10286_v25, 16  ;;  %v843_v18 = vld [vmem:[#allocation2 + $0x60] sm:$0xf] }
  0x8e   : > { %3140 = vmatprep.mubr.bf16.mxu0 %v1303_v5  ;;  %v959_v26 = vld [vmem:[#allocation2 + $0x3c] sm:$0xe]  ;;  %v580_v31 = vrot.slane %v578_v20, 7  ;;  %v590_v50 = vshll.u32 %v10286_v25, 16  ;;  %v595_v51 = vshrl.u32 %v10288_v32, 16  ;;  %v598_v60 = vshll.u32 %v10288_v32, 16  ;;  %8465 = vmatprep.subr.bf16.mxu0 %v9405_v33 }
  0x8f   : > { %v979_v34 = vld [vmem:[#allocation2 + $0x40] sm:$0xf]  ;;  %v837_v39 = vsel %vm10142_vm8, %v575_v28, %v836_v24  ;;  %v9370_v42 = vld [vmem:[#allocation2 + $0x44] ss:$0 sps:$4 sm:$0x11]   ;;  %v589_v11 = vrot.slane %v587_v44, 7  ;;  %v10319_v12 = vpack.c.bf16 %v353_v45, %v353_v45 }
  0x90   : > { %v917_v37 = vld [vmem:[#allocation2 + $0x40] sm:$0xf]  ;;  %v583_v38 = vor.u32 %v581_v21, %v580_v31  ;;  %v10294_v40 = vcombine.low %v978_v23, %v979_v34  ;;  %838 = vst [vmem:[#allocation2 + $0x54] sm:$0xf] %v837_v39  ;;  %v1312_v56 = vshll.u32 %v9370_v42, 16  ;;  %v1517_v63 = vrot.slane %v9370_v42, 1 }
  0x91   : > { %v10296_v41 = vcombine.low %v916_v55, %v917_v37  ;;  %v7729_v43 = vcombine.low %v959_v26, %v917_v37  ;;  %v980_v46 = vld [vmem:[#allocation2 + $0x48] sm:$0xf]  ;;  %v585_v9 = vrot.slane %v580_v31, 4  ;;  %v604_v13 = vshrl.u32 %v10304_v52, 16  ;;  %v354_v24 = vld [vmem:[%s9905_s11 + $0x90] sm:$0xff]  ;;  %v355_v25 = vld [vmem:[%s9905_s11 + $0x98] sm:$0xff] }
  0x92   : > { %v918_v29 = vld [vmem:[#allocation2 + $0x48] sm:$0xf]  ;;  %v584_v49 = vsel %vm10123_vm6, %v576_v30, %v583_v38  ;;  %3301 = vmatprep.mubr.bf16.mxu1 %v10294_v40  ;;  %v981_v57 = vld [vmem:[#allocation2 + $0x4c] sm:$0xf]  ;;  %v1314_v6 = vrot.slane %v1312_v56, 1  ;;  %v592_v23 = vor.u32 %v590_v50, %v589_v11  ;;  %v593_v31 = vrot.slane %v589_v11, 4 }
  0x93   : > { %v1305_v53 = vshrl.u32 %v10296_v41, 16  ;;  %v1307_v54 = vshll.u32 %v10296_v41, 16  ;;  %839 = vst.msk [vmem:[#allocation2 + $0x58] sm:$0xf] %vm788_vm0, %v584_v49  ;;  %v10312_v61 = vcombine.low %v980_v46, %v981_v57  ;;  %v1516_v62 = vrot.slane %v7729_v43, 1 }
  0x94   : > { %v919_v1 = vld [vmem:[#allocation2 + $0x4c] sm:$0xf]  ;;  %v10316_v8 = vld [vmem:[#allocation2 + $0x50] ss:$0 sps:$4 sm:$0x11]   ;;  %v841_v22 = vsel %vm10136_vm7, %v585_v9, %v840_v59  ;;  %v844_v39 = vsel %vm10142_vm8, %v592_v23, %v843_v18  ;;  %v10351_v59 = vpack.c.bf16 %v355_v25, %v355_v25  ;;  %v356_v23 = vld [vmem:[%s9905_s11 + $0xa0] sm:$0xff] }
  0x95   : > { %3141 = vmatmul.mubr.bf16.gmra.mrb[16].mxu0 %v10239_v15  ;;  %3302 = vmatmul.mubr.bf16.gmra.mrb[16].mxu1 %v1515_v36  ;;  %v1309_v5 = vrot.slane %v1307_v54, 1  ;;  %v10314_v7 = vcombine.low %v918_v29, %v919_v1  ;;  %v960_v10 = vld [vmem:[#allocation2 + $0x48] sm:$0xe]  ;;  %v597_v15 = vrot.slane %v595_v51, 7  ;;  %v1324_v17 = vshll.u32 %v10316_v8, 16 }
  0x96   : > { %3309 = vmatprep.mubr.bf16.mxu1 %v10312_v61  ;;  %v1518_v19 = vsel %vm1500_vm9, %v1516_v62, %v1517_v63  ;;  %v7730_v21 = vcombine.low %v960_v10, %v919_v1  ;;  %842 = vst [vmem:[#allocation2 + $0x5c] sm:$0x1] %v841_v22  ;;  %v847_v32 = vld [vmem:[#allocation2 + $0x68] sm:$0x1]  ;;  %v1520_v36 = vrot.slane %v10316_v8, 1  ;;  %v8182_v29 = vpack.c.bf16 %v354_v24, %v354_v24  ;;  %v9408_v1 = vld [vmem:[%s13067_s1 + $0x130] sm:$0xff]  }
  0x97   : > { %v1310_v58 = vor.u32 %v1309_v5, %v1305_v53  ;;  %v1317_v4 = vshrl.u32 %v10314_v7, 16  ;;  %v1319_v16 = vshll.u32 %v10314_v7, 16  ;;  %v982_v20 = vld [vmem:[#allocation2 + $0x54] sm:$0xf]  ;;  %v1326_v28 = vrot.slane %v1324_v17, 1  ;;  %8466 = vmatpush3.bf16.msra.mxu0 %v9408_v1  ;;  %v9409_v17 = vld [vmem:[%s13067_s1 + $0x1c0] sm:$0xff]  }
  0x98   : > { %v920_v30 = vld [vmem:[#allocation2 + $0x54] sm:$0xf]  ;;  %v600_v38 = vor.u32 %v598_v60, %v597_v15  ;;  %v602_v42 = vrot.slane %v597_v15, 4  ;;  %845 = vst [vmem:[#allocation2 + $0x60] sm:$0xf] %v844_v39  ;;  %v1519_v49 = vrot.slane %v7730_v21, 1  ;;  %8565 = vmatprep.subr.bf16.mxu1 %v9409_v17 }
  0x99   : > { %v1315_v55 = vsel %vm1243_vm4, %v1310_v58, %v1314_v6  ;;  %v1321_v26 = vrot.slane %v1319_v16, 1  ;;  %v961_v46 = vld [vmem:[#allocation2 + $0x54] sm:$0xe]  ;;  %v606_v53 = vrot.slane %v604_v13, 7  ;;  %v850_v57 = vld [vmem:[#allocation2 + $0x6c] sm:$0xf] }
  0x9a   : > { %3148 = vmatprep.mubr.bf16.mxu0 %v1315_v55  ;;  %v983_v34 = vld [vmem:[#allocation2 + $0x58] sm:$0xf]  ;;  %v601_v50 = vsel %vm10123_vm6, %v593_v31, %v600_v38  ;;  %v848_v62 = vsel %vm10136_vm7, %v602_v42, %v847_v32  ;;  %v607_v63 = vshll.u32 %v10304_v52, 16  ;;  %v612_v6 = vshrl.u32 %v10319_v12, 16  ;;  %v854_v58 = vld [vmem:[#allocation2 + $0x74] sm:$0x1] }
  0x9b   : > { %v921_v37 = vld [vmem:[#allocation2 + $0x58] sm:$0xf]  ;;  %v1322_v43 = vor.u32 %v1321_v26, %v1317_v4  ;;  %v10340_v44 = vcombine.low %v982_v20, %v983_v34  ;;  %846 = vst.msk [vmem:[#allocation2 + $0x64] sm:$0xf] %vm788_vm0, %v601_v50  ;;  %849 = vst [vmem:[#allocation2 + $0x68] sm:$0x1] %v848_v62  ;;  %v1521_v10 = vsel %vm1500_vm9, %v1519_v49, %v1520_v36 }
  0x9c   : > { %v10342_v45 = vcombine.low %v920_v30, %v921_v37  ;;  %v7731_v51 = vcombine.low %v961_v46, %v921_v37  ;;  %v615_v8 = vshll.u32 %v10319_v12, 16  ;;  %v621_v9 = vshrl.u32 %v8182_v29, 16  ;;  %v857_v22 = vld [vmem:[#allocation2 + $0x78] sm:$0xf]  ;;  %v357_v24 = vld [vmem:[%s9905_s11 + $0xa8] sm:$0xff] }
  0x9d   : > { %3149 = vmatmul.mubr.bf16.gmra.mrb[20].mxu0 %v10296_v41  ;;  %3310 = vmatmul.mubr.bf16.gmra.mrb[20].mxu1 %v1518_v19  ;;  %v1327_v54 = vsel %vm1243_vm4, %v1322_v43, %v1326_v28  ;;  %v9380_v11 = vld [vmem:[#allocation2 + $0x5c] ss:$0 sps:$4 sm:$0x11]   ;;  %v609_v15 = vor.u32 %v607_v63, %v606_v53  ;;  %v624_v13 = vshll.u32 %v8182_v29, 16  ;;  %v610_v52 = vrot.slane %v606_v53, 4 }
  0x9e   : > { %3317 = vmatprep.mubr.bf16.mxu1 %v10340_v44  ;;  %v1331_v56 = vshll.u32 %v10342_v45, 16  ;;  %3156 = vmatprep.mubr.bf16.mxu0 %v1327_v54  ;;  %v1329_v41 = vshrl.u32 %v10342_v45, 16  ;;  %v1522_v60 = vrot.slane %v7731_v51, 1  ;;  %v614_v35 = vrot.slane %v612_v6, 7  ;;  %v861_v49 = vld [vmem:[#allocation2 + $0x80] sm:$0x1] }
  0x9f   : > { %v623_v4 = vrot.slane %v621_v9, 7  ;;  %v629_v16 = vshrl.u32 %v10351_v59, 16  ;;  %v1336_v18 = vshll.u32 %v9380_v11, 16  ;;  %v984_v19 = vld [vmem:[#allocation2 + $0x60] sm:$0xf]  ;;  %v1523_v20 = vrot.slane %v9380_v11, 1 }
  0xa0   : > { %v1333_v5 = vrot.slane %v1331_v56, 1  ;;  %v851_v21 = vsel %vm10142_vm8, %v609_v15, %v850_v57  ;;  %v922_v25 = vld [vmem:[#allocation2 + $0x60] sm:$0xf]  ;;  %v617_v55 = vor.u32 %v615_v8, %v614_v35  ;;  %v619_v28 = vrot.slane %v614_v35, 4  ;;  %v358_v56 = vld [vmem:[%s9905_s11 + $0xb0] sm:$0xff]  ;;  %v359_v1 = vld [vmem:[%s9905_s11 + $0xb8] sm:$0xff] }
  0xa1   : > { %852 = vst [vmem:[#allocation2 + $0x6c] sm:$0xf] %v851_v21  ;;  %v962_v26 = vld [vmem:[#allocation2 + $0x60] sm:$0xe]  ;;  %v626_v30 = vor.u32 %v624_v13, %v623_v4  ;;  %v627_v31 = vrot.slane %v623_v4, 4  ;;  %v1338_v32 = vrot.slane %v1336_v18, 1  ;;  %v8184_v42 = vpack.c.bf16 %v356_v23, %v356_v23 }
  0xa2   : > { %v1334_v12 = vor.u32 %v1333_v5, %v1329_v41  ;;  %v985_v33 = vld [vmem:[#allocation2 + $0x64] sm:$0xf]  ;;  %v631_v36 = vrot.slane %v629_v16, 7  ;;  %v618_v39 = vsel %vm10123_vm6, %v610_v52, %v617_v55  ;;  %v10379_v46 = vld [vmem:[#allocation2 + $0x68] ss:$0 sps:$4 sm:$0x11]   ;;  %v8185_v50 = vpack.c.bf16 %v357_v24, %v357_v24 }
  0xa3   : > { %v923_v34 = vld [vmem:[#allocation2 + $0x64] sm:$0xf]  ;;  %v10372_v37 = vcombine.low %v984_v19, %v985_v33  ;;  %853 = vst.msk [vmem:[#allocation2 + $0x70] sm:$0xf] %vm788_vm0, %v618_v39  ;;  %v632_v29 = vshll.u32 %v10351_v59, 16  ;;  %v858_v54 = vsel %vm10142_vm8, %v626_v30, %v857_v22  ;;  %v1524_v59 = vsel %vm1500_vm9, %v1522_v60, %v1523_v20  ;;  %v9411_v5 = vld [vmem:[%s13067_s1 + $0x1c8] sm:$0xff]  }
  0xa4   : > { %v10374_v38 = vcombine.low %v922_v25, %v923_v34  ;;  %v1339_v43 = vsel %vm1243_vm4, %v1334_v12, %v1338_v32  ;;  %v9410_v57 = vld [vmem:[%s13067_s1 + $0x180] sm:$0xff]   ;;  %v1348_v41 = vshll.u32 %v10379_v46, 16  ;;  %v7732_v62 = vcombine.low %v962_v26, %v923_v34  ;;  %859 = vst [vmem:[#allocation2 + $0x78] sm:$0xf] %v858_v54  ;;  %v868_v39 = vld [vmem:[#allocation2 + $0x8c] sm:$0x1] }
  0xa5   : > { %3157 = vmatmul.mubr.bf16.gmra.mrb[24].mxu0 %v10314_v7  ;;  %3318 = vmatmul.mubr.bf16.gmra.mrb[24].mxu1 %v1521_v10  ;;  %v855_v7 = vsel %vm10136_vm7, %v619_v28, %v854_v58  ;;  %v634_v63 = vor.u32 %v632_v29, %v631_v36  ;;  %v636_v8 = vrot.slane %v631_v36, 4  ;;  %v638_v9 = vshrl.u32 %v8184_v42, 16  ;;  %v864_v13 = vld [vmem:[#allocation2 + $0x84] sm:$0xf] }
  0xa6   : > { %3164 = vmatprep.mubr.bf16.mxu0 %v1339_v43  ;;  %3325 = vmatprep.mubr.bf16.mxu1 %v10372_v37  ;;  %v1341_v51 = vshrl.u32 %v10374_v38, 16  ;;  %v1343_v53 = vshll.u32 %v10374_v38, 16  ;;  %856 = vst [vmem:[#allocation2 + $0x74] sm:$0x1] %v855_v7  ;;  %v641_v10 = vshll.u32 %v8184_v42, 16  ;;  %v1350_v11 = vrot.slane %v1348_v41, 1 }
  0xa7   : > { %8566 = vmatpush3.bf16.msra.mxu1 %v9410_v57  ;;  %v635_v15 = vsel %vm10123_vm6, %v627_v31, %v634_v63  ;;  %v646_v60 = vshrl.u32 %v8185_v50, 16  ;;  %v10402_v52 = vpack.c.bf16 %v358_v56, %v358_v56  ;;  %v862_v16 = vsel %vm10136_vm7, %v636_v8, %v861_v49  ;;  %v9414_v31 = vld [vmem:[%s13067_s1 + $0x188] sm:$0xff]   ;;  %v360_v43 = vld [vmem:[%s9905_s11 + $0xc0] sm:$0xff]  ;;  %v10768_v48 = vld [vmem:[#allocation2 + $0x50] ss:$0 sps:$4 sm:$0x11]  }
  0xa8   : > { %v1345_v6 = vrot.slane %v1343_v53, 1  ;;  %8567 = vmatprep.subr.bf16.mxu1 %v9411_v5  ;;  %v986_v58 = vld [vmem:[#allocation2 + $0x6c] sm:$0xf]  ;;  %860 = vst.msk [vmem:[#allocation2 + $0x7c] sm:$0xf] %vm788_vm0, %v635_v15  ;;  %v640_v17 = vrot.slane %v638_v9, 7  ;;  %v10408_v21 = vpack.c.bf16 %v359_v1, %v359_v1 }
  0xa9   : > { %v924_v4 = vld [vmem:[#allocation2 + $0x6c] sm:$0xf]  ;;  %v649_v12 = vshll.u32 %v8185_v50, 16  ;;  %v1525_v18 = vrot.slane %v7732_v62, 1  ;;  %863 = vst [vmem:[#allocation2 + $0x80] sm:$0x1] %v862_v16 }
  0xaa   : > { %v1346_v35 = vor.u32 %v1345_v6, %v1341_v51  ;;  %v963_v19 = vld [vmem:[#allocation2 + $0x6c] sm:$0xe]  ;;  %v648_v20 = vrot.slane %v646_v60, 7  ;;  %v987_v23 = vld [vmem:[#allocation2 + $0x70] sm:$0xf]  ;;  %v1526_v24 = vrot.slane %v10379_v46, 1  ;;  %v643_v55 = vor.u32 %v641_v10, %v640_v17 }
  0xab   : > { %v925_v25 = vld [vmem:[#allocation2 + $0x70] sm:$0xf]  ;;  %v644_v26 = vrot.slane %v640_v17, 4  ;;  %v10412_v28 = vcombine.low %v986_v58, %v987_v23  ;;  %v988_v32 = vld [vmem:[#allocation2 + $0x78] sm:$0xf]  ;;  %v655_v42 = vshrl.u32 %v10402_v52, 16  ;;  %8568 = vmatpush3.bf16.msra.mxu1 %v9414_v31  ;;  %v10441_v10 = vpack.c.bf16 %v360_v43, %v360_v43 }
  0xac   : > { %v1351_v22 = vsel %vm1243_vm4, %v1346_v35, %v1350_v11  ;;  %v7733_v33 = vcombine.low %v963_v19, %v925_v25  ;;  %v651_v34 = vor.u32 %v649_v12, %v648_v20  ;;  %v865_v36 = vsel %vm10142_vm8, %v643_v55, %v864_v13  ;;  %v926_v49 = vld [vmem:[#allocation2 + $0x78] sm:$0xf]  ;;  %v871_v9 = vld [vmem:[#allocation2 + $0x90] sm:$0xf] }
  0xad   : > { %3165 = vmatmul.mubr.bf16.gmra.mrb[28].mxu0 %v10342_v45  ;;  %3326 = vmatmul.mubr.bf16.gmra.mrb[28].mxu1 %v1524_v59  ;;  %v10414_v45 = vcombine.low %v924_v4, %v925_v25  ;;  %v10416_v30 = vld [vmem:[#allocation2 + $0x74] ss:$0 sps:$4 sm:$0x11]   ;;  %866 = vst [vmem:[#allocation2 + $0x84] sm:$0xf] %v865_v36  ;;  %v658_v50 = vshll.u32 %v10402_v52, 16  ;;  %v1527_v51 = vsel %vm1500_vm9, %v1525_v18, %v1526_v24 }
  0xae   : > { %3172 = vmatprep.mubr.bf16.mxu0 %v1351_v22  ;;  %3333 = vmatprep.mubr.bf16.mxu1 %v10412_v28  ;;  %v1360_v29 = vshll.u32 %v10416_v30, 16  ;;  %v652_v53 = vsel %vm10123_vm6, %v644_v26, %v651_v34  ;;  %v964_v54 = vld [vmem:[#allocation2 + $0x78] sm:$0xe]  ;;  %v653_v56 = vrot.slane %v648_v20, 4  ;;  %v663_v57 = vshrl.u32 %v10408_v21, 16  ;;  %v361_v52 = vld [vmem:[%s9905_s11 + $0xc8] sm:$0xff] }
  0xaf   : > { %v1353_v46 = vshrl.u32 %v10414_v45, 16  ;;  %v1355_v7 = vshll.u32 %v10414_v45, 16  ;;  %v989_v62 = vld [vmem:[#allocation2 + $0x7c] sm:$0xf]  ;;  %867 = vst.msk [vmem:[#allocation2 + $0x88] sm:$0xf] %vm788_vm0, %v652_v53 }
  0xb0   : > { %v1362_v41 = vrot.slane %v1360_v29, 1  ;;  %v927_v63 = vld [vmem:[#allocation2 + $0x7c] sm:$0xf]  ;;  %v10435_v1 = vcombine.low %v988_v32, %v989_v62  ;;  %v1528_v5 = vrot.slane %v7733_v33, 1  ;;  %v869_v60 = vsel %vm10136_vm7, %v653_v56, %v868_v39  ;;  %v9417_v35 = vld [vmem:[%s13067_s1 + $0x1d0] sm:$0xff]  }
  0xb1   : > { %v1357_v59 = vrot.slane %v1355_v7, 1  ;;  %v10437_v6 = vcombine.low %v926_v49, %v927_v63  ;;  %v10439_v8 = vld [vmem:[#allocation2 + $0x80] ss:$0 sps:$4 sm:$0x11]   ;;  %v7734_v15 = vcombine.low %v964_v54, %v927_v63  ;;  %v657_v13 = vrot.slane %v655_v42, 7  ;;  %8569 = vmatprep.subr.bf16.mxu1 %v9417_v35  ;;  %v362_v24 = vld [vmem:[%s9905_s11 + $0xd0] sm:$0xff] }
  0xb2   : > { %v1529_v58 = vrot.slane %v10416_v30, 1  ;;  %v1372_v16 = vshll.u32 %v10439_v8, 16  ;;  %870 = vst [vmem:[#allocation2 + $0x8c] sm:$0x1] %v869_v60  ;;  %v666_v18 = vshll.u32 %v10408_v21, 16  ;;  %v665_v26 = vrot.slane %v663_v57, 7 }
  0xb3   : > { %v1358_v11 = vor.u32 %v1357_v59, %v1353_v46  ;;  %v1365_v4 = vshrl.u32 %v10437_v6, 16  ;;  %v660_v12 = vor.u32 %v658_v50, %v657_v13  ;;  %v1531_v23 = vrot.slane %v7734_v15, 1  ;;  %v875_v32 = vld [vmem:[#allocation2 + $0x98] sm:$0x1]  ;;  %v9418_v57 = vld [vmem:[%s13067_s1 + $0x190] sm:$0xff]  }
  0xb4   : > { %v1374_v20 = vrot.slane %v1372_v16, 1  ;;  %v990_v22 = vld [vmem:[#allocation2 + $0x84] sm:$0xf]  ;;  %v661_v55 = vrot.slane %v657_v13, 4  ;;  %v10460_v33 = vpack.c.bf16 %v361_v52, %v361_v52  ;;  %v363_v34 = vld [vmem:[%s9905_s11 + $0xd8] sm:$0xff]  ;;  %v1530_v21 = vsel %vm1500_vm9, %v1528_v5, %v1529_v58  ;;  %8570 = vmatpush3.bf16.msra.mxu1 %v9418_v57 }
  0xb5   : > { %3173 = vmatmul.mubr.bf16.gmra.mrb[32].mxu0 %v10374_v38  ;;  %3334 = vmatmul.mubr.bf16.gmra.mrb[32].mxu1 %v1527_v51  ;;  %v1367_v38 = vshll.u32 %v10437_v6, 16  ;;  %v1363_v17 = vsel %vm1243_vm4, %v1358_v11, %v1362_v41  ;;  %v928_v25 = vld [vmem:[#allocation2 + $0x84] sm:$0xf]  ;;  %v872_v30 = vsel %vm10142_vm8, %v660_v12, %v871_v9  ;;  %v672_v43 = vshrl.u32 %v10441_v10, 16  ;;  %v9419_v59 = vld [vmem:[%s13067_s1 + $0x1d8] sm:$0xff]  }
  0xb6   : > { %3341 = vmatprep.mubr.bf16.mxu1 %v10435_v1  ;;  %3180 = vmatprep.mubr.bf16.mxu0 %v1363_v17  ;;  %v965_v31 = vld [vmem:[#allocation2 + $0x84] sm:$0xe]  ;;  %v991_v39 = vld [vmem:[#allocation2 + $0x88] sm:$0xf]  ;;  %873 = vst [vmem:[#allocation2 + $0x90] sm:$0xf] %v872_v30  ;;  %v668_v49 = vor.u32 %v666_v18, %v665_v26  ;;  %v8190_v50 = vpack.c.bf16 %v362_v24, %v362_v24 }
  0xb7   : > { %v1369_v19 = vrot.slane %v1367_v38, 1  ;;  %v929_v42 = vld [vmem:[#allocation2 + $0x88] sm:$0xf]  ;;  %v675_v46 = vshll.u32 %v10441_v10, 16  ;;  %v10466_v7 = vcombine.low %v990_v22, %v991_v39  ;;  %v670_v54 = vrot.slane %v665_v26, 4  ;;  %v9422_v52 = vld [vmem:[%s13067_s1 + $0x198] sm:$0xff]   ;;  %8571 = vmatprep.subr.bf16.mxu1 %v9419_v59 }
  0xb8   : > { %v10468_v29 = vcombine.low %v928_v25, %v929_v42  ;;  %v7735_v53 = vcombine.low %v965_v31, %v929_v42  ;;  %v10471_v56 = vrot.slane %v672_v43, 7  ;;  %v1532_v41 = vrot.slane %v10439_v8, 1  ;;  %v878_v10 = vld [vmem:[#allocation2 + $0x9c] sm:$0xf]  ;;  %v882_v30 = vld [vmem:[#allocation2 + $0xa4] sm:$0x1]  ;;  %8572 = vmatpush3.bf16.msra.mxu1 %v9422_v52 }
  0xb9   : > { %v1370_v36 = vor.u32 %v1369_v19, %v1365_v4  ;;  %v10481_v62 = vld [vmem:[#allocation2 + $0x8c] ss:$0 sps:$4 sm:$0x11]   ;;  %v669_v63 = vsel %vm10123_vm6, %v661_v55, %v668_v49  ;;  %v8191_v11 = vpack.c.bf16 %v363_v34, %v363_v34  ;;  %v9423_v35 = vld [vmem:[%s13067_s1 + $0x178] sm:$0xff]   ;;  %v680_v4 = vshrl.u32 %v10460_v33, 16  ;;  %v364_v43 = vld [vmem:[%s9905_s11 + $0xe0] sm:$0xff] }
  0xba   : > { %v1377_v5 = vshrl.u32 %v10468_v29, 16  ;;  %v1379_v9 = vshll.u32 %v10468_v29, 16  ;;  %874 = vst.msk [vmem:[#allocation2 + $0x94] sm:$0xf] %vm788_vm0, %v669_v63  ;;  %v1384_v8 = vshll.u32 %v10481_v62, 16  ;;  %v10492_v15 = vrot.slane %v7735_v53, 1  ;;  %8467 = vmatprep.subr.bf16.mxu0 %v9423_v35 }
  0xbb   : > { %v1375_v51 = vsel %vm1243_vm4, %v1370_v36, %v1374_v20  ;;  %v1535_v60 = vrot.slane %v10481_v62, 1  ;;  %v677_v13 = vor.u32 %v675_v46, %v10471_v56  ;;  %v683_v38 = vshll.u32 %v10460_v33, 16  ;;  %v889_v52 = vld [vmem:[#allocation2 + $0xb0] sm:$0x1] }
  0xbc   : > { %v1381_v58 = vrot.slane %v1379_v9, 1  ;;  %v689_v16 = vshrl.u32 %v8190_v50, 16  ;;  %v1386_v17 = vrot.slane %v1384_v8, 1  ;;  %v678_v18 = vrot.slane %v10471_v56, 4 }
  0xbd   : > { %3181 = vmatmul.mubr.bf16.gmra.mrb[36].mxu0 %v10414_v45  ;;  %3342 = vmatmul.mubr.bf16.gmra.mrb[36].mxu1 %v1530_v21  ;;  %v876_v45 = vsel %vm10136_vm7, %v670_v54, %v875_v32  ;;  %v992_v12 = vld [vmem:[#allocation2 + $0x90] sm:$0xf]  ;;  %v879_v19 = vsel %vm10142_vm8, %v677_v13, %v878_v10  ;;  %v692_v20 = vshll.u32 %v8190_v50, 16  ;;  %v1533_v22 = vsel %vm1500_vm9, %v1531_v23, %v1532_v41  ;;  %v885_v32 = vld [vmem:[#allocation2 + $0xa8] sm:$0xf] }
  0xbe   : > { %3188 = vmatprep.mubr.bf16.mxu0 %v1375_v51  ;;  %3349 = vmatprep.mubr.bf16.mxu1 %v10466_v7  ;;  %877 = vst [vmem:[#allocation2 + $0x98] sm:$0x1] %v876_v45  ;;  %v1382_v24 = vor.u32 %v1381_v58, %v1377_v5  ;;  %v930_v25 = vld [vmem:[#allocation2 + $0x90] sm:$0xf]  ;;  %v682_v55 = vrot.slane %v680_v4, 7  ;;  %v691_v31 = vrot.slane %v689_v16, 7  ;;  %v8192_v59 = vpack.c.bf16 %v364_v43, %v364_v43 }
  0xbf   : > { %880 = vst [vmem:[#allocation2 + $0x9c] sm:$0xf] %v879_v19  ;;  %v966_v26 = vld [vmem:[#allocation2 + $0x90] sm:$0xe]  ;;  %v697_v33 = vshrl.u32 %v8191_v11, 16  ;;  %v700_v34 = vshll.u32 %v8191_v11, 16  ;;  %v1536_v8 = vsel %vm1500_vm9, %v10492_v15, %v1535_v60 }
  0xc0   : > { %v1387_v21 = vsel %vm1243_vm4, %v1382_v24, %v1386_v17  ;;  %v685_v36 = vor.u32 %v683_v38, %v682_v55  ;;  %v687_v39 = vrot.slane %v682_v55, 4  ;;  %v694_v42 = vor.u32 %v692_v20, %v691_v31  ;;  %v365_v23 = vld [vmem:[%s9905_s11 + $0xe8] sm:$0xff]  ;;  %v9427_v15 = vld [vmem:[%s13067_s1 + $0x1e0] sm:$0xff]  }
  0xc1   : > { %v10512_v46 = vld [vmem:[#allocation2 + $0x94] sm:$0xf]  ;;  %v695_v50 = vrot.slane %v691_v31, 4  ;;  %v699_v51 = vrot.slane %v697_v33, 7  ;;  %v8193_v11 = vpack.c.bf16 %v365_v23, %v365_v23  ;;  %v706_v19 = vshrl.u32 %v8192_v59, 16  ;;  %8573 = vmatprep.subr.bf16.mxu1 %v9427_v15 }
  0xc2   : > { %v931_v49 = vld [vmem:[#allocation2 + $0x94] sm:$0xf]  ;;  %v10515_v53 = vcombine.low %v992_v12, %v10512_v46  ;;  %v686_v57 = vsel %vm10123_vm6, %v678_v18, %v685_v36  ;;  %v883_v62 = vsel %vm10136_vm7, %v687_v39, %v882_v30  ;;  %v886_v5 = vsel %vm10142_vm8, %v694_v42, %v885_v32 }
  0xc3   : > { %v10517_v54 = vcombine.low %v930_v25, %v931_v49  ;;  %881 = vst.msk [vmem:[#allocation2 + $0xa0] sm:$0xf] %vm788_vm0, %v686_v57  ;;  %v7736_v41 = vcombine.low %v966_v26, %v931_v49  ;;  %v702_v63 = vor.u32 %v700_v34, %v699_v51  ;;  %884 = vst [vmem:[#allocation2 + $0xa4] sm:$0x1] %v883_v62  ;;  %v704_v18 = vrot.slane %v699_v51, 4  ;;  %v9428_v26 = vld [vmem:[%s13067_s1 + $0x1a0] sm:$0xff]  }
  0xc4   : > { %887 = vst [vmem:[#allocation2 + $0xa8] sm:$0xf] %v886_v5  ;;  %v709_v20 = vshll.u32 %v8192_v59, 16  ;;  %v717_v24 = vshll.u32 %v8193_v11, 16  ;;  %v708_v55 = vrot.slane %v706_v19, 7  ;;  %8574 = vmatpush3.bf16.msra.mxu1 %v9428_v26  ;;  %v9435_v15 = vld [vmem:[%s13067_s1 + $0x1f0] sm:$0xff]  }
  0xc5   : > { %3189 = vmatmul.mubr.bf16.gmra.mrb[40].mxu0 %v10437_v6  ;;  %3350 = vmatmul.mubr.bf16.gmra.mrb[40].mxu1 %v1533_v22  ;;  %v10519_v56 = vld [vmem:[#allocation2 + $0x98] ss:$0 sps:$4 sm:$0x11]   ;;  %v1389_v9 = vshrl.u32 %v10517_v54, 16  ;;  %v1391_v45 = vshll.u32 %v10517_v54, 16  ;;  %v703_v13 = vsel %vm10123_vm6, %v695_v50, %v702_v63  ;;  %v1537_v38 = vrot.slane %v7736_v41, 1 }
  0xc6   : > { %3196 = vmatprep.mubr.bf16.mxu0 %v1387_v21  ;;  %v9426_v6 = vld [vmem:[%s13067_s1 + $0x138] sm:$0xff]   ;;  %3357 = vmatprep.mubr.bf16.mxu1 %v10515_v53  ;;  %v1396_v10 = vshll.u32 %v10519_v56, 16  ;;  %v1538_v16 = vrot.slane %v10519_v56, 1  ;;  %888 = vst.msk [vmem:[#allocation2 + $0xac] sm:$0xf] %vm788_vm0, %v703_v13  ;;  %v714_v22 = vshrl.u32 %v8193_v11, 16  ;;  %v890_v25 = vsel %vm10136_vm7, %v704_v18, %v889_v52 }
  0xc7   : > { %8468 = vmatpush3.bf16.msra.mxu0 %v9426_v6  ;;  %v1393_v35 = vrot.slane %v1391_v45, 1  ;;  %v994_v4 = vld [vmem:[#allocation2 + $0x9c] sm:$0xf]  ;;  %891 = vst [vmem:[#allocation2 + $0xb0] sm:$0x1] %v890_v25  ;;  %v711_v49 = vor.u32 %v709_v20, %v708_v55  ;;  %v9432_v50 = vld [vmem:[%s13067_s1 + $0x1a8] sm:$0xff]  }
  0xc8   : > { %v1398_v58 = vrot.slane %v1396_v10, 1  ;;  %v932_v17 = vld [vmem:[#allocation2 + $0x9c] sm:$0xf]  ;;  %v716_v33 = vrot.slane %v714_v22, 7  ;;  %v892_v39 = vld [vmem:[#allocation2 + $0xb4] sm:$0xf]  ;;  %v1539_v41 = vsel %vm1500_vm9, %v1537_v38, %v1538_v16 }
  0xc9   : > { %v967_v12 = vld [vmem:[#allocation2 + $0x9c] sm:$0xe]  ;;  %v1394_v60 = vor.u32 %v1393_v35, %v1389_v9  ;;  %v712_v10 = vrot.slane %v708_v55, 4  ;;  %v896_v11 = vld [vmem:[#allocation2 + $0xbc] sm:$0x1]  ;;  %v893_v52 = vsel %vm10142_vm8, %v711_v49, %v892_v39  ;;  %v9436_v55 = vld [vmem:[%s13067_s1 + $0x1b0] sm:$0xff]  }
  0xca   : > { %v10551_v31 = vld [vmem:[#allocation2 + $0xa0] sm:$0xf]  ;;  %v10561_v36 = vld [vmem:[#allocation2 + $0xa4] ss:$0 sps:$4 sm:$0x11]   ;;  %v719_v6 = vor.u32 %v717_v24, %v716_v33  ;;  %v367_v35 = vld [vmem:[%s9905_s11 + $0xf8] sm:$0xff] }
  0xcb   : > { %v1399_v30 = vsel %vm1243_vm4, %v1394_v60, %v1398_v58  ;;  %v933_v32 = vld [vmem:[#allocation2 + $0xa0] sm:$0xf]  ;;  %v10557_v34 = vcombine.low %v994_v4, %v10551_v31  ;;  %v996_v42 = vld [vmem:[#allocation2 + $0xa8] sm:$0xf]  ;;  %v1408_v57 = vshll.u32 %v10561_v36, 16  ;;  %v1541_v4 = vrot.slane %v10561_v36, 1 }
  0xcc   : > { %v10559_v21 = vcombine.low %v932_v17, %v933_v32  ;;  %v7737_v43 = vcombine.low %v967_v12, %v933_v32  ;;  %v934_v23 = vld [vmem:[#allocation2 + $0xa8] sm:$0xf]  ;;  %v720_v16 = vsel %vm10123_vm6, %v712_v10, %v719_v6  ;;  %894 = vst [vmem:[#allocation2 + $0xb4] sm:$0xf] %v893_v52  ;;  %v721_v19 = vrot.slane %v716_v33, 4  ;;  %v9437_v36 = vld [vmem:[%s13067_s1 + $0x1f8] sm:$0xff]  }
  0xcd   : > { %3197 = vmatmul.mubr.bf16.gmra.mrb[44].mxu0 %v10468_v29  ;;  %3358 = vmatmul.mubr.bf16.gmra.mrb[44].mxu1 %v1536_v8  ;;  %v9429_v29 = vld [vmem:[%s13067_s1 + $0x1e8] sm:$0xff]   ;;  %v1410_v9 = vrot.slane %v1408_v57, 1  ;;  %v366_v8 = vld [vmem:[%s9905_s11 + $0xf0] sm:$0xff]  ;;  %895 = vst.msk [vmem:[#allocation2 + $0xb8] sm:$0xf] %vm788_vm0, %v720_v16  ;;  %v8195_v20 = vpack.c.bf16 %v367_v35, %v367_v35  ;;  %v1712_v60 = vshll.u32 %v10182_v2, 16 }
  0xce   : > { %3204 = vmatprep.mubr.bf16.mxu0 %v1399_v30  ;;  %3365 = vmatprep.mubr.bf16.mxu1 %v10557_v34  ;;  %v1401_v51 = vshrl.u32 %v10559_v21, 16  ;;  %v1403_v56 = vshll.u32 %v10559_v21, 16  ;;  %v10570_v59 = vld [vmem:[#allocation2 + $0xac] sm:$0xf]  ;;  %v1540_v13 = vrot.slane %v7737_v43, 1  ;;  %v8194_v17 = vpack.c.bf16 %v366_v8, %v366_v8 }
  0xcf   : > { %8575 = vmatprep.subr.bf16.mxu1 %v9429_v29  ;;  %v10574_v62 = vcombine.low %v996_v42, %v10570_v59  ;;  %v10576_v63 = vld [vmem:[#allocation2 + $0xac] sm:$0xf]  ;;  %v10587_v38 = vld [vmem:[#allocation2 + $0xb0] ss:$0 sps:$4 sm:$0x11]   ;;  %v897_v30 = vsel %vm10136_vm7, %v721_v19, %v896_v11  ;;  %v731_v33 = vshrl.u32 %v8195_v20, 16 }
  0xd0   : > { %v1405_v5 = vrot.slane %v1403_v56, 1  ;;  %v10579_v45 = vcombine.low %v934_v23, %v10576_v63  ;;  %8576 = vmatpush3.bf16.msra.mxu1 %v9432_v50  ;;  %v1420_v24 = vshll.u32 %v10587_v38, 16  ;;  %v723_v25 = vshrl.u32 %v8194_v17, 16  ;;  %v899_v29 = vld [vmem:[#allocation2 + $0xc0] sm:$0xf]  ;;  %v9439_v56 = vld [vmem:[%s13067_s1 + $0x1b8] sm:$0xff]  }
  0xd1   : > { %13126 = vst [vmem:[#allocation10_spill] sm:$0xff] %v10574_v62  ;;  %v726_v32 = vshll.u32 %v8194_v17, 16  ;;  %8577 = vmatprep.subr.bf16.mxu1 %v9435_v15  ;;  %898 = vst [vmem:[#allocation2 + $0xbc] sm:$0x1] %v897_v30  ;;  %v734_v23 = vshll.u32 %v8195_v20, 16  ;;  %v1542_v49 = vsel %vm1500_vm9, %v1540_v13, %v1541_v4  ;;  %v1724_v52 = vshll.u32 %v10200_v27, 16 }
  0xd2   : > { %v1406_v58 = vor.u32 %v1405_v5, %v1401_v51  ;;  %v1413_v12 = vshrl.u32 %v10579_v45, 16  ;;  %v1415_v18 = vshll.u32 %v10579_v45, 16  ;;  %v1422_v39 = vrot.slane %v1420_v24, 1  ;;  %v1018_v57 = vld [vmem:[#allocation2 + $0xc] sm:$0xe] }
  0xd3   : > { %v725_v43 = vrot.slane %v723_v25, 7  ;;  %v10611_v51 = vrot.slane %v731_v33, 7  ;;  %v1710_v5 = vshrl.u32 %v10182_v2, 16  ;;  %v998_v11 = vld [vmem:[#allocation2 + $0xb4] sm:$0xf]  ;;  %v1736_v15 = vshll.u32 %v10215_v47, 16 }
  0xd4   : > { %v1411_v22 = vsel %vm1243_vm4, %v1406_v58, %v1410_v9  ;;  %v1417_v26 = vrot.slane %v1415_v18, 1  ;;  %8578 = vmatpush3.bf16.msra.mxu1 %v9436_v55  ;;  %v10622_v9 = vrot.slane %v1712_v60, 1  ;;  %v936_v8 = vld [vmem:[#allocation2 + $0xb4] sm:$0xf]  ;;  %v10628_v35 = vld [vmem:[#allocation2 + $0xb8] sm:$0xf] }
  0xd5   : > { %3205 = vmatmul.mubr.bf16.gmra.mrb[48].mxu0 %v10517_v54  ;;  %3366 = vmatmul.mubr.bf16.gmra.mrb[48].mxu1 %v1539_v41  ;;  %v968_v54 = vld [vmem:[#allocation2 + $0xa8] sm:$0xe]  ;;  %v728_v6 = vor.u32 %v726_v32, %v725_v43  ;;  %v729_v41 = vrot.slane %v725_v43, 4  ;;  %v736_v13 = vor.u32 %v734_v23, %v10611_v51  ;;  %v937_v4 = vld [vmem:[#allocation2 + $0xb8] sm:$0xf]  ;;  %v10633_v17 = vcombine.low %v998_v11, %v10628_v35 }
  0xd6   : > { %3373 = vmatprep.mubr.bf16.mxu1 %v10574_v62  ;;  %3212 = vmatprep.mubr.bf16.mxu0 %v1411_v22  ;;  %v7738_v42 = vcombine.low %v968_v54, %v10576_v63  ;;  %v1418_v50 = vor.u32 %v1417_v26, %v1413_v12  ;;  %v10619_v63 = vld [vmem:[%s13067_s1 + $0x200] sm:$0xff]   ;;  %v1544_v12 = vrot.slane %v10587_v38, 1  ;;  %v10636_v18 = vcombine.low %v936_v8, %v937_v4  ;;  %v9722_v19 = vld [vmem:[#allocation2 + $0x10] sm:$0xf]  ;;  %v1035_v55 = vld [vmem:[#allocation2 + $0x18] sm:$0xf] }
  0xd7   : > { %8579 = vmatprep.subr.bf16.mxu1 %v9437_v36  ;;  %v900_v16 = vsel %vm10142_vm8, %v728_v6, %v899_v29  ;;  %13127 = vst [vmem:[#allocation11_spill] sm:$0xff] %v10633_v17  ;;  %v737_v54 = vsel %vm10123_vm6, %v729_v41, %v736_v13  ;;  %9173 = vmatprep.subr.bf16.mxu0 %v10619_v63  ;;  %v1748_v38 = vshll.u32 %v10236_v14, 16  ;;  %v9438_v33 = vld [vmem:[#allocation2 + $0x14] ss:$0 sps:$4 sm:$0x11]  }
  0xd8   : > { %v1423_v10 = vsel %vm1243_vm4, %v1418_v50, %v1422_v39  ;;  %v1543_v58 = vrot.slane %v7738_v42, 1  ;;  %901 = vst [vmem:[#allocation2 + $0xc0] sm:$0xf] %v900_v16  ;;  %902 = vst.msk [vmem:[#allocation2 + $0xc4] sm:$0xf] %vm788_vm0, %v737_v54  ;;  %8580 = vmatpush3.bf16.msra.mxu1 %v9439_v56  ;;  %v7772_v20 = vcombine.low %v1018_v57, %v9722_v19  ;;  %v1425_v24 = vshrl.u32 %v10636_v18, 16 }
  0xd9   : > { %v9431_v60 = vld [vmem:[#allocation2 + $0xbc] ss:$0 sps:$4 sm:$0x11]   ;;  %v1427_v25 = vshll.u32 %v10636_v18, 16  ;;  %v1019_v36 = vld [vmem:[#allocation2 + $0x18] sm:$0xe] }
  0xda   : > { %v1545_v26 = vsel %vm1500_vm9, %v1543_v58, %v1544_v12  ;;  %v1432_v30 = vshll.u32 %v9431_v60, 16  ;;  %v1036_v29 = vld [vmem:[#allocation2 + $0x1c] sm:$0xf]  ;;  %v10654_v56 = vld [vmem:[#allocation2 + $0x20] ss:$0 sps:$4 sm:$0x11]  }
  0xdb   : > { %v1429_v42 = vrot.slane %v1427_v25, 1  ;;  %v10650_v43 = vcombine.low %v1035_v55, %v1036_v29  ;;  %13128 = vst [vmem:[#allocation12_spill] sm:$0xff] %v10654_v56  ;;  %v1965_v41 = vrot.slane %v7772_v20, 1  ;;  %v1547_v58 = vrot.slane %v9431_v60, 1  ;;  %v1037_v19 = vld [vmem:[#allocation2 + $0x24] sm:$0xf] }
  0xdc   : > { %v1434_v50 = vrot.slane %v1432_v30, 1  ;;  %v2181_v16 = vshll.u32 %v10654_v56, 16  ;;  %v1038_v20 = vld [vmem:[#allocation2 + $0x28] sm:$0xf]  ;;  %v1041_v2 = vld [vmem:[#allocation2 + $0x3c] sm:$0xf] }
  0xdd   : > { %3213 = vmatmul.mubr.bf16.gmra.mrb[52].mxu0 %v10559_v21  ;;  %3374 = vmatmul.mubr.bf16.gmra.mrb[52].mxu1 %v1542_v49  ;;  %v969_v21 = vld [vmem:[#allocation2 + $0xb4] sm:$0xe]  ;;  %v1430_v57 = vor.u32 %v1429_v42, %v1425_v24  ;;  %v2176_v11 = vshll.u32 %v10650_v43, 16  ;;  %v9723_v24 = vld [vmem:[#allocation2 + $0x1c] sm:$0xf] }
  0xde   : > { %3220 = vmatprep.mubr.bf16.mxu0 %v1423_v10  ;;  %3381 = vmatprep.mubr.bf16.mxu1 %v10633_v17  ;;  %v7739_v32 = vcombine.low %v969_v21, %v937_v4  ;;  %v2174_v10 = vshrl.u32 %v10650_v43, 16  ;;  %v1717_v4 = vshll.u32 %v9438_v33, 16  ;;  %v7773_v25 = vcombine.low %v1019_v36, %v9723_v24  ;;  %v10670_v29 = vld [vmem:[#allocation2 + $0x2c] ss:$0 sps:$4 sm:$0x11]  }
  0xdf   : > { %v1000_v6 = vld [vmem:[#allocation2 + $0xc0] sm:$0xf]  ;;  %v10659_v8 = vld [vmem:[#allocation2 + $0xc4] sm:$0xf]  ;;  %v1435_v12 = vsel %vm1243_vm4, %v1430_v57, %v1434_v50  ;;  %v2178_v21 = vrot.slane %v2176_v11, 1  ;;  %v2183_v55 = vrot.slane %v2181_v16, 1 }
  0xe0   : > { %v1546_v13 = vrot.slane %v7739_v32, 1  ;;  %v10664_v54 = vcombine.low %v1000_v6, %v10659_v8  ;;  %v10668_v32 = vcombine.low %v1037_v19, %v1038_v20  ;;  %13130 = vst [vmem:[#allocation14_spill] sm:$0xff] %v10670_v29  ;;  %v1020_v16 = vld [vmem:[#allocation2 + $0x24] sm:$0xe]  ;;  %v1968_v19 = vrot.slane %v7773_v25, 1 }
  0xe1   : > { %v2179_v60 = vor.u32 %v2178_v21, %v2174_v10  ;;  %v1719_v21 = vrot.slane %v1717_v4, 1  ;;  %v2193_v24 = vshll.u32 %v10670_v29, 16  ;;  %v10689_v4 = vld [vmem:[#allocation2 + $0x34] sm:$0xf]  ;;  %v10708_v30 = vld [vmem:[#allocation2 + $0x40] sm:$0xf] }
  0xe2   : > { %13129 = vst [vmem:[#allocation13_spill] sm:$0xff] %v10664_v54  ;;  %v1548_v36 = vsel %vm1500_vm9, %v1546_v13, %v1547_v58  ;;  %v2188_v10 = vshll.u32 %v10668_v32, 16  ;;  %v2186_v20 = vshrl.u32 %v10668_v32, 16  ;;  %v1722_v58 = vshrl.u32 %v10200_v27, 16  ;;  %13131 = vst [vmem:[#allocation15_spill] sm:$0xff] %v10689_v4 }
  0xe3   : > { %v2184_v11 = vsel %vm1243_vm4, %v2179_v60, %v2183_v55  ;;  %v1039_v55 = vld [vmem:[#allocation2 + $0x30] sm:$0xf]  ;;  %v1715_v60 = vor.u32 %v10622_v9, %v1710_v5  ;;  %v10691_v25 = vld [vmem:[#allocation2 + $0x2c] ss:$0 sps:$4 sm:$0x11]   ;;  %13133 = vst [vmem:[#allocation17_spill] sm:$0xff] %v10708_v30 }
  0xe4   : > { %v10694_v57 = vcombine.low %v1039_v55, %v10689_v4  ;;  %v10702_v50 = vld [vmem:[#allocation2 + $0x38] ss:$0 sps:$4 sm:$0x11]   ;;  %v9724_v5 = vld [vmem:[#allocation2 + $0x28] sm:$0xf]  ;;  %v1726_v55 = vrot.slane %v1724_v52, 1 }
  0xe5   : > { %3221 = vmatmul.mubr.bf16.gmra.mrb[56].mxu0 %v10579_v45  ;;  %3382 = vmatmul.mubr.bf16.gmra.mrb[56].mxu1 %v1545_v26  ;;  %v1966_v45 = vrot.slane %v9438_v33, 1  ;;  %v9443_v26 = vld [vmem:[#allocation2 + $0x20] ss:$0 sps:$4 sm:$0x11]   ;;  %v7774_v9 = vcombine.low %v1020_v16, %v9724_v5  ;;  %v9447_v16 = vld [vmem:[%s13067_s1 + $0x208] sm:$0xff]   ;;  %v10722_v5 = vcombine.low %v1041_v2, %v10708_v30  ;;  %v1753_v2 = vshll.u32 %v10702_v50, 16 }
  0xe6   : > { %3228 = vmatprep.mubr.bf16.mxu0 %v1435_v12  ;;  %3389 = vmatprep.mubr.bf16.mxu1 %v10664_v54  ;;  %v10680_v12 = vld [vmem:[#allocation2 + $0x30] sm:$0xe]  ;;  %v1969_v13 = vrot.slane %v9443_v26, 1  ;;  %v2200_v42 = vshll.u32 %v10694_v57, 16  ;;  %v2198_v27 = vshrl.u32 %v10694_v57, 16  ;;  %v13145_v30 = vshll.u32 %v10340_v44, 16 }
  0xe7   : > { %v1967_v6 = vsel %vm1500_vm9, %v1965_v41, %v1966_v45  ;;  %v1729_v41 = vshll.u32 %v9443_v26, 16  ;;  %v2190_v45 = vrot.slane %v2188_v10, 1  ;;  %v10700_v26 = vld [vmem:[#allocation2 + $0x48] sm:$0xe]  ;;  %v9727_v49 = vld [vmem:[#allocation2 + $0x4c] sm:$0xf] }
  0xe8   : > { %v10714_v23 = vld [vmem:[#allocation2 + $0x44] ss:$0 sps:$4 sm:$0x11]   ;;  %v2202_v52 = vrot.slane %v2200_v42, 1  ;;  %v7777_v39 = vcombine.low %v10700_v26, %v9727_v49  ;;  %v1727_v42 = vor.u32 %v1726_v55, %v1722_v58  ;;  %v2212_v26 = vshll.u32 %v10722_v5, 16 }
  0xe9   : > { %v2191_v10 = vor.u32 %v2190_v45, %v2186_v20  ;;  %v1970_v45 = vsel %vm1500_vm9, %v1968_v19, %v1969_v13  ;;  %13134 = vst [vmem:[#allocation18_spill] sm:$0xff] %v10714_v23  ;;  %v1731_v20 = vrot.slane %v1729_v41, 1  ;;  %v1741_v19 = vshll.u32 %v10691_v25, 16  ;;  %v9726_v13 = vld [vmem:[#allocation2 + $0x40] sm:$0xf] }
  0xea   : > { %v10731_v22 = vld [vmem:[#allocation2 + $0x44] ss:$0 sps:$4 sm:$0x11]   ;;  %v1971_v41 = vrot.slane %v7774_v9, 1  ;;  %v2203_v49 = vor.u32 %v2202_v52, %v2198_v27  ;;  %v10743_v9 = vld [vmem:[#allocation2 + $0x4c] sm:$0xf] }
  0xeb   : > { %13135 = vst [vmem:[#allocation19_spill] sm:$0xff] %v10743_v9  ;;  %v1765_v27 = vshll.u32 %v10731_v22, 16  ;;  %v1047_v29 = vld [vmem:[#allocation2 + $0x60] sm:$0xf]  ;;  %v10839_v54 = vrot.slane %v13145_v30, 1 }
  0xed   : > { %3229 = vmatmul.mubr.bf16.gmra.mrb[60].mxu0 %v10636_v18  ;;  %3390 = vmatmul.mubr.bf16.gmra.mrb[60].mxu1 %v1548_v36  ;;  %v10696_v18 = vld [vmem:[#allocation2 + $0x38] ss:$0 sps:$4 sm:$0x11]   ;;  %v10698_v36 = vld [vmem:[#allocation2 + $0x3c] sm:$0xe] }
  0xee   : > { %3430 = vmatprep.mubr.bf16.mxu0 %v1967_v6  ;;  %3591 = vmatprep.mubr.bf16.mxu1 %v2184_v11  ;;  %13132 = vst [vmem:[#allocation16_spill] sm:$0xff] %v10696_v18  ;;  %v2195_v6 = vrot.slane %v2193_v24, 1  ;;  %v9725_v11 = vld [vmem:[#allocation2 + $0x34] sm:$0xf]  ;;  %v1720_v24 = vsel %vm1243_vm4, %v1715_v60, %v1719_v21  ;;  %v7776_v60 = vcombine.low %v10698_v36, %v9726_v13  ;;  %v2217_v36 = vshll.u32 %v10714_v23, 16 }
  0xef   : > { %v7775_v33 = vcombine.low %v10680_v12, %v9725_v11  ;;  %v2205_v12 = vshll.u32 %v10696_v18, 16  ;;  %v1043_v13 = vld [vmem:[#allocation2 + $0x48] sm:$0xf] }
  0xf0   : > { %v2196_v21 = vsel %vm1243_vm4, %v2191_v10, %v2195_v6  ;;  %v1972_v10 = vrot.slane %v10691_v25, 1  ;;  %v1734_v6 = vshrl.u32 %v10215_v47, 16  ;;  %v1743_v25 = vrot.slane %v1741_v19, 1  ;;  %v10823_v23 = vld [vmem:[#allocation2 + $0x68] ss:$0 sps:$4 sm:$0x11]  }
  0xf1   : > { %v2207_v58 = vrot.slane %v2205_v12, 1  ;;  %v1974_v55 = vrot.slane %v7775_v33, 1  ;;  %v1975_v47 = vrot.slane %v10702_v50, 1  ;;  %v10755_v52 = vcombine.low %v1043_v13, %v10743_v9  ;;  %v1024_v12 = vld [vmem:[#allocation2 + $0x54] sm:$0xe]  ;;  %v9461_v50 = vld [vmem:[%s13067_s1 + $0x218] sm:$0xff]  }
  0xf2   : > { %v2210_v33 = vshrl.u32 %v10722_v5, 16  ;;  %v2219_v19 = vrot.slane %v2217_v36, 1  ;;  %v10759_v11 = vrot.slane %v7776_v60, 1  ;;  %v1045_v60 = vld [vmem:[#allocation2 + $0x54] sm:$0xf]  ;;  %v13138_v36 = vshll.u32 %v10294_v40, 16 }
  0xf3   : > { %v2208_v13 = vsel %vm1243_vm4, %v2203_v49, %v2207_v58  ;;  %v10782_v49 = vrot.slane %v7777_v39, 1  ;;  %v10812_v9 = vld [vmem:[#allocation2 + $0x68] ss:$0 sps:$4 sm:$0x11]  }
  0xf4   : > { %v10777_v3 = vrot.slane %v13138_v36, 1  ;;  %13142 = vst [vmem:[#allocation24_spill] sm:$0xff] %v10812_v9 }
  0xf5   : > { %3431 = vmatmul.mubr.bf16.vlgmr.msra.gmra.mrb[64].mxu0 %v1720_v24  ;;  %3592 = vmatmul.mubr.bf16.vlgmr.msra.gmra.mrb[64].mxu1 %v10650_v43  ;;  %v1738_v43 = vrot.slane %v1736_v15, 1  ;;  %v10751_v15 = vrot.slane %v1753_v2, 1  ;;  %v1973_v2 = vsel %vm1500_vm9, %v1971_v41, %v1972_v10  ;;  %v2214_v24 = vrot.slane %v2212_v26, 1 }
  0xf6   : > { %9174 = vmatpush3.bf16.msra.mxu0 %v10619_v63  ;;  %3438 = vmatprep.mubr.bf16.mxu0 %v1970_v45  ;;  %v9454_v63 = vld [vmem:[%s13067_s1 + $0x210] sm:$0xff]   ;;  %v10748_v45 = vrot.slane %v1748_v38, 1  ;;  %v10779_v41 = vrot.slane %v1765_v27, 1  ;;  %v2224_v10 = vshll.u32 %v10755_v52, 16  ;;  %v1777_v27 = vshll.u32 %v10768_v48, 16 }
  0xf7   : > { %3599 = vmatprep.mubr.bf16.mxu1 %v2196_v21  ;;  %9175 = vmatprep.subr.bf16.mxu0 %v9447_v16  ;;  %v1732_v21 = vsel %vm1243_vm4, %v1727_v42, %v1731_v20  ;;  %v10761_v38 = vld [vmem:[#allocation2 + $0x50] ss:$0 sps:$4 sm:$0x11]   ;;  %v10772_v42 = vld [vmem:[#allocation2 + $0x58] sm:$0xf]  ;;  %v1739_v58 = vor.u32 %v1738_v43, %v1734_v6  ;;  %v2215_v20 = vor.u32 %v2214_v24, %v2210_v33  ;;  %v2222_v43 = vshrl.u32 %v10755_v52, 16 }
  0xf8   : > { %13136 = vst [vmem:[#allocation20_spill] sm:$0xff] %v10761_v38  ;;  %13137 = vst [vmem:[#allocation21_spill] sm:$0xff] %v10772_v42  ;;  %v2229_v26 = vshll.u32 %v10761_v38, 16  ;;  %v10792_v39 = vcombine.low %v1045_v60, %v10772_v42  ;;  %v1025_v6 = vld [vmem:[#allocation2 + $0x60] sm:$0xe]  ;;  %v2226_v56 = vrot.slane %v2224_v10, 1 }
  0xf9   : > { %v10798_v38 = vld [vmem:[#allocation2 + $0x64] sm:$0xf]  ;;  %v10808_v60 = vld [vmem:[#allocation2 + $0x6c] sm:$0xe]  ;;  %v2220_v24 = vsel %vm1243_vm4, %v2215_v20, %v2219_v19  ;;  %v13143_v20 = vshrl.u32 %v10236_v14, 16  ;;  %v9482_v14 = vld [vmem:[%s13067_s1 + $0x230] sm:$0xff]  }
  0xfa   : > { %9176 = vmatpush3.bf16.msra.mxu0 %v9447_v16  ;;  %v10785_v16 = vld [vmem:[#allocation2 + $0x5c] ss:$0 sps:$4 sm:$0x11]   ;;  %13140 = vst [vmem:[#allocation23_spill] sm:$0xff] %v10798_v38  ;;  %v10806_v33 = vcombine.low %v1047_v29, %v10798_v38  ;;  %v2231_v42 = vrot.slane %v2229_v26, 1  ;;  %v9475_v10 = vld [vmem:[%s13067_s1 + $0x228] sm:$0xff]  }
  0xfb   : > { %9177 = vmatprep.subr.bf16.mxu0 %v9454_v63  ;;  %13139 = vst [vmem:[#allocation22_spill] sm:$0xff] %v10785_v16  ;;  %v2236_v29 = vshll.u32 %v10792_v39, 16  ;;  %v9729_v26 = vld [vmem:[#allocation2 + $0x64] sm:$0xf] }
  0xfc   : > { %v7779_v19 = vcombine.low %v1025_v6, %v9729_v26  ;;  %v2253_v6 = vshll.u32 %v10812_v9, 16  ;;  %v1801_v26 = vshll.u32 %v10823_v23, 16  ;;  %v2246_v30 = vshrl.u32 %v10806_v33, 16  ;;  %v10855_v9 = vld [vmem:[#allocation2 + $0x74] ss:$0 sps:$4 sm:$0x11]  }
  0xfd   : > { %3439 = vmatmul.mubr.bf16.gmra.mrb[68].mxu0 %v1732_v21  ;;  %3600 = vmatmul.mubr.bf16.gmra.mrb[68].mxu1 %v10668_v32  ;;  %v9468_v32 = vld [vmem:[%s13067_s1 + $0x220] sm:$0xff]   ;;  %v9728_v21 = vld [vmem:[#allocation2 + $0x58] sm:$0xf]  ;;  %13146 = vst [vmem:[#allocation26_spill] sm:$0xff] %v10855_v9  ;;  %v2265_v17 = vshll.u32 %v10855_v9, 16 }
  0xfe   : > { %3446 = vmatprep.mubr.bf16.mxu0 %v1973_v2  ;;  %3607 = vmatprep.mubr.bf16.mxu1 %v2208_v13  ;;  %v7778_v36 = vcombine.low %v1024_v12, %v9728_v21  ;;  %v10794_v2 = vld [vmem:[#allocation2 + $0x5c] ss:$0 sps:$4 sm:$0x11]   ;;  %v1744_v21 = vsel %vm1243_vm4, %v1739_v58, %v1743_v25  ;;  %v1976_v13 = vsel %vm1500_vm9, %v1974_v55, %v1975_v47  ;;  %v2241_v55 = vshll.u32 %v10785_v16, 16 }
  0xff   : > { %9178 = vmatpush3.bf16.msra.mxu0 %v9454_v63  ;;  %v13141_v63 = vshll.u32 %v10312_v61, 16  ;;  %v1789_v47 = vshll.u32 %v10794_v2, 16  ;;  %v2248_v58 = vshll.u32 %v10806_v33, 16 }
 0x100   : > { %9179 = vmatprep.subr.bf16.mxu0 %v9461_v50  ;;  %v10821_v38 = vrot.slane %v7778_v36, 1  ;;  %v1049_v36 = vld [vmem:[#allocation2 + $0x6c] sm:$0xf] }
 0x101   : > { %v10803_v12 = vrot.slane %v13141_v63, 1  ;;  %v10818_v63 = vrot.slane %v1777_v27, 1  ;;  %v10833_v27 = vld [vmem:[#allocation2 + $0x70] sm:$0xf]  ;;  %v10849_v16 = vrot.slane %v1789_v47, 1  ;;  %v2250_v18 = vrot.slane %v2248_v58, 1 }
 0x102   : > { %13144 = vst [vmem:[#allocation25_spill] sm:$0xff] %v10833_v27  ;;  %v10853_v25 = vcombine.low %v1049_v36, %v10833_v27  ;;  %v1051_v36 = vld [vmem:[#allocation2 + $0x78] sm:$0xf]  ;;  %v1028_v27 = vld [vmem:[#allocation2 + $0x84] sm:$0xe] }
 0x103   : > { %9180 = vmatpush3.bf16.msra.mxu0 %v9461_v50  ;;  %v1751_v50 = vor.u32 %v10748_v45, %v13143_v20  ;;  %v10847_v20 = vrot.slane %v2241_v55, 1  ;;  %v13147_v55 = vshll.u32 %v10372_v37, 16  ;;  %v9489_v58 = vld [vmem:[%s13067_s1 + $0x238] sm:$0xff]   ;;  %v2251_v9 = vor.u32 %v2250_v18, %v2246_v30 }
 0x104   : > { %9181 = vmatprep.subr.bf16.mxu0 %v9468_v32  ;;  %v2260_v4 = vshll.u32 %v10853_v25, 16 }
 0x105   : > { %3447 = vmatmul.mubr.bf16.gmra.mrb[72].mxu0 %v1744_v21  ;;  %3608 = vmatmul.mubr.bf16.gmra.mrb[72].mxu1 %v10694_v57  ;;  %v9730_v57 = vld [vmem:[#allocation2 + $0x70] sm:$0xf]  ;;  %v1027_v21 = vld [vmem:[#allocation2 + $0x78] sm:$0xe]  ;;  %v10867_v47 = vrot.slane %v13147_v55, 1 }
 0x106   : > { %3454 = vmatprep.mubr.bf16.mxu0 %v1976_v13  ;;  %3615 = vmatprep.mubr.bf16.mxu1 %v2220_v24  ;;  %v7780_v45 = vcombine.low %v10808_v60, %v9730_v57  ;;  %v2227_v13 = vor.u32 %v2226_v56, %v2222_v43  ;;  %v2238_v24 = vrot.slane %v2236_v29, 1  ;;  %v10857_v60 = vrot.slane %v7779_v19, 1  ;;  %v10869_v57 = vld [vmem:[#allocation2 + $0x7c] sm:$0xf] }
 0x107   : > { %9182 = vmatpush3.bf16.msra.mxu0 %v9468_v32  ;;  %v1756_v32 = vsel %vm1243_vm4, %v1751_v50, %v10751_v15  ;;  %v10863_v29 = vrot.slane %v2253_v6, 1  ;;  %13148 = vst [vmem:[#allocation27_spill] sm:$0xff] %v10869_v57  ;;  %v13149_v19 = vrot.slane %v10731_v22, 1  ;;  %v10879_v50 = vrot.slane %v1801_v26, 1  ;;  %v9731_v55 = vld [vmem:[#allocation2 + $0x7c] sm:$0xf] }
 0x108   : > { %9183 = vmatprep.subr.bf16.mxu0 %v9475_v10  ;;  %v2232_v15 = vsel %vm1243_vm4, %v2227_v13, %v2231_v42  ;;  %v10881_v6 = vld [vmem:[#allocation2 + $0x74] ss:$0 sps:$4 sm:$0x11]   ;;  %v7781_v43 = vcombine.low %v1027_v21, %v9731_v55  ;;  %v10885_v0 = vrot.slane %v7780_v45, 1  ;;  %v10892_v42 = vcombine.low %v1051_v36, %v10869_v57  ;;  %v1053_v21 = vld [vmem:[#allocation2 + $0x84] sm:$0xf] }
 0x109   : > { %v1979_v56 = vsel %vm1500_vm9, %v10759_v11, %v13149_v19  ;;  %v10887_v22 = vld [vmem:[#allocation2 + $0x80] ss:$0 sps:$4 sm:$0x11]   ;;  %v13151_v13 = vshrl.u32 %v10294_v40, 16  ;;  %v13152_v26 = vshrl.u32 %v10792_v39, 16  ;;  %v13154_v36 = vshll.u32 %v10412_v28, 16 }
 0x10a   : > { %13150 = vst [vmem:[#allocation28_spill] sm:$0xff] %v10887_v22  ;;  %v10910_v40 = vrot.slane %v2260_v4, 1  ;;  %v2272_v55 = vshll.u32 %v10892_v42, 16  ;;  %v10921_v57 = vld [vmem:[#allocation2 + $0x8c] ss:$0 sps:$4 sm:$0x11]  }
 0x10b   : > { %9184 = vmatpush3.bf16.msra.mxu0 %v9475_v10  ;;  %v10894_v10 = vld [vmem:[#allocation2 + $0x80] ss:$0 sps:$4 sm:$0x11]   ;;  %v1763_v45 = vor.u32 %v10777_v3, %v13151_v13  ;;  %v2239_v19 = vor.u32 %v2238_v24, %v13152_v26  ;;  %v10907_v11 = vrot.slane %v13154_v36, 1  ;;  %v10912_v3 = vrot.slane %v2265_v17, 1 }
 0x10c   : > { %9185 = vmatprep.subr.bf16.mxu0 %v9482_v14  ;;  %v10915_v24 = vrot.slane %v7781_v43, 1  ;;  %v9732_v13 = vld [vmem:[#allocation2 + $0x88] sm:$0xf]  ;;  %v13156_v17 = vrot.slane %v10768_v48, 1  ;;  %v13157_v43 = vshrl.u32 %v10312_v61, 16  ;;  %v10951_v18 = vrot.slane %v2272_v55, 1 }
 0x10d   : > { %3455 = vmatmul.mubr.bf16.gmra.mrb[76].mxu0 %v1756_v32  ;;  %3616 = vmatmul.mubr.bf16.gmra.mrb[76].mxu1 %v10722_v5  ;;  %v10901_v32 = vld [vmem:[#allocation2 + $0x88] sm:$0xf]  ;;  %v7782_v26 = vcombine.low %v1028_v27, %v9732_v13  ;;  %v1029_v5 = vld [vmem:[#allocation2 + $0x90] sm:$0xe]  ;;  %v1768_v4 = vsel %vm1243_vm4, %v1763_v45, %v10779_v41  ;;  %v1825_v13 = vshll.u32 %v10894_v10, 16  ;;  %v2289_v30 = vshll.u32 %v10921_v57, 16 }
 0x10e   : > { %3462 = vmatprep.mubr.bf16.mxu0 %v1979_v56  ;;  %3623 = vmatprep.mubr.bf16.mxu1 %v2232_v15  ;;  %13153 = vst [vmem:[#allocation29_spill] sm:$0xff] %v10901_v32  ;;  %v1813_v56 = vshll.u32 %v10881_v6, 16  ;;  %v2277_v15 = vshll.u32 %v10887_v22, 16  ;;  %13155 = vst [vmem:[#allocation30_spill] sm:$0xff] %v10915_v24  ;;  %v10919_v36 = vcombine.low %v1053_v21, %v10901_v32  ;;  %v1055_v21 = vld [vmem:[#allocation2 + $0x90] sm:$0xf] }
 0x10f   : > { %9186 = vmatpush3.bf16.msra.mxu0 %v9482_v14  ;;  %v1982_v14 = vsel %vm1500_vm9, %v10782_v49, %v13156_v17  ;;  %v1775_v27 = vor.u32 %v10803_v12, %v13157_v43  ;;  %v10933_v22 = vld [vmem:[#allocation2 + $0x8c] ss:$0 sps:$4 sm:$0x11]   ;;  %v2244_v32 = vsel %vm1243_vm4, %v2239_v19, %v10847_v20  ;;  %v10940_v41 = vld [vmem:[#allocation2 + $0x94] sm:$0xf]  ;;  %v13159_v17 = vshll.u32 %v10435_v1, 16 }
 0x110   : > { %9187 = vmatprep.subr.bf16.mxu0 %v9489_v58  ;;  %v10937_v24 = vrot.slane %v1813_v56, 1  ;;  %13158 = vst [vmem:[#allocation31_spill] sm:$0xff] %v10940_v41  ;;  %v1030_v49 = vld [vmem:[#allocation2 + $0x9c] sm:$0xe]  ;;  %v10943_v12 = vrot.slane %v2277_v15, 1  ;;  %v2284_v20 = vshll.u32 %v10919_v36, 16  ;;  %v7783_v19 = vcombine.low %v1029_v5, %v10512_v46 }
 0x111   : > { %v10948_v43 = vrot.slane %v13159_v17, 1  ;;  %v10959_v56 = vrot.slane %v1825_v13, 1  ;;  %v10961_v15 = vrot.slane %v7782_v26, 1  ;;  %v7784_v46 = vcombine.low %v1030_v49, %v10551_v31  ;;  %v1057_v13 = vld [vmem:[#allocation2 + $0x9c] sm:$0xf] }
 0x112   : > { %v13161_v5 = vrot.slane %v10794_v2, 1  ;;  %v10980_v55 = vld [vmem:[#allocation2 + $0xa0] sm:$0xf]  ;;  %v1031_v17 = vld [vmem:[#allocation2 + $0xa8] sm:$0xe]  ;;  %v10984_v48 = vrot.slane %v2284_v20, 1 }
 0x113   : > { %9188 = vmatpush3.bf16.msra.mxu0 %v9489_v58  ;;  %v10956_v58 = vcombine.low %v1055_v21, %v10940_v41  ;;  %v10969_v21 = vld [vmem:[#allocation2 + $0x98] ss:$0 sps:$4 sm:$0x11]   ;;  %v10982_v45 = vld [vmem:[#allocation2 + $0xb4] sm:$0xe]  ;;  %v10986_v31 = vrot.slane %v2289_v30, 1  ;;  %v11008_v41 = vcombine.low %v1057_v13, %v10980_v55  ;;  %v7785_v13 = vcombine.low %v1031_v17, %v10570_v59 }
 0x114   : > { %v1985_v26 = vsel %vm1500_vm9, %v10821_v38, %v13161_v5  ;;  %v10993_v38 = vld [vmem:[#allocation2 + $0xc0] sm:$0xe]  ;;  %v10999_v5 = vrot.slane %v7783_v19, 1  ;;  %v13164_v61 = vshll.u32 %v10515_v53, 16  ;;  %v13166_v19 = vshrl.u32 %v10372_v37, 16 }
 0x115   : > { %3463 = vmatmul.mubr.bf16.gmra.mrb[80].mxu0 %v1768_v4  ;;  %3624 = vmatmul.mubr.bf16.gmra.mrb[80].mxu1 %v10755_v52  ;;  %v1837_v4 = vshll.u32 %v10933_v22, 16  ;;  %v10964_v52 = vld [vmem:[#allocation2 + $0x98] ss:$0 sps:$4 sm:$0x11]   ;;  %v2296_v2 = vshll.u32 %v10956_v58, 16  ;;  %v13167_v37 = vshrl.u32 %v10853_v25, 16 }
 0x116   : > { %3470 = vmatprep.mubr.bf16.mxu0 %v1982_v14  ;;  %3631 = vmatprep.mubr.bf16.mxu1 %v2244_v32  ;;  %13160 = vst [vmem:[#allocation32_spill] sm:$0xff] %v10964_v52  ;;  %v1780_v32 = vsel %vm1243_vm4, %v1775_v27, %v10818_v63  ;;  %v2256_v14 = vsel %vm1243_vm4, %v2251_v9, %v10863_v29  ;;  %v13162_v63 = vshll.u32 %v10466_v7, 16  ;;  %v2301_v29 = vshll.u32 %v10964_v52, 16  ;;  %v11014_v52 = vld [vmem:[#allocation2 + $0xa4] ss:$0 sps:$4 sm:$0x11]  }
 0x117   : > { %v10995_v49 = vrot.slane %v1837_v4, 1  ;;  %v13165_v4 = vshrl.u32 %v10340_v44, 16  ;;  %v1849_v9 = vshll.u32 %v10969_v21, 16  ;;  %v1799_v30 = vor.u32 %v10867_v47, %v13166_v19  ;;  %v11022_v20 = vld [vmem:[#allocation2 + $0xa4] ss:$0 sps:$4 sm:$0x11]  }
 0x118   : > { %v10990_v27 = vrot.slane %v13162_v63, 1  ;;  %v11005_v63 = vrot.slane %v13164_v61, 1  ;;  %v11020_v61 = vrot.slane %v2296_v2, 1  ;;  %v7786_v44 = vcombine.low %v10982_v45, %v10628_v35  ;;  %v11039_v17 = vld [vmem:[#allocation2 + $0xb0] ss:$0 sps:$4 sm:$0x11]  }
 0x119   : > { %13163 = vst [vmem:[#allocation33_spill] sm:$0xff] %v10995_v49  ;;  %v1787_v49 = vor.u32 %v10839_v54, %v13165_v4  ;;  %v2263_v47 = vor.u32 %v10910_v40, %v13167_v37  ;;  %v11034_v2 = vrot.slane %v2301_v29, 1  ;;  %v2308_v4 = vshll.u32 %v11008_v41, 16  ;;  %v11052_v19 = vld [vmem:[#allocation2 + $0xb0] ss:$0 sps:$4 sm:$0x11]  }
 0x11a   : > { %v11037_v59 = vrot.slane %v7784_v46, 1  ;;  %v13168_v45 = vrot.slane %v10823_v23, 1  ;;  %v11050_v29 = vrot.slane %v1849_v9, 1  ;;  %v1061_v46 = vld [vmem:[#allocation2 + $0xb4] sm:$0xf]  ;;  %v1804_v37 = vsel %vm1243_vm4, %v1799_v30, %v10879_v50 }
 0x11b   : > { %v1792_v35 = vsel %vm1243_vm4, %v1787_v49, %v10849_v16  ;;  %v2313_v16 = vshll.u32 %v11014_v52, 16  ;;  %v1861_v9 = vshll.u32 %v11022_v20, 16  ;;  %v2268_v50 = vsel %vm1243_vm4, %v2263_v47, %v10912_v3  ;;  %v11082_v54 = vld [vmem:[#allocation2 + $0xbc] ss:$0 sps:$4 sm:$0x11]  }
 0x11c   : > { %v13173_v30 = vrot.slane %v10881_v6, 1  ;;  %v13175_v6 = vshrl.u32 %v10435_v1, 16 }
 0x11d   : > { %3471 = vmatmul.mubr.bf16.gmra.mrb[84].mxu0 %v1780_v32  ;;  %3632 = vmatmul.mubr.bf16.gmra.mrb[84].mxu1 %v10792_v39  ;;  %v1059_v32 = vld [vmem:[#allocation2 + $0xa8] sm:$0xf]  ;;  %v11029_v39 = vld [vmem:[#allocation2 + $0xac] sm:$0xf]  ;;  %v11103_v1 = vrot.slane %v1861_v9, 1 }
 0x11e   : > { %3478 = vmatprep.mubr.bf16.mxu0 %v1985_v26  ;;  %3639 = vmatprep.mubr.bf16.mxu1 %v2256_v14  ;;  %v1988_v26 = vsel %vm1500_vm9, %v10857_v60, %v13168_v45  ;;  %v13169_v14 = vshrl.u32 %v10412_v28, 16  ;;  %v11059_v23 = vcombine.low %v1059_v32, %v11029_v39  ;;  %v11061_v60 = vld [vmem:[#allocation2 + $0xb8] sm:$0xf]  ;;  %v11069_v45 = vrot.slane %v7785_v13, 1 }
 0x11f   : > { %v1991_v32 = vsel %vm1500_vm9, %v10885_v0, %v13173_v30  ;;  %v11080_v28 = vcombine.low %v1061_v46, %v11061_v60  ;;  %v13174_v13 = vshrl.u32 %v10892_v42, 16  ;;  %v1823_v47 = vor.u32 %v10948_v43, %v13175_v6  ;;  %13177 = vst [vmem:[#allocation37_spill] sm:$0xff] %v11103_v1  ;;  %v11142_v43 = vld [vmem:[#allocation2 + $0xd0] sm:$0xf] }
 0x120   : > { %v1811_v40 = vor.u32 %v10907_v11, %v13169_v14  ;;  %v13170_v11 = vshll.u32 %v10557_v34, 16  ;;  %13172 = vst [vmem:[#allocation35_spill] sm:$0xff] %v11069_v45  ;;  %v11077_v14 = vrot.slane %v2308_v4, 1  ;;  %v11095_v4 = vld [vmem:[#allocation2 + $0xbc] ss:$0 sps:$4 sm:$0x11]  }
 0x121   : > { %v2275_v3 = vor.u32 %v10951_v18, %v13174_v13  ;;  %13176 = vst [vmem:[#allocation36_spill] sm:$0xff] %v11095_v4  ;;  %v11098_v46 = vrot.slane %v2313_v16, 1  ;;  %v1873_v30 = vshll.u32 %v11052_v19, 16  ;;  %v13178_v18 = vshll.u32 %v10574_v62, 16  ;;  %v11123_v62 = vld [vmem:[#allocation2 + $0xc4] sm:$0xf] }
 0x122   : > { %v11066_v49 = vrot.slane %v13170_v11, 1  ;;  %v11086_v11 = vsel %vm1243_vm4, %v1811_v40, %v10937_v24  ;;  %v2320_v24 = vshll.u32 %v11059_v23, 16  ;;  %v2325_v40 = vshll.u32 %v11039_v17, 16 }
 0x123   : > { %v11108_v13 = vrot.slane %v13178_v18, 1  ;;  %v2332_v6 = vshll.u32 %v11080_v28, 16  ;;  %v2337_v0 = vshll.u32 %v11082_v54, 16  ;;  %v11114_v45 = vrot.slane %v7786_v44, 1 }
 0x124   : > { %13171 = vst [vmem:[#allocation34_spill] sm:$0xff] %v11066_v49  ;;  %v1885_v18 = vshll.u32 %v11095_v4, 16  ;;  %v11125_v16 = vrot.slane %v2320_v24, 1  ;;  %v11127_v1 = vrot.slane %v2325_v40, 1  ;;  %v11129_v44 = vrot.slane %v1873_v30, 1 }
 0x125   : > { %3479 = vmatmul.mubr.bf16.gmra.mrb[88].mxu0 %v1792_v35  ;;  %3640 = vmatmul.mubr.bf16.gmra.mrb[88].mxu1 %v10806_v33  ;;  %13179 = vst [vmem:[#allocation38_spill] sm:$0xff] %v11108_v13  ;;  %v738_v33 = vrot.slane %v10611_v51, 4  ;;  %v903_v35 = vld [vmem:[#allocation2 + $0xc8] sm:$0x1]  ;;  %13180 = vst [vmem:[#allocation39_spill] sm:$0xff] %v11114_v45  ;;  %v13184_v45 = vld [vmem:[#allocation11_spill] sm:$0xff] }
 0x126   : > { %3486 = vmatprep.mubr.bf16.mxu0 %v1988_v26  ;;  %3647 = vmatprep.mubr.bf16.mxu1 %v2268_v50  ;;  %v13181_v26 = vshrl.u32 %v10919_v36, 16  ;;  %v1063_v13 = vld [vmem:[#allocation2 + $0xc0] sm:$0xf]  ;;  %13183 = vst [vmem:[#allocation40_spill] sm:$0xff] %v11129_v44  ;;  %v13186_v50 = vld [vmem:[#allocation30_spill] sm:$0xff]  ;;  %v11144_v30 = vrot.slane %v2332_v6, 1 }
 0x127   : > { %v904_v51 = vsel %vm10136_vm7, %v738_v33, %v903_v35  ;;  %v1065_v40 = vld [vmem:[#allocation2 + $0xcc] sm:$0xf]  ;;  %v11146_v49 = vrot.slane %v2337_v0, 1  ;;  %v11165_v6 = vrot.slane %v1885_v18, 1  ;;  %v13193_v0 = vcombine.low %v10993_v38, %v10659_v8  ;;  %v1085_v24 = vld [vmem:[#allocation2 + $0x30] sm:$0xe] }
 0x128   : > { %v2287_v9 = vor.u32 %v10984_v48, %v13181_v26  ;;  %905 = vst [vmem:[#allocation2 + $0xc8] sm:$0x1] %v904_v51  ;;  %v2280_v48 = vsel %vm1243_vm4, %v2275_v3, %v10943_v12  ;;  %v13185_v26 = vrot.slane %v10894_v10, 1  ;;  %v13188_v51 = vshll.u32 %v13184_v45, 16  ;;  %v1087_v8 = vld [vmem:[#allocation2 + $0x48] sm:$0xe] }
 0x129   : > { %13187 = vst [vmem:[#allocation30_spill] sm:$0xff] %v11146_v49  ;;  %v11153_v10 = vcombine.low %v1063_v13, %v11123_v62  ;;  %v11157_v3 = vsel %vm1243_vm4, %v1823_v47, %v10959_v56  ;;  %13192 = vst [vmem:[#allocation43_spill] sm:$0xff] %v11165_v6  ;;  %v1086_v13 = vld [vmem:[#allocation2 + $0x3c] sm:$0xe]  ;;  %v13195_v47 = vld [vmem:[#allocation15_spill] sm:$0xff]  ;;  %v13197_v38 = vshrl.u32 %v10956_v58, 16 }
 0x12a   : > { %v11138_v33 = vsel %vm1500_vm9, %v13186_v50, %v13185_v26  ;;  %v11150_v12 = vrot.slane %v13188_v51, 1  ;;  %v13191_v50 = vrot.slane %v10933_v22, 1  ;;  %v11170_v51 = vrot.slane %v13193_v0, 1  ;;  %v1088_v6 = vld [vmem:[#allocation2 + $0x54] sm:$0xe]  ;;  %v13205_v44 = vld [vmem:[#allocation21_spill] sm:$0xff] }
 0x12b   : > { %13190 = vst [vmem:[#allocation42_spill] sm:$0xff] %v11153_v10  ;;  %v2292_v56 = vsel %vm1243_vm4, %v2287_v9, %v10986_v31  ;;  %v11176_v22 = vcombine.low %v1065_v40, %v11142_v43  ;;  %v7822_v18 = vcombine.low %v1085_v24, %v13195_v47  ;;  %v13201_v40 = vld [vmem:[#allocation17_spill] sm:$0xff]  ;;  %v2344_v24 = vshll.u32 %v11153_v10, 16 }
 0x12c   : > { %13189 = vst [vmem:[#allocation41_spill] sm:$0xff] %v11150_v12  ;;  %v11163_v26 = vsel %vm1500_vm9, %v10961_v15, %v13191_v50  ;;  %13194 = vst [vmem:[#allocation44_spill] sm:$0xff] %v11170_v51  ;;  %v11178_v15 = vld [vmem:[#allocation2 + $0xd4] ss:$0 sps:$4 sm:$0x11]   ;;  %v13196_v50 = vld [vmem:[#allocation16_spill] sm:$0xff]  ;;  %v7823_v51 = vcombine.low %v1086_v13, %v13201_v40 }
 0x12d   : > { %3487 = vmatmul.mubr.bf16.gmra.mrb[92].mxu0 %v1804_v37  ;;  %3648 = vmatmul.mubr.bf16.gmra.mrb[92].mxu1 %v10853_v25  ;;  %v2436_v35 = vrot.slane %v13196_v50, 1  ;;  %v2299_v37 = vor.u32 %v11020_v61, %v13197_v38  ;;  %v13198_v25 = vld [vmem:[#allocation13_spill] sm:$0xff]  ;;  %v2435_v47 = vrot.slane %v7822_v18, 1  ;;  %v13202_v50 = vld [vmem:[#allocation18_spill] sm:$0xff] }
 0x12e   : > { %3494 = vmatprep.mubr.bf16.mxu0 %v1991_v32  ;;  %3655 = vmatprep.mubr.bf16.mxu1 %v2280_v48  ;;  %v13199_v31 = vshll.u32 %v13198_v25, 16  ;;  %v1089_v12 = vld [vmem:[#allocation2 + $0x60] sm:$0xe]  ;;  %v2439_v32 = vrot.slane %v13202_v50, 1  ;;  %v13203_v48 = vld [vmem:[#allocation19_spill] sm:$0xff]  ;;  %v2438_v0 = vrot.slane %v7823_v51, 1  ;;  %v7825_v25 = vcombine.low %v1088_v6, %v13205_v44 }
 0x12f   : > { %v7824_v45 = vcombine.low %v1087_v8, %v13203_v48  ;;  %v11199_v13 = vsel %vm1500_vm9, %v2435_v47, %v2436_v35  ;;  %v1090_v18 = vld [vmem:[#allocation2 + $0x6c] sm:$0xe]  ;;  %v2361_v50 = vshll.u32 %v11178_v15, 16  ;;  %v13209_v48 = vld [vmem:[#allocation20_spill] sm:$0xff]  ;;  %v11207_v51 = vrot.slane %v2344_v24, 1 }
 0x130   : > { %v11188_v9 = vrot.slane %v13199_v31, 1  ;;  %v2356_v31 = vshll.u32 %v11176_v22, 16  ;;  %13206 = vst [vmem:[#allocation16_spill] sm:$0xff] %v11199_v13  ;;  %v11204_v8 = vsel %vm1500_vm9, %v2438_v0, %v2439_v32  ;;  %v2442_v4 = vrot.slane %v13209_v48, 1  ;;  %v13210_v6 = vld [vmem:[#allocation22_spill] sm:$0xff]  ;;  %v13213_v0 = vld [vmem:[#allocation25_spill] sm:$0xff] }
 0x131   : > { %v2441_v40 = vrot.slane %v7824_v45, 1  ;;  %13208 = vst [vmem:[#allocation17_spill] sm:$0xff] %v11204_v8  ;;  %v2444_v38 = vrot.slane %v7825_v25, 1  ;;  %v2445_v61 = vrot.slane %v13210_v6, 1  ;;  %v1091_v47 = vld [vmem:[#allocation2 + $0x78] sm:$0xe]  ;;  %v7827_v32 = vcombine.low %v1090_v18, %v13213_v0 }
 0x132   : > { %13200 = vst [vmem:[#allocation15_spill] sm:$0xff] %v11188_v9  ;;  %v13207_v9 = vld [vmem:[#allocation23_spill] sm:$0xff]  ;;  %v13211_v45 = vld [vmem:[#allocation14_spill] sm:$0xff]  ;;  %v1092_v8 = vld [vmem:[#allocation2 + $0x84] sm:$0xe]  ;;  %v13214_v25 = vshrl.u32 %v10466_v7, 16 }
 0x133   : > { %v7826_v49 = vcombine.low %v1089_v12, %v13207_v9  ;;  %v11213_v12 = vsel %vm1500_vm9, %v2441_v40, %v2442_v4  ;;  %v13212_v9 = vld [vmem:[#allocation24_spill] sm:$0xff]  ;;  %v1093_v48 = vld [vmem:[#allocation2 + $0x90] sm:$0xe]  ;;  %v11224_v24 = vrot.slane %v2356_v31, 1  ;;  %v11227_v4 = vsel %vm1500_vm9, %v2444_v38, %v2445_v61  ;;  %v13216_v40 = vld [vmem:[#allocation26_spill] sm:$0xff] }
 0x134   : > { %v2448_v10 = vrot.slane %v13212_v9, 1  ;;  %13215 = vst [vmem:[#allocation18_spill] sm:$0xff] %v11227_v4  ;;  %v2451_v6 = vrot.slane %v13216_v40, 1  ;;  %v1094_v9 = vld [vmem:[#allocation2 + $0x9c] sm:$0xe]  ;;  %v2450_v7 = vrot.slane %v7827_v32, 1  ;;  %v2304_v61 = vsel %vm1243_vm4, %v2299_v37, %v11034_v2 }
 0x135   : > { %v2447_v35 = vrot.slane %v7826_v49, 1  ;;  %3495 = vmatmul.mubr.bf16.gmra.mrb[96].mxu0 %v11086_v11  ;;  %3656 = vmatmul.mubr.bf16.gmra.mrb[96].mxu1 %v10892_v42  ;;  %v11222_v49 = vor.u32 %v10990_v27, %v13214_v25  ;;  %v1095_v18 = vld [vmem:[#allocation2 + $0xa8] sm:$0xe]  ;;  %v11231_v11 = vrot.slane %v2361_v50, 1  ;;  %v13218_v27 = vld [vmem:[#allocation27_spill] sm:$0xff]  ;;  %v13219_v38 = vld [vmem:[#allocation28_spill] sm:$0xff]  ;;  %v7831_v2 = vcombine.low %v1094_v9, %v10980_v55 }
 0x136   : > { %3502 = vmatprep.mubr.bf16.mxu0 %v11138_v33  ;;  %3663 = vmatprep.mubr.bf16.mxu1 %v2292_v56  ;;  %v7828_v0 = vcombine.low %v1091_v47, %v13218_v27  ;;  %v1096_v31 = vld [vmem:[#allocation2 + $0xb4] sm:$0xe]  ;;  %v2454_v25 = vrot.slane %v13219_v38, 1  ;;  %v13220_v40 = vld [vmem:[#allocation29_spill] sm:$0xff]  ;;  %v2457_v44 = vrot.slane %v10921_v57, 1  ;;  %v11245_v50 = vsel %vm1500_vm9, %v2450_v7, %v2451_v6  ;;  %v13222_v47 = vld [vmem:[#allocation32_spill] sm:$0xff] }
 0x137   : > { %v11234_v42 = vsel %vm1500_vm9, %v2447_v35, %v2448_v10  ;;  %v7829_v13 = vcombine.low %v1092_v8, %v13220_v40  ;;  %v1097_v33 = vld [vmem:[#allocation2 + $0xc0] sm:$0xe]  ;;  %v11242_v56 = vld [vmem:[#allocation2 + $0xc8] ss:$0 sps:$4 sm:$0x11]   ;;  %v13221_v35 = vld [vmem:[#allocation31_spill] sm:$0xff]  ;;  %v7832_v8 = vcombine.low %v1095_v18, %v11029_v39  ;;  %v7833_v7 = vcombine.low %v1096_v31, %v11061_v60 }
 0x138   : > { %13217 = vst [vmem:[#allocation19_spill] sm:$0xff] %v11234_v42  ;;  %v2453_v10 = vrot.slane %v7828_v0, 1  ;;  %v7830_v32 = vcombine.low %v1093_v48, %v13221_v35  ;;  %v2460_v27 = vrot.slane %v13222_v47, 1  ;;  %v1098_v42 = vld [vmem:[#allocation2 + $0xcc] sm:$0xe]  ;;  %v2463_v37 = vrot.slane %v11014_v52, 1 }
 0x139   : > { %v2456_v4 = vrot.slane %v7829_v13, 1  ;;  %v2466_v6 = vrot.slane %v11039_v17, 1  ;;  %v2462_v13 = vrot.slane %v7831_v2, 1  ;;  %v2465_v35 = vrot.slane %v7832_v8, 1  ;;  %v9733_v8 = vld [vmem:[#allocation2 + $0x1c] sm:$0xf] }
 0x13a   : > { %v11253_v38 = vsel %vm1500_vm9, %v2453_v10, %v2454_v25  ;;  %v2459_v40 = vrot.slane %v7830_v32, 1  ;;  %v2469_v55 = vrot.slane %v11082_v54, 1  ;;  %v2468_v18 = vrot.slane %v7833_v7, 1  ;;  %v1083_v32 = vld [vmem:[#allocation2 + $0x18] sm:$0xe] }
 0x13b   : > { %v11258_v0 = vsel %vm1500_vm9, %v2456_v4, %v2457_v44  ;;  %v7834_v25 = vcombine.low %v1097_v33, %v11123_v62  ;;  %v11268_v60 = vsel %vm1500_vm9, %v2462_v13, %v2463_v37  ;;  %v11271_v44 = vsel %vm1500_vm9, %v2465_v35, %v2466_v6  ;;  %v11304_v37 = vld [vmem:[#allocation2 + $0xc8] ss:$0 sps:$4 sm:$0x11]  }
 0x13c   : > { %v11262_v39 = vsel %vm1500_vm9, %v2459_v40, %v2460_v27  ;;  %v2472_v54 = vrot.slane %v11242_v56, 1  ;;  %v7835_v4 = vcombine.low %v1098_v42, %v11142_v43  ;;  %v2349_v62 = vshll.u32 %v11242_v56, 16  ;;  %v13224_v42 = vld [vmem:[#allocation33_spill] sm:$0xff] }
 0x13d   : > { %3503 = vmatmul.mubr.bf16.gmra.mrb[100].mxu0 %v11157_v3  ;;  %3664 = vmatmul.mubr.bf16.gmra.mrb[100].mxu1 %v10919_v36  ;;  %v11278_v3 = vsel %vm1500_vm9, %v2468_v18, %v2469_v55  ;;  %v2471_v36 = vrot.slane %v7834_v25, 1  ;;  %v13223_v33 = vshrl.u32 %v11008_v41, 16  ;;  %v2475_v27 = vrot.slane %v11178_v15, 1  ;;  %v11296_v56 = vld [vmem:[%s13069_s3] ss:$0 sm:$0xff] }
 0x13e   : > { %3510 = vmatprep.mubr.bf16.mxu0 %v11163_v26  ;;  %3671 = vmatprep.mubr.bf16.mxu1 %v2304_v61  ;;  %v2474_v47 = vrot.slane %v7835_v4, 1  ;;  %v1840_v61 = vsel %vm1243_vm4, %v11222_v49, %v13224_v42  ;;  %v13226_v49 = vshrl.u32 %v10515_v53, 16  ;;  %v2011_v13 = vrot.slane %v11304_v37, 1  ;;  %v13230_v4 = vld [vmem:[#allocation34_spill] sm:$0xff]  ;;  %v13232_v42 = vld [vmem:[#allocation37_spill] sm:$0xff] }
 0x13f   : > { %v2311_v10 = vor.u32 %v11077_v14, %v13223_v33  ;;  %v11285_v43 = vsel %vm1500_vm9, %v2471_v36, %v2472_v54  ;;  %v13225_v14 = vrot.slane %v10969_v21, 1  ;;  %v13227_v21 = vshrl.u32 %v11059_v23, 16 }
 0x140   : > { %v11288_v26 = vsel %vm1500_vm9, %v2474_v47, %v2475_v27  ;;  %v1847_v40 = vor.u32 %v11005_v63, %v13226_v49  ;;  %v1897_v63 = vshll.u32 %v11304_v37, 16  ;;  %v2351_v25 = vrot.slane %v2349_v62, 1 }
 0x141   : > { %v2000_v15 = vsel %vm1500_vm9, %v10999_v5, %v13225_v14  ;;  %v2316_v2 = vsel %vm1243_vm4, %v2311_v10, %v11098_v46  ;;  %v2323_v5 = vor.u32 %v11125_v16, %v13227_v21  ;;  %v13228_v16 = vrot.slane %v11022_v20, 1 }
 0x142   : > { %v1852_v53 = vsel %vm1243_vm4, %v1847_v40, %v11050_v29  ;;  %v13229_v29 = vshrl.u32 %v10557_v34, 16 }
 0x143   : > { %v8245_v57 = vpop.f32.mrb[0].mxu0  ;;  %v2328_v18 = vsel %vm1243_vm4, %v2323_v5, %v11127_v1 }
 0x144   : > { %v8246_v48 = vpop.f32.mrb[1].mxu0 }
 0x145   : > { %v8247_v52 = vadd.f32 %v8246_v48, %v8245_v57  ;;  %v8248_v9 = vpop.f32.mrb[2].mxu0  ;;  %v7820_v57 = vcombine.low %v1083_v32, %v9733_v8  ;;  %3511 = vmatmul.mubr.bf16.gmra.mrb[104].mxu0 %v1840_v61  ;;  %3672 = vmatmul.mubr.bf16.gmra.mrb[104].mxu1 %v10956_v58  ;;  %v8357_v46 = vpop.f32.mrb[0].mxu1 }
 0x146   : > { %v8249_v17 = vpop.f32.mrb[3].mxu0  ;;  %3518 = vmatprep.mubr.bf16.mxu0 %v2000_v15  ;;  %3679 = vmatprep.mubr.bf16.mxu1 %v2316_v2  ;;  %v8358_v48 = vpop.f32.mrb[1].mxu1  ;;  %v13233_v15 = vrot.slane %v11052_v19, 1  ;;  %v13234_v2 = vld [vmem:[#allocation35_spill] sm:$0xff] }
 0x147   : > { %v8250_v31 = vadd.f32 %v8249_v17, %v8248_v9  ;;  %v3111_v6 = vadd.f32 %v8247_v52, %v11296_v56  ;;  %v11314_v7 = vrot.slane %v7820_v57, 1  ;;  %v8359_v35 = vadd.f32 %v8358_v48, %v8357_v46  ;;  %v8360_v55 = vpop.f32.mrb[2].mxu1  ;;  %v13235_v57 = vld [vmem:[#allocation30_spill] sm:$0xff] }
 0x148   : > { %v8361_v9 = vpop.f32.mrb[3].mxu1  ;;  %v2003_v52 = vsel %vm1500_vm9, %v11037_v59, %v13228_v16  ;;  %v13231_v59 = vshrl.u32 %v11080_v28, 16  ;;  %v2006_v8 = vsel %vm1500_vm9, %v13234_v2, %v13233_v15  ;;  %v13238_v48 = vld [vmem:[#allocation38_spill] sm:$0xff]  ;;  %v13247_v2 = vld [vmem:[#allocation41_spill] sm:$0xff] }
 0x149   : > { %v3114_v58 = vadd.f32 %v8250_v31, %v11296_v56  ;;  %v8362_v17 = vadd.f32 %v8361_v9, %v8360_v55  ;;  %v11327_v54 = vadd.f32 %v8359_v35, %v3111_v6  ;;  %v1859_v31 = vor.u32 %v13230_v4, %v13229_v29  ;;  %v13236_v6 = vld [vmem:[#allocation10_spill] sm:$0xff] }
 0x14a   : > { %v2335_v36 = vor.u32 %v11144_v30, %v13231_v59  ;;  %v13237_v46 = vshrl.u32 %v13236_v6, 16  ;;  %v13239_v35 = vld [vmem:[#allocation42_spill] sm:$0xff]  ;;  %v13241_v59 = vld [vmem:[#allocation40_spill] sm:$0xff] }
 0x14b   : > { %v11333_v20 = vadd.f32 %v8362_v17, %v3114_v58  ;;  %v1864_v34 = vsel %vm1243_vm4, %v1859_v31, %v13232_v42  ;;  %v13240_v55 = vshrl.u32 %v13239_v35, 16 }
 0x14c   : > { %v2340_v30 = vsel %vm1243_vm4, %v2335_v36, %v13235_v57  ;;  %v1871_v19 = vor.u32 %v13238_v48, %v13237_v46 }
 0x14d   : > { %3519 = vmatmul.mubr.bf16.gmra.mrb[108].mxu0 %v1852_v53  ;;  %3680 = vmatmul.mubr.bf16.gmra.mrb[108].mxu1 %v11008_v41  ;;  %v2347_v53 = vor.u32 %v11207_v51, %v13240_v55  ;;  %v13249_v55 = vld [vmem:[#allocation43_spill] sm:$0xff] }
 0x14e   : > { %3526 = vmatprep.mubr.bf16.mxu0 %v2003_v52  ;;  %3687 = vmatprep.mubr.bf16.mxu1 %v2328_v18  ;;  %v1876_v36 = vsel %vm1243_vm4, %v1871_v19, %v13241_v59 }
 0x150   : > { %v8251_v1 = vpop.f32.mrb[4].mxu0  ;;  %v8363_v62 = vpop.f32.mrb[4].mxu1 }
 0x151   : > { %v8252_v33 = vpop.f32.mrb[5].mxu0  ;;  %v8364_v10 = vpop.f32.mrb[5].mxu1 }
 0x152   : > { %v8253_v32 = vadd.f32 %v8252_v33, %v8251_v1  ;;  %v8254_v47 = vpop.f32.mrb[6].mxu0  ;;  %v8365_v27 = vadd.f32 %v8364_v10, %v8363_v62  ;;  %v8366_v41 = vpop.f32.mrb[6].mxu1  ;;  %v13242_v33 = vld [vmem:[#allocation36_spill] sm:$0xff] }
 0x153   : > { %v8255_v61 = vpop.f32.mrb[7].mxu0  ;;  %v8367_v14 = vpop.f32.mrb[7].mxu1  ;;  %v13243_v10 = vrot.slane %v13242_v33, 1 }
 0x154   : > { %v3119_v49 = vadd.f32 %v8253_v32, %v11296_v56  ;;  %v8256_v40 = vadd.f32 %v8255_v61, %v8254_v47  ;;  %v8368_v21 = vadd.f32 %v8367_v14, %v8366_v41  ;;  %v13244_v32 = vld [vmem:[#allocation39_spill] sm:$0xff]  ;;  %v2352_v47 = vsel %vm1243_vm4, %v2347_v53, %v2351_v25 }
 0x155   : > { %3527 = vmatmul.mubr.bf16.gmra.mrb[112].mxu0 %v1864_v34  ;;  %3688 = vmatmul.mubr.bf16.gmra.mrb[112].mxu1 %v11059_v23  ;;  %v2009_v51 = vsel %vm1500_vm9, %v13244_v32, %v13243_v10  ;;  %v1084_v34 = vld [vmem:[#allocation2 + $0x24] sm:$0xe]  ;;  %v13245_v14 = vld [vmem:[#allocation11_spill] sm:$0xff]  ;;  %v13248_v25 = vshrl.u32 %v11176_v22, 16 }
 0x156   : > { %v3122_v5 = vadd.f32 %v8256_v40, %v11296_v56  ;;  %3534 = vmatprep.mubr.bf16.mxu0 %v2006_v8  ;;  %3695 = vmatprep.mubr.bf16.mxu1 %v2340_v30  ;;  %v11352_v58 = vadd.f32 %v8365_v27, %v3119_v49  ;;  %v13246_v15 = vshrl.u32 %v13245_v14, 16 }
 0x157   : > { %v2359_v30 = vor.u32 %v11224_v24, %v13248_v25  ;;  %v13250_v24 = vld [vmem:[#allocation44_spill] sm:$0xff] }
 0x158   : > { %v8257_v9 = vpop.f32.mrb[8].mxu0  ;;  %v8369_v16 = vpop.f32.mrb[8].mxu1  ;;  %v11357_v52 = vadd.f32 %v8368_v21, %v3122_v5  ;;  %v1883_v8 = vor.u32 %v13247_v2, %v13246_v15  ;;  %v13254_v25 = vld [vmem:[#allocation12_spill] sm:$0xff] }
 0x159   : > { %v8258_v18 = vpop.f32.mrb[9].mxu0  ;;  %v8370_v23 = vpop.f32.mrb[9].mxu1 }
 0x15a   : > { %v8259_v17 = vadd.f32 %v8258_v18, %v8257_v9  ;;  %v8260_v29 = vpop.f32.mrb[10].mxu0  ;;  %v8371_v4 = vadd.f32 %v8370_v23, %v8369_v16  ;;  %v8372_v31 = vpop.f32.mrb[10].mxu1  ;;  %v1888_v53 = vsel %vm1243_vm4, %v1883_v8, %v13249_v55  ;;  %v9734_v9 = vld [vmem:[#allocation2 + $0x28] sm:$0xf] }
 0x15b   : > { %v8261_v1 = vpop.f32.mrb[11].mxu0  ;;  %v8373_v62 = vpop.f32.mrb[11].mxu1  ;;  %v7821_v16 = vcombine.low %v1084_v34, %v9734_v9 }
 0x15c   : > { %v3127_v27 = vadd.f32 %v8259_v17, %v11296_v56  ;;  %v8262_v41 = vadd.f32 %v8261_v1, %v8260_v29  ;;  %v8374_v42 = vadd.f32 %v8373_v62, %v8372_v31  ;;  %v2012_v17 = vsel %vm1500_vm9, %v13250_v24, %v2011_v13  ;;  %v13253_v62 = vld [vmem:[#allocation15_spill] sm:$0xff] }
 0x15d   : > { %3535 = vmatmul.mubr.bf16.gmra.mrb[116].mxu0 %v1876_v36  ;;  %3696 = vmatmul.mubr.bf16.gmra.mrb[116].mxu1 %v11080_v28  ;;  %v2364_v29 = vsel %vm1243_vm4, %v2359_v30, %v11231_v11  ;;  %v13251_v36 = vld [vmem:[#allocation13_spill] sm:$0xff]  ;;  %v1899_v13 = vrot.slane %v1897_v63, 1  ;;  %v2432_v32 = vrot.slane %v7821_v16, 1  ;;  %v13255_v30 = vrot.slane %v13254_v25, 1 }
 0x15e   : > { %v3130_v61 = vadd.f32 %v8262_v41, %v11296_v56  ;;  %3542 = vmatprep.mubr.bf16.mxu0 %v2009_v51  ;;  %3703 = vmatprep.mubr.bf16.mxu1 %v2352_v47  ;;  %v11372_v57 = vadd.f32 %v8371_v4, %v3127_v27  ;;  %v13252_v1 = vshrl.u32 %v13251_v36, 16  ;;  %v9511_v51 = vld [vmem:[%s13068_s2 + $0x40] sm:$0xff]   ;;  %v13256_v24 = vrot.slane %v13211_v45, 1  ;;  %v9514_v45 = vld [vmem:[%s13068_s2 + $0x8] sm:$0xff]  }
 0x15f   : > { %8701 = vmatprep.subr.bf16.mxu1 %v9511_v51 }
 0x160   : > { %v8263_v49 = vpop.f32.mrb[12].mxu0  ;;  %v8375_v40 = vpop.f32.mrb[12].mxu1  ;;  %v11377_v21 = vadd.f32 %v8374_v42, %v3130_v61  ;;  %v1895_v33 = vor.u32 %v13253_v62, %v13252_v1  ;;  %v13257_v1 = vld [vmem:[#allocation16_spill] sm:$0xff] }
 0x161   : > { %v8264_v28 = vpop.f32.mrb[13].mxu0  ;;  %v8376_v5 = vpop.f32.mrb[13].mxu1 }
 0x162   : > { %v8265_v6 = vadd.f32 %v8264_v28, %v8263_v49  ;;  %v8266_v46 = vpop.f32.mrb[14].mxu0  ;;  %v8377_v48 = vadd.f32 %v8376_v5, %v8375_v40  ;;  %v8378_v19 = vpop.f32.mrb[14].mxu1  ;;  %v1900_v15 = vsel %vm1243_vm4, %v1895_v33, %v1899_v13  ;;  %v2431_v49 = vsel %vm1500_vm9, %v11314_v7, %v13255_v30  ;;  %v9513_v33 = vld [vmem:[%s13068_s2 + $0x48] sm:$0xff]  }
 0x163   : > { %v8267_v18 = vpop.f32.mrb[15].mxu0  ;;  %v8379_v23 = vpop.f32.mrb[15].mxu1 }
 0x164   : > { %v3135_v4 = vadd.f32 %v8265_v6, %v11296_v56  ;;  %v8268_v31 = vadd.f32 %v8267_v18, %v8266_v46  ;;  %v8380_v59 = vadd.f32 %v8379_v23, %v8378_v19 }
 0x165   : > { %3543 = vmatmul.mubr.bf16.gmra.mrb[120].mxu0 %v1888_v53  ;;  %3704 = vmatmul.mubr.bf16.gmra.mrb[120].mxu1 %v13239_v35  ;;  %v9512_v35 = vld [vmem:[%s13068_s2] sm:$0xff]  }
 0x166   : > { %v3138_v10 = vadd.f32 %v8268_v31, %v11296_v56  ;;  %3550 = vmatprep.mubr.bf16.mxu0 %v2012_v17  ;;  %3711 = vmatprep.mubr.bf16.mxu1 %v2364_v29  ;;  %v11395_v11 = vadd.f32 %v8377_v48, %v3135_v4  ;;  %v2434_v17 = vsel %vm1500_vm9, %v2432_v32, %v13256_v24  ;;  %v13259_v24 = vld [vmem:[#allocation18_spill] sm:$0xff] }
 0x167   : > { %8702 = vmatpush3.bf16.msra.mxu1 %v9512_v35 }
 0x168   : > { %v8269_v47 = vpop.f32.mrb[16].mxu0  ;;  %v8381_v27 = vpop.f32.mrb[16].mxu1  ;;  %v11403_v41 = vadd.f32 %v8380_v59, %v3138_v10  ;;  %8703 = vmatprep.subr.bf16.mxu1 %v9513_v33 }
 0x169   : > { %v8270_v42 = vpop.f32.mrb[17].mxu0  ;;  %v8382_v37 = vpop.f32.mrb[17].mxu1 }
 0x16a   : > { %v8271_v63 = vadd.f32 %v8270_v42, %v8269_v47  ;;  %v8272_v34 = vpop.f32.mrb[18].mxu0  ;;  %v8383_v61 = vadd.f32 %v8382_v37, %v8381_v27  ;;  %v8384_v14 = vpop.f32.mrb[18].mxu1 }
 0x16b   : > { %v8273_v2 = vpop.f32.mrb[19].mxu0  ;;  %v8385_v8 = vpop.f32.mrb[19].mxu1  ;;  %8704 = vmatpush3.bf16.msra.mxu1 %v9514_v45 }
 0x16c   : > { %v3143_v40 = vadd.f32 %v8271_v63, %v11296_v56  ;;  %v8274_v28 = vadd.f32 %v8273_v2, %v8272_v34  ;;  %v8386_v5 = vadd.f32 %v8385_v8, %v8384_v14  ;;  %v13258_v2 = vld [vmem:[#allocation17_spill] sm:$0xff] }
 0x16d   : > { %3551 = vmatmul.mubr.bf16.gmra.mrb[124].mxu0 %v1900_v15  ;;  %3712 = vmatmul.mubr.bf16.gmra.mrb[124].mxu1 %v11176_v22 }
 0x16e   : > { %v3146_v6 = vadd.f32 %v8274_v28, %v11296_v56  ;;  %9189 = vmatprep.mubr.bf16.mxu0 %v2431_v49  ;;  %v11413_v46 = vadd.f32 %v8383_v61, %v3143_v40 }
 0x170   : > { %v8275_v48 = vpop.f32.mrb[20].mxu0  ;;  %v8387_v19 = vpop.f32.mrb[20].mxu1  ;;  %v11415_v55 = vadd.f32 %v8386_v5, %v3146_v6 }
 0x171   : > { %v8276_v53 = vpop.f32.mrb[21].mxu0  ;;  %v8388_v9 = vpop.f32.mrb[21].mxu1 }
 0x172   : > { %v8277_v16 = vadd.f32 %v8276_v53, %v8275_v48  ;;  %v8278_v7 = vpop.f32.mrb[22].mxu0  ;;  %v8389_v18 = vadd.f32 %v8388_v9, %v8387_v19  ;;  %v8390_v23 = vpop.f32.mrb[22].mxu1 }
 0x173   : > { %v8279_v22 = vpop.f32.mrb[23].mxu0  ;;  %v8391_v29 = vpop.f32.mrb[23].mxu1 }
 0x174   : > { %v3151_v4 = vadd.f32 %v8277_v16, %v11296_v56  ;;  %v8280_v31 = vadd.f32 %v8279_v22, %v8278_v7  ;;  %v8392_v59 = vadd.f32 %v8391_v29, %v8390_v23  ;;  %v9515_v29 = vld [vmem:[%s13068_s2 + $0x50] sm:$0xff]  }
 0x175   : > { %9190 = vmatmul.mubr.bf16.vlgmr.msra.gmra.mrb[128].mxu0 %v2434_v17  ;;  %v13260_v17 = vld [vmem:[#allocation19_spill] sm:$0xff]  ;;  %8705 = vmatprep.subr.bf16.mxu1 %v9515_v29 }
 0x176   : > { %v3154_v36 = vadd.f32 %v8280_v31, %v11296_v56  ;;  %9193 = vmatprep.mubr.bf16.mxu0 %v13257_v1  ;;  %v11423_v62 = vadd.f32 %v8389_v18, %v3151_v4  ;;  %v9516_v4 = vld [vmem:[%s13068_s2 + $0x10] sm:$0xff]  }
 0x177   : > { %8706 = vmatpush3.bf16.msra.mxu1 %v9516_v4 }
 0x178   : > { %v8281_v10 = vpop.f32.mrb[24].mxu0  ;;  %v8393_v13 = vpop.f32.mrb[24].mxu1  ;;  %v11431_v32 = vadd.f32 %v8392_v59, %v3154_v36 }
 0x179   : > { %v8282_v51 = vpop.f32.mrb[25].mxu0  ;;  %v8394_v35 = vpop.f32.mrb[25].mxu1 }
 0x17a   : > { %v8283_v47 = vadd.f32 %v8282_v51, %v8281_v10  ;;  %v8284_v27 = vpop.f32.mrb[26].mxu0  ;;  %v8395_v42 = vadd.f32 %v8394_v35, %v8393_v13  ;;  %v8396_v37 = vpop.f32.mrb[26].mxu1 }
 0x17b   : > { %v8285_v63 = vpop.f32.mrb[27].mxu0  ;;  %v8397_v34 = vpop.f32.mrb[27].mxu1 }
 0x17c   : > { %v3159_v61 = vadd.f32 %v8283_v47, %v11296_v56  ;;  %v8286_v14 = vadd.f32 %v8285_v63, %v8284_v27  ;;  %v8398_v15 = vadd.f32 %v8397_v34, %v8396_v37 }
 0x17d   : > { %9194 = vmatmul.mubr.bf16.gmra.mrb[132].mxu0 %v13258_v2 }
 0x17e   : > { %v3162_v8 = vadd.f32 %v8286_v14, %v11296_v56  ;;  %9197 = vmatprep.mubr.bf16.mxu0 %v11213_v12  ;;  %v11437_v25 = vadd.f32 %v8395_v42, %v3159_v61 }
 0x180   : > { %v8287_v30 = vpop.f32.mrb[28].mxu0  ;;  %v8399_v49 = vpop.f32.mrb[28].mxu1  ;;  %v11439_v40 = vadd.f32 %v8398_v15, %v3162_v8 }
 0x181   : > { %v8288_v28 = vpop.f32.mrb[29].mxu0  ;;  %v8400_v5 = vpop.f32.mrb[29].mxu1 }
 0x182   : > { %v8289_v6 = vadd.f32 %v8288_v28, %v8287_v30  ;;  %v8290_v48 = vpop.f32.mrb[30].mxu0  ;;  %v8401_v19 = vadd.f32 %v8400_v5, %v8399_v49  ;;  %v8402_v53 = vpop.f32.mrb[30].mxu1 }
 0x183   : > { %v8291_v9 = vpop.f32.mrb[31].mxu0  ;;  %v8403_v16 = vpop.f32.mrb[31].mxu1 }
 0x184   : > { %v3167_v7 = vadd.f32 %v8289_v6, %v11296_v56  ;;  %v8292_v18 = vadd.f32 %v8291_v9, %v8290_v48  ;;  %v8404_v23 = vadd.f32 %v8403_v16, %v8402_v53  ;;  %v9517_v16 = vld [vmem:[%s13068_s2 + $0x58] sm:$0xff]  }
 0x185   : > { %9198 = vmatmul.mubr.bf16.gmra.mrb[136].mxu0 %v13259_v24  ;;  %8707 = vmatprep.subr.bf16.mxu1 %v9517_v16 }
 0x186   : > { %v3170_v12 = vadd.f32 %v8292_v18, %v11296_v56  ;;  %9201 = vmatprep.mubr.bf16.mxu0 %v13260_v17  ;;  %v11445_v22 = vadd.f32 %v8401_v19, %v3167_v7  ;;  %v9518_v7 = vld [vmem:[%s13068_s2 + $0x18] sm:$0xff]  }
 0x187   : > { %8708 = vmatpush3.bf16.msra.mxu1 %v9518_v7 }
 0x188   : > { %v8293_v31 = vpop.f32.mrb[32].mxu0  ;;  %v8405_v59 = vpop.f32.mrb[32].mxu1  ;;  %v11453_v36 = vadd.f32 %v8404_v23, %v3170_v12 }
 0x189   : > { %v8294_v1 = vpop.f32.mrb[33].mxu0  ;;  %v8406_v33 = vpop.f32.mrb[33].mxu1 }
 0x18a   : > { %v8295_v45 = vadd.f32 %v8294_v1, %v8293_v31  ;;  %v8296_v10 = vpop.f32.mrb[34].mxu0  ;;  %v8407_v13 = vadd.f32 %v8406_v33, %v8405_v59  ;;  %v8408_v51 = vpop.f32.mrb[34].mxu1 }
 0x18b   : > { %v8297_v35 = vpop.f32.mrb[35].mxu0  ;;  %v8409_v47 = vpop.f32.mrb[35].mxu1 }
 0x18c   : > { %v3175_v27 = vadd.f32 %v8295_v45, %v11296_v56  ;;  %v8298_v42 = vadd.f32 %v8297_v35, %v8296_v10  ;;  %v8410_v37 = vadd.f32 %v8409_v47, %v8408_v51 }
 0x18d   : > { %9202 = vmatmul.mubr.bf16.gmra.mrb[140].mxu0 %v11245_v50 }
 0x18e   : > { %v3178_v63 = vadd.f32 %v8298_v42, %v11296_v56  ;;  %v11458_v34 = vadd.f32 %v8407_v13, %v3175_v27  ;;  %9205 = vmatprep.mubr.bf16.mxu0 %v11253_v38 }
 0x190   : > { %v11461_v61 = vadd.f32 %v8410_v37, %v3178_v63  ;;  %v8299_v14 = vpop.f32.mrb[36].mxu0  ;;  %v8411_v15 = vpop.f32.mrb[36].mxu1 }
 0x191   : > { %v8300_v2 = vpop.f32.mrb[37].mxu0  ;;  %v8412_v8 = vpop.f32.mrb[37].mxu1 }
 0x192   : > { %v8301_v30 = vadd.f32 %v8300_v2, %v8299_v14  ;;  %v8302_v49 = vpop.f32.mrb[38].mxu0  ;;  %v8413_v28 = vadd.f32 %v8412_v8, %v8411_v15  ;;  %v8414_v5 = vpop.f32.mrb[38].mxu1 }
 0x193   : > { %v8303_v6 = vpop.f32.mrb[39].mxu0  ;;  %v8415_v48 = vpop.f32.mrb[39].mxu1 }
 0x194   : > { %v3183_v50 = vadd.f32 %v8301_v30, %v11296_v56  ;;  %v8304_v19 = vadd.f32 %v8303_v6, %v8302_v49  ;;  %v8416_v53 = vadd.f32 %v8415_v48, %v8414_v5  ;;  %v9519_v5 = vld [vmem:[%s13068_s2 + $0x60] sm:$0xff]  }
 0x195   : > { %9206 = vmatmul.mubr.bf16.gmra.mrb[144].mxu0 %v11258_v0  ;;  %v9520_v6 = vld [vmem:[%s13068_s2 + $0x20] sm:$0xff]   ;;  %8709 = vmatprep.subr.bf16.mxu1 %v9519_v5 }
 0x196   : > { %v3186_v38 = vadd.f32 %v8304_v19, %v11296_v56  ;;  %v11466_v9 = vadd.f32 %v8413_v28, %v3183_v50  ;;  %9209 = vmatprep.mubr.bf16.mxu0 %v11262_v39  ;;  %8710 = vmatpush3.bf16.msra.mxu1 %v9520_v6 }
 0x198   : > { %v11475_v18 = vadd.f32 %v8416_v53, %v3186_v38  ;;  %v8305_v23 = vpop.f32.mrb[40].mxu0  ;;  %v8417_v24 = vpop.f32.mrb[40].mxu1 }
 0x199   : > { %v8306_v0 = vpop.f32.mrb[41].mxu0  ;;  %v8418_v12 = vpop.f32.mrb[41].mxu1 }
 0x19a   : > { %v8307_v17 = vadd.f32 %v8306_v0, %v8305_v23  ;;  %v8308_v29 = vpop.f32.mrb[42].mxu0  ;;  %v8419_v4 = vadd.f32 %v8418_v12, %v8417_v24  ;;  %v8420_v39 = vpop.f32.mrb[42].mxu1 }
 0x19b   : > { %v8309_v31 = vpop.f32.mrb[43].mxu0  ;;  %v8421_v59 = vpop.f32.mrb[43].mxu1 }
 0x19c   : > { %v3191_v1 = vadd.f32 %v8307_v17, %v11296_v56  ;;  %v8310_v33 = vadd.f32 %v8309_v31, %v8308_v29  ;;  %v8422_v45 = vadd.f32 %v8421_v59, %v8420_v39 }
 0x19d   : > { %9210 = vmatmul.mubr.bf16.gmra.mrb[148].mxu0 %v11268_v60 }
 0x19e   : > { %v3194_v10 = vadd.f32 %v8310_v33, %v11296_v56  ;;  %v11480_v13 = vadd.f32 %v8419_v4, %v3191_v1  ;;  %9213 = vmatprep.mubr.bf16.mxu0 %v11271_v44 }
 0x1a0   : > { %v11483_v51 = vadd.f32 %v8422_v45, %v3194_v10  ;;  %v8311_v35 = vpop.f32.mrb[44].mxu0  ;;  %v8423_v47 = vpop.f32.mrb[44].mxu1 }
 0x1a1   : > { %v8312_v27 = vpop.f32.mrb[45].mxu0  ;;  %v8424_v42 = vpop.f32.mrb[45].mxu1 }
 0x1a2   : > { %v8313_v37 = vadd.f32 %v8312_v27, %v8311_v35  ;;  %v8314_v63 = vpop.f32.mrb[46].mxu0  ;;  %v8425_v14 = vadd.f32 %v8424_v42, %v8423_v47  ;;  %v8426_v15 = vpop.f32.mrb[46].mxu1 }
 0x1a3   : > { %v8315_v2 = vpop.f32.mrb[47].mxu0  ;;  %v8427_v8 = vpop.f32.mrb[47].mxu1 }
 0x1a4   : > { %v3199_v60 = vadd.f32 %v8313_v37, %v11296_v56  ;;  %v8316_v30 = vadd.f32 %v8315_v2, %v8314_v63  ;;  %v8428_v49 = vadd.f32 %v8427_v8, %v8426_v15  ;;  %v9521_v2 = vld [vmem:[%s13068_s2 + $0x68] sm:$0xff]  }
 0x1a5   : > { %9214 = vmatmul.mubr.bf16.gmra.mrb[152].mxu0 %v11278_v3  ;;  %v9522_v8 = vld [vmem:[%s13068_s2 + $0x28] sm:$0xff]   ;;  %8711 = vmatprep.subr.bf16.mxu1 %v9521_v2  ;;  %v9523_v2 = vld [vmem:[%s13068_s2 + $0x70] sm:$0xff]  }
 0x1a6   : > { %v3202_v44 = vadd.f32 %v8316_v30, %v11296_v56  ;;  %v11488_v28 = vadd.f32 %v8425_v14, %v3199_v60  ;;  %9217 = vmatprep.mubr.bf16.mxu0 %v11285_v43  ;;  %8712 = vmatpush3.bf16.msra.mxu1 %v9522_v8  ;;  %v9524_v8 = vld [vmem:[%s13068_s2 + $0x30] sm:$0xff]  }
 0x1a7   : > { %8713 = vmatprep.subr.bf16.mxu1 %v9523_v2 }
 0x1a8   : > { %v11497_v48 = vadd.f32 %v8428_v49, %v3202_v44  ;;  %v8317_v50 = vpop.f32.mrb[48].mxu0  ;;  %v8429_v19 = vpop.f32.mrb[48].mxu1 }
 0x1a9   : > { %v8318_v3 = vpop.f32.mrb[49].mxu0  ;;  %v8430_v53 = vpop.f32.mrb[49].mxu1 }
 0x1aa   : > { %v8319_v38 = vadd.f32 %v8318_v3, %v8317_v50  ;;  %v8320_v16 = vpop.f32.mrb[50].mxu0  ;;  %v8431_v7 = vadd.f32 %v8430_v53, %v8429_v19  ;;  %v8432_v43 = vpop.f32.mrb[50].mxu1  ;;  %8714 = vmatpush3.bf16.msra.mxu1 %v9524_v8 }
 0x1ab   : > { %v8321_v23 = vpop.f32.mrb[51].mxu0  ;;  %v8433_v24 = vpop.f32.mrb[51].mxu1 }
 0x1ac   : > { %v3207_v0 = vadd.f32 %v8319_v38, %v11296_v56  ;;  %v8322_v12 = vadd.f32 %v8321_v23, %v8320_v16  ;;  %v8434_v17 = vadd.f32 %v8433_v24, %v8432_v43 }
 0x1ad   : > { %9218 = vmatmul.mubr.bf16.gmra.mrb[156].mxu0 %v11288_v26 }
 0x1ae   : > { %v3210_v29 = vadd.f32 %v8322_v12, %v11296_v56  ;;  %v11502_v4 = vadd.f32 %v8431_v7, %v3207_v0 }
 0x1b0   : > { %v11504_v39 = vadd.f32 %v8434_v17, %v3210_v29  ;;  %v8323_v31 = vpop.f32.mrb[52].mxu0  ;;  %v8435_v59 = vpop.f32.mrb[52].mxu1 }
 0x1b1   : > { %v8324_v1 = vpop.f32.mrb[53].mxu0  ;;  %v8436_v33 = vpop.f32.mrb[53].mxu1 }
 0x1b2   : > { %v8325_v45 = vadd.f32 %v8324_v1, %v8323_v31  ;;  %v8326_v10 = vpop.f32.mrb[54].mxu0  ;;  %v8437_v35 = vadd.f32 %v8436_v33, %v8435_v59  ;;  %v8438_v47 = vpop.f32.mrb[54].mxu1 }
 0x1b3   : > { %v8327_v27 = vpop.f32.mrb[55].mxu0  ;;  %v8439_v42 = vpop.f32.mrb[55].mxu1 }
 0x1b4   : > { %v3215_v37 = vadd.f32 %v8325_v45, %v11296_v56  ;;  %v8328_v63 = vadd.f32 %v8327_v27, %v8326_v10  ;;  %v8440_v26 = vadd.f32 %v8439_v42, %v8438_v47  ;;  %v9525_v10 = vld [vmem:[%s13068_s2 + $0xc0] sm:$0xff]  }
 0x1b5   : > { %v9526_v27 = vld [vmem:[%s13068_s2 + $0x80] sm:$0xff]   ;;  %8813 = vmatprep.subr.bf16.mxu0 %v9525_v10 }
 0x1b6   : > { %v3218_v14 = vadd.f32 %v8328_v63, %v11296_v56  ;;  %v11508_v15 = vadd.f32 %v8437_v35, %v3215_v37  ;;  %8814 = vmatpush3.bf16.msra.mxu0 %v9526_v27 }
 0x1b8   : > { %v11516_v60 = vadd.f32 %v8440_v26, %v3218_v14  ;;  %v8329_v30 = vpop.f32.mrb[56].mxu0  ;;  %v8441_v49 = vpop.f32.mrb[56].mxu1 }
 0x1b9   : > { %v8330_v44 = vpop.f32.mrb[57].mxu0  ;;  %v8442_v5 = vpop.f32.mrb[57].mxu1 }
 0x1ba   : > { %v8331_v6 = vadd.f32 %v8330_v44, %v8329_v30  ;;  %v8332_v50 = vpop.f32.mrb[58].mxu0  ;;  %v8443_v19 = vadd.f32 %v8442_v5, %v8441_v49  ;;  %v8444_v3 = vpop.f32.mrb[58].mxu1  ;;  %v9527_v30 = vld [vmem:[%s13068_s2 + $0xc8] sm:$0xff]  }
 0x1bb   : > { %v8333_v53 = vpop.f32.mrb[59].mxu0  ;;  %v8445_v38 = vpop.f32.mrb[59].mxu1  ;;  %v9528_v49 = vld [vmem:[%s13068_s2 + $0x88] sm:$0xff]   ;;  %8815 = vmatprep.subr.bf16.mxu0 %v9527_v30 }
 0x1bc   : > { %v3223_v16 = vadd.f32 %v8331_v6, %v11296_v56  ;;  %v8334_v7 = vadd.f32 %v8333_v53, %v8332_v50  ;;  %v8446_v43 = vadd.f32 %v8445_v38, %v8444_v3  ;;  %8816 = vmatpush3.bf16.msra.mxu0 %v9528_v49 }
 0x1be   : > { %v3226_v23 = vadd.f32 %v8334_v7, %v11296_v56  ;;  %v11520_v24 = vadd.f32 %v8443_v19, %v3223_v16  ;;  %v9529_v16 = vld [vmem:[%s13068_s2 + $0xd0] sm:$0xff]  }
 0x1bf   : > { %8817 = vmatprep.subr.bf16.mxu0 %v9529_v16 }
 0x1c0   : > { %v11522_v0 = vadd.f32 %v8446_v43, %v3226_v23  ;;  %v8335_v12 = vpop.f32.mrb[60].mxu0  ;;  %v8447_v17 = vpop.f32.mrb[60].mxu1  ;;  %v9530_v23 = vld [vmem:[%s13068_s2 + $0x90] sm:$0xff]  }
 0x1c1   : > { %v8336_v29 = vpop.f32.mrb[61].mxu0  ;;  %v8448_v31 = vpop.f32.mrb[61].mxu1  ;;  %8818 = vmatpush3.bf16.msra.mxu0 %v9530_v23 }
 0x1c2   : > { %v8337_v59 = vadd.f32 %v8336_v29, %v8335_v12  ;;  %v8338_v1 = vpop.f32.mrb[62].mxu0  ;;  %v8449_v33 = vadd.f32 %v8448_v31, %v8447_v17  ;;  %v8450_v45 = vpop.f32.mrb[62].mxu1 }
 0x1c3   : > { %v8339_v35 = vpop.f32.mrb[63].mxu0  ;;  %v8451_v47 = vpop.f32.mrb[63].mxu1 }
 0x1c4   : > { %v3231_v42 = vadd.f32 %v8337_v59, %v11296_v56  ;;  %v8340_v37 = vadd.f32 %v8339_v35, %v8338_v1  ;;  %v8452_v63 = vadd.f32 %v8451_v47, %v8450_v45  ;;  %v9531_v1 = vld [vmem:[%s13068_s2 + $0xd8] sm:$0xff]  }
 0x1c5   : > { %8819 = vmatprep.subr.bf16.mxu0 %v9531_v1  ;;  %v4442_v1 = vld [vmem:[#allocation3] sm:$0xf] }
 0x1c6   : > { %v3234_v26 = vadd.f32 %v8340_v37, %v11296_v56  ;;  %v11532_v14 = vadd.f32 %v8449_v33, %v3231_v42  ;;  %v9532_v33 = vld [vmem:[%s13068_s2 + $0x98] sm:$0xff]  }
 0x1c7   : > { %8820 = vmatpush3.bf16.msra.mxu0 %v9532_v33  ;;  %v11582_v33 = vld [vmem:[#allocation3 + $0x4] sm:$0xf] }
 0x1c8   : > { %v11546_v44 = vadd.f32 %v8452_v63, %v3234_v26  ;;  %v8469_v56 = vpop.f32.mrb[64].mxu0  ;;  %v8581_v5 = vpop.f32.mrb[64].mxu1 }
 0x1c9   : > { %v8470_v6 = vpop.f32.mrb[65].mxu0  ;;  %v8582_v50 = vpop.f32.mrb[65].mxu1 }
 0x1ca   : > { %v8471_v19 = vadd.f32 %v8470_v6, %v8469_v56  ;;  %v8472_v3 = vpop.f32.mrb[66].mxu0  ;;  %v8583_v53 = vadd.f32 %v8582_v50, %v8581_v5  ;;  %v8584_v38 = vpop.f32.mrb[66].mxu1 }
 0x1cb   : > { %v8473_v7 = vpop.f32.mrb[67].mxu0  ;;  %v8585_v43 = vpop.f32.mrb[67].mxu1 }
 0x1cc   : > { %v3433_v12 = vadd.f32 %v8471_v19, %v11327_v54  ;;  %v8474_v17 = vadd.f32 %v8473_v7, %v8472_v3  ;;  %v8586_v29 = vadd.f32 %v8585_v43, %v8584_v38  ;;  %v9535_v19 = vld [vmem:[%s13068_s2 + $0xe0] sm:$0xff]  }
 0x1cd   : > { %8821 = vmatprep.subr.bf16.mxu0 %v9535_v19 }
 0x1ce   : > { %v3436_v31 = vadd.f32 %v8474_v17, %v11333_v20  ;;  %v11556_v59 = vadd.f32 %v8583_v53, %v3433_v12 }
 0x1d0   : > { %v8475_v45 = vpop.f32.mrb[68].mxu0  ;;  %v8587_v10 = vpop.f32.mrb[68].mxu1  ;;  %v11564_v35 = vadd.f32 %v8586_v29, %v3436_v31  ;;  %v9537_v31 = vld [vmem:[%s13068_s2 + $0xe8] sm:$0xff]  }
 0x1d1   : > { %v8476_v54 = vpop.f32.mrb[69].mxu0  ;;  %v8588_v47 = vpop.f32.mrb[69].mxu1 }
 0x1d2   : > { %v8477_v27 = vadd.f32 %v8476_v54, %v8475_v45  ;;  %v8478_v20 = vpop.f32.mrb[70].mxu0  ;;  %v8589_v42 = vadd.f32 %v8588_v47, %v8587_v10  ;;  %v8590_v37 = vpop.f32.mrb[70].mxu1  ;;  %v9538_v45 = vld [vmem:[%s13068_s2 + $0xa8] sm:$0xff]   ;;  %v7941_v10 = vcombine.low %v4442_v1, %v11582_v33 }
 0x1d3   : > { %v8479_v63 = vpop.f32.mrb[71].mxu0  ;;  %v8591_v26 = vpop.f32.mrb[71].mxu1 }
 0x1d4   : > { %v3441_v2 = vadd.f32 %v8477_v27, %v11352_v58  ;;  %v8480_v8 = vadd.f32 %v8479_v63, %v8478_v20  ;;  %v8592_v30 = vadd.f32 %v8591_v26, %v8590_v37  ;;  %v9536_v58 = vld [vmem:[%s13068_s2 + $0xa0] sm:$0xff]   ;;  %v4782_v27 = vshll.u32 %v7941_v10, 16  ;;  %v9533_v63 = vld [vmem:[%s13068_s2 + $0x78] sm:$0xff]  }
 0x1d5   : > { %8822 = vmatpush3.bf16.msra.mxu0 %v9536_v58  ;;  %8715 = vmatprep.subr.bf16.mxu1 %v9533_v63 }
 0x1d6   : > { %v3444_v49 = vadd.f32 %v8480_v8, %v11357_v52  ;;  %v11568_v56 = vadd.f32 %v8589_v42, %v3441_v2  ;;  %8823 = vmatprep.subr.bf16.mxu0 %v9537_v31  ;;  %v9539_v8 = vld [vmem:[%s13068_s2 + $0xf0] sm:$0xff]  }
 0x1d8   : > { %v8481_v5 = vpop.f32.mrb[72].mxu0  ;;  %v8593_v6 = vpop.f32.mrb[72].mxu1  ;;  %v11570_v50 = vadd.f32 %v8592_v30, %v3444_v49  ;;  %v4780_v30 = vshrl.u32 %v7941_v10, 16  ;;  %v4784_v49 = vrot.slane %v4782_v27, 1 }
 0x1d9   : > { %v8482_v3 = vpop.f32.mrb[73].mxu0  ;;  %v8594_v53 = vpop.f32.mrb[73].mxu1  ;;  %8824 = vmatpush3.bf16.msra.mxu0 %v9538_v45  ;;  %v9544_v45 = vld [vmem:[%s13068_s2 + $0xb8] sm:$0xff]  }
 0x1da   : > { %v8483_v38 = vadd.f32 %v8482_v3, %v8481_v5  ;;  %v8484_v16 = vpop.f32.mrb[74].mxu0  ;;  %v8595_v7 = vadd.f32 %v8594_v53, %v8593_v6  ;;  %v8596_v52 = vpop.f32.mrb[74].mxu1  ;;  %v9540_v53 = vld [vmem:[%s13068_s2 + $0xb0] sm:$0xff]   ;;  %8825 = vmatprep.subr.bf16.mxu0 %v9539_v8 }
 0x1db   : > { %v8485_v43 = vpop.f32.mrb[75].mxu0  ;;  %v8597_v23 = vpop.f32.mrb[75].mxu1 }
 0x1dc   : > { %v3449_v12 = vadd.f32 %v8483_v38, %v11372_v57  ;;  %v8486_v17 = vadd.f32 %v8485_v43, %v8484_v16  ;;  %v8598_v29 = vadd.f32 %v8597_v23, %v8596_v52  ;;  %v11591_v57 = vld [vmem:[#allocation3 + $0x8] ss:$0 sps:$4 sm:$0x11]  }
 0x1dd   : > { %v4787_v58 = vshll.u32 %v11591_v57, 16  ;;  %8826 = vmatpush3.bf16.msra.mxu0 %v9540_v53 }
 0x1de   : > { %v3452_v54 = vadd.f32 %v8486_v17, %v11377_v21  ;;  %v11589_v47 = vadd.f32 %v8595_v7, %v3449_v12  ;;  %v9534_v21 = vld [vmem:[%s13068_s2 + $0x38] sm:$0xff]   ;;  %v4785_v7 = vor.u32 %v4784_v49, %v4780_v30 }
 0x1df   : > { %8716 = vmatpush3.bf16.msra.mxu1 %v9534_v21  ;;  %v4789_v12 = vrot.slane %v4787_v58, 1  ;;  %v9543_v17 = vld [vmem:[%s13068_s2 + $0xf8] sm:$0xff]   ;;  %v5036_v58 = vrot.slane %v11591_v57, 1 }
 0x1e0   : > { %v8487_v20 = vpop.f32.mrb[76].mxu0  ;;  %v8599_v42 = vpop.f32.mrb[76].mxu1  ;;  %v11593_v37 = vadd.f32 %v8598_v29, %v3452_v54  ;;  %8827 = vmatprep.subr.bf16.mxu0 %v9543_v17 }
 0x1e1   : > { %v8488_v26 = vpop.f32.mrb[77].mxu0  ;;  %v8600_v2 = vpop.f32.mrb[77].mxu1  ;;  %v4790_v1 = vsel %vm1243_vm4, %v4785_v7, %v4789_v12  ;;  %8828 = vmatpush3.bf16.msra.mxu0 %v9544_v45 }
 0x1e2   : > { %v8489_v5 = vadd.f32 %v8488_v26, %v8487_v20  ;;  %v8490_v6 = vpop.f32.mrb[78].mxu0  ;;  %v8601_v19 = vadd.f32 %v8600_v2, %v8599_v42  ;;  %v8602_v3 = vpop.f32.mrb[78].mxu1  ;;  %6635 = vmatprep.mubr.bf16.mxu1 %v4790_v1 }
 0x1e3   : > { %v8491_v38 = vpop.f32.mrb[79].mxu0  ;;  %v8603_v16 = vpop.f32.mrb[79].mxu1  ;;  %6636 = vmatmul.mubr.bf16.vlgmr.msra.gmra.mrb[128].mxu1 %v7941_v10 }
 0x1e4   : > { %v3457_v52 = vadd.f32 %v8489_v5, %v11395_v11  ;;  %v8492_v43 = vadd.f32 %v8491_v38, %v8490_v6  ;;  %v8604_v23 = vadd.f32 %v8603_v16, %v8602_v3  ;;  %v4490_v6 = vld [vmem:[#allocation3] sm:$0xe] }
 0x1e6   : > { %v3460_v29 = vadd.f32 %v8492_v43, %v11403_v41  ;;  %v11613_v31 = vadd.f32 %v8601_v19, %v3457_v52  ;;  %v7973_v19 = vcombine.low %v4490_v6, %v11582_v33 }
 0x1e8   : > { %v8493_v11 = vpop.f32.mrb[80].mxu0  ;;  %v8605_v54 = vpop.f32.mrb[80].mxu1  ;;  %v11619_v27 = vadd.f32 %v8604_v23, %v3460_v29  ;;  %v5035_v10 = vrot.slane %v7973_v19, 1 }
 0x1e9   : > { %v8494_v20 = vpop.f32.mrb[81].mxu0  ;;  %v8606_v42 = vpop.f32.mrb[81].mxu1 }
 0x1ea   : > { %v8495_v63 = vadd.f32 %v8494_v20, %v8493_v11  ;;  %v8496_v41 = vpop.f32.mrb[82].mxu0  ;;  %v8607_v26 = vadd.f32 %v8606_v42, %v8605_v54  ;;  %v8608_v2 = vpop.f32.mrb[82].mxu1  ;;  %v9547_v20 = vld [vmem:[%s13068_s2 + $0x140] sm:$0xff]  }
 0x1eb   : > { %v8497_v21 = vpop.f32.mrb[83].mxu0  ;;  %v8609_v8 = vpop.f32.mrb[83].mxu1  ;;  %v9548_v42 = vld [vmem:[%s13068_s2 + $0x100] sm:$0xff]   ;;  %8925 = vmatprep.subr.bf16.mxu1 %v9547_v20 }
 0x1ec   : > { %v3465_v30 = vadd.f32 %v8495_v63, %v11413_v46  ;;  %v8498_v49 = vadd.f32 %v8497_v21, %v8496_v41  ;;  %v8610_v5 = vadd.f32 %v8609_v8, %v8608_v2  ;;  %v11630_v46 = vsel %vm1500_vm9, %v5035_v10, %v5036_v58  ;;  %8926 = vmatpush3.bf16.msra.mxu1 %v9548_v42 }
 0x1ee   : > { %v3468_v3 = vadd.f32 %v8498_v49, %v11415_v55  ;;  %v11624_v53 = vadd.f32 %v8607_v26, %v3465_v30 }
 0x1f0   : > { %v8499_v38 = vpop.f32.mrb[84].mxu0  ;;  %v8611_v16 = vpop.f32.mrb[84].mxu1  ;;  %v11627_v7 = vadd.f32 %v8610_v5, %v3468_v3 }
 0x1f1   : > { %v8500_v52 = vpop.f32.mrb[85].mxu0  ;;  %v8612_v43 = vpop.f32.mrb[85].mxu1 }
 0x1f2   : > { %v8501_v23 = vadd.f32 %v8500_v52, %v8499_v38  ;;  %v8502_v12 = vpop.f32.mrb[86].mxu0  ;;  %v8613_v17 = vadd.f32 %v8612_v43, %v8611_v16  ;;  %v8614_v33 = vpop.f32.mrb[86].mxu1 }
 0x1f3   : > { %v8503_v29 = vpop.f32.mrb[87].mxu0  ;;  %v8615_v55 = vpop.f32.mrb[87].mxu1 }
 0x1f4   : > { %v3473_v1 = vadd.f32 %v8501_v23, %v11423_v62  ;;  %v8504_v45 = vadd.f32 %v8503_v29, %v8502_v12  ;;  %v8616_v11 = vadd.f32 %v8615_v55, %v8614_v33 }
 0x1f6   : > { %v3476_v57 = vadd.f32 %v8504_v45, %v11431_v32  ;;  %v11634_v54 = vadd.f32 %v8613_v17, %v3473_v1 }
 0x1f8   : > { %v8505_v63 = vpop.f32.mrb[88].mxu0  ;;  %v8617_v41 = vpop.f32.mrb[88].mxu1  ;;  %v11642_v26 = vadd.f32 %v8616_v11, %v3476_v57 }
 0x1f9   : > { %v8506_v2 = vpop.f32.mrb[89].mxu0  ;;  %v8618_v62 = vpop.f32.mrb[89].mxu1 }
 0x1fa   : > { %v8507_v21 = vadd.f32 %v8506_v2, %v8505_v63  ;;  %v8508_v8 = vpop.f32.mrb[90].mxu0  ;;  %v8619_v32 = vadd.f32 %v8618_v62, %v8617_v41  ;;  %v8620_v30 = vpop.f32.mrb[90].mxu1 }
 0x1fb   : > { %v8509_v49 = vpop.f32.mrb[91].mxu0  ;;  %v8621_v5 = vpop.f32.mrb[91].mxu1 }
 0x1fc   : > { %v3481_v6 = vadd.f32 %v8507_v21, %v11437_v25  ;;  %v8510_v19 = vadd.f32 %v8509_v49, %v8508_v8  ;;  %v8622_v3 = vadd.f32 %v8621_v5, %v8620_v30 }
 0x1fe   : > { %v3484_v10 = vadd.f32 %v8510_v19, %v11439_v40  ;;  %v11646_v58 = vadd.f32 %v8619_v32, %v3481_v6 }
 0x200   : > { %v8511_v38 = vpop.f32.mrb[92].mxu0  ;;  %v8623_v16 = vpop.f32.mrb[92].mxu1  ;;  %v11648_v52 = vadd.f32 %v8622_v3, %v3484_v10 }
 0x201   : > { %v8512_v43 = vpop.f32.mrb[93].mxu0  ;;  %v8624_v23 = vpop.f32.mrb[93].mxu1 }
 0x202   : > { %v8513_v12 = vadd.f32 %v8512_v43, %v8511_v38  ;;  %v8514_v17 = vpop.f32.mrb[94].mxu0  ;;  %v8625_v33 = vadd.f32 %v8624_v23, %v8623_v16  ;;  %v8626_v29 = vpop.f32.mrb[94].mxu1 }
 0x203   : > { %v8515_v55 = vpop.f32.mrb[95].mxu0  ;;  %v8627_v1 = vpop.f32.mrb[95].mxu1 }
 0x204   : > { %v3489_v25 = vadd.f32 %v8513_v12, %v11445_v22  ;;  %v8516_v45 = vadd.f32 %v8515_v55, %v8514_v17  ;;  %v8628_v11 = vadd.f32 %v8627_v1, %v8626_v29 }
 0x206   : > { %v3492_v40 = vadd.f32 %v8516_v45, %v11453_v36  ;;  %v11652_v57 = vadd.f32 %v8625_v33, %v3489_v25 }
 0x208   : > { %v8517_v20 = vpop.f32.mrb[96].mxu0  ;;  %v8629_v42 = vpop.f32.mrb[96].mxu1  ;;  %v11654_v63 = vadd.f32 %v8628_v11, %v3492_v40 }
 0x209   : > { %v8518_v41 = vpop.f32.mrb[97].mxu0  ;;  %v8630_v2 = vpop.f32.mrb[97].mxu1 }
 0x20a   : > { %v8519_v62 = vadd.f32 %v8518_v41, %v8517_v20  ;;  %v8520_v21 = vpop.f32.mrb[98].mxu0  ;;  %v8631_v8 = vadd.f32 %v8630_v2, %v8629_v42  ;;  %v8632_v32 = vpop.f32.mrb[98].mxu1 }
 0x20b   : > { %v8521_v30 = vpop.f32.mrb[99].mxu0  ;;  %v8633_v49 = vpop.f32.mrb[99].mxu1 }
 0x20c   : > { %v3497_v22 = vadd.f32 %v8519_v62, %v11458_v34  ;;  %v8522_v5 = vadd.f32 %v8521_v30, %v8520_v21  ;;  %v8634_v6 = vadd.f32 %v8633_v49, %v8632_v32  ;;  %v9557_v34 = vld [vmem:[%s13068_s2 + $0x148] sm:$0xff]  }
 0x20d   : > { %8927 = vmatprep.subr.bf16.mxu1 %v9557_v34 }
 0x20e   : > { %v3500_v36 = vadd.f32 %v8522_v5, %v11461_v61  ;;  %v11658_v19 = vadd.f32 %v8631_v8, %v3497_v22  ;;  %v9560_v61 = vld [vmem:[%s13068_s2 + $0x108] sm:$0xff]  }
 0x20f   : > { %8928 = vmatpush3.bf16.msra.mxu1 %v9560_v61 }
 0x210   : > { %v8523_v3 = vpop.f32.mrb[100].mxu0  ;;  %v8635_v10 = vpop.f32.mrb[100].mxu1  ;;  %v11660_v38 = vadd.f32 %v8634_v6, %v3500_v36 }
 0x211   : > { %v8524_v16 = vpop.f32.mrb[101].mxu0  ;;  %v8636_v43 = vpop.f32.mrb[101].mxu1 }
 0x212   : > { %v8525_v23 = vadd.f32 %v8524_v16, %v8523_v3  ;;  %v8526_v12 = vpop.f32.mrb[102].mxu0  ;;  %v8637_v17 = vadd.f32 %v8636_v43, %v8635_v10  ;;  %v8638_v33 = vpop.f32.mrb[102].mxu1 }
 0x213   : > { %v8527_v29 = vpop.f32.mrb[103].mxu0  ;;  %v8639_v55 = vpop.f32.mrb[103].mxu1 }
 0x214   : > { %v3505_v1 = vadd.f32 %v8525_v23, %v11466_v9  ;;  %v8528_v25 = vadd.f32 %v8527_v29, %v8526_v12  ;;  %v8640_v45 = vadd.f32 %v8639_v55, %v8638_v33 }
 0x216   : > { %v3508_v11 = vadd.f32 %v8528_v25, %v11475_v18  ;;  %v11670_v40 = vadd.f32 %v8637_v17, %v3505_v1 }
 0x218   : > { %v8529_v20 = vpop.f32.mrb[104].mxu0  ;;  %v8641_v42 = vpop.f32.mrb[104].mxu1  ;;  %v11672_v41 = vadd.f32 %v8640_v45, %v3508_v11 }
 0x219   : > { %v8530_v2 = vpop.f32.mrb[105].mxu0  ;;  %v8642_v62 = vpop.f32.mrb[105].mxu1 }
 0x21a   : > { %v8531_v21 = vadd.f32 %v8530_v2, %v8529_v20  ;;  %v8532_v8 = vpop.f32.mrb[106].mxu0  ;;  %v8643_v32 = vadd.f32 %v8642_v62, %v8641_v42  ;;  %v8644_v30 = vpop.f32.mrb[106].mxu1 }
 0x21b   : > { %v8533_v49 = vpop.f32.mrb[107].mxu0  ;;  %v8645_v9 = vpop.f32.mrb[107].mxu1 }
 0x21c   : > { %v3513_v22 = vadd.f32 %v8531_v21, %v11480_v13  ;;  %v8534_v5 = vadd.f32 %v8533_v49, %v8532_v8  ;;  %v8646_v6 = vadd.f32 %v8645_v9, %v8644_v30 }
 0x21e   : > { %v3516_v18 = vadd.f32 %v8534_v5, %v11483_v51  ;;  %v11676_v36 = vadd.f32 %v8643_v32, %v3513_v22 }
 0x220   : > { %v8535_v3 = vpop.f32.mrb[108].mxu0  ;;  %v8647_v10 = vpop.f32.mrb[108].mxu1  ;;  %v11678_v16 = vadd.f32 %v8646_v6, %v3516_v18  ;;  %v9570_v18 = vld [vmem:[%s13068_s2 + $0x110] sm:$0xff]  }
 0x221   : > { %v8536_v43 = vpop.f32.mrb[109].mxu0  ;;  %v8648_v23 = vpop.f32.mrb[109].mxu1 }
 0x222   : > { %v8537_v12 = vadd.f32 %v8536_v43, %v8535_v3  ;;  %v8538_v17 = vpop.f32.mrb[110].mxu0  ;;  %v8649_v33 = vadd.f32 %v8648_v23, %v8647_v10  ;;  %v8650_v29 = vpop.f32.mrb[110].mxu1 }
 0x223   : > { %v8539_v55 = vpop.f32.mrb[111].mxu0  ;;  %v8651_v34 = vpop.f32.mrb[111].mxu1 }
 0x224   : > { %v3521_v13 = vadd.f32 %v8537_v12, %v11488_v28  ;;  %v8540_v61 = vadd.f32 %v8539_v55, %v8538_v17  ;;  %v8652_v1 = vadd.f32 %v8651_v34, %v8650_v29 }
 0x226   : > { %v3524_v51 = vadd.f32 %v8540_v61, %v11497_v48  ;;  %v11682_v25 = vadd.f32 %v8649_v33, %v3521_v13  ;;  %v9567_v48 = vld [vmem:[%s13068_s2 + $0x150] sm:$0xff]  }
 0x227   : > { %8929 = vmatprep.subr.bf16.mxu1 %v9567_v48 }
 0x228   : > { %v8541_v45 = vpop.f32.mrb[112].mxu0  ;;  %v8653_v11 = vpop.f32.mrb[112].mxu1  ;;  %v11684_v20 = vadd.f32 %v8652_v1, %v3524_v51  ;;  %8930 = vmatpush3.bf16.msra.mxu1 %v9570_v18  ;;  %v9578_v1 = vld [vmem:[%s13068_s2 + $0x158] sm:$0xff]  }
 0x229   : > { %v8542_v42 = vpop.f32.mrb[113].mxu0  ;;  %v8654_v2 = vpop.f32.mrb[113].mxu1  ;;  %8931 = vmatprep.subr.bf16.mxu1 %v9578_v1  ;;  %v9592_v1 = vld [vmem:[%s13068_s2 + $0x160] sm:$0xff]  }
 0x22a   : > { %v8543_v62 = vadd.f32 %v8542_v42, %v8541_v45  ;;  %v8544_v21 = vpop.f32.mrb[114].mxu0  ;;  %v8655_v8 = vadd.f32 %v8654_v2, %v8653_v11  ;;  %v8656_v32 = vpop.f32.mrb[114].mxu1 }
 0x22b   : > { %v8545_v30 = vpop.f32.mrb[115].mxu0  ;;  %v8657_v49 = vpop.f32.mrb[115].mxu1 }
 0x22c   : > { %v3529_v28 = vadd.f32 %v8543_v62, %v11502_v4  ;;  %v8546_v9 = vadd.f32 %v8545_v30, %v8544_v21  ;;  %v8658_v22 = vadd.f32 %v8657_v49, %v8656_v32  ;;  %v9582_v49 = vld [vmem:[%s13068_s2 + $0x118] sm:$0xff]  }
 0x22d   : > { %8932 = vmatpush3.bf16.msra.mxu1 %v9582_v49 }
 0x22e   : > { %v3532_v5 = vadd.f32 %v8546_v9, %v11504_v39  ;;  %v11691_v6 = vadd.f32 %v8655_v8, %v3529_v28  ;;  %8933 = vmatprep.subr.bf16.mxu1 %v9592_v1 }
 0x230   : > { %v8547_v3 = vpop.f32.mrb[116].mxu0  ;;  %v8659_v10 = vpop.f32.mrb[116].mxu1  ;;  %v11696_v43 = vadd.f32 %v8658_v22, %v3532_v5 }
 0x231   : > { %v8548_v4 = vpop.f32.mrb[117].mxu0  ;;  %v8660_v23 = vpop.f32.mrb[117].mxu1 }
 0x232   : > { %v8549_v12 = vadd.f32 %v8548_v4, %v8547_v3  ;;  %v8550_v17 = vpop.f32.mrb[118].mxu0  ;;  %v8661_v33 = vadd.f32 %v8660_v23, %v8659_v10  ;;  %v8662_v29 = vpop.f32.mrb[118].mxu1 }
 0x233   : > { %v8551_v55 = vpop.f32.mrb[119].mxu0  ;;  %v8663_v39 = vpop.f32.mrb[119].mxu1 }
 0x234   : > { %v3537_v34 = vadd.f32 %v8549_v12, %v11508_v15  ;;  %v8552_v13 = vadd.f32 %v8551_v55, %v8550_v17  ;;  %v8664_v61 = vadd.f32 %v8663_v39, %v8662_v29 }
 0x236   : > { %v3540_v51 = vadd.f32 %v8552_v13, %v11516_v60  ;;  %v11703_v45 = vadd.f32 %v8661_v33, %v3537_v34 }
 0x238   : > { %v8553_v11 = vpop.f32.mrb[120].mxu0  ;;  %v8665_v42 = vpop.f32.mrb[120].mxu1  ;;  %v11705_v2 = vadd.f32 %v8664_v61, %v3540_v51 }
 0x239   : > { %v8554_v62 = vpop.f32.mrb[121].mxu0  ;;  %v8666_v21 = vpop.f32.mrb[121].mxu1 }
 0x23a   : > { %v8555_v8 = vadd.f32 %v8554_v62, %v8553_v11  ;;  %v8556_v32 = vpop.f32.mrb[122].mxu0  ;;  %v8667_v15 = vadd.f32 %v8666_v21, %v8665_v42  ;;  %v8668_v30 = vpop.f32.mrb[122].mxu1 }
 0x23b   : > { %v8557_v28 = vpop.f32.mrb[123].mxu0  ;;  %v8669_v9 = vpop.f32.mrb[123].mxu1 }
 0x23c   : > { %v3545_v60 = vadd.f32 %v8555_v8, %v11520_v24  ;;  %v8558_v22 = vadd.f32 %v8557_v28, %v8556_v32  ;;  %v8670_v48 = vadd.f32 %v8669_v9, %v8668_v30  ;;  %v9590_v24 = vld [vmem:[%s13068_s2 + $0x1c0] sm:$0xff]  }
 0x23d   : > { %9037 = vmatprep.subr.bf16.mxu0 %v9590_v24 }
 0x23e   : > { %v3548_v5 = vadd.f32 %v8558_v22, %v11522_v0  ;;  %v11712_v18 = vadd.f32 %v8667_v15, %v3545_v60  ;;  %v9596_v15 = vld [vmem:[%s13068_s2 + $0x120] sm:$0xff]  }
 0x23f   : > { %8934 = vmatpush3.bf16.msra.mxu1 %v9596_v15 }
 0x240   : > { %v8559_v3 = vpop.f32.mrb[124].mxu0  ;;  %v8671_v10 = vpop.f32.mrb[124].mxu1  ;;  %v11714_v4 = vadd.f32 %v8670_v48, %v3548_v5 }
 0x241   : > { %v8560_v23 = vpop.f32.mrb[125].mxu0  ;;  %v8672_v12 = vpop.f32.mrb[125].mxu1 }
 0x242   : > { %v8561_v17 = vadd.f32 %v8560_v23, %v8559_v3  ;;  %v8562_v33 = vpop.f32.mrb[126].mxu0  ;;  %v8673_v29 = vadd.f32 %v8672_v12, %v8671_v10  ;;  %v8674_v55 = vpop.f32.mrb[126].mxu1 }
 0x243   : > { %v8563_v39 = vpop.f32.mrb[127].mxu0  ;;  %v8675_v34 = vpop.f32.mrb[127].mxu1 }
 0x244   : > { %v3553_v0 = vadd.f32 %v8561_v17, %v11532_v14  ;;  %v8564_v13 = vadd.f32 %v8563_v39, %v8562_v33  ;;  %v8676_v61 = vadd.f32 %v8675_v34, %v8674_v55  ;;  %v4337_v34 = vld [vmem:[#allocation3 + $0x18] sm:$0xf] }
 0x246   : > { %v3556_v51 = vadd.f32 %v8564_v13, %v11546_v44  ;;  %v11724_v11 = vadd.f32 %v8673_v29, %v3553_v0 }
 0x248   : > { %v9191_v42 = vpop.f32.mrb[128].mxu0  ;;  %v11726_v62 = vadd.f32 %v8676_v61, %v3556_v51 }
 0x249   : > { %v3763_v21 = vadd.f32 %v9191_v42, %v11568_v56  ;;  %v3754_v8 = vpop.f32.mrb[129].mxu0  ;;  %v4330_v42 = vld [vmem:[#allocation3 + $0xc] sm:$0xf] }
 0x24a   : > { %v3755_v14 = vadd.f32 %v3754_v8, %v11556_v59  ;;  %v9192_v32 = vpop.f32.mrb[130].mxu0 }
 0x24b   : > { %v3883_v30 = vmax.f32 %v3763_v21, 0.0  ;;  %v3766_v49 = vadd.f32 %v9192_v32, %v11570_v50  ;;  %v3757_v44 = vpop.f32.mrb[131].mxu0 }
 0x24c   : > { %v3881_v28 = vmax.f32 %v3755_v14, 0.0  ;;  %v3758_v9 = vadd.f32 %v3757_v44, %v11564_v35 }
 0x24d   : > { %v8198_v60 = vpack.c.bf16 %v3883_v30, %v3883_v30  ;;  %v3884_v22 = vmax.f32 %v3766_v49, 0.0  ;;  %v4341_v30 = vld [vmem:[#allocation3 + $0x20] sm:$0x1] }
 0x24e   : > { %v8196_v48 = vpack.c.bf16 %v3881_v28, %v3881_v28  ;;  %v3882_v56 = vmax.f32 %v3758_v9, 0.0 }
 0x24f   : > { %v4027_v5 = vshrl.u32 %v8198_v60, 16  ;;  %v8199_v3 = vpack.c.bf16 %v3884_v22, %v3884_v22  ;;  %v4030_v59 = vshll.u32 %v8198_v60, 16  ;;  %v4334_v22 = vld [vmem:[#allocation3 + $0x14] sm:$0x1] }
 0x250   : > { %v4010_v10 = vshrl.u32 %v8196_v48, 16  ;;  %v4013_v23 = vshll.u32 %v8196_v48, 16  ;;  %v8197_v12 = vpack.c.bf16 %v3882_v56, %v3882_v56  ;;  %v9195_v17 = vpop.f32.mrb[132].mxu0 }
 0x251   : > { %v4029_v33 = vrot.slane %v4027_v5, 7  ;;  %v4035_v29 = vshrl.u32 %v8199_v3, 16  ;;  %v4038_v55 = vshll.u32 %v8199_v3, 16  ;;  %v3779_v50 = vadd.f32 %v9195_v17, %v11613_v31  ;;  %v3770_v39 = vpop.f32.mrb[133].mxu0 }
 0x252   : > { %v4012_v35 = vrot.slane %v4010_v10, 7  ;;  %v4018_v24 = vshrl.u32 %v8197_v12, 16  ;;  %v4021_v0 = vshll.u32 %v8197_v12, 16  ;;  %v3771_v13 = vadd.f32 %v3770_v39, %v11589_v47  ;;  %v9196_v61 = vpop.f32.mrb[134].mxu0  ;;  %v9606_v47 = vld [vmem:[%s13068_s2 + $0x168] sm:$0xff]  }
 0x253   : > { %v4032_v1 = vor.u32 %v4030_v59, %v4029_v33  ;;  %v4033_v51 = vrot.slane %v4029_v33, 4  ;;  %v4037_v21 = vrot.slane %v4035_v29, 7  ;;  %v3887_v8 = vmax.f32 %v3779_v50, 0.0  ;;  %v3773_v14 = vpop.f32.mrb[135].mxu0  ;;  %8935 = vmatprep.subr.bf16.mxu1 %v9606_v47 }
 0x254   : > { %v4015_v32 = vor.u32 %v4013_v23, %v4012_v35  ;;  %v4016_v15 = vrot.slane %v4012_v35, 4  ;;  %v4020_v49 = vrot.slane %v4018_v24, 7  ;;  %v3885_v44 = vmax.f32 %v3771_v13, 0.0 }
 0x255   : > { %v4338_v28 = vsel %vm10142_vm8, %v4032_v1, %v4337_v34  ;;  %v4040_v9 = vor.u32 %v4038_v55, %v4037_v21  ;;  %v4042_v60 = vrot.slane %v4037_v21, 4  ;;  %v8202_v48 = vpack.c.bf16 %v3887_v8, %v3887_v8 }
 0x256   : > { %4339 = vst [vmem:[#allocation3 + $0x18] sm:$0xf] %v4338_v28  ;;  %v4331_v56 = vsel %vm10142_vm8, %v4015_v32, %v4330_v42  ;;  %v4023_v5 = vor.u32 %v4021_v0, %v4020_v49  ;;  %v4025_v3 = vrot.slane %v4020_v49, 4  ;;  %v8200_v59 = vpack.c.bf16 %v3885_v44, %v3885_v44 }
 0x257   : > { %4332 = vst [vmem:[#allocation3 + $0xc] sm:$0xf] %v4331_v56  ;;  %v4041_v23 = vsel %vm10123_vm6, %v4033_v51, %v4040_v9  ;;  %v4342_v17 = vsel %vm10136_vm7, %v4042_v60, %v4341_v30  ;;  %v4061_v33 = vshrl.u32 %v8202_v48, 16  ;;  %v4064_v50 = vshll.u32 %v8202_v48, 16  ;;  %v4351_v51 = vld [vmem:[#allocation3 + $0x30] sm:$0xf] }
 0x258   : > { %4340 = vst.msk [vmem:[#allocation3 + $0x1c] sm:$0xf] %vm788_vm0, %v4041_v23  ;;  %4343 = vst [vmem:[#allocation3 + $0x20] sm:$0x1] %v4342_v17  ;;  %v4024_v29 = vsel %vm10123_vm6, %v4016_v15, %v4023_v5  ;;  %v4335_v55 = vsel %vm10136_vm7, %v4025_v3, %v4334_v22  ;;  %v4044_v39 = vshrl.u32 %v8200_v59, 16  ;;  %v9199_v34 = vpop.f32.mrb[136].mxu0  ;;  %v3782_v24 = vadd.f32 %v9196_v61, %v11619_v27 }
 0x259   : > { %4333 = vst.msk [vmem:[#allocation3 + $0x10] sm:$0xf] %vm788_vm0, %v4024_v29  ;;  %4336 = vst [vmem:[#allocation3 + $0x14] sm:$0x1] %v4335_v55  ;;  %v11754_v35 = vrot.slane %v4061_v33, 7  ;;  %v3774_v0 = vadd.f32 %v3773_v14, %v11593_v37  ;;  %v3795_v13 = vadd.f32 %v9199_v34, %v11634_v54  ;;  %v3786_v1 = vpop.f32.mrb[137].mxu0 }
 0x25a   : > { %v4046_v42 = vrot.slane %v4044_v39, 7  ;;  %v4047_v21 = vshll.u32 %v8200_v59, 16  ;;  %v3787_v8 = vadd.f32 %v3786_v1, %v11624_v53  ;;  %v9200_v32 = vpop.f32.mrb[138].mxu0  ;;  %v9610_v15 = vld [vmem:[%s13068_s2 + $0x128] sm:$0xff]   ;;  %v4344_v27 = vld [vmem:[#allocation3 + $0x24] sm:$0xf] }
 0x25b   : > { %v4066_v30 = vor.u32 %v4064_v50, %v11754_v35  ;;  %v4067_v49 = vrot.slane %v11754_v35, 4  ;;  %v3888_v61 = vmax.f32 %v3782_v24, 0.0  ;;  %v3886_v37 = vmax.f32 %v3774_v0, 0.0  ;;  %v3789_v14 = vpop.f32.mrb[139].mxu0  ;;  %8936 = vmatpush3.bf16.msra.mxu1 %v9610_v15  ;;  %v4355_v29 = vld [vmem:[#allocation3 + $0x38] sm:$0x1] }
 0x25c   : > { %v4049_v54 = vor.u32 %v4047_v21, %v4046_v42  ;;  %v4050_v44 = vrot.slane %v4046_v42, 4  ;;  %v3891_v28 = vmax.f32 %v3795_v13, 0.0  ;;  %v3889_v9 = vmax.f32 %v3787_v8, 0.0  ;;  %v4348_v55 = vld [vmem:[#allocation3 + $0x2c] sm:$0x1] }
 0x25d   : > { %v4352_v53 = vsel %vm10142_vm8, %v4066_v30, %v4351_v51  ;;  %v8203_v60 = vpack.c.bf16 %v3888_v61, %v3888_v61  ;;  %v8201_v22 = vpack.c.bf16 %v3886_v37, %v3886_v37  ;;  %v3798_v48 = vadd.f32 %v9200_v32, %v11642_v26 }
 0x25e   : > { %4353 = vst [vmem:[#allocation3 + $0x30] sm:$0xf] %v4352_v53  ;;  %v4345_v47 = vsel %vm10142_vm8, %v4049_v54, %v4344_v27  ;;  %v8206_v56 = vpack.c.bf16 %v3891_v28, %v3891_v28  ;;  %v8204_v5 = vpack.c.bf16 %v3889_v9, %v3889_v9  ;;  %v3790_v3 = vadd.f32 %v3789_v14, %v11627_v7  ;;  %v4365_v7 = vld [vmem:[#allocation3 + $0x48] sm:$0xf]  ;;  %v4358_v14 = vld [vmem:[#allocation3 + $0x3c] sm:$0xf] }
 0x25f   : > { %4346 = vst [vmem:[#allocation3 + $0x24] sm:$0xf] %v4345_v47  ;;  %v4069_v59 = vshrl.u32 %v8203_v60, 16  ;;  %v4072_v23 = vshll.u32 %v8203_v60, 16  ;;  %v4052_v17 = vshrl.u32 %v8201_v22, 16  ;;  %v4055_v33 = vshll.u32 %v8201_v22, 16 }
 0x260   : > { %v4095_v50 = vshrl.u32 %v8206_v56, 16  ;;  %v4098_v39 = vshll.u32 %v8206_v56, 16  ;;  %v4078_v34 = vshrl.u32 %v8204_v5, 16  ;;  %v4081_v35 = vshll.u32 %v8204_v5, 16  ;;  %v9203_v26 = vpop.f32.mrb[140].mxu0 }
 0x261   : > { %v4071_v24 = vrot.slane %v4069_v59, 7  ;;  %v4054_v0 = vrot.slane %v4052_v17, 7  ;;  %v3892_v13 = vmax.f32 %v3798_v48, 0.0  ;;  %v3890_v1 = vmax.f32 %v3790_v3, 0.0  ;;  %v3802_v51 = vpop.f32.mrb[141].mxu0 }
 0x262   : > { %v11771_v42 = vrot.slane %v4095_v50, 7  ;;  %v11773_v21 = vrot.slane %v4078_v34, 7  ;;  %v3811_v8 = vadd.f32 %v9203_v26, %v11652_v57  ;;  %v3803_v32 = vadd.f32 %v3802_v51, %v11646_v58  ;;  %v9204_v15 = vpop.f32.mrb[142].mxu0  ;;  %v4507_v17 = vld [vmem:[#allocation3 + $0x10] sm:$0xf] }
 0x263   : > { %v4074_v30 = vor.u32 %v4072_v23, %v4071_v24  ;;  %v4076_v27 = vrot.slane %v4071_v24, 4  ;;  %v4057_v61 = vor.u32 %v4055_v33, %v4054_v0  ;;  %v4059_v37 = vrot.slane %v4054_v0, 4  ;;  %v3805_v54 = vpop.f32.mrb[143].mxu0  ;;  %v4369_v34 = vld [vmem:[#allocation3 + $0x50] sm:$0x1] }
 0x264   : > { %v4100_v28 = vor.u32 %v4098_v39, %v11771_v42  ;;  %v4101_v9 = vrot.slane %v11771_v42, 4  ;;  %v4083_v53 = vor.u32 %v4081_v35, %v11773_v21  ;;  %v8207_v47 = vpack.c.bf16 %v3892_v13, %v3892_v13  ;;  %v4362_v35 = vld [vmem:[#allocation3 + $0x44] sm:$0x1] }
 0x265   : > { %v4075_v60 = vsel %vm10123_vm6, %v4067_v49, %v4074_v30  ;;  %v4356_v57 = vsel %vm10136_vm7, %v4076_v27, %v4355_v29  ;;  %v4058_v58 = vsel %vm10123_vm6, %v4050_v44, %v4057_v61  ;;  %v4349_v22 = vsel %vm10136_vm7, %v4059_v37, %v4348_v55  ;;  %v9620_v44 = vld [vmem:[%s13068_s2 + $0x170] sm:$0xff]  }
 0x266   : > { %4354 = vst.msk [vmem:[#allocation3 + $0x34] sm:$0xf] %vm788_vm0, %v4075_v60  ;;  %4357 = vst [vmem:[#allocation3 + $0x38] sm:$0x1] %v4356_v57  ;;  %v4366_v48 = vsel %vm10142_vm8, %v4100_v28, %v4365_v7  ;;  %v4359_v49 = vsel %vm10142_vm8, %v4083_v53, %v4358_v14  ;;  %v8205_v56 = vpack.c.bf16 %v3890_v1, %v3890_v1  ;;  %v3895_v5 = vmax.f32 %v3811_v8, 0.0  ;;  %v9591_v8 = vld [vmem:[%s13068_s2 + $0x180] sm:$0xff]  }
 0x267   : > { %4347 = vst.msk [vmem:[#allocation3 + $0x28] sm:$0xf] %vm788_vm0, %v4058_v58  ;;  %4350 = vst [vmem:[#allocation3 + $0x2c] sm:$0x1] %v4349_v22  ;;  %v3893_v3 = vmax.f32 %v3803_v32, 0.0  ;;  %v3814_v59 = vadd.f32 %v9204_v15, %v11654_v63  ;;  %v3806_v23 = vadd.f32 %v3805_v54, %v11648_v52  ;;  %v4084_v33 = vrot.slane %v11773_v21, 4  ;;  %8937 = vmatprep.subr.bf16.mxu1 %v9620_v44 }
 0x268   : > { %4367 = vst [vmem:[#allocation3 + $0x48] sm:$0xf] %v4366_v48  ;;  %4360 = vst [vmem:[#allocation3 + $0x3c] sm:$0xf] %v4359_v49  ;;  %v4103_v29 = vshrl.u32 %v8207_v47, 16  ;;  %v4106_v55 = vshll.u32 %v8207_v47, 16  ;;  %v8210_v26 = vpack.c.bf16 %v3895_v5, %v3895_v5 }
 0x269   : > { %v4086_v50 = vshrl.u32 %v8205_v56, 16  ;;  %v11800_v39 = vpop.f32.mrb[144].mxu0  ;;  %v8208_v24 = vpack.c.bf16 %v3893_v3, %v3893_v3  ;;  %v3896_v0 = vmax.f32 %v3814_v59, 0.0  ;;  %v3894_v13 = vmax.f32 %v3806_v23, 0.0  ;;  %v4506_v1 = vld [vmem:[#allocation3 + $0xc] sm:$0xf] }
 0x26a   : > { %v11802_v51 = vpop.f32.mrb[145].mxu0  ;;  %v4105_v63 = vrot.slane %v4103_v29, 7  ;;  %v4089_v42 = vshll.u32 %v8205_v56, 16  ;;  %v11804_v7 = vcombine.low %v4506_v1, %v4507_v17  ;;  %v9624_v32 = vld [vmem:[%s13068_s2 + $0x130] sm:$0xff]   ;;  %v4129_v15 = vshrl.u32 %v8210_v26, 16  ;;  %v9604_v14 = vld [vmem:[%s13068_s2 + $0x1c8] sm:$0xff]  }
 0x26b   : > { %v4088_v52 = vrot.slane %v4086_v50, 7  ;;  %v9208_v21 = vpop.f32.mrb[146].mxu0  ;;  %v4132_v30 = vshll.u32 %v8210_v26, 16  ;;  %v4112_v27 = vshrl.u32 %v8208_v24, 16  ;;  %v4115_v61 = vshll.u32 %v8208_v24, 16  ;;  %8938 = vmatpush3.bf16.msra.mxu1 %v9624_v32  ;;  %v9605_v59 = vld [vmem:[%s13068_s2 + $0x188] sm:$0xff]  }
 0x26c   : > { %v11812_v37 = vpop.f32.mrb[147].mxu0  ;;  %v4108_v54 = vor.u32 %v4106_v55, %v4105_v63  ;;  %v4110_v28 = vrot.slane %v4105_v63, 4  ;;  %6796 = vmatprep.mubr.bf16.mxu0 %v11804_v7  ;;  %v11818_v57 = vrot.slane %v4129_v15, 7  ;;  %v4379_v58 = vld [vmem:[#allocation3 + $0x60] sm:$0xf]  ;;  %v8211_v48 = vpack.c.bf16 %v3896_v0, %v3896_v0  ;;  %v9618_v17 = vld [vmem:[%s13068_s2 + $0x1d0] sm:$0xff]  }
 0x26d   : > { %v4091_v53 = vor.u32 %v4089_v42, %v4088_v52  ;;  %v4093_v60 = vrot.slane %v4088_v52, 4  ;;  %v11820_v22 = vrot.slane %v4112_v27, 7  ;;  %v8209_v49 = vpack.c.bf16 %v3894_v13, %v3894_v13  ;;  %6797 = vmatmul.mubr.bf16.vlgmr.msra.gmra.mrb[160].mxu0 %v11630_v46  ;;  %v4372_v3 = vld [vmem:[#allocation3 + $0x54] sm:$0xf]  ;;  %v4509_v23 = vld [vmem:[#allocation3 + $0x1c] sm:$0xf] }
 0x26e   : > { %v4109_v47 = vsel %vm10123_vm6, %v4101_v9, %v4108_v54  ;;  %v4370_v56 = vsel %vm10136_vm7, %v4110_v28, %v4369_v34  ;;  %9038 = vmatpush3.bf16.msra.mxu0 %v9591_v8  ;;  %v4134_v46 = vor.u32 %v4132_v30, %v11818_v57  ;;  %v4135_v50 = vrot.slane %v11818_v57, 4  ;;  %v4383_v24 = vld [vmem:[#allocation3 + $0x68] sm:$0x1]  ;;  %v4376_v0 = vld [vmem:[#allocation3 + $0x5c] sm:$0x1] }
 0x26f   : > { %v4092_v44 = vsel %vm10123_vm6, %v4084_v33, %v4091_v53  ;;  %v4363_v5 = vsel %vm10136_vm7, %v4093_v60, %v4362_v35  ;;  %4368 = vst.msk [vmem:[#allocation3 + $0x4c] sm:$0xf] %vm788_vm0, %v4109_v47  ;;  %4371 = vst [vmem:[#allocation3 + $0x50] sm:$0x1] %v4370_v56  ;;  %v4117_v9 = vor.u32 %v4115_v61, %v11820_v22  ;;  %9039 = vmatprep.subr.bf16.mxu0 %v9604_v14  ;;  %v4508_v13 = vld [vmem:[#allocation3 + $0x18] sm:$0xf] }
 0x270   : > { %4361 = vst.msk [vmem:[#allocation3 + $0x40] sm:$0xf] %vm788_vm0, %v4092_v44  ;;  %4364 = vst [vmem:[#allocation3 + $0x44] sm:$0x1] %v4363_v5  ;;  %v4137_v33 = vshrl.u32 %v8211_v48, 16  ;;  %v4120_v29 = vshrl.u32 %v8209_v49, 16  ;;  %v4380_v34 = vsel %vm10142_vm8, %v4134_v46, %v4379_v58  ;;  %v11853_v32 = vcombine.low %v4508_v13, %v4509_v23 }
 0x271   : > { %v11841_v55 = vpop.f32.mrb[148].mxu0  ;;  %v4373_v35 = vsel %vm10142_vm8, %v4117_v9, %v4372_v3  ;;  %v4140_v26 = vshll.u32 %v8211_v48, 16  ;;  %v9619_v63 = vld [vmem:[%s13068_s2 + $0x190] sm:$0xff]   ;;  %4381 = vst [vmem:[#allocation3 + $0x60] sm:$0xf] %v4380_v34  ;;  %v4123_v8 = vshll.u32 %v8209_v49, 16  ;;  %v3827_v61 = vadd.f32 %v11800_v39, %v11670_v40 }
 0x272   : > { %v11848_v1 = vpop.f32.mrb[149].mxu0  ;;  %4374 = vst [vmem:[#allocation3 + $0x54] sm:$0xf] %v4373_v35  ;;  %v4139_v52 = vrot.slane %v4137_v33, 7  ;;  %v4122_v42 = vrot.slane %v4120_v29, 7  ;;  %9040 = vmatpush3.bf16.msra.mxu0 %v9605_v59  ;;  %v4118_v27 = vrot.slane %v11820_v22, 4  ;;  %v3819_v14 = vadd.f32 %v11802_v51, %v11658_v19  ;;  %6804 = vmatprep.mubr.bf16.mxu0 %v11853_v32 }
 0x273   : > { %v11855_v15 = vld [vmem:[#allocation3 + $0x10] sm:$0xf]  ;;  %v11857_v30 = vpop.f32.mrb[150].mxu0  ;;  %v3830_v54 = vadd.f32 %v9208_v21, %v11672_v41  ;;  %v11865_v28 = vld [vmem:[#allocation3 + $0x1c] sm:$0xf]  ;;  %9041 = vmatprep.subr.bf16.mxu0 %v9618_v17  ;;  %v9632_v60 = vld [vmem:[%s13068_s2 + $0x1d8] sm:$0xff]   ;;  %v3822_v17 = vadd.f32 %v11812_v37, %v11660_v38 }
 0x274   : > { %v11867_v53 = vpop.f32.mrb[151].mxu0  ;;  %v4142_v57 = vor.u32 %v4140_v26, %v4139_v52  ;;  %v4144_v58 = vrot.slane %v4139_v52, 4  ;;  %v4125_v22 = vor.u32 %v4123_v8, %v4122_v42  ;;  %v4127_v48 = vrot.slane %v4122_v42, 4  ;;  %v11873_v40 = vld [vmem:[#allocation3 + $0x14] ss:$0 sps:$4 sm:$0x11]  }
 0x275   : > { %v3899_v19 = vmax.f32 %v3827_v61, 0.0  ;;  %v3897_v39 = vmax.f32 %v3819_v14, 0.0  ;;  %v3900_v41 = vmax.f32 %v3830_v54, 0.0  ;;  %v11875_v51 = vld [vmem:[#allocation3 + $0x20] ss:$0 sps:$4 sm:$0x11]  }
 0x276   : > { %v4143_v21 = vsel %vm10123_vm6, %v4135_v50, %v4142_v57  ;;  %v4384_v49 = vsel %vm10136_vm7, %v4144_v58, %v4383_v24  ;;  %v4126_v47 = vsel %vm10123_vm6, %v4118_v27, %v4125_v22  ;;  %v4377_v56 = vsel %vm10136_vm7, %v4127_v48, %v4376_v0  ;;  %v4444_v44 = vld [vmem:[#allocation3 + $0xc] sm:$0xf]  ;;  %9042 = vmatpush3.bf16.msra.mxu0 %v9619_v63  ;;  %v4446_v9 = vld [vmem:[#allocation3 + $0x18] sm:$0xf]  ;;  %v9633_v23 = vld [vmem:[%s13068_s2 + $0x198] sm:$0xff]  }
 0x277   : > { %4382 = vst.msk [vmem:[#allocation3 + $0x64] sm:$0xf] %vm788_vm0, %v4143_v21  ;;  %4385 = vst [vmem:[#allocation3 + $0x68] sm:$0x1] %v4384_v49  ;;  %v8214_v5 = vpack.c.bf16 %v3899_v19, %v3899_v19  ;;  %v8212_v3 = vpack.c.bf16 %v3897_v39, %v3897_v39  ;;  %v8215_v59 = vpack.c.bf16 %v3900_v41, %v3900_v41  ;;  %9043 = vmatprep.subr.bf16.mxu0 %v9632_v60  ;;  %v9634_v50 = vld [vmem:[%s13068_s2 + $0x178] sm:$0xff]   ;;  %v9639_v57 = vld [vmem:[%s13068_s2 + $0x1e0] sm:$0xff]  }
 0x278   : > { %4375 = vst.msk [vmem:[#allocation3 + $0x58] sm:$0xf] %vm788_vm0, %v4126_v47  ;;  %4378 = vst [vmem:[#allocation3 + $0x5c] sm:$0x1] %v4377_v56  ;;  %v11888_v46 = vcombine.low %v4444_v44, %v11855_v15  ;;  %v11896_v33 = vcombine.low %v4446_v9, %v11865_v28  ;;  %v11898_v29 = vpop.f32.mrb[152].mxu0  ;;  %v4799_v26 = vshll.u32 %v11873_v40, 16  ;;  %8939 = vmatprep.subr.bf16.mxu1 %v9634_v50 }
 0x279   : > { %v4163_v34 = vshrl.u32 %v8214_v5, 16  ;;  %v4146_v35 = vshrl.u32 %v8212_v3, 16  ;;  %v4811_v24 = vshll.u32 %v11875_v51, 16  ;;  %v11905_v0 = vpop.f32.mrb[153].mxu0  ;;  %v4166_v13 = vshll.u32 %v8214_v5, 16  ;;  %v9638_v8 = vld [vmem:[%s13068_s2 + $0x138] sm:$0xff]  }
 0x27a   : > { %v4393_v63 = vld [vmem:[#allocation3 + $0x78] sm:$0xf]  ;;  %v4149_v38 = vshll.u32 %v8212_v3, 16  ;;  %v4171_v37 = vshrl.u32 %v8215_v59, 16  ;;  %v4794_v52 = vshll.u32 %v11888_v46, 16  ;;  %v11908_v42 = vpop.f32.mrb[154].mxu0  ;;  %9044 = vmatpush3.bf16.msra.mxu0 %v9633_v23  ;;  %8940 = vmatpush3.bf16.msra.mxu1 %v9638_v8 }
 0x27b   : > { %v4165_v27 = vrot.slane %v4163_v34, 7  ;;  %v11913_v61 = vrot.slane %v4146_v35, 7  ;;  %v4174_v14 = vshll.u32 %v8215_v59, 16  ;;  %v3898_v54 = vmax.f32 %v3822_v17, 0.0  ;;  %v11915_v60 = vpop.f32.mrb[155].mxu0  ;;  %9045 = vmatprep.subr.bf16.mxu0 %v9639_v57  ;;  %v9642_v9 = vld [vmem:[%s13068_s2 + $0x1a0] sm:$0xff]  }
 0x27c   : > { %v4386_v58 = vld [vmem:[#allocation3 + $0x6c] sm:$0xf]  ;;  %v4173_v22 = vrot.slane %v4171_v37, 7  ;;  %v4792_v48 = vshrl.u32 %v11888_v46, 16  ;;  %v4796_v19 = vrot.slane %v4794_v52, 1  ;;  %v4806_v39 = vshll.u32 %v11896_v33, 16 }
 0x27d   : > { %v4168_v41 = vor.u32 %v4166_v13, %v4165_v27  ;;  %v4169_v21 = vrot.slane %v4165_v27, 4  ;;  %v4151_v49 = vor.u32 %v4149_v38, %v11913_v61  ;;  %v4397_v47 = vld [vmem:[#allocation3 + $0x80] sm:$0x1]  ;;  %v4801_v56 = vrot.slane %v4799_v26, 1  ;;  %v4491_v37 = vld [vmem:[#allocation3 + $0xc] sm:$0xe] }
 0x27e   : > { %v4176_v44 = vor.u32 %v4174_v14, %v4173_v22  ;;  %v4178_v5 = vrot.slane %v4173_v22, 4  ;;  %v4797_v3 = vor.u32 %v4796_v19, %v4792_v48  ;;  %v8213_v59 = vpack.c.bf16 %v3898_v54, %v3898_v54  ;;  %9046 = vmatpush3.bf16.msra.mxu0 %v9642_v9  ;;  %v4390_v8 = vld [vmem:[#allocation3 + $0x74] sm:$0x1]  ;;  %v4511_v22 = vld [vmem:[#allocation3 + $0x28] sm:$0xf] }
 0x27f   : > { %v4394_v23 = vsel %vm10142_vm8, %v4168_v41, %v4393_v63  ;;  %v4387_v17 = vsel %vm10142_vm8, %v4151_v49, %v4386_v58  ;;  %v4804_v50 = vshrl.u32 %v11896_v33, 16  ;;  %v4808_v34 = vrot.slane %v4806_v39, 1  ;;  %v9643_v63 = vld [vmem:[%s13068_s2 + $0x1e8] sm:$0xff]   ;;  %v4510_v58 = vld [vmem:[#allocation3 + $0x24] sm:$0xf] }
 0x280   : > { %4395 = vst [vmem:[#allocation3 + $0x78] sm:$0xf] %v4394_v23  ;;  %4388 = vst [vmem:[#allocation3 + $0x6c] sm:$0xf] %v4387_v17  ;;  %v4177_v35 = vsel %vm10123_vm6, %v4169_v21, %v4176_v44  ;;  %v4398_v26 = vsel %vm10136_vm7, %v4178_v5, %v4397_v47  ;;  %v4802_v13 = vsel %vm1243_vm4, %v4797_v3, %v4801_v56  ;;  %v4154_v38 = vshrl.u32 %v8213_v59, 16  ;;  %v11936_v52 = vpop.f32.mrb[156].mxu0 }
 0x281   : > { %4396 = vst.msk [vmem:[#allocation3 + $0x7c] sm:$0xf] %vm788_vm0, %v4177_v35  ;;  %4399 = vst [vmem:[#allocation3 + $0x80] sm:$0x1] %v4398_v26  ;;  %6643 = vmatprep.mubr.bf16.mxu1 %v4802_v13  ;;  %v4809_v27 = vor.u32 %v4808_v34, %v4804_v50  ;;  %v4813_v14 = vrot.slane %v4811_v24, 1  ;;  %v7974_v54 = vcombine.low %v4491_v37, %v11855_v15  ;;  %v5039_v57 = vrot.slane %v11873_v40, 1 }
 0x282   : > { %v11944_v48 = vpop.f32.mrb[157].mxu0  ;;  %v9644_v19 = vld [vmem:[%s13068_s2 + $0x1a8] sm:$0xff]   ;;  %v4152_v39 = vrot.slane %v11913_v61, 4  ;;  %v4156_v41 = vrot.slane %v4154_v38, 7  ;;  %v4157_v21 = vshll.u32 %v8213_v59, 16  ;;  %6644 = vmatmul.mubr.bf16.gmra.mrb[132].mxu1 %v11888_v46  ;;  %v3843_v24 = vadd.f32 %v11841_v55, %v11682_v25  ;;  %9047 = vmatprep.subr.bf16.mxu0 %v9643_v63  ;;  %v9647_v59 = vld [vmem:[%s13068_s2 + $0x1f0] sm:$0xff]  }
 0x283   : > { %v11953_v15 = vld [vmem:[#allocation3 + $0x28] sm:$0xf]  ;;  %v11955_v40 = vpop.f32.mrb[158].mxu0  ;;  %v4814_v49 = vsel %vm1243_vm4, %v4809_v27, %v4813_v14  ;;  %v5038_v47 = vrot.slane %v7974_v54, 1  ;;  %v3835_v56 = vadd.f32 %v11848_v1, %v11676_v36  ;;  %v3846_v61 = vadd.f32 %v11857_v30, %v11684_v20  ;;  %9048 = vmatpush3.bf16.msra.mxu0 %v9644_v19  ;;  %v4448_v30 = vld [vmem:[#allocation3 + $0x24] sm:$0xf] }
 0x284   : > { %v11962_v44 = vld [vmem:[#allocation3 + $0x2c] ss:$0 sps:$4 sm:$0x11]   ;;  %v11964_v46 = vpop.f32.mrb[159].mxu0  ;;  %v4159_v5 = vor.u32 %v4157_v21, %v4156_v41  ;;  %v4161_v25 = vrot.slane %v4156_v41, 4  ;;  %6651 = vmatprep.mubr.bf16.mxu1 %v4814_v49  ;;  %v11966_v55 = vcombine.low %v4510_v58, %v4511_v22  ;;  %v3903_v3 = vmax.f32 %v3843_v24, 0.0  ;;  %9049 = vmatprep.subr.bf16.mxu0 %v9647_v59 }
 0x285   : > { %v5040_v36 = vsel %vm1500_vm9, %v5038_v47, %v5039_v57  ;;  %v3901_v1 = vmax.f32 %v3835_v56, 0.0  ;;  %v3904_v9 = vmax.f32 %v3846_v61, 0.0  ;;  %v3838_v20 = vadd.f32 %v11867_v53, %v11678_v16  ;;  %v9648_v23 = vld [vmem:[%s13068_s2 + $0x1b0] sm:$0xff]   ;;  %v4407_v27 = vld [vmem:[#allocation3 + $0x90] sm:$0xf] }
 0x286   : > { %v4160_v17 = vsel %vm10123_vm6, %v4152_v39, %v4159_v5  ;;  %v4391_v50 = vsel %vm10136_vm7, %v4161_v25, %v4390_v8  ;;  %6805 = vmatmul.mubr.bf16.gmra.mrb[164].mxu0 %v5040_v36  ;;  %v8218_v34 = vpack.c.bf16 %v3903_v3, %v3903_v3  ;;  %v11982_v35 = vcombine.low %v4448_v30, %v11953_v15  ;;  %v4400_v19 = vld [vmem:[#allocation3 + $0x84] sm:$0xf]  ;;  %v4492_v24 = vld [vmem:[#allocation3 + $0x18] sm:$0xe]  ;;  %v4411_v56 = vld [vmem:[#allocation3 + $0x98] sm:$0x1] }
 0x287   : > { %4389 = vst.msk [vmem:[#allocation3 + $0x70] sm:$0xf] %vm788_vm0, %v4160_v17  ;;  %4392 = vst [vmem:[#allocation3 + $0x74] sm:$0x1] %v4391_v50  ;;  %6812 = vmatprep.mubr.bf16.mxu0 %v11966_v55  ;;  %v8216_v16 = vpack.c.bf16 %v3901_v1, %v3901_v1  ;;  %v8219_v53 = vpack.c.bf16 %v3904_v9, %v3904_v9  ;;  %v3902_v26 = vmax.f32 %v3838_v20, 0.0  ;;  %v4823_v13 = vshll.u32 %v11962_v44, 16 }
 0x288   : > { %v4197_v38 = vshrl.u32 %v8218_v34, 16  ;;  %v4200_v37 = vshll.u32 %v8218_v34, 16  ;;  %v4816_v63 = vshrl.u32 %v11982_v35, 16  ;;  %v4818_v8 = vshll.u32 %v11982_v35, 16  ;;  %9050 = vmatpush3.bf16.msra.mxu0 %v9648_v23  ;;  %v9651_v25 = vld [vmem:[%s13068_s2 + $0x1f8] sm:$0xff]  }
 0x289   : > { %v4180_v14 = vshrl.u32 %v8216_v16, 16  ;;  %v4183_v54 = vshll.u32 %v8216_v16, 16  ;;  %v4205_v57 = vshrl.u32 %v8219_v53, 16  ;;  %v4208_v58 = vshll.u32 %v8219_v53, 16  ;;  %v4513_v9 = vld [vmem:[#allocation3 + $0x34] sm:$0xf]  ;;  %9051 = vmatprep.subr.bf16.mxu0 %v9651_v25 }
 0x28a   : > { %v4199_v22 = vrot.slane %v4197_v38, 7  ;;  %v8217_v39 = vpack.c.bf16 %v3902_v26, %v3902_v26  ;;  %6652 = vmatmul.mubr.bf16.gmra.mrb[136].mxu1 %v11896_v33  ;;  %v4820_v41 = vrot.slane %v4818_v8, 1  ;;  %v4825_v21 = vrot.slane %v4823_v13, 1  ;;  %v9652_v33 = vld [vmem:[%s13068_s2 + $0x1b8] sm:$0xff]   ;;  %v4512_v16 = vld [vmem:[#allocation3 + $0x30] sm:$0xf] }
 0x28b   : > { %v4182_v49 = vrot.slane %v4180_v14, 7  ;;  %v4207_v47 = vrot.slane %v4205_v57, 7  ;;  %v7975_v61 = vcombine.low %v4492_v24, %v11865_v28  ;;  %v5042_v5 = vrot.slane %v11875_v51, 1  ;;  %v4404_v38 = vld [vmem:[#allocation3 + $0x8c] sm:$0x1] }
 0x28c   : > { %v4202_v3 = vor.u32 %v4200_v37, %v4199_v22  ;;  %v4203_v59 = vrot.slane %v4199_v22, 4  ;;  %v4188_v36 = vshrl.u32 %v8217_v39, 16  ;;  %v4191_v1 = vshll.u32 %v8217_v39, 16  ;;  %9052 = vmatpush3.bf16.msra.mxu0 %v9652_v33  ;;  %v12016_v57 = vld [vmem:[#allocation3 + $0x34] sm:$0xf] }
 0x28d   : > { %v4185_v20 = vor.u32 %v4183_v54, %v4182_v49  ;;  %v4186_v30 = vrot.slane %v4182_v49, 4  ;;  %v4210_v23 = vor.u32 %v4208_v58, %v4207_v47  ;;  %v4212_v17 = vrot.slane %v4207_v47, 4  ;;  %v12031_v49 = vld [vmem:[#allocation3 + $0x38] ss:$0 sps:$4 sm:$0x11]  }
 0x28e   : > { %v4408_v28 = vsel %vm10142_vm8, %v4202_v3, %v4407_v27  ;;  %v4190_v51 = vrot.slane %v4188_v36, 7  ;;  %v4821_v50 = vor.u32 %v4820_v41, %v4816_v63  ;;  %v5041_v34 = vrot.slane %v7975_v61, 1  ;;  %v12011_v63 = vld [vmem:[%s13068_s2 + $0x200] sm:$0xff]   ;;  %v12044_v33 = vld [vmem:[#allocation3 + $0x40] sm:$0xf] }
 0x28f   : > { %4409 = vst [vmem:[#allocation3 + $0x90] sm:$0xf] %v4408_v28  ;;  %v4401_v53 = vsel %vm10142_vm8, %v4185_v20, %v4400_v19  ;;  %v4211_v26 = vsel %vm10123_vm6, %v4203_v59, %v4210_v23  ;;  %v4412_v13 = vsel %vm10136_vm7, %v4212_v17, %v4411_v56  ;;  %v12006_v37 = vcombine.low %v4512_v16, %v4513_v9  ;;  %v4450_v19 = vld [vmem:[#allocation3 + $0x30] sm:$0xf]  ;;  %v4421_v20 = vld [vmem:[#allocation3 + $0xa8] sm:$0xf] }
 0x290   : > { %4402 = vst [vmem:[#allocation3 + $0x84] sm:$0xf] %v4401_v53  ;;  %4410 = vst.msk [vmem:[#allocation3 + $0x94] sm:$0xf] %vm788_vm0, %v4211_v26  ;;  %v4193_v8 = vor.u32 %v4191_v1, %v4190_v51  ;;  %v4195_v27 = vrot.slane %v4190_v51, 4  ;;  %v4826_v14 = vsel %vm1243_vm4, %v4821_v50, %v4825_v21  ;;  %v5043_v54 = vsel %vm1500_vm9, %v5041_v34, %v5042_v5 }
 0x291   : > { %4413 = vst [vmem:[#allocation3 + $0x98] sm:$0x1] %v4412_v13  ;;  %6659 = vmatprep.mubr.bf16.mxu1 %v4826_v14  ;;  %6813 = vmatmul.mubr.bf16.gmra.mrb[168].mxu0 %v5043_v54  ;;  %v3859_v58 = vadd.f32 %v11898_v29, %v11703_v45  ;;  %v3851_v22 = vadd.f32 %v11905_v0, %v11691_v6  ;;  %v4493_v0 = vld [vmem:[#allocation3 + $0x24] sm:$0xe]  ;;  %v5045_v61 = vrot.slane %v11962_v44, 1 }
 0x292   : > { %v4194_v39 = vsel %vm10123_vm6, %v4186_v30, %v4193_v8  ;;  %v4405_v41 = vsel %vm10136_vm7, %v4195_v27, %v4404_v38  ;;  %6820 = vmatprep.mubr.bf16.mxu0 %v12006_v37  ;;  %v3862_v21 = vadd.f32 %v11908_v42, %v11705_v2  ;;  %v3854_v24 = vadd.f32 %v11915_v60, %v11696_v43  ;;  %v4414_v30 = vld [vmem:[#allocation3 + $0x9c] sm:$0xf]  ;;  %v4425_v26 = vld [vmem:[#allocation3 + $0xb0] sm:$0x1]  ;;  %v4456_v12 = vld [vmem:[#allocation3 + $0x54] sm:$0xf] }
 0x293   : > { %4403 = vst.msk [vmem:[#allocation3 + $0x88] sm:$0xf] %vm788_vm0, %v4194_v39  ;;  %4406 = vst [vmem:[#allocation3 + $0x8c] sm:$0x1] %v4405_v41  ;;  %v3907_v6 = vmax.f32 %v3859_v58, 0.0  ;;  %v3905_v45 = vmax.f32 %v3851_v22, 0.0  ;;  %6660 = vmatmul.mubr.bf16.gmra.mrb[140].mxu1 %v11982_v35  ;;  %v12036_v29 = vcombine.low %v4450_v19, %v12016_v57  ;;  %9221 = vmatprep.subr.bf16.mxu1 %v12011_v63 }
 0x294   : > { %v3908_v47 = vmax.f32 %v3862_v21, 0.0  ;;  %v3906_v2 = vmax.f32 %v3854_v24, 0.0  ;;  %v7976_v42 = vcombine.low %v4493_v0, %v11953_v15  ;;  %v4835_v35 = vshll.u32 %v12031_v49, 16  ;;  %v4514_v16 = vld [vmem:[#allocation3 + $0x3c] sm:$0xf] }
 0x295   : > { %v8222_v43 = vpack.c.bf16 %v3907_v6, %v3907_v6  ;;  %v8220_v60 = vpack.c.bf16 %v3905_v45, %v3905_v45  ;;  %v4830_v56 = vshll.u32 %v12036_v29, 16  ;;  %v4828_v9 = vshrl.u32 %v12036_v29, 16  ;;  %v4418_v22 = vld [vmem:[#allocation3 + $0xa4] sm:$0x1] }
 0x296   : > { %v8223_v5 = vpack.c.bf16 %v3908_v47, %v3908_v47  ;;  %v8221_v25 = vpack.c.bf16 %v3906_v2, %v3906_v2  ;;  %v5044_v3 = vrot.slane %v7976_v42, 1  ;;  %v12048_v8 = vcombine.low %v4514_v16, %v12044_v33  ;;  %v12051_v24 = vld [vmem:[#allocation3 + $0x44] ss:$0 sps:$4 sm:$0x11]   ;;  %v12057_v2 = vld [vmem:[#allocation3 + $0x40] sm:$0xf] }
 0x297   : > { %v4231_v59 = vshrl.u32 %v8222_v43, 16  ;;  %v4234_v36 = vshll.u32 %v8222_v43, 16  ;;  %v4214_v1 = vshrl.u32 %v8220_v60, 16  ;;  %v4217_v15 = vshll.u32 %v8220_v60, 16 }
 0x298   : > { %v4239_v23 = vshrl.u32 %v8223_v5, 16  ;;  %v4242_v17 = vshll.u32 %v8223_v5, 16  ;;  %v4222_v28 = vshrl.u32 %v8221_v25, 16  ;;  %v4832_v50 = vrot.slane %v4830_v56, 1 }
 0x299   : > { %v4233_v51 = vrot.slane %v4231_v59, 7  ;;  %v4216_v44 = vrot.slane %v4214_v1, 7  ;;  %v5046_v34 = vsel %vm1500_vm9, %v5044_v3, %v5045_v61  ;;  %v4225_v38 = vshll.u32 %v8221_v25, 16  ;;  %v4452_v3 = vld [vmem:[#allocation3 + $0x3c] sm:$0xf] }
 0x29a   : > { %v4241_v53 = vrot.slane %v4239_v23, 7  ;;  %v4224_v13 = vrot.slane %v4222_v28, 7  ;;  %6821 = vmatmul.mubr.bf16.gmra.mrb[172].mxu0 %v5046_v34  ;;  %v4833_v0 = vor.u32 %v4832_v50, %v4828_v9  ;;  %v4837_v47 = vrot.slane %v4835_v35, 1  ;;  %v4494_v59 = vld [vmem:[#allocation3 + $0x30] sm:$0xe] }
 0x29b   : > { %v4236_v27 = vor.u32 %v4234_v36, %v4233_v51  ;;  %v4237_v14 = vrot.slane %v4233_v51, 4  ;;  %v4219_v54 = vor.u32 %v4217_v15, %v4216_v44  ;;  %v4220_v58 = vrot.slane %v4216_v44, 4  ;;  %6828 = vmatprep.mubr.bf16.mxu0 %v12048_v8  ;;  %v4516_v44 = vld [vmem:[#allocation3 + $0x48] sm:$0xf] }
 0x29c   : > { %v4244_v19 = vor.u32 %v4242_v17, %v4241_v53  ;;  %v4246_v39 = vrot.slane %v4241_v53, 4  ;;  %v4227_v41 = vor.u32 %v4225_v38, %v4224_v13  ;;  %v4229_v21 = vrot.slane %v4224_v13, 4  ;;  %v12092_v53 = vld [vmem:[#allocation3 + $0x4c] sm:$0xf]  ;;  %v4428_v13 = vld [vmem:[#allocation3 + $0xb4] sm:$0xf] }
 0x29d   : > { %v4422_v6 = vsel %vm10142_vm8, %v4236_v27, %v4421_v20  ;;  %v4415_v45 = vsel %vm10142_vm8, %v4219_v54, %v4414_v30  ;;  %v4838_v61 = vsel %vm1243_vm4, %v4833_v0, %v4837_v47  ;;  %v3875_v5 = vadd.f32 %v11936_v52, %v11724_v11  ;;  %v12083_v11 = vld [vmem:[#allocation3 + $0x4c] sm:$0xf]  ;;  %v12096_v47 = vld [vmem:[#allocation3 + $0x50] ss:$0 sps:$4 sm:$0x11]  }
 0x29e   : > { %4423 = vst [vmem:[#allocation3 + $0xa8] sm:$0xf] %v4422_v6  ;;  %4416 = vst [vmem:[#allocation3 + $0x9c] sm:$0xf] %v4415_v45  ;;  %v4245_v42 = vsel %vm10123_vm6, %v4237_v14, %v4244_v19  ;;  %v4426_v43 = vsel %vm10136_vm7, %v4246_v39, %v4425_v26  ;;  %v4228_v60 = vsel %vm10123_vm6, %v4220_v58, %v4227_v41  ;;  %6667 = vmatprep.mubr.bf16.mxu1 %v4838_v61  ;;  %v4435_v26 = vld [vmem:[#allocation3 + $0xc0] sm:$0xf] }
 0x29f   : > { %v4419_v56 = vsel %vm10136_vm7, %v4229_v21, %v4418_v22  ;;  %4424 = vst.msk [vmem:[#allocation3 + $0xac] sm:$0xf] %vm788_vm0, %v4245_v42  ;;  %4427 = vst [vmem:[#allocation3 + $0xb0] sm:$0x1] %v4426_v43  ;;  %v3867_v25 = vadd.f32 %v11944_v48, %v11712_v18  ;;  %v3878_v35 = vadd.f32 %v11955_v40, %v11726_v62  ;;  %v4847_v9 = vshll.u32 %v12051_v24, 16 }
 0x2a0   : > { %4417 = vst.msk [vmem:[#allocation3 + $0xa0] sm:$0xf] %vm788_vm0, %v4228_v60  ;;  %4420 = vst [vmem:[#allocation3 + $0xa4] sm:$0x1] %v4419_v56  ;;  %v3870_v36 = vadd.f32 %v11964_v46, %v11714_v4  ;;  %v12079_v1 = vcombine.low %v4452_v3, %v12057_v2  ;;  %v7977_v20 = vcombine.low %v4494_v59, %v12016_v57  ;;  %v3911_v52 = vmax.f32 %v3875_v5, 0.0 }
 0x2a1   : > { %v3909_v18 = vmax.f32 %v3867_v25, 0.0  ;;  %v3912_v48 = vmax.f32 %v3878_v35, 0.0  ;;  %6668 = vmatmul.mubr.bf16.gmra.mrb[144].mxu1 %v12036_v29  ;;  %v5048_v15 = vrot.slane %v12031_v49, 1  ;;  %v4849_v51 = vrot.slane %v4847_v9, 1  ;;  %v4439_v22 = vld [vmem:[#allocation3 + $0xc8] sm:$0x1] }
 0x2a2   : > { %v3910_v62 = vmax.f32 %v3870_v36, 0.0  ;;  %v4842_v40 = vshll.u32 %v12079_v1, 16  ;;  %v8226_v4 = vpack.c.bf16 %v3911_v52, %v3911_v52  ;;  %v5047_v23 = vrot.slane %v7977_v20, 1  ;;  %v4454_v41 = vld [vmem:[#allocation3 + $0x48] sm:$0xf] }
 0x2a3   : > { %v8224_v46 = vpack.c.bf16 %v3909_v18, %v3909_v18  ;;  %v8227_v30 = vpack.c.bf16 %v3912_v48, %v3912_v48  ;;  %v4840_v28 = vshrl.u32 %v12079_v1, 16  ;;  %v12090_v29 = vcombine.low %v4516_v44, %v12083_v11  ;;  %v4432_v61 = vld [vmem:[#allocation3 + $0xbc] sm:$0x1]  ;;  %v4495_v20 = vld [vmem:[#allocation3 + $0x3c] sm:$0xe] }
 0x2a4   : > { %v8225_v17 = vpack.c.bf16 %v3910_v62, %v3910_v62  ;;  %v4844_v57 = vrot.slane %v4842_v40, 1  ;;  %v4265_v50 = vshrl.u32 %v8226_v4, 16  ;;  %v4268_v34 = vshll.u32 %v8226_v4, 16  ;;  %v12104_v52 = vld [vmem:[#allocation3 + $0x58] sm:$0xf] }
 0x2a5   : > { %v4248_v16 = vshrl.u32 %v8224_v46, 16  ;;  %v4251_v49 = vshll.u32 %v8224_v46, 16  ;;  %v4273_v38 = vshrl.u32 %v8227_v30, 16  ;;  %v4276_v27 = vshll.u32 %v8227_v30, 16  ;;  %v12106_v18 = vld [vmem:[#allocation3 + $0x58] sm:$0xf] }
 0x2a6   : > { %v4256_v14 = vshrl.u32 %v8225_v17, 16  ;;  %v4267_v54 = vrot.slane %v4265_v50, 7  ;;  %v4845_v19 = vor.u32 %v4844_v57, %v4840_v28  ;;  %v5049_v39 = vsel %vm1500_vm9, %v5047_v23, %v5048_v15  ;;  %v12116_v15 = vld [vmem:[#allocation3 + $0x5c] ss:$0 sps:$4 sm:$0x11]  }
 0x2a7   : > { %v4250_v58 = vrot.slane %v4248_v16, 7  ;;  %v4275_v21 = vrot.slane %v4273_v38, 7  ;;  %v4259_v45 = vshll.u32 %v8225_v17, 16  ;;  %6829 = vmatmul.mubr.bf16.gmra.mrb[176].mxu0 %v5049_v39  ;;  %v7947_v0 = vcombine.low %v4454_v41, %v12092_v53  ;;  %v4518_v23 = vld [vmem:[#allocation3 + $0x54] sm:$0xf] }
 0x2a8   : > { %v4258_v6 = vrot.slane %v4256_v14, 7  ;;  %v4270_v42 = vor.u32 %v4268_v34, %v4267_v54  ;;  %v4271_v43 = vrot.slane %v4267_v54, 4  ;;  %6836 = vmatprep.mubr.bf16.mxu0 %v12090_v29  ;;  %v4850_v9 = vsel %vm1243_vm4, %v4845_v19, %v4849_v51  ;;  %v12125_v28 = vld [vmem:[#allocation3 + $0x64] sm:$0xf]  ;;  %v4496_v16 = vld [vmem:[#allocation3 + $0x48] sm:$0xe] }
 0x2a9   : > { %v4253_v60 = vor.u32 %v4251_v49, %v4250_v58  ;;  %v4254_v56 = vrot.slane %v4250_v58, 4  ;;  %v4278_v5 = vor.u32 %v4276_v27, %v4275_v21  ;;  %v4280_v25 = vrot.slane %v4275_v21, 4  ;;  %6675 = vmatprep.mubr.bf16.mxu1 %v4850_v9  ;;  %v12136_v58 = vld [vmem:[#allocation3 + $0x68] ss:$0 sps:$4 sm:$0x11]  }
 0x2aa   : > { %v4261_v35 = vor.u32 %v4259_v45, %v4258_v6  ;;  %v4263_v3 = vrot.slane %v4258_v6, 4  ;;  %v4436_v59 = vsel %vm10142_vm8, %v4270_v42, %v4435_v26  ;;  %6676 = vmatmul.mubr.bf16.gmra.mrb[148].mxu1 %v12079_v1  ;;  %v4854_v4 = vshll.u32 %v7947_v0, 16  ;;  %v4460_v6 = vld [vmem:[#allocation3 + $0x6c] sm:$0xf]  ;;  %v12142_v42 = vld [vmem:[#allocation3 + $0x64] sm:$0xf] }
 0x2ab   : > { %v4429_v36 = vsel %vm10142_vm8, %v4253_v60, %v4428_v13  ;;  %4437 = vst [vmem:[#allocation3 + $0xc0] sm:$0xf] %v4436_v59  ;;  %v4279_v48 = vsel %vm10123_vm6, %v4271_v43, %v4278_v5  ;;  %v4440_v62 = vsel %vm10136_vm7, %v4280_v25, %v4439_v22  ;;  %v4859_v46 = vshll.u32 %v12096_v47, 16  ;;  %v4458_v13 = vld [vmem:[#allocation3 + $0x60] sm:$0xf] }
 0x2ac   : > { %4430 = vst [vmem:[#allocation3 + $0xb4] sm:$0xf] %v4429_v36  ;;  %v4262_v40 = vsel %vm10123_vm6, %v4254_v56, %v4261_v35  ;;  %v4433_v31 = vsel %vm10136_vm7, %v4263_v3, %v4432_v61  ;;  %4438 = vst.msk [vmem:[#allocation3 + $0xc4] sm:$0xf] %vm788_vm0, %v4279_v48  ;;  %v7978_v10 = vcombine.low %v4495_v20, %v12057_v2  ;;  %v5051_v30 = vrot.slane %v12051_v24, 1 }
 0x2ad   : > { %4441 = vst [vmem:[#allocation3 + $0xc8] sm:$0x1] %v4440_v62  ;;  %4431 = vst.msk [vmem:[#allocation3 + $0xb8] sm:$0xf] %vm788_vm0, %v4262_v40  ;;  %v7948_v17 = vcombine.low %v4456_v12, %v12106_v18  ;;  %v4852_v57 = vshrl.u32 %v7947_v0, 16  ;;  %v4856_v51 = vrot.slane %v4854_v4, 1  ;;  %v12128_v50 = vcombine.low %v4518_v23, %v12104_v52 }
 0x2ae   : > { %4434 = vst [vmem:[#allocation3 + $0xbc] sm:$0x1] %v4433_v31  ;;  %v5050_v44 = vrot.slane %v7978_v10, 1  ;;  %v4871_v34 = vshll.u32 %v12116_v15, 16  ;;  %v4861_v2 = vrot.slane %v4859_v46, 1  ;;  %v7979_v49 = vcombine.low %v4496_v16, %v12092_v53 }
 0x2af   : > { %v4866_v1 = vshll.u32 %v7948_v17, 16  ;;  %v4857_v26 = vor.u32 %v4856_v51, %v4852_v57  ;;  %v4864_v38 = vshrl.u32 %v7948_v17, 16  ;;  %v7949_v14 = vcombine.low %v4458_v13, %v12125_v28  ;;  %v12138_v22 = vld [vmem:[#allocation3 + $0x70] sm:$0xf]  ;;  %v4497_v5 = vld [vmem:[#allocation3 + $0x54] sm:$0xe] }
 0x2b0   : > { %v5052_v24 = vsel %vm1500_vm9, %v5050_v44, %v5051_v30  ;;  %v4873_v39 = vrot.slane %v4871_v34, 1  ;;  %v5053_v53 = vrot.slane %v7979_v49, 1  ;;  %v5054_v21 = vrot.slane %v12096_v47, 1  ;;  %v4520_v25 = vld [vmem:[#allocation3 + $0x60] sm:$0xf] }
 0x2b1   : > { %6837 = vmatmul.mubr.bf16.gmra.mrb[180].mxu0 %v5052_v24  ;;  %v4868_v27 = vrot.slane %v4866_v1, 1  ;;  %v4862_v54 = vsel %vm1243_vm4, %v4857_v26, %v4861_v2  ;;  %v4878_v41 = vshll.u32 %v7949_v14, 16  ;;  %v12145_v60 = vcombine.low %v4460_v6, %v12138_v22  ;;  %v12154_v36 = vld [vmem:[#allocation3 + $0x7c] sm:$0xf]  ;;  %v4462_v62 = vld [vmem:[#allocation3 + $0x78] sm:$0xf] }
 0x2b2   : > { %6844 = vmatprep.mubr.bf16.mxu0 %v12128_v50  ;;  %6683 = vmatprep.mubr.bf16.mxu1 %v4862_v54  ;;  %v4876_v56 = vshrl.u32 %v7949_v14, 16  ;;  %v4883_v61 = vshll.u32 %v12136_v58, 16  ;;  %v5055_v35 = vsel %vm1500_vm9, %v5053_v53, %v5054_v21  ;;  %v12151_v47 = vcombine.low %v4520_v25, %v12142_v42  ;;  %v12157_v20 = vld [vmem:[#allocation3 + $0x74] ss:$0 sps:$4 sm:$0x11]  }
 0x2b3   : > { %v4869_v19 = vor.u32 %v4868_v27, %v4864_v38  ;;  %6684 = vmatmul.mubr.bf16.gmra.mrb[152].mxu1 %v7947_v0  ;;  %v4880_v43 = vrot.slane %v4878_v41, 1  ;;  %v7980_v0 = vcombine.low %v4497_v5, %v12106_v18  ;;  %v4890_v59 = vshll.u32 %v12145_v60, 16  ;;  %v4523_v31 = vld [vmem:[#allocation3 + $0x70] sm:$0xf]  ;;  %v4522_v10 = vld [vmem:[#allocation3 + $0x6c] sm:$0xf] }
 0x2b4   : > { %v4885_v9 = vrot.slane %v4883_v61, 1  ;;  %v5057_v40 = vrot.slane %v12116_v15, 1  ;;  %v12162_v46 = vcombine.low %v4462_v62, %v12154_v36  ;;  %v4888_v30 = vshrl.u32 %v12145_v60, 16  ;;  %v4498_v57 = vld [vmem:[#allocation3 + $0x60] sm:$0xe] }
 0x2b5   : > { %v4874_v45 = vsel %vm1243_vm4, %v4869_v19, %v4873_v39  ;;  %v4881_v3 = vor.u32 %v4880_v43, %v4876_v56  ;;  %v5056_v48 = vrot.slane %v7980_v0, 1  ;;  %v4892_v4 = vrot.slane %v4890_v59, 1  ;;  %v12171_v1 = vld [vmem:[#allocation3 + $0x88] sm:$0xf]  ;;  %v4464_v2 = vld [vmem:[#allocation3 + $0x84] sm:$0xf] }
 0x2b6   : > { %6691 = vmatprep.mubr.bf16.mxu1 %v4874_v45  ;;  %v4895_v12 = vshll.u32 %v12157_v20, 16  ;;  %v12166_v23 = vcombine.low %v4522_v10, %v4523_v31  ;;  %v7981_v44 = vcombine.low %v4498_v57, %v12125_v28  ;;  %v4902_v15 = vshll.u32 %v12162_v46, 16  ;;  %v12174_v16 = vld [vmem:[#allocation3 + $0x80] ss:$0 sps:$4 sm:$0x11]  }
 0x2b7   : > { %v4886_v18 = vsel %vm1243_vm4, %v4881_v3, %v4885_v9  ;;  %v4893_v51 = vor.u32 %v4892_v4, %v4888_v30  ;;  %v5060_v26 = vrot.slane %v12136_v58, 1  ;;  %v4525_v13 = vld [vmem:[#allocation3 + $0x7c] sm:$0xf]  ;;  %v12179_v28 = vcombine.low %v4464_v2, %v12171_v1  ;;  %v4524_v27 = vld [vmem:[#allocation3 + $0x78] sm:$0xf] }
 0x2b8   : > { %v4897_v34 = vrot.slane %v4895_v12, 1  ;;  %v5059_v49 = vrot.slane %v7981_v44, 1  ;;  %v4904_v38 = vrot.slane %v4902_v15, 1  ;;  %v4900_v54 = vshrl.u32 %v12162_v46, 16  ;;  %v4499_v41 = vld [vmem:[#allocation3 + $0x6c] sm:$0xe] }
 0x2b9   : > { %6845 = vmatmul.mubr.bf16.gmra.mrb[184].mxu0 %v5055_v35  ;;  %v4907_v19 = vshll.u32 %v12174_v16, 16  ;;  %v12183_v39 = vcombine.low %v4524_v27, %v4525_v13  ;;  %v7982_v53 = vcombine.low %v4499_v41, %v12138_v22  ;;  %v4914_v21 = vshll.u32 %v12179_v28, 16  ;;  %v12188_v6 = vld [vmem:[#allocation3 + $0x94] sm:$0xf]  ;;  %v4466_v61 = vld [vmem:[#allocation3 + $0x90] sm:$0xf] }
 0x2ba   : > { %6852 = vmatprep.mubr.bf16.mxu0 %v12151_v47  ;;  %v4898_v24 = vsel %vm1243_vm4, %v4893_v51, %v4897_v34  ;;  %v5061_v58 = vsel %vm1500_vm9, %v5059_v49, %v5060_v26  ;;  %v12191_v43 = vld [vmem:[#allocation3 + $0x8c] ss:$0 sps:$4 sm:$0x11]   ;;  %v5063_v56 = vrot.slane %v12157_v20, 1  ;;  %v12197_v22 = vcombine.low %v4466_v61, %v12188_v6  ;;  %v4527_v35 = vld [vmem:[#allocation3 + $0x88] sm:$0xf] }
 0x2bb   : > { %6692 = vmatmul.mubr.bf16.gmra.mrb[156].mxu1 %v7948_v17  ;;  %v5058_v17 = vsel %vm1500_vm9, %v5056_v48, %v5057_v40  ;;  %v4909_v45 = vrot.slane %v4907_v19, 1  ;;  %v5062_v25 = vrot.slane %v7982_v53, 1  ;;  %v4916_v0 = vrot.slane %v4914_v21, 1  ;;  %v4500_v9 = vld [vmem:[#allocation3 + $0x78] sm:$0xe] }
 0x2bc   : > { %6699 = vmatprep.mubr.bf16.mxu1 %v4886_v18  ;;  %v4912_v3 = vshrl.u32 %v12179_v28, 16  ;;  %v4919_v59 = vshll.u32 %v12191_v43, 16  ;;  %v4526_v48 = vld [vmem:[#allocation3 + $0x84] sm:$0xf]  ;;  %v7983_v20 = vcombine.low %v4500_v9, %v12154_v36  ;;  %v4926_v40 = vshll.u32 %v12197_v22, 16 }
 0x2bd   : > { %v5064_v62 = vsel %vm1500_vm9, %v5062_v25, %v5063_v56  ;;  %v12206_v31 = vld [vmem:[#allocation3 + $0x98] ss:$0 sps:$4 sm:$0x11]   ;;  %v12208_v4 = vld [vmem:[#allocation3 + $0xa0] sm:$0xf]  ;;  %v5066_v51 = vrot.slane %v12174_v16, 1 }
 0x2be   : > { %v4917_v18 = vor.u32 %v4916_v0, %v4912_v3  ;;  %v4921_v10 = vrot.slane %v4919_v59, 1  ;;  %v12211_v30 = vld [vmem:[#allocation3 + $0x2c] ss:$0 sps:$4 sm:$0x11]   ;;  %v5065_v12 = vrot.slane %v7983_v20, 1  ;;  %v4928_v34 = vrot.slane %v4926_v40, 1 }
 0x2bf   : > { %v4468_v57 = vld [vmem:[#allocation3 + $0x9c] sm:$0xf]  ;;  %v12213_v36 = vld [vmem:[#allocation3 + $0x28] sm:$0xf]  ;;  %v4528_v44 = vld [vmem:[#allocation3 + $0x90] sm:$0xf] }
 0x2c0   : > { %v4529_v15 = vld [vmem:[#allocation3 + $0x94] sm:$0xf]  ;;  %v12219_v26 = vcombine.low %v4468_v57, %v12208_v4  ;;  %v4620_v2 = vld [vmem:[#allocation3 + $0x24] sm:$0xe]  ;;  %v4931_v49 = vshll.u32 %v12206_v31, 16  ;;  %v5069_v3 = vrot.slane %v12191_v43, 1 }
 0x2c1   : > { %6853 = vmatmul.mubr.bf16.gmra.mrb[188].mxu0 %v5058_v17  ;;  %v4922_v17 = vsel %vm1243_vm4, %v4917_v18, %v4921_v10  ;;  %v4501_v13 = vld [vmem:[#allocation3 + $0x84] sm:$0xe]  ;;  %v12225_v27 = vcombine.low %v4528_v44, %v4529_v15  ;;  %v12232_v53 = vld [vmem:[#allocation3 + $0xa4] ss:$0 sps:$4 sm:$0x11]   ;;  %v5072_v15 = vrot.slane %v12206_v31, 1 }
 0x2c2   : > { %6860 = vmatprep.mubr.bf16.mxu0 %v12166_v23  ;;  %v7984_v16 = vcombine.low %v4501_v13, %v12171_v1  ;;  %v4938_v41 = vshll.u32 %v12219_v26, 16  ;;  %v12234_v21 = vld [vmem:[#allocation3 + $0xac] sm:$0xf]  ;;  %v4933_v56 = vrot.slane %v4931_v49, 1  ;;  %v4470_v25 = vld [vmem:[#allocation3 + $0xa8] sm:$0xf] }
 0x2c3   : > { %6700 = vmatmul.mubr.bf16.gmra.mrb[160].mxu1 %v7949_v14  ;;  %v4905_v14 = vor.u32 %v4904_v38, %v4900_v54  ;;  %v8070_v38 = vcombine.low %v4620_v2, %v12213_v36  ;;  %v5067_v54 = vsel %vm1500_vm9, %v5065_v12, %v5066_v51  ;;  %v4531_v59 = vld [vmem:[#allocation3 + $0xa0] sm:$0xf]  ;;  %v4530_v20 = vld [vmem:[#allocation3 + $0x9c] sm:$0xf]  ;;  %v4943_v18 = vshll.u32 %v12232_v53, 16 }
 0x2c4   : > { %6707 = vmatprep.mubr.bf16.mxu1 %v4898_v24  ;;  %v4924_v24 = vshrl.u32 %v12197_v22, 16  ;;  %v4940_v9 = vrot.slane %v4938_v41, 1  ;;  %v12254_v40 = vcombine.low %v4530_v20, %v4531_v59  ;;  %v4502_v10 = vld [vmem:[#allocation3 + $0x90] sm:$0xe]  ;;  %v4533_v49 = vld [vmem:[#allocation3 + $0xac] sm:$0xf] }
 0x2c5   : > { %v4910_v5 = vsel %vm1243_vm4, %v4905_v14, %v4909_v45  ;;  %v12230_v14 = vpop.f32.mrb[128].mxu1  ;;  %v7985_v57 = vcombine.low %v4502_v10, %v12188_v6  ;;  %v4945_v51 = vrot.slane %v4943_v18, 1  ;;  %v9628_v44 = vld [vmem:[#allocation3 + $0xb0] ss:$0 sps:$4 sm:$0x11]  }
 0x2c6   : > { %v4929_v19 = vor.u32 %v4928_v34, %v4924_v24  ;;  %v12236_v45 = vpop.f32.mrb[129].mxu1  ;;  %v4472_v34 = vld [vmem:[#allocation3 + $0xb4] sm:$0xf]  ;;  %v4504_v10 = vld [vmem:[#allocation3 + $0xa8] sm:$0xe] }
 0x2c7   : > { %v12242_v61 = vpop.f32.mrb[130].mxu1  ;;  %v5071_v24 = vrot.slane %v7985_v57, 1  ;;  %v4534_v18 = vld [vmem:[#allocation3 + $0xb4] sm:$0xf]  ;;  %v7987_v57 = vcombine.low %v4504_v10, %v12234_v21 }
 0x2c8   : > { %v12244_v0 = vpop.f32.mrb[131].mxu1 }
 0x2c9   : > { %6861 = vmatmul.mubr.bf16.gmra.mrb[192].mxu0 %v5061_v58  ;;  %v5966_v58 = vrot.slane %v8070_v38, 1  ;;  %v4532_v38 = vld [vmem:[#allocation3 + $0xa8] sm:$0xf]  ;;  %v5073_v31 = vsel %vm1500_vm9, %v5071_v24, %v5072_v15 }
 0x2ca   : > { %6868 = vmatprep.mubr.bf16.mxu0 %v12183_v39 }
 0x2cb   : > { %6708 = vmatmul.mubr.bf16.gmra.mrb[164].mxu1 %v12145_v60  ;;  %v12203_v60 = vcombine.low %v4526_v48, %v4527_v35  ;;  %v4934_v35 = vsel %vm1243_vm4, %v4929_v19, %v4933_v56  ;;  %v12250_v48 = vcombine.low %v4470_v25, %v12234_v21  ;;  %v4503_v19 = vld [vmem:[#allocation3 + $0x9c] sm:$0xe] }
 0x2cc   : > { %6715 = vmatprep.mubr.bf16.mxu1 %v4910_v5  ;;  %v5068_v5 = vrot.slane %v7984_v16, 1  ;;  %v4955_v16 = vshll.u32 %v9628_v44, 16 }
 0x2cd   : > { %v4950_v43 = vshll.u32 %v12250_v48, 16 }
 0x2ce   : > { %v4957_v56 = vrot.slane %v4955_v16, 1  ;;  %v4536_v16 = vld [vmem:[#allocation3 + $0xc0] sm:$0xf] }
 0x2cf   : > { %v4952_v13 = vrot.slane %v4950_v43, 1  ;;  %v4571_v43 = vld [vmem:[#allocation3 + $0x18] sm:$0xf] }
 0x2d1   : > { %6869 = vmatmul.mubr.bf16.gmra.mrb[196].mxu0 %v5064_v62  ;;  %v4936_v62 = vshrl.u32 %v12219_v26, 16 }
 0x2d2   : > { %6876 = vmatprep.mubr.bf16.mxu0 %v12203_v60 }
 0x2d3   : > { %6716 = vmatmul.mubr.bf16.gmra.mrb[168].mxu1 %v12162_v46  ;;  %v5967_v46 = vrot.slane %v12211_v30, 1  ;;  %v4941_v12 = vor.u32 %v4940_v9, %v4936_v62  ;;  %v4535_v9 = vld [vmem:[#allocation3 + $0xb8] sm:$0xf]  ;;  %v4572_v62 = vld [vmem:[#allocation3 + $0x1c] sm:$0xf] }
 0x2d4   : > { %6723 = vmatprep.mubr.bf16.mxu1 %v4922_v17  ;;  %v12259_v17 = vld [vmem:[#allocation3 + $0xb8] sm:$0xf] }
 0x2d5   : > { %v12240_v1 = vsel %vm1500_vm9, %v5966_v58, %v5967_v46  ;;  %v4946_v2 = vsel %vm1243_vm4, %v4941_v12, %v4945_v51  ;;  %v12266_v6 = vcombine.low %v4472_v34, %v12259_v17  ;;  %v4948_v46 = vshrl.u32 %v12250_v48, 16  ;;  %v4554_v51 = vld [vmem:[#allocation3 + $0xc] sm:$0xe]  ;;  %v9646_v34 = vld [vmem:[#allocation3 + $0x14] ss:$0 sps:$4 sm:$0x11]  }
 0x2d6   : > { %13264 = vst [vmem:[#allocation21_spill] sm:$0xff] %v12240_v1  ;;  %v12283_v12 = vcombine.low %v4534_v18, %v4535_v9  ;;  %v4555_v9 = vld [vmem:[#allocation3 + $0x18] sm:$0xe] }
 0x2d7   : > { %v4953_v41 = vor.u32 %v4952_v13, %v4948_v46  ;;  %v4962_v58 = vshll.u32 %v12266_v6, 16  ;;  %v5077_v13 = vrot.slane %v7987_v57, 1  ;;  %v4537_v46 = vld [vmem:[#allocation3 + $0xc4] sm:$0xf]  ;;  %v5251_v57 = vshll.u32 %v9646_v34, 16 }
 0x2d8   : > { %13266 = vst [vmem:[#allocation20_spill] sm:$0xff] %v12283_v12 }
 0x2d9   : > { %6877 = vmatmul.mubr.bf16.gmra.mrb[200].mxu0 %v5067_v54  ;;  %v12269_v54 = vcombine.low %v4532_v38, %v4533_v49  ;;  %v4958_v25 = vsel %vm1243_vm4, %v4953_v41, %v4957_v56  ;;  %v4964_v59 = vrot.slane %v4962_v58, 1  ;;  %v5078_v38 = vrot.slane %v9628_v44, 1  ;;  %v4505_v41 = vld [vmem:[#allocation3 + $0xb4] sm:$0xe] }
 0x2da   : > { %6884 = vmatprep.mubr.bf16.mxu0 %v12225_v27  ;;  %v7988_v56 = vcombine.low %v4505_v41, %v12259_v17  ;;  %v9661_v41 = vld [vmem:[%s13068_s2 + $0x208] sm:$0xff]  }
 0x2db   : > { %6724 = vmatmul.mubr.bf16.gmra.mrb[172].mxu1 %v12179_v28  ;;  %v5070_v28 = vsel %vm1500_vm9, %v5068_v5, %v5069_v3  ;;  %13265 = vst [vmem:[#allocation23_spill] sm:$0xff] %v12269_v54  ;;  %v12275_v5 = vld [vmem:[#allocation3 + $0xbc] ss:$0 sps:$4 sm:$0x11]   ;;  %v5075_v3 = vrot.slane %v12232_v53, 1  ;;  %v12286_v53 = vcombine.low %v4571_v43, %v4572_v62  ;;  %v5079_v58 = vsel %vm1500_vm9, %v5077_v13, %v5078_v38 }
 0x2dc   : > { %6731 = vmatprep.mubr.bf16.mxu1 %v4934_v35  ;;  %v4967_v20 = vshll.u32 %v12275_v5, 16  ;;  %v9736_v62 = vld [vmem:[#allocation3 + $0x1c] sm:$0xf]  ;;  %v5080_v17 = vrot.slane %v7988_v56, 1  ;;  %v5081_v10 = vrot.slane %v12275_v5, 1  ;;  %v5727_v56 = vshll.u32 %v12211_v30, 16 }
 0x2dd   : > { %v5710_v21 = vshll.u32 %v12286_v53, 16  ;;  %v8022_v18 = vcombine.low %v4555_v9, %v9736_v62  ;;  %v4575_v5 = vld [vmem:[#allocation3 + $0x30] sm:$0xf]  ;;  %v5256_v9 = vshrl.u32 %v11853_v32, 16  ;;  %v5270_v62 = vshll.u32 %v11966_v55, 16 }
 0x2de   : > { %v4969_v15 = vrot.slane %v4967_v20, 1 }
 0x2df   : > { %v5712_v44 = vrot.slane %v5710_v21, 1  ;;  %v5502_v13 = vrot.slane %v8022_v18, 1  ;;  %v5253_v21 = vrot.slane %v5251_v57, 1  ;;  %v9738_v57 = vld [vmem:[#allocation3 + $0x34] sm:$0xf] }
 0x2e1   : > { %6885 = vmatmul.mubr.bf16.gmra.mrb[204].mxu0 %v5070_v28 }
 0x2e2   : > { %6892 = vmatprep.mubr.bf16.mxu0 %v12254_v40 }
 0x2e3   : > { %6732 = vmatmul.mubr.bf16.gmra.mrb[176].mxu1 %v12197_v22  ;;  %v7986_v22 = vcombine.low %v4503_v19, %v12208_v4  ;;  %v4960_v4 = vshrl.u32 %v12266_v6, 16  ;;  %v5246_v19 = vshll.u32 %v11804_v7, 16 }
 0x2e4   : > { %6739 = vmatprep.mubr.bf16.mxu1 %v4946_v2  ;;  %v9735_v2 = vld [vmem:[#allocation3 + $0x10] sm:$0xf] }
 0x2e5   : > { %v5074_v35 = vrot.slane %v7986_v22, 1  ;;  %v8021_v24 = vcombine.low %v4554_v51, %v9735_v2  ;;  %v9650_v22 = vld [vmem:[#allocation3 + $0x20] ss:$0 sps:$4 sm:$0x11]   ;;  %v4576_v2 = vld [vmem:[#allocation3 + $0x34] sm:$0xf] }
 0x2e6   : > { %v5715_v20 = vshll.u32 %v9650_v22, 16 }
 0x2e7   : > { %v5076_v28 = vsel %vm1500_vm9, %v5074_v35, %v5075_v3  ;;  %v4573_v35 = vld [vmem:[#allocation3 + $0x24] sm:$0xf] }
 0x2e8   : > { %v12298_v3 = vcombine.low %v4573_v35, %v12213_v36  ;;  %v5244_v36 = vshrl.u32 %v11804_v7, 16  ;;  %v9737_v35 = vld [vmem:[#allocation3 + $0x28] sm:$0xf] }
 0x2e9   : > { %6893 = vmatmul.mubr.bf16.gmra.mrb[208].mxu0 %v5073_v31  ;;  %v12293_v31 = vcombine.low %v4536_v16, %v4537_v46  ;;  %v4556_v16 = vld [vmem:[#allocation3 + $0x24] sm:$0xe] }
 0x2ea   : > { %6900 = vmatprep.mubr.bf16.mxu0 %v12269_v54  ;;  %v5722_v51 = vshll.u32 %v12298_v3, 16  ;;  %v12478_v54 = vld [vmem:[#allocation3 + $0xc8] ss:$0 sps:$4 sm:$0x11]  }
 0x2eb   : > { %6740 = vmatmul.mubr.bf16.gmra.mrb[180].mxu1 %v12219_v26  ;;  %v4965_v26 = vor.u32 %v4964_v59, %v4960_v4  ;;  %13267 = vst [vmem:[#allocation22_spill] sm:$0xff] %v12293_v31  ;;  %v5248_v59 = vrot.slane %v5246_v19, 1  ;;  %v5708_v4 = vshrl.u32 %v12286_v53, 16 }
 0x2ec   : > { %6747 = vmatprep.mubr.bf16.mxu1 %v4958_v25  ;;  %v5500_v25 = vrot.slane %v9646_v34, 1  ;;  %v5724_v7 = vrot.slane %v5722_v51, 1  ;;  %v12310_v34 = vcombine.low %v4575_v5, %v4576_v2 }
 0x2ed   : > { %v4970_v49 = vsel %vm1243_vm4, %v4965_v26, %v4969_v15  ;;  %v9654_v26 = vld [vmem:[#allocation3 + $0x20] ss:$0 sps:$4 sm:$0x11]   ;;  %v5713_v43 = vor.u32 %v5712_v44, %v5708_v4  ;;  %v5258_v15 = vshll.u32 %v11853_v32, 16  ;;  %v8023_v44 = vcombine.low %v4556_v16, %v9737_v35  ;;  %v9669_v32 = vld [vmem:[%s13068_s2 + $0x210] sm:$0xff]  }
 0x2ee   : > { %v5503_v38 = vrot.slane %v9654_v26, 1  ;;  %v5263_v4 = vshll.u32 %v9654_v26, 16  ;;  %v5734_v18 = vshll.u32 %v12310_v34, 16  ;;  %v5729_v26 = vrot.slane %v5727_v56, 1 }
 0x2ef   : > { %v5260_v19 = vrot.slane %v5258_v15, 1  ;;  %v12344_v15 = vld [vmem:[#allocation3 + $0x4c] sm:$0xf]  ;;  %v12355_v16 = vld [vmem:[#allocation3 + $0x44] ss:$0 sps:$4 sm:$0x11]  }
 0x2f0   : > { %v5265_v51 = vrot.slane %v5263_v4, 1 }
 0x2f1   : > { %6901 = vmatmul.mubr.bf16.gmra.mrb[212].mxu0 %v5076_v28 }
 0x2f2   : > { %6908 = vmatprep.mubr.bf16.mxu0 %v12283_v12 }
 0x2f3   : > { %6748 = vmatmul.mubr.bf16.gmra.mrb[184].mxu1 %v12250_v48  ;;  %v5499_v48 = vrot.slane %v8021_v24, 1  ;;  %v5717_v24 = vrot.slane %v5715_v20, 1  ;;  %v12326_v20 = vld [vmem:[#allocation3 + $0x40] sm:$0xf] }
 0x2f4   : > { %6755 = vmatprep.mubr.bf16.mxu1 %v4970_v49  ;;  %v5249_v49 = vor.u32 %v5248_v59, %v5244_v36  ;;  %v5504_v59 = vsel %vm1500_vm9, %v5502_v13, %v5503_v38  ;;  %v12338_v36 = vld [vmem:[#allocation3 + $0x38] ss:$0 sps:$4 sm:$0x11]   ;;  %v5732_v38 = vshrl.u32 %v12310_v34, 16 }
 0x2f5   : > { %v5501_v28 = vsel %vm1500_vm9, %v5499_v48, %v5500_v25  ;;  %v5718_v46 = vsel %vm1243_vm4, %v5713_v43, %v5717_v24  ;;  %v12318_v48 = vld [vmem:[#allocation3 + $0x2c] ss:$0 sps:$4 sm:$0x11]   ;;  %v12322_v25 = vadd.f32 %v12236_v45, %v12230_v14  ;;  %v12333_v14 = vadd.f32 %v12244_v0, %v12242_v61 }
 0x2f6   : > { %v5254_v22 = vsel %vm1243_vm4, %v5249_v49, %v5253_v21  ;;  %v5261_v45 = vor.u32 %v5260_v19, %v5256_v9  ;;  %v5505_v61 = vrot.slane %v8023_v44, 1  ;;  %v5506_v0 = vrot.slane %v12318_v48, 1  ;;  %v9677_v21 = vld [vmem:[%s13068_s2 + $0x218] sm:$0xff]  }
 0x2f7   : > { %v5736_v24 = vrot.slane %v5734_v18, 1  ;;  %v5272_v49 = vrot.slane %v5270_v62, 1  ;;  %v5509_v44 = vrot.slane %v12338_v36, 1  ;;  %v12370_v62 = vld [vmem:[#allocation3 + $0x44] ss:$0 sps:$4 sm:$0x11]  }
 0x2f8   : > { %v5266_v13 = vsel %vm1243_vm4, %v5261_v45, %v5265_v51  ;;  %v5507_v56 = vsel %vm1500_vm9, %v5505_v61, %v5506_v0 }
 0x2f9   : > { %6909 = vmatmul.mubr.bf16.gmra.mrb[216].mxu0 %v5079_v58  ;;  %v5720_v58 = vshrl.u32 %v12298_v3, 16  ;;  %v5737_v9 = vor.u32 %v5736_v24, %v5732_v38  ;;  %v4581_v38 = vld [vmem:[#allocation3 + $0x54] sm:$0xf] }
 0x2fa   : > { %6916 = vmatprep.mubr.bf16.mxu0 %v12293_v31  ;;  %v4627_v31 = vld [vmem:[#allocation3 + $0x78] sm:$0xe] }
 0x2fb   : > { %6756 = vmatmul.mubr.bf16.gmra.mrb[188].mxu1 %v12266_v6  ;;  %v5082_v6 = vsel %vm1500_vm9, %v5080_v17, %v5081_v10  ;;  %v5725_v30 = vor.u32 %v5724_v7, %v5720_v58  ;;  %v9660_v17 = vld [vmem:[#allocation3 + $0x38] ss:$0 sps:$4 sm:$0x11]   ;;  %v4577_v10 = vld [vmem:[#allocation3 + $0x3c] sm:$0xf]  ;;  %v5275_v7 = vshll.u32 %v12318_v48, 16 }
 0x2fc   : > { %6957 = vmatprep.mubr.bf16.mxu1 %v5501_v28  ;;  %v4557_v28 = vld [vmem:[#allocation3 + $0x30] sm:$0xe]  ;;  %v5739_v5 = vshll.u32 %v9660_v17, 16  ;;  %v12362_v58 = vld [vmem:[#allocation3 + $0x48] sm:$0xe] }
 0x2fd   : > { %v8024_v43 = vcombine.low %v4557_v28, %v9738_v57  ;;  %v5730_v2 = vsel %vm1243_vm4, %v5725_v30, %v5729_v26  ;;  %v8026_v18 = vcombine.low %v12362_v58, %v12083_v11  ;;  %v5277_v28 = vrot.slane %v5275_v7, 1  ;;  %v4622_v26 = vld [vmem:[#allocation3 + $0x3c] sm:$0xe] }
 0x2fe   : > { %v5741_v17 = vrot.slane %v5739_v5, 1  ;;  %v8072_v61 = vcombine.low %v4622_v26, %v12326_v20  ;;  %v4582_v5 = vld [vmem:[#allocation3 + $0x58] sm:$0xf] }
 0x2ff   : > { %v5508_v35 = vrot.slane %v8024_v43, 1 }
 0x300   : > { %v5742_v24 = vsel %vm1243_vm4, %v5737_v9, %v5741_v17  ;;  %v4626_v9 = vld [vmem:[#allocation3 + $0x6c] sm:$0xe]  ;;  %v5972_v17 = vrot.slane %v8072_v61, 1 }
 0x301   : > { %6917 = vmatmul.mubr.bf16.gmra.mrb[220].mxu0 %v5082_v6  ;;  %v4558_v6 = vld [vmem:[#allocation3 + $0x3c] sm:$0xe]  ;;  %v5510_v11 = vsel %vm1500_vm9, %v5508_v35, %v5509_v44  ;;  %v12400_v35 = vld [vmem:[#allocation3 + $0x5c] ss:$0 sps:$4 sm:$0x11]   ;;  %v5292_v44 = vshrl.u32 %v12048_v8, 16 }
 0x302   : > { %7118 = vmatprep.mubr.bf16.mxu0 %v5718_v46  ;;  %v4579_v46 = vld [vmem:[#allocation3 + $0x48] sm:$0xf]  ;;  %v8025_v48 = vcombine.low %v4558_v6, %v12044_v33  ;;  %v5973_v6 = vrot.slane %v12355_v16, 1 }
 0x303   : > { %6958 = vmatmul.mubr.bf16.vlgmr.msra.gmra.mrb[192].mxu1 %v5254_v22  ;;  %v5282_v22 = vshll.u32 %v12006_v37, 16  ;;  %v9685_v33 = vld [vmem:[%s13068_s2 + $0x220] sm:$0xff]  }
 0x304   : > { %6965 = vmatprep.mubr.bf16.mxu1 %v5504_v59  ;;  %9222 = vmatpush3.bf16.msra.mxu1 %v12011_v63  ;;  %v12341_v63 = vcombine.low %v4577_v10, %v12326_v20  ;;  %v12368_v59 = vld [vmem:[#allocation3 + $0x54] sm:$0xe]  ;;  %v12377_v10 = vld [vmem:[#allocation3 + $0x50] ss:$0 sps:$4 sm:$0x11]   ;;  %v5511_v20 = vrot.slane %v8025_v48, 1  ;;  %v12406_v48 = vcombine.low %v4581_v38, %v4582_v5 }
 0x305   : > { %9223 = vmatprep.subr.bf16.mxu1 %v9661_v41  ;;  %v5284_v0 = vrot.slane %v5282_v22, 1  ;;  %v12422_v38 = vld [vmem:[#allocation3 + $0xa0] sm:$0xf] }
 0x306   : > { %v5746_v19 = vshll.u32 %v12341_v63, 16  ;;  %v5744_v51 = vshrl.u32 %v12341_v63, 16 }
 0x308   : > { %9224 = vmatpush3.bf16.msra.mxu1 %v9661_v41  ;;  %v12359_v41 = vcombine.low %v4579_v46, %v12344_v15  ;;  %v5748_v57 = vrot.slane %v5746_v19, 1  ;;  %v5280_v46 = vshrl.u32 %v12006_v37, 16  ;;  %v4624_v19 = vld [vmem:[#allocation3 + $0x54] sm:$0xe] }
 0x309   : > { %7119 = vmatmul.mubr.bf16.vlgmr.msra.gmra.mrb[224].mxu0 %v12286_v53  ;;  %9225 = vmatprep.subr.bf16.mxu1 %v9669_v32  ;;  %v5268_v53 = vshrl.u32 %v11966_v55, 16  ;;  %v5294_v55 = vshll.u32 %v12048_v8, 16 }
 0x30a   : > { %7126 = vmatprep.mubr.bf16.mxu0 %v5730_v2  ;;  %v5758_v43 = vshll.u32 %v12359_v41, 16  ;;  %v12387_v2 = vld [vmem:[#allocation3 + $0x50] ss:$0 sps:$4 sm:$0x11]   ;;  %v5749_v22 = vor.u32 %v5748_v57, %v5744_v51  ;;  %v5285_v37 = vor.u32 %v5284_v0, %v5280_v46  ;;  %v5756_v26 = vshrl.u32 %v12359_v41, 16 }
 0x30b   : > { %6966 = vmatmul.mubr.bf16.gmra.mrb[196].mxu1 %v5266_v13  ;;  %v5273_v4 = vor.u32 %v5272_v49, %v5268_v53  ;;  %v5287_v13 = vshll.u32 %v12338_v36, 16  ;;  %v5512_v53 = vrot.slane %v12370_v62, 1  ;;  %v5296_v7 = vrot.slane %v5294_v55, 1 }
 0x30c   : > { %6973 = vmatprep.mubr.bf16.mxu1 %v5507_v56  ;;  %9226 = vmatpush3.bf16.msra.mxu1 %v9669_v32  ;;  %v5751_v32 = vshll.u32 %v12355_v16, 16  ;;  %v5760_v56 = vrot.slane %v5758_v43, 1  ;;  %v5763_v36 = vshll.u32 %v12377_v10, 16  ;;  %v5299_v55 = vshll.u32 %v12370_v62, 16  ;;  %v4628_v43 = vld [vmem:[#allocation3 + $0x84] sm:$0xe] }
 0x30d   : > { %9227 = vmatprep.subr.bf16.mxu1 %v9677_v21  ;;  %v5278_v49 = vsel %vm1243_vm4, %v5273_v4, %v5277_v28  ;;  %v12408_v4 = vld [vmem:[#allocation3 + $0x88] sm:$0xf]  ;;  %v5289_v28 = vrot.slane %v5287_v13, 1  ;;  %v8074_v57 = vcombine.low %v4624_v19, %v4582_v5  ;;  %v5513_v51 = vsel %vm1500_vm9, %v5511_v20, %v5512_v53  ;;  %v12424_v5 = vld [vmem:[#allocation3 + $0xa4] ss:$0 sps:$4 sm:$0x11]  }
 0x30e   : > { %v5753_v58 = vrot.slane %v5751_v32, 1  ;;  %v12411_v32 = vld [vmem:[#allocation3 + $0x74] ss:$0 sps:$4 sm:$0x11]   ;;  %v5297_v8 = vor.u32 %v5296_v7, %v5292_v44  ;;  %v5514_v0 = vrot.slane %v8026_v18, 1  ;;  %v5515_v62 = vrot.slane %v12387_v2, 1 }
 0x30f   : > { %v5765_v13 = vrot.slane %v5763_v36, 1  ;;  %v5290_v18 = vsel %vm1243_vm4, %v5285_v37, %v5289_v28  ;;  %v5301_v46 = vrot.slane %v5299_v55, 1  ;;  %v5770_v20 = vshll.u32 %v12406_v48, 16  ;;  %v12428_v53 = vld [vmem:[#allocation3 + $0x68] ss:$0 sps:$4 sm:$0x11]  }
 0x310   : > { %9228 = vmatpush3.bf16.msra.mxu1 %v9677_v21  ;;  %v12402_v21 = vld [vmem:[#allocation3 + $0x70] sm:$0xf]  ;;  %v5754_v61 = vsel %vm1243_vm4, %v5749_v22, %v5753_v58  ;;  %v8078_v7 = vcombine.low %v4628_v43, %v12408_v4  ;;  %v12431_v19 = vld [vmem:[#allocation3 + $0xb8] sm:$0xf]  ;;  %v5979_v36 = vrot.slane %v12400_v35, 1  ;;  %v5997_v30 = vrot.slane %v12424_v5, 1 }
 0x311   : > { %7127 = vmatmul.mubr.bf16.gmra.mrb[228].mxu0 %v12298_v3  ;;  %9229 = vmatprep.subr.bf16.mxu1 %v9685_v33  ;;  %v9693_v3 = vld [vmem:[%s13068_s2 + $0x228] sm:$0xff]   ;;  %v4584_v44 = vld [vmem:[#allocation3 + $0x64] sm:$0xf]  ;;  %v4630_v37 = vld [vmem:[#allocation3 + $0x9c] sm:$0xe]  ;;  %v12438_v55 = vsel %vm1243_vm4, %v5297_v8, %v5301_v46  ;;  %v5985_v8 = vrot.slane %v12411_v32, 1 }
 0x312   : > { %7134 = vmatprep.mubr.bf16.mxu0 %v5742_v24  ;;  %v12415_v24 = vld [vmem:[#allocation3 + $0x8c] ss:$0 sps:$4 sm:$0x11]   ;;  %v12443_v28 = vld [vmem:[#allocation3 + $0x7c] sm:$0xf] }
 0x313   : > { %6974 = vmatmul.mubr.bf16.gmra.mrb[200].mxu1 %v5278_v49  ;;  %v5761_v49 = vor.u32 %v5760_v56, %v5756_v26  ;;  %v5978_v56 = vrot.slane %v8074_v57, 1  ;;  %v4632_v26 = vld [vmem:[#allocation3 + $0xb4] sm:$0xe]  ;;  %v12446_v43 = vld [vmem:[#allocation3 + $0xbc] ss:$0 sps:$4 sm:$0x11]  }
 0x314   : > { %6981 = vmatprep.mubr.bf16.mxu1 %v5510_v11  ;;  %9230 = vmatpush3.bf16.msra.mxu1 %v9685_v33  ;;  %v9701_v11 = vld [vmem:[%s13068_s2 + $0x230] sm:$0xff]   ;;  %v8076_v33 = vcombine.low %v4626_v9, %v12402_v21  ;;  %v12441_v9 = vsel %vm1500_vm9, %v5514_v0, %v5515_v62  ;;  %v12453_v46 = vld [vmem:[#allocation3 + $0x80] ss:$0 sps:$4 sm:$0x11]   ;;  %v8082_v0 = vcombine.low %v4632_v26, %v12431_v19  ;;  %v5772_v62 = vrot.slane %v5770_v20, 1 }
 0x315   : > { %9231 = vmatprep.subr.bf16.mxu1 %v9693_v3  ;;  %v5766_v57 = vsel %vm1243_vm4, %v5761_v49, %v5765_v13  ;;  %v5991_v45 = vrot.slane %v12415_v24, 1  ;;  %v12457_v58 = vld [vmem:[#allocation3 + $0x94] sm:$0xf]  ;;  %v12459_v22 = vld [vmem:[#allocation3 + $0x98] ss:$0 sps:$4 sm:$0x11]   ;;  %v12464_v49 = vsel %vm1500_vm9, %v5972_v17, %v5973_v6  ;;  %v12474_v1 = vsel %vm1500_vm9, %v5978_v56, %v5979_v36 }
 0x316   : > { %13268 = vst [vmem:[#allocation14_spill] sm:$0xff] %v12464_v49  ;;  %v4623_v13 = vld [vmem:[#allocation3 + $0x48] sm:$0xe]  ;;  %v12467_v26 = vld [vmem:[#allocation3 + $0xac] sm:$0xf]  ;;  %13269 = vst [vmem:[#allocation24_spill] sm:$0xff] %v12474_v1 }
 0x317   : > { %v8073_v20 = vcombine.low %v4623_v13, %v12344_v15  ;;  %v4625_v16 = vld [vmem:[#allocation3 + $0x60] sm:$0xe]  ;;  %v6003_v17 = vrot.slane %v12446_v43, 1  ;;  %v5982_v49 = vrot.slane %v12428_v53, 1  ;;  %v6002_v12 = vrot.slane %v8082_v0, 1 }
 0x318   : > { %9232 = vmatpush3.bf16.msra.mxu1 %v9693_v3  ;;  %v9709_v3 = vld [vmem:[%s13068_s2 + $0x238] sm:$0xff]   ;;  %v13270_v56 = vshll.u32 %v12090_v29, 16  ;;  %v4629_v1 = vld [vmem:[#allocation3 + $0x90] sm:$0xe] }
 0x319   : > { %7135 = vmatmul.mubr.bf16.gmra.mrb[232].mxu0 %v12310_v34  ;;  %v8080_v34 = vcombine.low %v4630_v37, %v12422_v38  ;;  %9233 = vmatprep.subr.bf16.mxu1 %v9701_v11  ;;  %v5990_v37 = vrot.slane %v8078_v7, 1  ;;  %v5976_v7 = vrot.slane %v12377_v10, 1  ;;  %v8077_v10 = vcombine.low %v4627_v31, %v12443_v28  ;;  %v12490_v0 = vld [vmem:[#allocation3 + $0xc4] sm:$0xf] }
 0x31a   : > { %7142 = vmatprep.mubr.bf16.mxu0 %v5754_v61  ;;  %v5984_v61 = vrot.slane %v8076_v33, 1  ;;  %v4583_v33 = vld [vmem:[#allocation3 + $0x60] sm:$0xf]  ;;  %v5308_v36 = vrot.slane %v13270_v56, 1  ;;  %v13271_v56 = vshrl.u32 %v12406_v48, 16 }
 0x31b   : > { %6982 = vmatmul.mubr.bf16.gmra.mrb[204].mxu1 %v5290_v18  ;;  %v12469_v18 = vld [vmem:[#allocation3 + $0xb0] ss:$0 sps:$4 sm:$0x11]   ;;  %v5996_v6 = vrot.slane %v8080_v34, 1  ;;  %v12486_v34 = vcombine.low %v4583_v33, %v4584_v44  ;;  %v12496_v31 = vsel %vm1500_vm9, %v5990_v37, %v5991_v45  ;;  %v5304_v37 = vshrl.u32 %v12090_v29, 16 }
 0x31c   : > { %6989 = vmatprep.mubr.bf16.mxu1 %v5513_v51  ;;  %9234 = vmatpush3.bf16.msra.mxu1 %v9701_v11  ;;  %v8075_v51 = vcombine.low %v4625_v16, %v4584_v44  ;;  %v5975_v11 = vrot.slane %v8073_v20, 1  ;;  %v12481_v15 = vsel %vm1500_vm9, %v5984_v61, %v5985_v8  ;;  %v5988_v16 = vrot.slane %v12453_v46, 1  ;;  %v4631_v44 = vld [vmem:[#allocation3 + $0xa8] sm:$0xe] }
 0x31d   : > { %9235 = vmatprep.subr.bf16.mxu1 %v9709_v3  ;;  %v5987_v61 = vrot.slane %v8077_v10, 1  ;;  %v8079_v8 = vcombine.low %v4629_v1, %v12457_v58  ;;  %v6000_v45 = vrot.slane %v12469_v18, 1  ;;  %v12512_v1 = vsel %vm1500_vm9, %v6002_v12, %v6003_v17 }
 0x31e   : > { %v5981_v13 = vrot.slane %v8075_v51, 1  ;;  %v12493_v20 = vsel %vm1500_vm9, %v5975_v11, %v5976_v7  ;;  %v5994_v51 = vrot.slane %v12459_v22, 1  ;;  %v5782_v12 = vshll.u32 %v12486_v34, 16 }
 0x31f   : > { %v12508_v7 = vsel %vm1500_vm9, %v5987_v61, %v5988_v16  ;;  %v5993_v11 = vrot.slane %v8079_v8, 1  ;;  %v5311_v16 = vshll.u32 %v12387_v2, 16  ;;  %v5318_v61 = vshll.u32 %v12128_v50, 16 }
 0x320   : > { %9236 = vmatpush3.bf16.msra.mxu1 %v9709_v3  ;;  %v12500_v33 = vsel %vm1500_vm9, %v5981_v13, %v5982_v49  ;;  %v8081_v3 = vcombine.low %v4631_v44, %v12467_v26  ;;  %v9674_v49 = vld [vmem:[#allocation3 + $0x5c] ss:$0 sps:$4 sm:$0x11]   ;;  %v5773_v13 = vor.u32 %v5772_v62, %v13271_v56  ;;  %v13272_v8 = vshll.u32 %v12400_v35, 16  ;;  %v4561_v35 = vld [vmem:[#allocation3 + $0x60] sm:$0xe] }
 0x321   : > { %7143 = vmatmul.mubr.bf16.gmra.mrb[236].mxu0 %v12341_v63  ;;  %v12504_v63 = vsel %vm1500_vm9, %v5996_v6, %v5997_v30  ;;  %v6006_v6 = vrot.slane %v12478_v54, 1  ;;  %v12524_v17 = vsel %vm1500_vm9, %v5993_v11, %v5994_v51  ;;  %v13273_v62 = vcombine.low %v12368_v59, %v12104_v52 }
 0x322   : > { %7150 = vmatprep.mubr.bf16.mxu0 %v5766_v57  ;;  %v4633_v57 = vld [vmem:[#allocation3 + $0xc0] sm:$0xe]  ;;  %v5999_v10 = vrot.slane %v8081_v3, 1  ;;  %v5777_v44 = vrot.slane %v13272_v8, 1  ;;  %v5518_v2 = vrot.slane %v9674_v49, 1  ;;  %v5313_v11 = vrot.slane %v5311_v16, 1 }
 0x323   : > { %6990 = vmatmul.mubr.bf16.gmra.mrb[208].mxu1 %v12438_v55  ;;  %v8083_v30 = vcombine.low %v4633_v57, %v12490_v0  ;;  %v5517_v3 = vrot.slane %v13273_v62, 1  ;;  %v4585_v57 = vld [vmem:[#allocation3 + $0x6c] sm:$0xf]  ;;  %v5780_v52 = vshrl.u32 %v12486_v34, 16  ;;  %v5787_v59 = vshll.u32 %v12428_v53, 16 }
 0x324   : > { %6997 = vmatprep.mubr.bf16.mxu1 %v12441_v9  ;;  %v12527_v29 = vsel %vm1500_vm9, %v5999_v10, %v6000_v45  ;;  %v5309_v9 = vor.u32 %v5308_v36, %v5304_v37  ;;  %v5778_v51 = vsel %vm1243_vm4, %v5773_v13, %v5777_v44  ;;  %v5784_v45 = vrot.slane %v5782_v12, 1 }
 0x325   : > { %v6005_v55 = vrot.slane %v8083_v30, 1  ;;  %v12541_v10 = vcombine.low %v4585_v57, %v12402_v21  ;;  %v5320_v37 = vrot.slane %v5318_v61, 1  ;;  %v8028_v30 = vcombine.low %v4561_v35, %v12142_v42  ;;  %v4587_v61 = vld [vmem:[#allocation3 + $0x78] sm:$0xf] }
 0x326   : > { %v5314_v36 = vsel %vm1243_vm4, %v5309_v9, %v5313_v11  ;;  %v5785_v13 = vor.u32 %v5784_v45, %v5780_v52  ;;  %v5316_v21 = vshrl.u32 %v12128_v50, 16  ;;  %v5323_v16 = vshll.u32 %v9674_v49, 16  ;;  %v4562_v50 = vld [vmem:[#allocation3 + $0x6c] sm:$0xe]  ;;  %v9739_v45 = vld [vmem:[#allocation3 + $0x70] sm:$0xf] }
 0x327   : > { %v12536_v56 = vsel %vm1500_vm9, %v6005_v55, %v6006_v6  ;;  %v9678_v6 = vld [vmem:[#allocation3 + $0x68] ss:$0 sps:$4 sm:$0x11]   ;;  %v5794_v12 = vshll.u32 %v12541_v10, 16  ;;  %v5330_v55 = vshll.u32 %v12151_v47, 16  ;;  %v5789_v8 = vrot.slane %v5787_v59, 1 }
 0x328   : > { %v5321_v44 = vor.u32 %v5320_v37, %v5316_v21  ;;  %v5520_v9 = vrot.slane %v8028_v30, 1  ;;  %v5521_v53 = vrot.slane %v9678_v6, 1  ;;  %v5325_v62 = vrot.slane %v5323_v16, 1  ;;  %v4634_v21 = vld [vmem:[#allocation3 + $0xcc] sm:$0xe] }
 0x329   : > { %7151 = vmatmul.mubr.bf16.gmra.mrb[240].mxu0 %v12359_v41  ;;  %v5519_v41 = vsel %vm1500_vm9, %v5517_v3, %v5518_v2  ;;  %v5790_v42 = vsel %vm1243_vm4, %v5785_v13, %v5789_v8  ;;  %v5796_v3 = vrot.slane %v5794_v12, 1  ;;  %v12554_v2 = vcombine.low %v4587_v61, %v12443_v28  ;;  %v4589_v12 = vld [vmem:[#allocation3 + $0x84] sm:$0xf] }
 0x32a   : > { %7158 = vmatprep.mubr.bf16.mxu0 %v5778_v51  ;;  %v5326_v49 = vsel %vm1243_vm4, %v5321_v44, %v5325_v62  ;;  %v5792_v57 = vshrl.u32 %v12541_v10, 16  ;;  %v5799_v51 = vshll.u32 %v12411_v32, 16  ;;  %v5332_v11 = vrot.slane %v5330_v55, 1 }
 0x32b   : > { %6998 = vmatmul.mubr.bf16.gmra.mrb[212].mxu1 %v5314_v36  ;;  %v8029_v35 = vcombine.low %v4562_v50, %v9739_v45  ;;  %v9682_v36 = vld [vmem:[#allocation3 + $0x74] ss:$0 sps:$4 sm:$0x11]   ;;  %v5328_v28 = vshrl.u32 %v12151_v47, 16  ;;  %v5335_v59 = vshll.u32 %v9678_v6, 16  ;;  %v5806_v37 = vshll.u32 %v12554_v2, 16 }
 0x32c   : > { %7005 = vmatprep.mubr.bf16.mxu1 %v5519_v41  ;;  %v5797_v52 = vor.u32 %v5796_v3, %v5792_v57  ;;  %v5342_v30 = vshll.u32 %v12166_v23, 16  ;;  %v5801_v41 = vrot.slane %v5799_v51, 1  ;;  %v5524_v16 = vrot.slane %v9682_v36, 1  ;;  %v12568_v47 = vld [vmem:[#allocation3 + $0xd0] sm:$0xf] }
 0x32d   : > { %v5333_v13 = vor.u32 %v5332_v11, %v5328_v28  ;;  %v5523_v32 = vrot.slane %v8029_v35, 1  ;;  %v5337_v8 = vrot.slane %v5335_v59, 1  ;;  %v5808_v44 = vrot.slane %v5806_v37, 1  ;;  %v4563_v6 = vld [vmem:[#allocation3 + $0x78] sm:$0xe] }
 0x32e   : > { %v5802_v55 = vsel %vm1243_vm4, %v5797_v52, %v5801_v41  ;;  %v8084_v61 = vcombine.low %v4634_v21, %v12568_v47  ;;  %v5804_v62 = vshrl.u32 %v12554_v2, 16  ;;  %v9686_v3 = vld [vmem:[#allocation3 + $0x80] ss:$0 sps:$4 sm:$0x11]   ;;  %v9740_v50 = vld [vmem:[#allocation3 + $0x7c] sm:$0xf] }
 0x32f   : > { %v5340_v57 = vshrl.u32 %v12166_v23, 16  ;;  %v5347_v51 = vshll.u32 %v9682_v36, 16  ;;  %v12576_v11 = vld [vmem:[#allocation3 + $0xd4] ss:$0 sps:$4 sm:$0x11]  }
 0x330   : > { %v5809_v45 = vor.u32 %v5808_v44, %v5804_v62  ;;  %v6008_v52 = vrot.slane %v8084_v61, 1  ;;  %v6009_v28 = vrot.slane %v12576_v11, 1  ;;  %v4591_v21 = vld [vmem:[#allocation3 + $0x90] sm:$0xf]  ;;  %v5823_v44 = vshll.u32 %v12415_v24, 16 }
 0x331   : > { %7159 = vmatmul.mubr.bf16.gmra.mrb[244].mxu0 %v12406_v48  ;;  %v5522_v48 = vsel %vm1500_vm9, %v5520_v9, %v5521_v53  ;;  %v12566_v9 = vcombine.low %v4589_v12, %v12408_v4  ;;  %v5344_v53 = vrot.slane %v5342_v30, 1  ;;  %v5525_v4 = vsel %vm1500_vm9, %v5523_v32, %v5524_v16  ;;  %v4564_v61 = vld [vmem:[#allocation3 + $0x84] sm:$0xe]  ;;  %v9690_v24 = vld [vmem:[#allocation3 + $0x8c] ss:$0 sps:$4 sm:$0x11]  }
 0x332   : > { %7166 = vmatprep.mubr.bf16.mxu0 %v5790_v42  ;;  %v5338_v42 = vsel %vm1243_vm4, %v5333_v13, %v5337_v8  ;;  %v5349_v30 = vrot.slane %v5347_v51, 1  ;;  %v5527_v13 = vrot.slane %v9686_v3, 1  ;;  %v12584_v16 = vcombine.low %v4591_v21, %v12457_v58 }
 0x333   : > { %7006 = vmatmul.mubr.bf16.gmra.mrb[216].mxu1 %v5326_v49  ;;  %v8030_v49 = vcombine.low %v4563_v6, %v9740_v50  ;;  %v5818_v35 = vshll.u32 %v12566_v9, 16  ;;  %v5359_v51 = vshll.u32 %v9686_v3, 16  ;;  %v5835_v21 = vshll.u32 %v12459_v22, 16 }
 0x334   : > { %7013 = vmatprep.mubr.bf16.mxu1 %v5522_v48  ;;  %v5345_v48 = vor.u32 %v5344_v53, %v5340_v57  ;;  %v12589_v53 = vsel %vm1500_vm9, %v6008_v52, %v6009_v28 }
 0x335   : > { %v5526_v41 = vrot.slane %v8030_v49, 1  ;;  %v5820_v32 = vrot.slane %v5818_v35, 1 }
 0x336   : > { %v5350_v8 = vsel %vm1243_vm4, %v5345_v48, %v5349_v30  ;;  %v5825_v48 = vrot.slane %v5823_v44, 1 }
 0x337   : > { %v5528_v49 = vsel %vm1500_vm9, %v5526_v41, %v5527_v13  ;;  %v4565_v41 = vld [vmem:[#allocation3 + $0x90] sm:$0xe]  ;;  %v5828_v13 = vshrl.u32 %v12584_v16, 16 }
 0x339   : > { %7167 = vmatmul.mubr.bf16.gmra.mrb[248].mxu0 %v12486_v34  ;;  %v5811_v34 = vshll.u32 %v12453_v46, 16  ;;  %v5354_v46 = vshll.u32 %v12183_v39, 16 }
 0x33a   : > { %7174 = vmatprep.mubr.bf16.mxu0 %v5802_v55 }
 0x33b   : > { %7014 = vmatmul.mubr.bf16.gmra.mrb[220].mxu1 %v5338_v42  ;;  %v5813_v59 = vrot.slane %v5811_v34, 1  ;;  %v5356_v42 = vrot.slane %v5354_v46, 1  ;;  %v9741_v34 = vld [vmem:[#allocation3 + $0x88] sm:$0xf]  ;;  %v5530_v46 = vrot.slane %v9690_v24, 1 }
 0x33c   : > { %7021 = vmatprep.mubr.bf16.mxu1 %v5525_v4  ;;  %v8031_v50 = vcombine.low %v4564_v61, %v9741_v34  ;;  %v5352_v4 = vshrl.u32 %v12183_v39, 16  ;;  %v5837_v61 = vrot.slane %v5835_v21, 1 }
 0x33d   : > { %v5814_v36 = vsel %vm1243_vm4, %v5809_v45, %v5813_v59  ;;  %v5830_v45 = vshll.u32 %v12584_v16, 16  ;;  %v4593_v59 = vld [vmem:[#allocation3 + $0x9c] sm:$0xf] }
 0x33e   : > { %v5357_v52 = vor.u32 %v5356_v42, %v5352_v4  ;;  %v5529_v28 = vrot.slane %v8031_v50, 1  ;;  %v12605_v3 = vcombine.low %v4593_v59, %v12422_v38  ;;  %v5364_v38 = vshrl.u32 %v12203_v60, 16 }
 0x33f   : > { %v5832_v30 = vrot.slane %v5830_v45, 1 }
 0x340   : > { %v8829_v37 = vpop.f32.mrb[160].mxu0  ;;  %v5842_v44 = vshll.u32 %v12605_v3, 16 }
 0x341   : > { %v8830_v23 = vpop.f32.mrb[161].mxu0  ;;  %7175 = vmatmul.mubr.bf16.gmra.mrb[252].mxu0 %v12541_v10  ;;  %v5816_v10 = vshrl.u32 %v12566_v9, 16 }
 0x342   : > { %v8831_v12 = vadd.f32 %v8830_v23, %v8829_v37  ;;  %v8832_v55 = vpop.f32.mrb[162].mxu0  ;;  %7182 = vmatprep.mubr.bf16.mxu0 %v5814_v36  ;;  %v5361_v37 = vrot.slane %v5359_v51, 1  ;;  %v9742_v36 = vld [vmem:[#allocation3 + $0x94] sm:$0xf]  ;;  %v5847_v51 = vshll.u32 %v12424_v5, 16  ;;  %v5390_v5 = vshll.u32 %v12254_v40, 16 }
 0x343   : > { %v8833_v6 = vpop.f32.mrb[163].mxu0  ;;  %7022 = vmatmul.mubr.bf16.gmra.mrb[224].mxu1 %v5350_v8  ;;  %v5821_v57 = vor.u32 %v5820_v32, %v5816_v10  ;;  %v8032_v32 = vcombine.low %v4565_v41, %v9742_v36  ;;  %v5371_v8 = vshll.u32 %v9690_v24, 16 }
 0x344   : > { %v12593_v62 = vadd.f32 %v8831_v12, %v12322_v25  ;;  %v8834_v58 = vadd.f32 %v8833_v6, %v8832_v55  ;;  %7029 = vmatprep.mubr.bf16.mxu1 %v5528_v49  ;;  %v5366_v25 = vshll.u32 %v12203_v60, 16  ;;  %v9694_v12 = vld [vmem:[#allocation3 + $0x98] ss:$0 sps:$4 sm:$0x11]   ;;  %v5833_v55 = vor.u32 %v5832_v30, %v5828_v13  ;;  %v4566_v60 = vld [vmem:[#allocation3 + $0x9c] sm:$0xe] }
 0x345   : > { %v5826_v39 = vsel %vm1243_vm4, %v5821_v57, %v5825_v48  ;;  %v5378_v6 = vshll.u32 %v12225_v27, 16  ;;  %v5532_v42 = vrot.slane %v8032_v32, 1  ;;  %v5533_v22 = vrot.slane %v9694_v12, 1 }
 0x346   : > { %v12599_v35 = vadd.f32 %v8834_v58, %v12333_v14  ;;  %v5362_v14 = vsel %vm1243_vm4, %v5357_v52, %v5361_v37  ;;  %v5368_v23 = vrot.slane %v5366_v25, 1  ;;  %v4595_v58 = vld [vmem:[#allocation3 + $0xa8] sm:$0xf]  ;;  %v5838_v34 = vsel %vm1243_vm4, %v5833_v55, %v5837_v61  ;;  %v9743_v25 = vld [vmem:[#allocation3 + $0xa0] sm:$0xf] }
 0x347   : > { %v5373_v50 = vrot.slane %v5371_v8, 1  ;;  %v5844_v49 = vrot.slane %v5842_v44, 1  ;;  %v12617_v4 = vcombine.low %v4595_v58, %v12467_v26  ;;  %v5840_v57 = vshrl.u32 %v12605_v3, 16  ;;  %v9698_v52 = vld [vmem:[#allocation3 + $0xa4] ss:$0 sps:$4 sm:$0x11]  }
 0x348   : > { %v5369_v10 = vor.u32 %v5368_v23, %v5364_v38  ;;  %v5380_v45 = vrot.slane %v5378_v6, 1  ;;  %v8033_v48 = vcombine.low %v4566_v60, %v9743_v25  ;;  %v5376_v26 = vshrl.u32 %v12225_v27, 16  ;;  %v4597_v55 = vld [vmem:[#allocation3 + $0xb4] sm:$0xf] }
 0x349   : > { %7183 = vmatmul.mubr.bf16.gmra.mrb[0].mxu0 %v12554_v2  ;;  %v5531_v2 = vsel %vm1500_vm9, %v5529_v28, %v5530_v46  ;;  %v5845_v46 = vor.u32 %v5844_v49, %v5840_v57  ;;  %v5383_v59 = vshll.u32 %v9694_v12, 16  ;;  %v5536_v36 = vrot.slane %v9698_v52, 1  ;;  %v9702_v57 = vld [vmem:[#allocation3 + $0xb0] ss:$0 sps:$4 sm:$0x11]  }
 0x34a   : > { %7190 = vmatprep.mubr.bf16.mxu0 %v5826_v39  ;;  %v5374_v24 = vsel %vm1243_vm4, %v5369_v10, %v5373_v50  ;;  %v5854_v39 = vshll.u32 %v12617_v4, 16  ;;  %v5381_v13 = vor.u32 %v5380_v45, %v5376_v26  ;;  %v5535_v23 = vrot.slane %v8033_v48, 1  ;;  %v4567_v10 = vld [vmem:[#allocation3 + $0xa8] sm:$0xe]  ;;  %v9744_v50 = vld [vmem:[#allocation3 + $0xac] sm:$0xf] }
 0x34b   : > { %7030 = vmatmul.mubr.bf16.gmra.mrb[228].mxu1 %v5362_v14  ;;  %v5849_v14 = vrot.slane %v5847_v51, 1  ;;  %v5385_v12 = vrot.slane %v5383_v59, 1  ;;  %v12629_v44 = vcombine.low %v4597_v55, %v12431_v19  ;;  %v5859_v58 = vshll.u32 %v12469_v18, 16 }
 0x34c   : > { %7037 = vmatprep.mubr.bf16.mxu1 %v5531_v2  ;;  %v5856_v38 = vrot.slane %v5854_v39, 1  ;;  %v8034_v49 = vcombine.low %v4567_v10, %v9744_v50  ;;  %v5537_v60 = vsel %vm1500_vm9, %v5535_v23, %v5536_v36  ;;  %v5388_v25 = vshrl.u32 %v12254_v40, 16 }
 0x34d   : > { %v5850_v27 = vsel %vm1243_vm4, %v5845_v46, %v5849_v14  ;;  %v5395_v48 = vshll.u32 %v9698_v52, 16  ;;  %v5539_v14 = vrot.slane %v9702_v57, 1 }
 0x34f   : > { %v5397_v52 = vrot.slane %v5395_v48, 1 }
 0x351   : > { %7191 = vmatmul.mubr.bf16.gmra.mrb[4].mxu0 %v12566_v9  ;;  %v5534_v9 = vsel %vm1500_vm9, %v5532_v42, %v5533_v22  ;;  %v5386_v42 = vsel %vm1243_vm4, %v5381_v13, %v5385_v12  ;;  %v5852_v22 = vshrl.u32 %v12617_v4, 16  ;;  %v5864_v12 = vshrl.u32 %v12629_v44, 16 }
 0x352   : > { %7198 = vmatprep.mubr.bf16.mxu0 %v5838_v34 }
 0x353   : > { %7038 = vmatmul.mubr.bf16.gmra.mrb[232].mxu1 %v5374_v24  ;;  %v5857_v45 = vor.u32 %v5856_v38, %v5852_v22  ;;  %v4601_v22 = vld [vmem:[#allocation3 + $0xcc] sm:$0xf] }
 0x354   : > { %7045 = vmatprep.mubr.bf16.mxu1 %v5534_v9  ;;  %v5866_v9 = vshll.u32 %v12629_v44, 16 }
 0x355   : > { %v8723_v28 = vpop.f32.mrb[132].mxu1 }
 0x356   : > { %v8724_v37 = vpop.f32.mrb[133].mxu1  ;;  %v5868_v23 = vrot.slane %v5866_v9, 1 }
 0x357   : > { %v8725_v30 = vadd.f32 %v8724_v37, %v8723_v28  ;;  %v8726_v41 = vpop.f32.mrb[134].mxu1  ;;  %v13274_v28 = vld [vmem:[#allocation23_spill] sm:$0xff]  ;;  %v5861_v37 = vrot.slane %v5859_v58, 1 }
 0x358   : > { %v8727_v21 = vpop.f32.mrb[135].mxu1  ;;  %v5402_v46 = vshll.u32 %v13274_v28, 16 }
 0x359   : > { %v8835_v32 = vpop.f32.mrb[164].mxu0  ;;  %v8728_v2 = vadd.f32 %v8727_v21, %v8726_v41  ;;  %7199 = vmatmul.mubr.bf16.gmra.mrb[8].mxu0 %v12584_v16  ;;  %v5392_v16 = vrot.slane %v5390_v5, 1  ;;  %v5538_v5 = vrot.slane %v8034_v49, 1  ;;  %v4599_v21 = vld [vmem:[#allocation3 + $0xc0] sm:$0xf]  ;;  %v5862_v40 = vsel %vm1243_vm4, %v5857_v45, %v5861_v37 }
 0x35a   : > { %v8836_v8 = vpop.f32.mrb[165].mxu0  ;;  %7206 = vmatprep.mubr.bf16.mxu0 %v5850_v27  ;;  %v12645_v36 = vcombine.low %v4599_v21, %v12490_v0  ;;  %v5404_v55 = vrot.slane %v5402_v46, 1  ;;  %v5400_v0 = vshrl.u32 %v13274_v28, 16  ;;  %v13275_v49 = vld [vmem:[#allocation20_spill] sm:$0xff]  ;;  %v5883_v21 = vshll.u32 %v12478_v54, 16 }
 0x35b   : > { %v8837_v6 = vadd.f32 %v8836_v8, %v8835_v32  ;;  %v8838_v61 = vpop.f32.mrb[166].mxu0  ;;  %7046 = vmatmul.mubr.bf16.gmra.mrb[236].mxu1 %v5386_v42  ;;  %v4568_v32 = vld [vmem:[#allocation3 + $0xb4] sm:$0xe]  ;;  %v12650_v8 = vld [vmem:[#allocation3 + $0xbc] ss:$0 sps:$4 sm:$0x11]  }
 0x35c   : > { %v8839_v34 = vpop.f32.mrb[167].mxu0  ;;  %7053 = vmatprep.mubr.bf16.mxu1 %v5537_v60  ;;  %v5407_v42 = vshll.u32 %v9702_v57, 16  ;;  %v5414_v60 = vshll.u32 %v13275_v49, 16  ;;  %v5405_v45 = vor.u32 %v5404_v55, %v5400_v0  ;;  %v12659_v57 = vcombine.low %v4601_v22, %v12568_v47 }
 0x35d   : > { %v12635_v24 = vadd.f32 %v8837_v6, %v8725_v30  ;;  %v8840_v19 = vadd.f32 %v8839_v34, %v8838_v61  ;;  %v8729_v51 = vpop.f32.mrb[136].mxu1  ;;  %v5393_v30 = vor.u32 %v5392_v16, %v5388_v25  ;;  %v5540_v61 = vsel %vm1500_vm9, %v5538_v5, %v5539_v14 }
 0x35e   : > { %v8730_v18 = vpop.f32.mrb[137].mxu1  ;;  %v5878_v16 = vshll.u32 %v12645_v36, 16  ;;  %v5409_v46 = vrot.slane %v5407_v42, 1  ;;  %v5542_v37 = vrot.slane %v12650_v8, 1  ;;  %v5412_v54 = vshrl.u32 %v13275_v49, 16 }
 0x35f   : > { %v12640_v26 = vadd.f32 %v8840_v19, %v8728_v2  ;;  %v8731_v59 = vadd.f32 %v8730_v18, %v8729_v51  ;;  %v8732_v39 = vpop.f32.mrb[138].mxu1  ;;  %v5871_v2 = vshll.u32 %v12446_v43, 16  ;;  %v5398_v27 = vsel %vm1243_vm4, %v5393_v30, %v5397_v52 }
 0x360   : > { %v8733_v41 = vpop.f32.mrb[139].mxu1  ;;  %v5869_v43 = vor.u32 %v5868_v23, %v5864_v12  ;;  %v5880_v14 = vrot.slane %v5878_v16, 1  ;;  %v5410_v47 = vsel %vm1243_vm4, %v5405_v45, %v5409_v46  ;;  %v5876_v52 = vshrl.u32 %v12645_v36, 16 }
 0x361   : > { %v8734_v13 = vadd.f32 %v8733_v41, %v8732_v39  ;;  %7207 = vmatmul.mubr.bf16.gmra.mrb[12].mxu0 %v12605_v3  ;;  %v9745_v3 = vld [vmem:[#allocation3 + $0xb8] sm:$0xf]  ;;  %v5873_v19 = vrot.slane %v5871_v2, 1  ;;  %v5416_v23 = vrot.slane %v5414_v60, 1  ;;  %v9746_v2 = vld [vmem:[#allocation3 + $0xc4] sm:$0xf] }
 0x362   : > { %7214 = vmatprep.mubr.bf16.mxu0 %v5862_v40  ;;  %v8035_v6 = vcombine.low %v4568_v32, %v9745_v3  ;;  %v4569_v40 = vld [vmem:[#allocation3 + $0xc0] sm:$0xe]  ;;  %v5890_v32 = vshll.u32 %v12659_v57, 16  ;;  %v5881_v12 = vor.u32 %v5880_v14, %v5876_v52  ;;  %v5419_v3 = vshll.u32 %v12650_v8, 16 }
 0x363   : > { %7054 = vmatmul.mubr.bf16.gmra.mrb[240].mxu1 %v5398_v27  ;;  %v5874_v41 = vsel %vm1243_vm4, %v5869_v43, %v5873_v19  ;;  %v8036_v55 = vcombine.low %v4569_v40, %v9746_v2  ;;  %v9710_v27 = vld [vmem:[#allocation3 + $0xc8] ss:$0 sps:$4 sm:$0x11]   ;;  %v5417_v43 = vor.u32 %v5416_v23, %v5412_v54  ;;  %v5895_v16 = vshll.u32 %v12576_v11, 16  ;;  %v4619_v11 = vld [vmem:[#allocation3 + $0x18] sm:$0xe] }
 0x364   : > { %v8841_v38 = vpop.f32.mrb[168].mxu0  ;;  %7061 = vmatprep.mubr.bf16.mxu1 %v5540_v61  ;;  %v5541_v39 = vrot.slane %v8035_v6, 1  ;;  %v13276_v6 = vld [vmem:[#allocation22_spill] sm:$0xff]  ;;  %v5421_v49 = vrot.slane %v5419_v3, 1 }
 0x365   : > { %v8842_v10 = vpop.f32.mrb[169].mxu0  ;;  %v5426_v61 = vshll.u32 %v13276_v6, 16  ;;  %v5544_v19 = vrot.slane %v8036_v55, 1  ;;  %v9748_v2 = vld [vmem:[#allocation3 + $0x20] ss:$0 sps:$4 sm:$0x11]  }
 0x366   : > { %v8843_v58 = vadd.f32 %v8842_v10, %v8841_v38  ;;  %v8844_v34 = vpop.f32.mrb[170].mxu0  ;;  %v8735_v50 = vpop.f32.mrb[140].mxu1  ;;  %v5885_v10 = vrot.slane %v5883_v21, 1  ;;  %v5424_v21 = vshrl.u32 %v13276_v6, 16  ;;  %v5964_v55 = vrot.slane %v9748_v2, 1 }
 0x367   : > { %v8845_v51 = vpop.f32.mrb[171].mxu0  ;;  %v8736_v25 = vpop.f32.mrb[141].mxu1  ;;  %v4621_v54 = vld [vmem:[#allocation3 + $0x30] sm:$0xe] }
 0x368   : > { %v12656_v48 = vadd.f32 %v8843_v58, %v8731_v59  ;;  %v8846_v9 = vadd.f32 %v8845_v51, %v8844_v34  ;;  %v8737_v18 = vadd.f32 %v8736_v25, %v8735_v50  ;;  %v8738_v28 = vpop.f32.mrb[142].mxu1  ;;  %v5888_v58 = vshrl.u32 %v12659_v57, 16 }
 0x369   : > { %v8739_v30 = vpop.f32.mrb[143].mxu1  ;;  %7215 = vmatmul.mubr.bf16.gmra.mrb[16].mxu0 %v12617_v4  ;;  %v5543_v4 = vsel %vm1500_vm9, %v5541_v39, %v5542_v37  ;;  %v5892_v34 = vrot.slane %v5890_v32, 1  ;;  %v5545_v51 = vrot.slane %v9710_v27, 1  ;;  %v5886_v8 = vsel %vm1243_vm4, %v5881_v12, %v5885_v10 }
 0x36a   : > { %v12664_v5 = vadd.f32 %v8846_v9, %v8734_v13  ;;  %v8740_v59 = vadd.f32 %v8739_v30, %v8738_v28  ;;  %7222 = vmatprep.mubr.bf16.mxu0 %v5874_v41  ;;  %v5422_v25 = vsel %vm1243_vm4, %v5417_v43, %v5421_v49  ;;  %v5428_v28 = vrot.slane %v5426_v61, 1  ;;  %v9747_v30 = vld [vmem:[#allocation3 + $0x1c] sm:$0xf]  ;;  %v9749_v61 = vld [vmem:[#allocation3 + $0x34] sm:$0xf] }
 0x36b   : > { %7062 = vmatmul.mubr.bf16.gmra.mrb[244].mxu1 %v5410_v47  ;;  %v5893_v46 = vor.u32 %v5892_v34, %v5888_v58  ;;  %v5897_v39 = vrot.slane %v5895_v16, 1  ;;  %v8069_v41 = vcombine.low %v4619_v11, %v9747_v30  ;;  %v8071_v10 = vcombine.low %v4621_v54, %v9749_v61  ;;  %v9750_v16 = vld [vmem:[#allocation3 + $0x38] ss:$0 sps:$4 sm:$0x11]  }
 0x36c   : > { %7069 = vmatprep.mubr.bf16.mxu1 %v5543_v4  ;;  %v5429_v52 = vor.u32 %v5428_v28, %v5424_v21 }
 0x36d   : > { %v8847_v13 = vpop.f32.mrb[172].mxu0  ;;  %v5898_v23 = vsel %vm1243_vm4, %v5893_v46, %v5897_v39  ;;  %v5963_v32 = vrot.slane %v8069_v41, 1  ;;  %v5969_v34 = vrot.slane %v8071_v10, 1 }
 0x36e   : > { %v8848_v38 = vpop.f32.mrb[173].mxu0 }
 0x36f   : > { %v8849_v0 = vadd.f32 %v8848_v38, %v8847_v13  ;;  %v8850_v42 = vpop.f32.mrb[174].mxu0 }
 0x370   : > { %v8851_v22 = vpop.f32.mrb[175].mxu0 }
 0x371   : > { %v12676_v50 = vadd.f32 %v8849_v0, %v8737_v18  ;;  %v8852_v60 = vadd.f32 %v8851_v22, %v8850_v42  ;;  %7223 = vmatmul.mubr.bf16.gmra.mrb[20].mxu0 %v12629_v44  ;;  %v5546_v18 = vsel %vm1500_vm9, %v5544_v19, %v5545_v51 }
 0x372   : > { %7230 = vmatprep.mubr.bf16.mxu0 %v5886_v8 }
 0x373   : > { %v12680_v45 = vadd.f32 %v8852_v60, %v8740_v59  ;;  %7070 = vmatmul.mubr.bf16.gmra.mrb[248].mxu1 %v5422_v25  ;;  %v5431_v59 = vshll.u32 %v9710_v27, 16  ;;  %v5965_v27 = vsel %vm1500_vm9, %v5963_v32, %v5964_v55  ;;  %v5970_v60 = vrot.slane %v9750_v16, 1 }
 0x374   : > { %v8741_v9 = vpop.f32.mrb[144].mxu1  ;;  %7077 = vmatprep.mubr.bf16.mxu1 %v5546_v18 }
 0x375   : > { %v8742_v37 = vpop.f32.mrb[145].mxu1  ;;  %v5433_v4 = vrot.slane %v5431_v59, 1  ;;  %v5971_v28 = vsel %vm1500_vm9, %v5969_v34, %v5970_v60 }
 0x376   : > { %v8743_v44 = vadd.f32 %v8742_v37, %v8741_v9  ;;  %v8744_v14 = vpop.f32.mrb[146].mxu1  ;;  %v13277_v9 = vld [vmem:[#allocation21_spill] sm:$0xff] }
 0x377   : > { %v8745_v40 = vpop.f32.mrb[147].mxu1  ;;  %v5434_v38 = vsel %vm1243_vm4, %v5429_v52, %v5433_v4  ;;  %v13278_v52 = vld [vmem:[#allocation14_spill] sm:$0xff] }
 0x378   : > { %v8746_v47 = vadd.f32 %v8745_v40, %v8744_v14 }
 0x379   : > { %7231 = vmatmul.mubr.bf16.gmra.mrb[24].mxu0 %v12645_v36 }
 0x37a   : > { %v8853_v13 = vpop.f32.mrb[176].mxu0  ;;  %7238 = vmatprep.mubr.bf16.mxu0 %v5898_v23 }
 0x37b   : > { %v8854_v12 = vpop.f32.mrb[177].mxu0  ;;  %7078 = vmatmul.mubr.bf16.gmra.mrb[252].mxu1 %v5434_v38 }
 0x37c   : > { %v8855_v3 = vadd.f32 %v8854_v12, %v8853_v13  ;;  %v8856_v6 = vpop.f32.mrb[178].mxu0  ;;  %9237 = vmatprep.mubr.bf16.mxu1 %v5965_v27 }
 0x37d   : > { %v8857_v0 = vpop.f32.mrb[179].mxu0  ;;  %v8747_v36 = vpop.f32.mrb[148].mxu1 }
 0x37e   : > { %v12689_v42 = vadd.f32 %v8855_v3, %v8743_v44  ;;  %v8858_v22 = vadd.f32 %v8857_v0, %v8856_v6  ;;  %v8748_v58 = vpop.f32.mrb[149].mxu1  ;;  %v13279_v0 = vld [vmem:[#allocation24_spill] sm:$0xff] }
 0x37f   : > { %v8749_v19 = vadd.f32 %v8748_v58, %v8747_v36  ;;  %v8750_v51 = vpop.f32.mrb[150].mxu1 }
 0x380   : > { %v12691_v43 = vadd.f32 %v8858_v22, %v8746_v47  ;;  %v8751_v8 = vpop.f32.mrb[151].mxu1 }
 0x381   : > { %7239 = vmatmul.mubr.bf16.gmra.mrb[28].mxu0 %v12659_v57  ;;  %v8752_v49 = vadd.f32 %v8751_v8, %v8750_v51 }
 0x383   : > { %9238 = vmatmul.mubr.bf16.vlgmr.msra.gmra.mrb[0].mxu1 %v13277_v9 }
 0x384   : > { %v8859_v25 = vpop.f32.mrb[180].mxu0  ;;  %9241 = vmatprep.mubr.bf16.mxu1 %v5971_v28 }
 0x385   : > { %v8860_v46 = vpop.f32.mrb[181].mxu0 }
 0x386   : > { %v8861_v39 = vadd.f32 %v8860_v46, %v8859_v25  ;;  %v8862_v11 = vpop.f32.mrb[182].mxu0  ;;  %v8753_v37 = vpop.f32.mrb[152].mxu1 }
 0x387   : > { %v8863_v18 = vpop.f32.mrb[183].mxu0  ;;  %v8754_v44 = vpop.f32.mrb[153].mxu1 }
 0x388   : > { %v12696_v30 = vadd.f32 %v8861_v39, %v8749_v19  ;;  %v8864_v41 = vadd.f32 %v8863_v18, %v8862_v11  ;;  %v8755_v57 = vadd.f32 %v8754_v44, %v8753_v37  ;;  %v8756_v14 = vpop.f32.mrb[154].mxu1 }
 0x389   : > { %v8757_v59 = vpop.f32.mrb[155].mxu1 }
 0x38a   : > { %v12698_v21 = vadd.f32 %v8864_v41, %v8752_v49  ;;  %v8758_v40 = vadd.f32 %v8757_v59, %v8756_v14 }
 0x38b   : > { %9242 = vmatmul.mubr.bf16.gmra.mrb[4].mxu1 %v13278_v52 }
 0x38c   : > { %v8865_v47 = vpop.f32.mrb[184].mxu0  ;;  %9245 = vmatprep.mubr.bf16.mxu1 %v12493_v20 }
 0x38d   : > { %v8866_v23 = vpop.f32.mrb[185].mxu0 }
 0x38e   : > { %v8867_v32 = vadd.f32 %v8866_v23, %v8865_v47  ;;  %v8868_v2 = vpop.f32.mrb[186].mxu0  ;;  %v8759_v4 = vpop.f32.mrb[156].mxu1 }
 0x38f   : > { %v8869_v55 = vpop.f32.mrb[187].mxu0  ;;  %v8760_v38 = vpop.f32.mrb[157].mxu1 }
 0x390   : > { %v12702_v13 = vadd.f32 %v8867_v32, %v8755_v57  ;;  %v8870_v12 = vadd.f32 %v8869_v55, %v8868_v2  ;;  %v8761_v54 = vadd.f32 %v8760_v38, %v8759_v4  ;;  %v8762_v3 = vpop.f32.mrb[158].mxu1 }
 0x391   : > { %v8763_v27 = vpop.f32.mrb[159].mxu1 }
 0x392   : > { %v12704_v6 = vadd.f32 %v8870_v12, %v8758_v40  ;;  %v8764_v61 = vadd.f32 %v8763_v27, %v8762_v3 }
 0x393   : > { %9246 = vmatmul.mubr.bf16.gmra.mrb[8].mxu1 %v13279_v0 }
 0x394   : > { %v8871_v10 = vpop.f32.mrb[188].mxu0  ;;  %9249 = vmatprep.mubr.bf16.mxu1 %v12500_v33 }
 0x395   : > { %v8872_v22 = vpop.f32.mrb[189].mxu0 }
 0x396   : > { %v8873_v20 = vadd.f32 %v8872_v22, %v8871_v10  ;;  %v8874_v36 = vpop.f32.mrb[190].mxu0  ;;  %v8765_v34 = vpop.f32.mrb[160].mxu1 }
 0x397   : > { %v8875_v58 = vpop.f32.mrb[191].mxu0  ;;  %v8766_v19 = vpop.f32.mrb[161].mxu1 }
 0x398   : > { %v12708_v16 = vadd.f32 %v8873_v20, %v8761_v54  ;;  %v8876_v60 = vadd.f32 %v8875_v58, %v8874_v36  ;;  %v8767_v51 = vadd.f32 %v8766_v19, %v8765_v34  ;;  %v8768_v8 = vpop.f32.mrb[162].mxu1 }
 0x399   : > { %v8769_v25 = vpop.f32.mrb[163].mxu1 }
 0x39a   : > { %v12710_v49 = vadd.f32 %v8876_v60, %v8764_v61  ;;  %v8770_v9 = vadd.f32 %v8769_v25, %v8768_v8 }
 0x39b   : > { %9250 = vmatmul.mubr.bf16.gmra.mrb[12].mxu1 %v12481_v15 }
 0x39c   : > { %v8877_v28 = vpop.f32.mrb[192].mxu0  ;;  %9253 = vmatprep.mubr.bf16.mxu1 %v12508_v7 }
 0x39d   : > { %v8878_v46 = vpop.f32.mrb[193].mxu0 }
 0x39e   : > { %v8879_v33 = vadd.f32 %v8878_v46, %v8877_v28  ;;  %v8880_v39 = vpop.f32.mrb[194].mxu0  ;;  %v8771_v18 = vpop.f32.mrb[164].mxu1 }
 0x39f   : > { %v8881_v11 = vpop.f32.mrb[195].mxu0  ;;  %v8772_v44 = vpop.f32.mrb[165].mxu1 }
 0x3a0   : > { %v12714_v37 = vadd.f32 %v8879_v33, %v8767_v51  ;;  %v8882_v41 = vadd.f32 %v8881_v11, %v8880_v39  ;;  %v8773_v57 = vadd.f32 %v8772_v44, %v8771_v18  ;;  %v8774_v14 = vpop.f32.mrb[166].mxu1 }
 0x3a1   : > { %v8775_v40 = vpop.f32.mrb[167].mxu1 }
 0x3a2   : > { %v12716_v59 = vadd.f32 %v8882_v41, %v8770_v9  ;;  %v8776_v47 = vadd.f32 %v8775_v40, %v8774_v14 }
 0x3a3   : > { %9254 = vmatmul.mubr.bf16.gmra.mrb[16].mxu1 %v12496_v31 }
 0x3a4   : > { %v8883_v52 = vpop.f32.mrb[196].mxu0  ;;  %9257 = vmatprep.mubr.bf16.mxu1 %v12524_v17 }
 0x3a5   : > { %v8884_v15 = vpop.f32.mrb[197].mxu0 }
 0x3a6   : > { %v8885_v7 = vadd.f32 %v8884_v15, %v8883_v52  ;;  %v8886_v23 = vpop.f32.mrb[198].mxu0  ;;  %v8777_v2 = vpop.f32.mrb[168].mxu1 }
 0x3a7   : > { %v8887_v32 = vpop.f32.mrb[199].mxu0  ;;  %v8778_v12 = vpop.f32.mrb[169].mxu1 }
 0x3a8   : > { %v12720_v55 = vadd.f32 %v8885_v7, %v8773_v57  ;;  %v8888_v4 = vadd.f32 %v8887_v32, %v8886_v23  ;;  %v8779_v38 = vadd.f32 %v8778_v12, %v8777_v2  ;;  %v8780_v54 = vpop.f32.mrb[170].mxu1 }
 0x3a9   : > { %v8781_v27 = vpop.f32.mrb[171].mxu1 }
 0x3aa   : > { %v12722_v3 = vadd.f32 %v8888_v4, %v8776_v47  ;;  %v8782_v61 = vadd.f32 %v8781_v27, %v8780_v54 }
 0x3ab   : > { %9258 = vmatmul.mubr.bf16.gmra.mrb[20].mxu1 %v12504_v63 }
 0x3ac   : > { %v8889_v10 = vpop.f32.mrb[200].mxu0  ;;  %9261 = vmatprep.mubr.bf16.mxu1 %v12527_v29 }
 0x3ad   : > { %v8890_v31 = vpop.f32.mrb[201].mxu0 }
 0x3ae   : > { %v8891_v17 = vadd.f32 %v8890_v31, %v8889_v10  ;;  %v8892_v0 = vpop.f32.mrb[202].mxu0  ;;  %v8783_v20 = vpop.f32.mrb[172].mxu1 }
 0x3af   : > { %v8893_v22 = vpop.f32.mrb[203].mxu0  ;;  %v8784_v34 = vpop.f32.mrb[173].mxu1 }
 0x3b0   : > { %v12726_v36 = vadd.f32 %v8891_v17, %v8779_v38  ;;  %v8894_v58 = vadd.f32 %v8893_v22, %v8892_v0  ;;  %v8785_v60 = vadd.f32 %v8784_v34, %v8783_v20  ;;  %v8786_v19 = vpop.f32.mrb[174].mxu1 }
 0x3b1   : > { %v8787_v8 = vpop.f32.mrb[175].mxu1 }
 0x3b2   : > { %v12728_v51 = vadd.f32 %v8894_v58, %v8782_v61  ;;  %v8788_v25 = vadd.f32 %v8787_v8, %v8786_v19 }
 0x3b3   : > { %9262 = vmatmul.mubr.bf16.gmra.mrb[24].mxu1 %v12512_v1 }
 0x3b4   : > { %v8895_v9 = vpop.f32.mrb[204].mxu0  ;;  %9265 = vmatprep.mubr.bf16.mxu1 %v12536_v56 }
 0x3b5   : > { %v8896_v63 = vpop.f32.mrb[205].mxu0 }
 0x3b6   : > { %v8897_v29 = vadd.f32 %v8896_v63, %v8895_v9  ;;  %v8898_v28 = vpop.f32.mrb[206].mxu0  ;;  %v8789_v33 = vpop.f32.mrb[176].mxu1 }
 0x3b7   : > { %v8899_v46 = vpop.f32.mrb[207].mxu0  ;;  %v8790_v18 = vpop.f32.mrb[177].mxu1 }
 0x3b8   : > { %v12732_v39 = vadd.f32 %v8897_v29, %v8785_v60  ;;  %v8900_v11 = vadd.f32 %v8899_v46, %v8898_v28  ;;  %v8791_v41 = vadd.f32 %v8790_v18, %v8789_v33  ;;  %v8792_v44 = vpop.f32.mrb[178].mxu1 }
 0x3b9   : > { %v8793_v14 = vpop.f32.mrb[179].mxu1 }
 0x3ba   : > { %v12734_v57 = vadd.f32 %v8900_v11, %v8788_v25  ;;  %v8794_v40 = vadd.f32 %v8793_v14, %v8792_v44 }
 0x3bb   : > { %9266 = vmatmul.mubr.bf16.gmra.mrb[28].mxu1 %v12589_v53 }
 0x3bc   : > { %v8901_v47 = vpop.f32.mrb[208].mxu0 }
 0x3bd   : > { %v8902_v1 = vpop.f32.mrb[209].mxu0 }
 0x3be   : > { %v8903_v52 = vadd.f32 %v8902_v1, %v8901_v47  ;;  %v8904_v56 = vpop.f32.mrb[210].mxu0  ;;  %v8795_v7 = vpop.f32.mrb[180].mxu1 }
 0x3bf   : > { %v8905_v15 = vpop.f32.mrb[211].mxu0  ;;  %v8796_v2 = vpop.f32.mrb[181].mxu1 }
 0x3c0   : > { %v12737_v23 = vadd.f32 %v8903_v52, %v8791_v41  ;;  %v8906_v32 = vadd.f32 %v8905_v15, %v8904_v56  ;;  %v8797_v4 = vadd.f32 %v8796_v2, %v8795_v7  ;;  %v8798_v12 = vpop.f32.mrb[182].mxu1 }
 0x3c1   : > { %v8799_v54 = vpop.f32.mrb[183].mxu1 }
 0x3c2   : > { %v12739_v38 = vadd.f32 %v8906_v32, %v8794_v40  ;;  %v8800_v27 = vadd.f32 %v8799_v54, %v8798_v12 }
 0x3c4   : > { %v8907_v61 = vpop.f32.mrb[212].mxu0 }
 0x3c5   : > { %v8908_v10 = vpop.f32.mrb[213].mxu0 }
 0x3c6   : > { %v8909_v31 = vadd.f32 %v8908_v10, %v8907_v61  ;;  %v8910_v17 = vpop.f32.mrb[214].mxu0  ;;  %v8801_v0 = vpop.f32.mrb[184].mxu1 }
 0x3c7   : > { %v8911_v53 = vpop.f32.mrb[215].mxu0  ;;  %v8802_v58 = vpop.f32.mrb[185].mxu1 }
 0x3c8   : > { %v12741_v22 = vadd.f32 %v8909_v31, %v8797_v4  ;;  %v8912_v20 = vadd.f32 %v8911_v53, %v8910_v17  ;;  %v8803_v34 = vadd.f32 %v8802_v58, %v8801_v0  ;;  %v8804_v60 = vpop.f32.mrb[186].mxu1 }
 0x3c9   : > { %v8805_v8 = vpop.f32.mrb[187].mxu1 }
 0x3ca   : > { %v12743_v19 = vadd.f32 %v8912_v20, %v8800_v27  ;;  %v8806_v25 = vadd.f32 %v8805_v8, %v8804_v60 }
 0x3cc   : > { %v8913_v9 = vpop.f32.mrb[216].mxu0 }
 0x3cd   : > { %v8914_v63 = vpop.f32.mrb[217].mxu0 }
 0x3ce   : > { %v8915_v29 = vadd.f32 %v8914_v63, %v8913_v9  ;;  %v8916_v28 = vpop.f32.mrb[218].mxu0  ;;  %v8807_v33 = vpop.f32.mrb[188].mxu1 }
 0x3cf   : > { %v8917_v46 = vpop.f32.mrb[219].mxu0  ;;  %v8808_v41 = vpop.f32.mrb[189].mxu1 }
 0x3d0   : > { %v12745_v11 = vadd.f32 %v8915_v29, %v8803_v34  ;;  %v8918_v18 = vadd.f32 %v8917_v46, %v8916_v28  ;;  %v8809_v44 = vadd.f32 %v8808_v41, %v8807_v33  ;;  %v8810_v14 = vpop.f32.mrb[190].mxu1 }
 0x3d1   : > { %v8811_v47 = vpop.f32.mrb[191].mxu1 }
 0x3d2   : > { %v12747_v40 = vadd.f32 %v8918_v18, %v8806_v25  ;;  %v8812_v1 = vadd.f32 %v8811_v47, %v8810_v14 }
 0x3d4   : > { %v8919_v52 = vpop.f32.mrb[220].mxu0 }
 0x3d5   : > { %v8920_v56 = vpop.f32.mrb[221].mxu0 }
 0x3d6   : > { %v8921_v15 = vadd.f32 %v8920_v56, %v8919_v52  ;;  %v8922_v7 = vpop.f32.mrb[222].mxu0  ;;  %v8941_v2 = vpop.f32.mrb[192].mxu1 }
 0x3d7   : > { %v8923_v32 = vpop.f32.mrb[223].mxu0  ;;  %v8942_v54 = vpop.f32.mrb[193].mxu1 }
 0x3d8   : > { %v12749_v4 = vadd.f32 %v8921_v15, %v8809_v44  ;;  %v8924_v12 = vadd.f32 %v8923_v32, %v8922_v7  ;;  %v8943_v27 = vadd.f32 %v8942_v54, %v8941_v2  ;;  %v8944_v61 = vpop.f32.mrb[194].mxu1 }
 0x3d9   : > { %v8945_v31 = vpop.f32.mrb[195].mxu1 }
 0x3da   : > { %v12751_v10 = vadd.f32 %v8924_v12, %v8812_v1  ;;  %v6960_v17 = vadd.f32 %v8943_v27, %v12593_v62  ;;  %v8946_v53 = vadd.f32 %v8945_v31, %v8944_v61 }
 0x3dc   : > { %v9053_v0 = vpop.f32.mrb[224].mxu0  ;;  %v6963_v58 = vadd.f32 %v8946_v53, %v12599_v35 }
 0x3dd   : > { %v9054_v20 = vpop.f32.mrb[225].mxu0 }
 0x3de   : > { %v9055_v34 = vadd.f32 %v9054_v20, %v9053_v0  ;;  %v9056_v60 = vpop.f32.mrb[226].mxu0  ;;  %v8947_v25 = vpop.f32.mrb[196].mxu1 }
 0x3df   : > { %v9057_v8 = vpop.f32.mrb[227].mxu0  ;;  %v8948_v63 = vpop.f32.mrb[197].mxu1 }
 0x3e0   : > { %v9058_v9 = vadd.f32 %v9057_v8, %v9056_v60  ;;  %v12755_v29 = vadd.f32 %v9055_v34, %v6960_v17  ;;  %v8949_v28 = vadd.f32 %v8948_v63, %v8947_v25  ;;  %v8950_v46 = vpop.f32.mrb[198].mxu1 }
 0x3e1   : > { %v8951_v33 = vpop.f32.mrb[199].mxu1 }
 0x3e2   : > { %v12757_v18 = vadd.f32 %v9058_v9, %v6963_v58  ;;  %v6968_v62 = vadd.f32 %v8949_v28, %v12635_v24  ;;  %v8952_v41 = vadd.f32 %v8951_v33, %v8950_v46 }
 0x3e4   : > { %v9059_v44 = vpop.f32.mrb[228].mxu0  ;;  %v6971_v35 = vadd.f32 %v8952_v41, %v12640_v26 }
 0x3e5   : > { %v9060_v14 = vpop.f32.mrb[229].mxu0 }
 0x3e6   : > { %v9061_v47 = vadd.f32 %v9060_v14, %v9059_v44  ;;  %v9062_v1 = vpop.f32.mrb[230].mxu0  ;;  %v8953_v56 = vpop.f32.mrb[200].mxu1 }
 0x3e7   : > { %v9063_v52 = vpop.f32.mrb[231].mxu0  ;;  %v8954_v7 = vpop.f32.mrb[201].mxu1 }
 0x3e8   : > { %v9064_v15 = vadd.f32 %v9063_v52, %v9062_v1  ;;  %v12761_v32 = vadd.f32 %v9061_v47, %v6968_v62  ;;  %v8955_v2 = vadd.f32 %v8954_v7, %v8953_v56  ;;  %v8956_v12 = vpop.f32.mrb[202].mxu1 }
 0x3e9   : > { %v8957_v54 = vpop.f32.mrb[203].mxu1 }
 0x3ea   : > { %v12763_v27 = vadd.f32 %v9064_v15, %v6971_v35  ;;  %v6976_v24 = vadd.f32 %v8955_v2, %v12656_v48  ;;  %v8958_v61 = vadd.f32 %v8957_v54, %v8956_v12 }
 0x3ec   : > { %v9065_v31 = vpop.f32.mrb[232].mxu0  ;;  %v6979_v26 = vadd.f32 %v8958_v61, %v12664_v5 }
 0x3ed   : > { %v9066_v17 = vpop.f32.mrb[233].mxu0 }
 0x3ee   : > { %v9067_v53 = vadd.f32 %v9066_v17, %v9065_v31  ;;  %v9068_v0 = vpop.f32.mrb[234].mxu0  ;;  %v8959_v58 = vpop.f32.mrb[204].mxu1 }
 0x3ef   : > { %v9069_v20 = vpop.f32.mrb[235].mxu0  ;;  %v8960_v60 = vpop.f32.mrb[205].mxu1 }
 0x3f0   : > { %v9070_v34 = vadd.f32 %v9069_v20, %v9068_v0  ;;  %v12767_v8 = vadd.f32 %v9067_v53, %v6976_v24  ;;  %v8961_v25 = vadd.f32 %v8960_v60, %v8959_v58  ;;  %v8962_v9 = vpop.f32.mrb[206].mxu1 }
 0x3f1   : > { %v8963_v63 = vpop.f32.mrb[207].mxu1 }
 0x3f2   : > { %v12769_v28 = vadd.f32 %v9070_v34, %v6979_v26  ;;  %v6984_v48 = vadd.f32 %v8961_v25, %v12676_v50  ;;  %v8964_v46 = vadd.f32 %v8963_v63, %v8962_v9 }
 0x3f4   : > { %v9071_v33 = vpop.f32.mrb[236].mxu0  ;;  %v6987_v5 = vadd.f32 %v8964_v46, %v12680_v45 }
 0x3f5   : > { %v9072_v62 = vpop.f32.mrb[237].mxu0 }
 0x3f6   : > { %v9073_v41 = vadd.f32 %v9072_v62, %v9071_v33  ;;  %v9074_v44 = vpop.f32.mrb[238].mxu0  ;;  %v8965_v35 = vpop.f32.mrb[208].mxu1 }
 0x3f7   : > { %v9075_v14 = vpop.f32.mrb[239].mxu0  ;;  %v8966_v1 = vpop.f32.mrb[209].mxu1 }
 0x3f8   : > { %v9076_v47 = vadd.f32 %v9075_v14, %v9074_v44  ;;  %v12773_v52 = vadd.f32 %v9073_v41, %v6984_v48  ;;  %v8967_v56 = vadd.f32 %v8966_v1, %v8965_v35  ;;  %v8968_v15 = vpop.f32.mrb[210].mxu1 }
 0x3f9   : > { %v8969_v7 = vpop.f32.mrb[211].mxu1 }
 0x3fa   : > { %v12775_v2 = vadd.f32 %v9076_v47, %v6987_v5  ;;  %v6992_v50 = vadd.f32 %v8967_v56, %v12689_v42  ;;  %v8970_v12 = vadd.f32 %v8969_v7, %v8968_v15 }
 0x3fc   : > { %v9077_v54 = vpop.f32.mrb[240].mxu0  ;;  %v6995_v45 = vadd.f32 %v8970_v12, %v12691_v43 }
 0x3fd   : > { %v9078_v24 = vpop.f32.mrb[241].mxu0 }
 0x3fe   : > { %v9079_v61 = vadd.f32 %v9078_v24, %v9077_v54  ;;  %v9080_v31 = vpop.f32.mrb[242].mxu0  ;;  %v8971_v26 = vpop.f32.mrb[212].mxu1 }
 0x3ff   : > { %v9081_v17 = vpop.f32.mrb[243].mxu0  ;;  %v8972_v0 = vpop.f32.mrb[213].mxu1 }
 0x400   : > { %v9082_v53 = vadd.f32 %v9081_v17, %v9080_v31  ;;  %v12779_v20 = vadd.f32 %v9079_v61, %v6992_v50  ;;  %v8973_v58 = vadd.f32 %v8972_v0, %v8971_v26  ;;  %v8974_v34 = vpop.f32.mrb[214].mxu1 }
 0x401   : > { %v8975_v60 = vpop.f32.mrb[215].mxu1 }
 0x402   : > { %v12781_v25 = vadd.f32 %v9082_v53, %v6995_v45  ;;  %v7000_v42 = vadd.f32 %v8973_v58, %v12696_v30  ;;  %v8976_v9 = vadd.f32 %v8975_v60, %v8974_v34 }
 0x404   : > { %v9083_v63 = vpop.f32.mrb[244].mxu0  ;;  %v7003_v43 = vadd.f32 %v8976_v9, %v12698_v21 }
 0x405   : > { %v9084_v48 = vpop.f32.mrb[245].mxu0 }
 0x406   : > { %v9085_v46 = vadd.f32 %v9084_v48, %v9083_v63  ;;  %v9086_v33 = vpop.f32.mrb[246].mxu0  ;;  %v8977_v5 = vpop.f32.mrb[216].mxu1 }
 0x407   : > { %v9087_v62 = vpop.f32.mrb[247].mxu0  ;;  %v8978_v44 = vpop.f32.mrb[217].mxu1 }
 0x408   : > { %v9088_v41 = vadd.f32 %v9087_v62, %v9086_v33  ;;  %v12785_v14 = vadd.f32 %v9085_v46, %v7000_v42  ;;  %v8979_v35 = vadd.f32 %v8978_v44, %v8977_v5  ;;  %v8980_v47 = vpop.f32.mrb[218].mxu1 }
 0x409   : > { %v8981_v1 = vpop.f32.mrb[219].mxu1 }
 0x40a   : > { %v12787_v56 = vadd.f32 %v9088_v41, %v7003_v43  ;;  %v7008_v30 = vadd.f32 %v8979_v35, %v12702_v13  ;;  %v8982_v15 = vadd.f32 %v8981_v1, %v8980_v47 }
 0x40c   : > { %v9089_v7 = vpop.f32.mrb[248].mxu0  ;;  %v7011_v21 = vadd.f32 %v8982_v15, %v12704_v6 }
 0x40d   : > { %v9090_v50 = vpop.f32.mrb[249].mxu0 }
 0x40e   : > { %v9091_v12 = vadd.f32 %v9090_v50, %v9089_v7  ;;  %v9092_v54 = vpop.f32.mrb[250].mxu0  ;;  %v8983_v45 = vpop.f32.mrb[220].mxu1 }
 0x40f   : > { %v9093_v24 = vpop.f32.mrb[251].mxu0  ;;  %v8984_v31 = vpop.f32.mrb[221].mxu1 }
 0x410   : > { %v9094_v61 = vadd.f32 %v9093_v24, %v9092_v54  ;;  %v12791_v17 = vadd.f32 %v9091_v12, %v7008_v30  ;;  %v8985_v26 = vadd.f32 %v8984_v31, %v8983_v45  ;;  %v8986_v53 = vpop.f32.mrb[222].mxu1 }
 0x411   : > { %v8987_v0 = vpop.f32.mrb[223].mxu1 }
 0x412   : > { %v12793_v58 = vadd.f32 %v9094_v61, %v7011_v21  ;;  %v7016_v13 = vadd.f32 %v8985_v26, %v12708_v16  ;;  %v8988_v34 = vadd.f32 %v8987_v0, %v8986_v53 }
 0x414   : > { %v9095_v60 = vpop.f32.mrb[252].mxu0  ;;  %v7019_v6 = vadd.f32 %v8988_v34, %v12710_v49 }
 0x415   : > { %v9096_v42 = vpop.f32.mrb[253].mxu0 }
 0x416   : > { %v9097_v9 = vadd.f32 %v9096_v42, %v9095_v60  ;;  %v9098_v63 = vpop.f32.mrb[254].mxu0  ;;  %v8989_v43 = vpop.f32.mrb[224].mxu1 }
 0x417   : > { %v9099_v48 = vpop.f32.mrb[255].mxu0  ;;  %v8990_v33 = vpop.f32.mrb[225].mxu1 }
 0x418   : > { %v9100_v46 = vadd.f32 %v9099_v48, %v9098_v63  ;;  %v12797_v62 = vadd.f32 %v9097_v9, %v7016_v13  ;;  %v8991_v5 = vadd.f32 %v8990_v33, %v8989_v43  ;;  %v8992_v41 = vpop.f32.mrb[226].mxu1 }
 0x419   : > { %v8993_v44 = vpop.f32.mrb[227].mxu1 }
 0x41a   : > { %v12799_v35 = vadd.f32 %v9100_v46, %v7019_v6  ;;  %v7024_v16 = vadd.f32 %v8991_v5, %v12714_v37  ;;  %v8994_v47 = vadd.f32 %v8993_v44, %v8992_v41 }
 0x41c   : > { %v9101_v1 = vpop.f32.mrb[0].mxu0  ;;  %v7027_v49 = vadd.f32 %v8994_v47, %v12716_v59 }
 0x41d   : > { %v9102_v30 = vpop.f32.mrb[1].mxu0 }
 0x41e   : > { %v9103_v15 = vadd.f32 %v9102_v30, %v9101_v1  ;;  %v9104_v7 = vpop.f32.mrb[2].mxu0  ;;  %v8995_v21 = vpop.f32.mrb[228].mxu1 }
 0x41f   : > { %v9105_v50 = vpop.f32.mrb[3].mxu0  ;;  %v8996_v54 = vpop.f32.mrb[229].mxu1 }
 0x420   : > { %v9106_v12 = vadd.f32 %v9105_v50, %v9104_v7  ;;  %v12803_v24 = vadd.f32 %v9103_v15, %v7024_v16  ;;  %v8997_v45 = vadd.f32 %v8996_v54, %v8995_v21  ;;  %v8998_v61 = vpop.f32.mrb[230].mxu1 }
 0x421   : > { %v8999_v31 = vpop.f32.mrb[231].mxu1 }
 0x422   : > { %v12805_v26 = vadd.f32 %v9106_v12, %v7027_v49  ;;  %v7032_v37 = vadd.f32 %v8997_v45, %v12720_v55  ;;  %v9000_v53 = vadd.f32 %v8999_v31, %v8998_v61 }
 0x424   : > { %v9107_v0 = vpop.f32.mrb[4].mxu0  ;;  %v7035_v59 = vadd.f32 %v9000_v53, %v12722_v3 }
 0x425   : > { %v9108_v13 = vpop.f32.mrb[5].mxu0 }
 0x426   : > { %v9109_v34 = vadd.f32 %v9108_v13, %v9107_v0  ;;  %v9110_v60 = vpop.f32.mrb[6].mxu0  ;;  %v9001_v6 = vpop.f32.mrb[232].mxu1 }
 0x427   : > { %v9111_v42 = vpop.f32.mrb[7].mxu0  ;;  %v9002_v63 = vpop.f32.mrb[233].mxu1 }
 0x428   : > { %v9112_v9 = vadd.f32 %v9111_v42, %v9110_v60  ;;  %v12809_v48 = vadd.f32 %v9109_v34, %v7032_v37  ;;  %v9003_v43 = vadd.f32 %v9002_v63, %v9001_v6  ;;  %v9004_v46 = vpop.f32.mrb[234].mxu1 }
 0x429   : > { %v9005_v33 = vpop.f32.mrb[235].mxu1 }
 0x42a   : > { %v12811_v5 = vadd.f32 %v9112_v9, %v7035_v59  ;;  %v7040_v55 = vadd.f32 %v9003_v43, %v12726_v36  ;;  %v9006_v41 = vadd.f32 %v9005_v33, %v9004_v46 }
 0x42c   : > { %v9113_v44 = vpop.f32.mrb[8].mxu0  ;;  %v7043_v3 = vadd.f32 %v9006_v41, %v12728_v51 }
 0x42d   : > { %v9114_v16 = vpop.f32.mrb[9].mxu0 }
 0x42e   : > { %v9115_v47 = vadd.f32 %v9114_v16, %v9113_v44  ;;  %v9116_v1 = vpop.f32.mrb[10].mxu0  ;;  %v9007_v49 = vpop.f32.mrb[236].mxu1 }
 0x42f   : > { %v9117_v30 = vpop.f32.mrb[11].mxu0  ;;  %v9008_v7 = vpop.f32.mrb[237].mxu1 }
 0x430   : > { %v9118_v15 = vadd.f32 %v9117_v30, %v9116_v1  ;;  %v12815_v50 = vadd.f32 %v9115_v47, %v7040_v55  ;;  %v9009_v21 = vadd.f32 %v9008_v7, %v9007_v49  ;;  %v9010_v12 = vpop.f32.mrb[238].mxu1 }
 0x431   : > { %v9011_v54 = vpop.f32.mrb[239].mxu1 }
 0x432   : > { %v12817_v45 = vadd.f32 %v9118_v15, %v7043_v3  ;;  %v7048_v36 = vadd.f32 %v9009_v21, %v12732_v39  ;;  %v9012_v61 = vadd.f32 %v9011_v54, %v9010_v12 }
 0x434   : > { %v9119_v31 = vpop.f32.mrb[12].mxu0  ;;  %v7051_v51 = vadd.f32 %v9012_v61, %v12734_v57 }
 0x435   : > { %v9120_v37 = vpop.f32.mrb[13].mxu0 }
 0x436   : > { %v9121_v53 = vadd.f32 %v9120_v37, %v9119_v31  ;;  %v9122_v0 = vpop.f32.mrb[14].mxu0  ;;  %v9013_v59 = vpop.f32.mrb[240].mxu1 }
 0x437   : > { %v9123_v13 = vpop.f32.mrb[15].mxu0  ;;  %v9014_v60 = vpop.f32.mrb[241].mxu1 }
 0x438   : > { %v9124_v34 = vadd.f32 %v9123_v13, %v9122_v0  ;;  %v12821_v42 = vadd.f32 %v9121_v53, %v7048_v36  ;;  %v9015_v6 = vadd.f32 %v9014_v60, %v9013_v59  ;;  %v9016_v9 = vpop.f32.mrb[242].mxu1 }
 0x439   : > { %v9017_v63 = vpop.f32.mrb[243].mxu1 }
 0x43a   : > { %v12823_v43 = vadd.f32 %v9124_v34, %v7051_v51  ;;  %v7056_v39 = vadd.f32 %v9015_v6, %v12737_v23  ;;  %v9018_v46 = vadd.f32 %v9017_v63, %v9016_v9 }
 0x43c   : > { %v9125_v33 = vpop.f32.mrb[16].mxu0  ;;  %v7059_v57 = vadd.f32 %v9018_v46, %v12739_v38 }
 0x43d   : > { %v9126_v55 = vpop.f32.mrb[17].mxu0 }
 0x43e   : > { %v9127_v41 = vadd.f32 %v9126_v55, %v9125_v33  ;;  %v9128_v44 = vpop.f32.mrb[18].mxu0  ;;  %v9019_v3 = vpop.f32.mrb[244].mxu1 }
 0x43f   : > { %v9129_v16 = vpop.f32.mrb[19].mxu0  ;;  %v9020_v1 = vpop.f32.mrb[245].mxu1 }
 0x440   : > { %v9130_v47 = vadd.f32 %v9129_v16, %v9128_v44  ;;  %v12827_v30 = vadd.f32 %v9127_v41, %v7056_v39  ;;  %v9021_v49 = vadd.f32 %v9020_v1, %v9019_v3  ;;  %v9022_v15 = vpop.f32.mrb[246].mxu1 }
 0x441   : > { %v9023_v7 = vpop.f32.mrb[247].mxu1 }
 0x442   : > { %v12829_v21 = vadd.f32 %v9130_v47, %v7059_v57  ;;  %v7064_v23 = vadd.f32 %v9021_v49, %v12741_v22  ;;  %v9024_v12 = vadd.f32 %v9023_v7, %v9022_v15 }
 0x444   : > { %v9131_v54 = vpop.f32.mrb[20].mxu0  ;;  %v7067_v38 = vadd.f32 %v9024_v12, %v12743_v19 }
 0x445   : > { %v9132_v36 = vpop.f32.mrb[21].mxu0 }
 0x446   : > { %v9133_v61 = vadd.f32 %v9132_v36, %v9131_v54  ;;  %v9134_v31 = vpop.f32.mrb[22].mxu0  ;;  %v9025_v51 = vpop.f32.mrb[248].mxu1 }
 0x447   : > { %v9135_v37 = vpop.f32.mrb[23].mxu0  ;;  %v9026_v0 = vpop.f32.mrb[249].mxu1 }
 0x448   : > { %v9136_v53 = vadd.f32 %v9135_v37, %v9134_v31  ;;  %v12833_v13 = vadd.f32 %v9133_v61, %v7064_v23  ;;  %v9027_v59 = vadd.f32 %v9026_v0, %v9025_v51  ;;  %v9028_v34 = vpop.f32.mrb[250].mxu1  ;;  %v12848_v61 = vld [vmem:[%s13070_s4] ss:$0 sm:$0xff] }
 0x449   : > { %v9029_v60 = vpop.f32.mrb[251].mxu1 }
 0x44a   : > { %v12835_v6 = vadd.f32 %v9136_v53, %v7067_v38  ;;  %v7072_v22 = vadd.f32 %v9027_v59, %v12745_v11  ;;  %v9030_v9 = vadd.f32 %v9029_v60, %v9028_v34  ;;  %v7449_v53 = vld [vmem:[%s9905_s11 + $0x10] sm:$0xff]  ;;  %v7447_v34 = vld [vmem:[%s9905_s11] sm:$0xff] }
 0x44c   : > { %v9137_v63 = vpop.f32.mrb[24].mxu0  ;;  %v7075_v19 = vadd.f32 %v9030_v9, %v12747_v40 }
 0x44d   : > { %v9138_v39 = vpop.f32.mrb[25].mxu0 }
 0x44e   : > { %v9139_v46 = vadd.f32 %v9138_v39, %v9137_v63  ;;  %v9140_v33 = vpop.f32.mrb[26].mxu0  ;;  %v9031_v57 = vpop.f32.mrb[252].mxu1 }
 0x44f   : > { %v9141_v55 = vpop.f32.mrb[27].mxu0  ;;  %v9032_v44 = vpop.f32.mrb[253].mxu1 }
 0x450   : > { %v9142_v41 = vadd.f32 %v9141_v55, %v9140_v33  ;;  %v12839_v16 = vadd.f32 %v9139_v46, %v7072_v22  ;;  %v9033_v3 = vadd.f32 %v9032_v44, %v9031_v57  ;;  %v9034_v47 = vpop.f32.mrb[254].mxu1 }
 0x451   : > { %v9035_v1 = vpop.f32.mrb[255].mxu1 }
 0x452   : > { %v12841_v49 = vadd.f32 %v9142_v41, %v7075_v19  ;;  %v7080_v11 = vadd.f32 %v9033_v3, %v12749_v4  ;;  %v9036_v15 = vadd.f32 %v9035_v1, %v9034_v47 }
 0x454   : > { %v9143_v7 = vpop.f32.mrb[28].mxu0  ;;  %v7083_v40 = vadd.f32 %v9036_v15, %v12751_v10  ;;  %v7453_v15 = vld [vmem:[%s9905_s11 + $0x30] sm:$0xff] }
 0x455   : > { %v9144_v23 = vpop.f32.mrb[29].mxu0 }
 0x456   : > { %v9145_v12 = vadd.f32 %v9144_v23, %v9143_v7  ;;  %v9146_v54 = vpop.f32.mrb[30].mxu0  ;;  %v9239_v38 = vpop.f32.mrb[0].mxu1 }
 0x457   : > { %v9147_v36 = vpop.f32.mrb[31].mxu0  ;;  %v7290_v37 = vadd.f32 %v9239_v38, %v12761_v32  ;;  %v7281_v4 = vpop.f32.mrb[1].mxu1  ;;  %v7450_v32 = vld [vmem:[%s9905_s11 + $0x18] sm:$0xff] }
 0x458   : > { %v9148_v31 = vadd.f32 %v9147_v36, %v9146_v54  ;;  %v12851_v51 = vadd.f32 %v9145_v12, %v7080_v11  ;;  %v7282_v10 = vadd.f32 %v7281_v4, %v12755_v29  ;;  %v9240_v0 = vpop.f32.mrb[2].mxu1  ;;  %v7448_v29 = vld [vmem:[%s9905_s11 + $0x8] sm:$0xff]  ;;  %v7451_v12 = vld [vmem:[%s9905_s11 + $0x20] sm:$0xff]  ;;  %v7454_v38 = vld [vmem:[%s9905_s11 + $0x38] sm:$0xff] }
 0x459   : > { %v7417_v59 = vadd.f32 %v12848_v61, %v7290_v37  ;;  %v7293_v60 = vadd.f32 %v9240_v0, %v12763_v27  ;;  %v7284_v22 = vpop.f32.mrb[3].mxu1  ;;  %v7452_v4 = vld [vmem:[%s9905_s11 + $0x28] sm:$0xff] }
 0x45a   : > { %v12858_v9 = vadd.f32 %v9148_v31, %v7083_v40  ;;  %v7415_v63 = vadd.f32 %v12848_v61, %v7282_v10  ;;  %v7285_v39 = vadd.f32 %v7284_v22, %v12757_v18 }
 0x45b   : > { %v7481_v19 = vadd.f32 %v7449_v53, %v7417_v59  ;;  %v7418_v46 = vadd.f32 %v12848_v61, %v7293_v60 }
 0x45c   : > { %v7479_v33 = vadd.f32 %v7447_v34, %v7415_v63  ;;  %v7416_v27 = vadd.f32 %v12848_v61, %v7285_v39  ;;  %v7457_v39 = vld [vmem:[%s9905_s11 + $0x50] sm:$0xff] }
 0x45d   : > { %v7513_v55 = vmax.f32 %v7481_v19, 0.0  ;;  %v7482_v57 = vadd.f32 %v7450_v32, %v7418_v46 }
 0x45e   : > { %v7511_v41 = vmax.f32 %v7479_v33, 0.0  ;;  %v7480_v44 = vadd.f32 %v7448_v29, %v7416_v27  ;;  %v9243_v3 = vpop.f32.mrb[4].mxu1  ;;  %v7455_v33 = vld [vmem:[%s9905_s11 + $0x40] sm:$0xff] }
 0x45f   : > { %7546 = vst.msk [vmem:[%s9907_s12 + $0x10] sm:$0xff] %vm7543_vm10, %v7513_v55  ;;  %v7514_v18 = vmax.f32 %v7482_v57, 0.0  ;;  %v7306_v47 = vadd.f32 %v9243_v3, %v12773_v52  ;;  %v7297_v1 = vpop.f32.mrb[5].mxu1  ;;  %v7458_v57 = vld [vmem:[%s9905_s11 + $0x58] sm:$0xff]  ;;  %v7456_v3 = vld [vmem:[%s9905_s11 + $0x48] sm:$0xff] }
 0x460   : > { %7544 = vst.msk [vmem:[%s9907_s12] sm:$0xff] %vm7543_vm10, %v7511_v41  ;;  %v7512_v11 = vmax.f32 %v7480_v44, 0.0  ;;  %v7298_v7 = vadd.f32 %v7297_v1, %v12767_v8  ;;  %v9244_v40 = vpop.f32.mrb[6].mxu1 }
 0x461   : > { %7547 = vst.msk [vmem:[%s9907_s12 + $0x18] sm:$0xff] %vm7543_vm10, %v7514_v18  ;;  %v7421_v23 = vadd.f32 %v12848_v61, %v7306_v47  ;;  %v7309_v54 = vadd.f32 %v9244_v40, %v12775_v2  ;;  %v7300_v36 = vpop.f32.mrb[7].mxu1 }
 0x462   : > { %7545 = vst.msk [vmem:[%s9907_s12 + $0x8] sm:$0xff] %vm7543_vm10, %v7512_v11  ;;  %v7419_v52 = vadd.f32 %v12848_v61, %v7298_v7  ;;  %v7301_v31 = vadd.f32 %v7300_v36, %v12769_v28 }
 0x463   : > { %v7485_v37 = vadd.f32 %v7453_v15, %v7421_v23  ;;  %v7422_v8 = vadd.f32 %v12848_v61, %v7309_v54  ;;  %v7461_v54 = vld [vmem:[%s9905_s11 + $0x70] sm:$0xff] }
 0x464   : > { %v7483_v53 = vadd.f32 %v7451_v12, %v7419_v52  ;;  %v7420_v10 = vadd.f32 %v12848_v61, %v7301_v31  ;;  %v7459_v31 = vld [vmem:[%s9905_s11 + $0x60] sm:$0xff] }
 0x465   : > { %v7517_v2 = vmax.f32 %v7485_v37, 0.0  ;;  %v7486_v0 = vadd.f32 %v7454_v38, %v7422_v8 }
 0x466   : > { %v7515_v59 = vmax.f32 %v7483_v53, 0.0  ;;  %v7484_v34 = vadd.f32 %v7452_v4, %v7420_v10  ;;  %v9247_v60 = vpop.f32.mrb[8].mxu1  ;;  %v7462_v4 = vld [vmem:[%s9905_s11 + $0x78] sm:$0xff] }
 0x467   : > { %7550 = vst.msk [vmem:[%s9907_s12 + $0x30] sm:$0xff] %vm7543_vm10, %v7517_v2  ;;  %v7518_v28 = vmax.f32 %v7486_v0, 0.0  ;;  %v7322_v22 = vadd.f32 %v9247_v60, %v12785_v14  ;;  %v7313_v63 = vpop.f32.mrb[9].mxu1  ;;  %v7460_v2 = vld [vmem:[%s9905_s11 + $0x68] sm:$0xff] }
 0x468   : > { %7548 = vst.msk [vmem:[%s9907_s12 + $0x20] sm:$0xff] %vm7543_vm10, %v7515_v59  ;;  %v7516_v32 = vmax.f32 %v7484_v34, 0.0  ;;  %v7314_v19 = vadd.f32 %v7313_v63, %v12779_v20  ;;  %v9248_v46 = vpop.f32.mrb[10].mxu1 }
 0x469   : > { %7551 = vst.msk [vmem:[%s9907_s12 + $0x38] sm:$0xff] %vm7543_vm10, %v7518_v28  ;;  %v7425_v29 = vadd.f32 %v12848_v61, %v7322_v22  ;;  %v7325_v27 = vadd.f32 %v9248_v46, %v12787_v56  ;;  %v7316_v55 = vpop.f32.mrb[11].mxu1 }
 0x46a   : > { %7549 = vst.msk [vmem:[%s9907_s12 + $0x28] sm:$0xff] %vm7543_vm10, %v7516_v32  ;;  %v7423_v14 = vadd.f32 %v12848_v61, %v7314_v19  ;;  %v7317_v41 = vadd.f32 %v7316_v55, %v12781_v25  ;;  %v7465_v19 = vld [vmem:[%s9905_s11 + $0x90] sm:$0xff] }
 0x46b   : > { %v7489_v44 = vadd.f32 %v7457_v39, %v7425_v29  ;;  %v7426_v20 = vadd.f32 %v12848_v61, %v7325_v27  ;;  %v7463_v27 = vld [vmem:[%s9905_s11 + $0x80] sm:$0xff] }
 0x46c   : > { %v7487_v18 = vadd.f32 %v7455_v33, %v7423_v14  ;;  %v7424_v47 = vadd.f32 %v12848_v61, %v7317_v41 }
 0x46d   : > { %v7521_v56 = vmax.f32 %v7489_v44, 0.0  ;;  %v7490_v1 = vadd.f32 %v7458_v57, %v7426_v20  ;;  %v7466_v57 = vld [vmem:[%s9905_s11 + $0x98] sm:$0xff]  ;;  %v7464_v20 = vld [vmem:[%s9905_s11 + $0x88] sm:$0xff] }
 0x46e   : > { %v7519_v11 = vmax.f32 %v7487_v18, 0.0  ;;  %v7488_v15 = vadd.f32 %v7456_v3, %v7424_v47  ;;  %v9251_v7 = vpop.f32.mrb[12].mxu1 }
 0x46f   : > { %7554 = vst.msk [vmem:[%s9907_s12 + $0x50] sm:$0xff] %vm7543_vm10, %v7521_v56  ;;  %v7522_v25 = vmax.f32 %v7490_v1, 0.0  ;;  %v7338_v40 = vadd.f32 %v9251_v7, %v12797_v62  ;;  %v7329_v23 = vpop.f32.mrb[13].mxu1 }
 0x470   : > { %7552 = vst.msk [vmem:[%s9907_s12 + $0x40] sm:$0xff] %vm7543_vm10, %v7519_v11  ;;  %v7520_v12 = vmax.f32 %v7488_v15, 0.0  ;;  %v7330_v36 = vadd.f32 %v7329_v23, %v12791_v17  ;;  %v9252_v52 = vpop.f32.mrb[14].mxu1 }
 0x471   : > { %7555 = vst.msk [vmem:[%s9907_s12 + $0x58] sm:$0xff] %vm7543_vm10, %v7522_v25  ;;  %v7429_v38 = vadd.f32 %v12848_v61, %v7338_v40  ;;  %v7341_v37 = vadd.f32 %v9252_v52, %v12799_v35  ;;  %v7332_v8 = vpop.f32.mrb[15].mxu1  ;;  %v7469_v40 = vld [vmem:[%s9905_s11 + $0xb0] sm:$0xff] }
 0x472   : > { %7553 = vst.msk [vmem:[%s9907_s12 + $0x48] sm:$0xff] %vm7543_vm10, %v7520_v12  ;;  %v7427_v62 = vadd.f32 %v12848_v61, %v7330_v36  ;;  %v7333_v53 = vadd.f32 %v7332_v8, %v12793_v58  ;;  %v7467_v36 = vld [vmem:[%s9905_s11 + $0xa0] sm:$0xff] }
 0x473   : > { %v7493_v10 = vadd.f32 %v7461_v54, %v7429_v38  ;;  %v7430_v17 = vadd.f32 %v12848_v61, %v7341_v37 }
 0x474   : > { %v7491_v0 = vadd.f32 %v7459_v31, %v7427_v62  ;;  %v7428_v59 = vadd.f32 %v12848_v61, %v7333_v53  ;;  %v7470_v31 = vld [vmem:[%s9905_s11 + $0xb8] sm:$0xff]  ;;  %v7468_v62 = vld [vmem:[%s9905_s11 + $0xa8] sm:$0xff] }
 0x475   : > { %v7525_v35 = vmax.f32 %v7493_v10, 0.0  ;;  %v7494_v34 = vadd.f32 %v7462_v4, %v7430_v17 }
 0x476   : > { %v7523_v60 = vmax.f32 %v7491_v0, 0.0  ;;  %v7492_v28 = vadd.f32 %v7460_v2, %v7428_v59  ;;  %v9255_v22 = vpop.f32.mrb[16].mxu1 }
 0x477   : > { %7558 = vst.msk [vmem:[%s9907_s12 + $0x70] sm:$0xff] %vm7543_vm10, %v7525_v35  ;;  %v7526_v58 = vmax.f32 %v7494_v34, 0.0  ;;  %v7354_v63 = vadd.f32 %v9255_v22, %v12809_v48  ;;  %v7345_v32 = vpop.f32.mrb[17].mxu1 }
 0x478   : > { %7556 = vst.msk [vmem:[%s9907_s12 + $0x60] sm:$0xff] %vm7543_vm10, %v7523_v60  ;;  %v7524_v39 = vmax.f32 %v7492_v28, 0.0  ;;  %v7346_v46 = vadd.f32 %v7345_v32, %v12803_v24  ;;  %v9256_v29 = vpop.f32.mrb[18].mxu1  ;;  %v7473_v60 = vld [vmem:[%s9905_s11 + $0xd0] sm:$0xff] }
 0x479   : > { %7559 = vst.msk [vmem:[%s9907_s12 + $0x78] sm:$0xff] %vm7543_vm10, %v7526_v58  ;;  %v7433_v33 = vadd.f32 %v12848_v61, %v7354_v63  ;;  %v7357_v55 = vadd.f32 %v9256_v29, %v12811_v5  ;;  %v7348_v14 = vpop.f32.mrb[19].mxu1  ;;  %v7471_v63 = vld [vmem:[%s9905_s11 + $0xc0] sm:$0xff] }
 0x47a   : > { %7557 = vst.msk [vmem:[%s9907_s12 + $0x68] sm:$0xff] %vm7543_vm10, %v7524_v39  ;;  %v7431_v48 = vadd.f32 %v12848_v61, %v7346_v46  ;;  %v7349_v41 = vadd.f32 %v7348_v14, %v12805_v26 }
 0x47b   : > { %v7497_v44 = vadd.f32 %v7465_v19, %v7433_v33  ;;  %v7434_v24 = vadd.f32 %v12848_v61, %v7357_v55  ;;  %v7474_v19 = vld [vmem:[%s9905_s11 + $0xd8] sm:$0xff]  ;;  %v7472_v33 = vld [vmem:[%s9905_s11 + $0xc8] sm:$0xff] }
 0x47c   : > { %v7495_v3 = vadd.f32 %v7463_v27, %v7431_v48  ;;  %v7432_v18 = vadd.f32 %v12848_v61, %v7349_v41 }
 0x47d   : > { %v7529_v5 = vmax.f32 %v7497_v44, 0.0  ;;  %v7498_v47 = vadd.f32 %v7466_v57, %v7434_v24 }
 0x47e   : > { %v7527_v56 = vmax.f32 %v7495_v3, 0.0  ;;  %v7496_v1 = vadd.f32 %v7464_v20, %v7432_v18  ;;  %v9259_v11 = vpop.f32.mrb[20].mxu1  ;;  %v7477_v3 = vld [vmem:[%s9905_s11 + $0xf0] sm:$0xff] }
 0x47f   : > { %7562 = vst.msk [vmem:[%s9907_s12 + $0x90] sm:$0xff] %vm7543_vm10, %v7529_v5  ;;  %v7530_v26 = vmax.f32 %v7498_v47, 0.0  ;;  %v7370_v15 = vadd.f32 %v9259_v11, %v12821_v42  ;;  %v7361_v7 = vpop.f32.mrb[21].mxu1 }
 0x480   : > { %7560 = vst.msk [vmem:[%s9907_s12 + $0x80] sm:$0xff] %vm7543_vm10, %v7527_v56  ;;  %v7528_v25 = vmax.f32 %v7496_v1, 0.0  ;;  %v7362_v23 = vadd.f32 %v7361_v7, %v12815_v50  ;;  %v9260_v12 = vpop.f32.mrb[22].mxu1  ;;  %v7475_v56 = vld [vmem:[%s9905_s11 + $0xe0] sm:$0xff] }
 0x481   : > { %7563 = vst.msk [vmem:[%s9907_s12 + $0x98] sm:$0xff] %vm7543_vm10, %v7530_v26  ;;  %v7437_v54 = vadd.f32 %v12848_v61, %v7370_v15  ;;  %v7373_v52 = vadd.f32 %v9260_v12, %v12823_v43  ;;  %v7364_v38 = vpop.f32.mrb[23].mxu1  ;;  %v7478_v26 = vld [vmem:[%s9905_s11 + $0xf8] sm:$0xff] }
 0x482   : > { %7561 = vst.msk [vmem:[%s9907_s12 + $0x88] sm:$0xff] %vm7543_vm10, %v7528_v25  ;;  %v7435_v42 = vadd.f32 %v12848_v61, %v7362_v23  ;;  %v7365_v37 = vadd.f32 %v7364_v38, %v12817_v45  ;;  %v7476_v25 = vld [vmem:[%s9905_s11 + $0xe8] sm:$0xff]  ;;  %s9751_s11 = scalar_lea.vmem %s13015_s26, 4096 }
 0x483   : > { %v7501_v8 = vadd.f32 %v7469_v40, %v7437_v54  ;;  %v7438_v50 = vadd.f32 %v12848_v61, %v7373_v52  ;;  %p9752_p12 = scmp.ne.s32.totalorder %s13015_s26, %s9751_s11  ;;  %p9759_p2 = scmp.lt.s32.totalorder %s9757_s13, %s9751_s11 }
 0x484   : > { %v7499_v4 = vadd.f32 %v7467_v36, %v7435_v42  ;;  %v7436_v53 = vadd.f32 %v12848_v61, %v7365_v37 }
 0x485   : > { %v7533_v43 = vmax.f32 %v7501_v8, 0.0  ;;  %v7502_v10 = vadd.f32 %v7470_v31, %v7438_v50  ;;  %p9753_p13 = pnand %p9752_p12, %p9887_p5  ;;  %p9760_p3 = por %p9759_p2, %p9758_p1 }
 0x486   : > { %v7531_v17 = vmax.f32 %v7499_v4, 0.0  ;;  %v7500_v2 = vadd.f32 %v7468_v62, %v7436_v53  ;;  %v9263_v0 = vpop.f32.mrb[24].mxu1 }
 0x487   : > { %7566 = vst.msk [vmem:[%s9907_s12 + $0xb0] sm:$0xff] %vm7543_vm10, %v7533_v43  ;;  %v7534_v45 = vmax.f32 %v7502_v10, 0.0  ;;  %v7386_v59 = vadd.f32 %v9263_v0, %v12833_v13  ;;  %v7377_v35 = vpop.f32.mrb[25].mxu1  ;;  %p9754_p0 = pneg %p9753_p13 }
 0x488   : > { %7564 = vst.msk [vmem:[%s9907_s12 + $0xa0] sm:$0xff] %vm7543_vm10, %v7531_v17  ;;  %v7532_v34 = vmax.f32 %v7500_v2, 0.0  ;;  %v7378_v28 = vadd.f32 %v7377_v35, %v12827_v30  ;;  %v9264_v22 = vpop.f32.mrb[26].mxu1 }
 0x489   : > { %7567 = vst.msk [vmem:[%s9907_s12 + $0xb8] sm:$0xff] %vm7543_vm10, %v7534_v45  ;;  %v7441_v58 = vadd.f32 %v12848_v61, %v7386_v59  ;;  %v7389_v32 = vadd.f32 %v9264_v22, %v12835_v6  ;;  %v7380_v39 = vpop.f32.mrb[27].mxu1  ;;  %p9761_p4 = pnand %p9760_p3, %p9754_p0 }
 0x48a   : > { %7565 = vst.msk [vmem:[%s9907_s12 + $0xa8] sm:$0xff] %vm7543_vm10, %v7532_v34  ;;  %v7439_v13 = vadd.f32 %v12848_v61, %v7378_v28  ;;  %v7381_v46 = vadd.f32 %v7380_v39, %v12829_v21 }
 0x48b   : > { %v7505_v29 = vadd.f32 %v7473_v60, %v7441_v58  ;;  %v7442_v30 = vadd.f32 %v12848_v61, %v7389_v32 }
 0x48c   : > { %v7503_v27 = vadd.f32 %v7471_v63, %v7439_v13  ;;  %v7440_v55 = vadd.f32 %v12848_v61, %v7381_v46 }
 0x48d   : > { %v7537_v6 = vmax.f32 %v7505_v29, 0.0  ;;  %v7506_v14 = vadd.f32 %v7474_v19, %v7442_v30 }
 0x48e   : > { %v7535_v48 = vmax.f32 %v7503_v27, 0.0  ;;  %v7504_v57 = vadd.f32 %v7472_v33, %v7440_v55  ;;  %v9267_v41 = vpop.f32.mrb[28].mxu1 }
 0x48f   : > { %7570 = vst.msk [vmem:[%s9907_s12 + $0xd0] sm:$0xff] %vm7543_vm10, %v7537_v6  ;;  %v7538_v21 = vmax.f32 %v7506_v14, 0.0  ;;  %v7402_v44 = vadd.f32 %v9267_v41, %v12851_v51  ;;  %v7393_v24 = vpop.f32.mrb[29].mxu1 }
 0x490   : > { %7568 = vst.msk [vmem:[%s9907_s12 + $0xc0] sm:$0xff] %vm7543_vm10, %v7535_v48  ;;  %v7536_v20 = vmax.f32 %v7504_v57, 0.0  ;;  %v7394_v18 = vadd.f32 %v7393_v24, %v12839_v16  ;;  %v9268_v5 = vpop.f32.mrb[30].mxu1 }
 0x491   : > { %7571 = vst.msk [vmem:[%s9907_s12 + $0xd8] sm:$0xff] %vm7543_vm10, %v7538_v21  ;;  %v7445_v47 = vadd.f32 %v12848_v61, %v7402_v44  ;;  %v7405_v1 = vadd.f32 %v9268_v5, %v12858_v9  ;;  %v7396_v11 = vpop.f32.mrb[31].mxu1 }
 0x492   : > { %7569 = vst.msk [vmem:[%s9907_s12 + $0xc8] sm:$0xff] %vm7543_vm10, %v7536_v20  ;;  %v7443_v51 = vadd.f32 %v12848_v61, %v7394_v18  ;;  %v7397_v15 = vadd.f32 %v7396_v11, %v12841_v49 }
 0x493   : > { %v7509_v16 = vadd.f32 %v7477_v3, %v7445_v47  ;;  %v7446_v7 = vadd.f32 %v12848_v61, %v7405_v1 }
 0x494   : > { %v7507_v40 = vadd.f32 %v7475_v56, %v7443_v51  ;;  %v7444_v9 = vadd.f32 %v12848_v61, %v7397_v15 }
 0x495   : > { %v7541_v23 = vmax.f32 %v7509_v16, 0.0  ;;  %v7510_v12 = vadd.f32 %v7478_v26, %v7446_v7 }
 0x496   : > { %v7539_v54 = vmax.f32 %v7507_v40, 0.0  ;;  %v7508_v36 = vadd.f32 %v7476_v25, %v7444_v9 }
 0x497   : > { %7574 = vst.msk [vmem:[%s9907_s12 + $0xf0] sm:$0xff] %vm7543_vm10, %v7541_v23  ;;  %v7542_v49 = vmax.f32 %v7510_v12, 0.0 }
 0x498   : > { %7572 = vst.msk [vmem:[%s9907_s12 + $0xe0] sm:$0xff] %vm7543_vm10, %v7539_v54  ;;  %v7540_v61 = vmax.f32 %v7508_v36, 0.0 }
 0x499   : > { %7575 = vst.msk [vmem:[%s9907_s12 + $0xf8] sm:$0xff] %vm7543_vm10, %v7542_v49 }
 0x49a   : > { %7573 = vst.msk [vmem:[%s9907_s12 + $0xe8] sm:$0xff] %vm7543_vm10, %v7540_v61 }
 0x49b   : > { %9764 = shalt.err (!%p9761_p4)
}
 0x49c   : > { %s9765_s30 = scalar_lea.hbm %s13013_s8, 4096  ;;  %s9769_s15 = scalar_lea.hbm %s13071_s5, 8192 }
 0x49d   : > { %p9766_p7 = scmp.ne.s32.totalorder %s13013_s8, %s9765_s30  ;;  %p9770_p10 = scmp.lt.u32.totalorder %s13013_s8, %s13071_s5 }
 0x49e   : > { %p9771_p11 = scmp.lt.u32.totalorder %s9769_s15, %s9765_s30  ;;  %p9773_p13 = scmp.lt.u32.totalorder %s9765_s30, %s13013_s8 }
 0x49f   : > { %p9767_p8 = pnand %p9766_p7, %p9887_p5 }
 0x4a0   : > { %p9772_p12 = por %p9771_p11, %p9770_p10 }
 0x4a1   : > { %p9768_p9 = pneg %p9767_p8 }
 0x4a2   : > { %p9774_p0 = por %p9773_p13, %p9772_p12 }
 0x4a4   : > { %p9775_p1 = pnand %p9774_p0, %p9768_p9 }
 0x4a6   : > { %9778 = shalt.err (!%p9775_p1)
}
 0x4a7   : > { %s9817_s23 = smov 128   ;;  %s9818_s25 = smov 8  }
 0x4a8   : > { %9269 = dma.vmem_to_hbm [thread:$0]  (%p9887_p5), %s13015_s26, 4096, %s13013_s8, %s13025_s22, %s9817_s23, %s9817_s23, %s9818_s25  }
 0x4a9 PF: > { %p9275_p2 = scmp.ge.s32.totalorder %s9813_s21, 2  ;;  %s7605_s6 = sand.u32 1, %s9801_s18  }
 0x4aa   : > { %s7606_s7 = scalar_lea.sflag [#allocation5], %s7605_s6 }
 0x4ab   : > { %p9272_p3 = pnand %p9275_p2, %p9891_p6 }
 0x4ad   : > { %9796 = dma.done.wait (!%p9272_p3), %s7606_s7, 4096  }
 0x4ae   : > { %9798 = vsyncadd (!%p9272_p3), %s7606_s7, 4294963200  ;;  %p15_p4 = scmp.ge.s32.totalorder %s9874_s24, 4   ;;  %s13280_s18 = smov %s9805_s19 }
 0x4af   : > { %s13281_s19 = smov %s9809_s20  ;;  %s13282_s20 = smov %s9885_s27 }
 0x4b0   : > { %s13283_s21 = smov %s9874_s24  ;;  %17 = sbr.rel (!%p15_p4) target bundleno = 3 (0x3), region = 83 }
 0x4b7   :  { %7611 = vsyncpa [#allocation5], 1 }
 0x4b8   :  { %7613 = vsyncpa [#allocation5 + $0x1], 1 }

</bundles_post_ra>
